<compile_context>
chip_gen: v7x
topology: tpu7x:2x2x1
jax: 0.10.0
libtpu: 0.0.40
codegen_flags: <defaults>
</compile_context>

<pallas_src>
import functools

import jax
import jax.numpy as jnp
from jax.experimental import pallas as pl
from jax.experimental.pallas import tpu as pltpu

BN_EPS = 1e-5
LANE = 128


def _round_up(v, m):
    return ((v + m - 1) // m) * m


def _vmem_limit():
    # Half the physical per-core VMEM: ~32 MiB on v7x, ~64 MiB on v5e/v6e.
    try:
        cap = int(pltpu.get_tpu_info().vmem_capacity_bytes)
    except Exception:
        cap = 64 * 1024 * 1024
    return max(32 * 1024 * 1024, min(cap // 2, 100 * 1024 * 1024))


# ----------------------------- Pallas kernels -----------------------------

def _conv3x3x3_kernel(x_ref, w_ref, scale_ref, shift_ref, y_ref, stats_ref,
                      zin_ref, pbuf_ref, *, apply_affine, pre_relu):
    # x_ref    : (D, H, W, Ci)     whole per-batch volume (resident per batch)
    # w_ref    : (27*Ci, Co) bf16  K-folded conv weights (resident)
    # scale/shift_ref : (1, Ci)    affine applied to the *input* (BN1 for conv2)
    # y_ref    : (H, W, Co)  bf16  raw conv output for grid point (n, d)
    # stats_ref: (2, Co)     f32   per-batch [sum, sum_sq], accumulated over d
    # zin_ref  : (3, H+2, Wp, Ci) bf16  halo slab (zero border = spatial pad)
    # pbuf_ref : (H*W, 27*Ci)     bf16  K-folded patch matrix (matmul LHS)
    D = x_ref.shape[0]
    H, W, Co = y_ref.shape
    Ci = x_ref.shape[-1]
    HW = H * W
    d = pl.program_id(1)

    # Zero the halo slab + stats accumulator once per batch.  Only the 1-wide
    # border of the slab ever needs zeros; the interior is fully overwritten
    # every step.  d is "arbitrary", so (n, 0) always runs before (n, d>0) on
    # the core that owns batch n.
    @pl.when(d == 0)
    def _():
        zin_ref[...] = jnp.zeros_like(zin_ref)
        stats_ref[...] = jnp.zeros_like(stats_ref)

    # Stage the 3 depth slices needed for output depth d, applying the
    # previous layer's BN affine (+ ReLU) on the fly so the normalized
    # activation never round-trips HBM.
    for kd in range(3):
        dd = d + kd - 1
        valid = jnp.logical_and(dd >= 0, dd <= D - 1)
        dd_c = jnp.clip(dd, 0, D - 1)
        xs = x_ref[dd_c].astype(jnp.float32)                  # (H, W, Ci)
        if apply_affine:
            xs = xs * scale_ref[...] + shift_ref[...]
        if pre_relu:
            xs = jnp.maximum(xs, 0.0)
        xs = jnp.where(valid, xs, 0.0)                        # depth zero pad
        zin_ref[kd, 1:H + 1, 1:W + 1, :] = xs.astype(zin_ref.dtype)

    # Assemble the K-folded patch matrix: for each output pixel the 27 shifted
    # Ci-vectors are contiguous along the contraction dim, so the whole
    # 3x3x3 conv is a single fat MXU matmul (K = 27*Ci) instead of 27 thin
    # ones.  Taps are packed in groups of 128 lanes so stores stay aligned.
    group = (LANE // Ci) if (Ci <= LANE and LANE % Ci == 0) else 1
    for t0 in range(0, 27, group):
        parts = []
        for t in range(t0, min(t0 + group, 27)):
            kd, r = divmod(t, 9)
            kh, kw = divmod(r, 3)
            win = zin_ref[kd, kh:kh + H, kw:kw + W, :]        # (H, W, Ci)
            parts.append(win.reshape(HW, Ci))
        blk = parts[0] if len(parts) == 1 else jnp.concatenate(parts, axis=-1)
        pbuf_ref[:, t0 * Ci:t0 * Ci + len(parts) * Ci] = blk

    acc = jnp.dot(pbuf_ref[...], w_ref[...],
                  preferred_element_type=jnp.float32)         # (HW, Co) f32

    y_ref[...] = acc.reshape(H, W, Co).astype(y_ref.dtype)

    # Partial BatchNorm statistics, accumulated across depth in the resident
    # output block (written back to HBM only once per batch).
    part = jnp.concatenate(
        [jnp.sum(acc, axis=0, keepdims=True),
         jnp.sum(acc * acc, axis=0, keepdims=True)], axis=0)  # (2, Co)
    stats_ref[...] += part


def _bn_add_relu_kernel(y_ref, r_ref, scale_ref, shift_ref, o_ref):
    # Fused BN2 (as affine) + residual add + ReLU over a lane-dense row tile.
    y = y_ref[...].astype(jnp.float32)
    res = r_ref[...].astype(jnp.float32)
    o_ref[...] = jnp.maximum(y * scale_ref[...] + shift_ref[...] + res,
                             0.0).astype(o_ref.dtype)


# ---------------------------- pallas_call wrappers --------------------------

def _conv_bn_stats(x, w_k, scale, shift, *, apply_affine, pre_relu):
    """x: (N, D, H, W, Ci), w_k: (27*Ci, Co) bf16, scale/shift: (1, Ci) f32."""
    N, D, H, W, Ci = x.shape
    K, Co = w_k.shape
    Wp = _round_up(W + 2, 8)
    kernel = functools.partial(_conv3x3x3_kernel,
                               apply_affine=apply_affine, pre_relu=pre_relu)
    y, stats = pl.pallas_call(
        kernel,
        grid=(N, D),
        in_specs=[
            # Per-batch volume: index_map ignores d -> DMA'd once per batch.
            pl.BlockSpec((None, D, H, W, Ci), lambda n, d: (n, 0, 0, 0, 0)),
            # Weights + BN affine: constant index_map -> VMEM-resident.
            pl.BlockSpec((K, Co), lambda n, d: (0, 0)),
            pl.BlockSpec((1, Ci), lambda n, d: (0, 0)),
            pl.BlockSpec((1, Ci), lambda n, d: (0, 0)),
        ],
        out_specs=(
            pl.BlockSpec((None, None, H, W, Co), lambda n, d: (n, d, 0, 0, 0)),
            # Stats block is constant in d -> stays resident (accumulator).
            pl.BlockSpec((None, 2, Co), lambda n, d: (n, 0, 0)),
        ),
        out_shape=(
            jax.ShapeDtypeStruct((N, D, H, W, Co), jnp.bfloat16),
            jax.ShapeDtypeStruct((N, 2, Co), jnp.float32),
        ),
        scratch_shapes=[
            pltpu.VMEM((3, H + 2, Wp, Ci), jnp.bfloat16),
            pltpu.VMEM((H * W, K), jnp.bfloat16),
        ],
        compiler_params=pltpu.CompilerParams(
            dimension_semantics=("parallel", "arbitrary"),
            vmem_limit_bytes=_vmem_limit()),
    )(x, w_k, scale, shift)
    return y, stats


def _pick_row_tile(r, c):
    budget = 2 * 1024 * 1024  # ~2 MiB per f32 buffer per tile
    for t in (4096, 2048, 1024, 512, 256, 128, 64, 32, 16, 8):
        if r % t == 0 and t * c * 4 <= budget:
            return t
    return r


def _bn_add_relu(y2d, res2d, scale_row, shift_row):
    R, C = y2d.shape
    tr = _pick_row_tile(R, C)
    return pl.pallas_call(
        _bn_add_relu_kernel,
        grid=(R // tr,),
        in_specs=[
            pl.BlockSpec((tr, C), lambda i: (i, 0)),
            pl.BlockSpec((tr, C), lambda i: (i, 0)),
            pl.BlockSpec((1, C), lambda i: (0, 0)),
            pl.BlockSpec((1, C), lambda i: (0, 0)),
        ],
        out_specs=pl.BlockSpec((tr, C), lambda i: (i, 0)),
        out_shape=jax.ShapeDtypeStruct((R, C), jnp.float32),
        compiler_params=pltpu.CompilerParams(
            dimension_semantics=("parallel",),
            vmem_limit_bytes=_vmem_limit()),
    )(y2d, res2d, scale_row, shift_row)


# ------------------------------- JAX glue ----------------------------------

def _prep_conv_weight(w):
    # (Co, Ci, kd, kh, kw) -> (27*Ci, Co) bf16 with tap-major ordering that
    # matches the in-kernel patch assembly (kd, kh, kw, ci).
    co, ci = w.shape[:2]
    wt = jnp.transpose(w, (2, 3, 4, 1, 0)).reshape(27 * ci, co)
    return wt.astype(jnp.bfloat16)


def _bn_affine_from_stats(stats, gamma, beta, count):
    # Finalize training-mode BatchNorm from per-batch partial sums (tiny).
    # NOTE: E[x^2]-E[x]^2 in f32; fine at these scales (see review note).
    s = stats[:, 0, :].sum(axis=0)
    ss = stats[:, 1, :].sum(axis=0)
    mean = s / count
    var = jnp.maximum(ss / count - mean * mean, 0.0)   # biased variance
    scale = gamma.astype(jnp.float32) * jax.lax.rsqrt(var + BN_EPS)
    shift = beta.astype(jnp.float32) - mean * scale
    c = scale.shape[0]
    return scale.reshape(1, c), shift.reshape(1, c)


@functools.partial(jax.jit, static_argnames=("stride",))
def basic_block_forward(x_ncdhw, params, stride=1):
    if stride != 1:
        # TODO(synk): stride>1 requires the downsample branch; not instantiated
        # here (module receives downsample=None).
        raise NotImplementedError("BasicBlock with downsample=None requires stride=1")
    N, Cin, D, H, W = x_ncdhw.shape
    planes = params["conv1_w"].shape[0]
    if Cin != planes or params["conv1_w"].shape[1] != Cin:
        raise ValueError("identity residual (downsample=None) needs inplanes == planes")

    # NDHWC, channels kept at their natural width (no HBM zero padding).
    x = jnp.transpose(x_ncdhw, (0, 2, 3, 4, 1)).astype(jnp.float32)

    w1 = _prep_conv_weight(params["conv1_w"])
    w2 = _prep_conv_weight(params["conv2_w"])
    ones = jnp.ones((1, Cin), jnp.float32)
    zeros = jnp.zeros((1, Cin), jnp.float32)
    count = jnp.float32(N * D * H * W)

    # conv1 + partial BN1 stats (BN1 itself is applied in the next kernel).
    y1, st1 = _conv_bn_stats(x, w1, ones, zeros,
                             apply_affine=False, pre_relu=False)
    scale1, shift1 = _bn_affine_from_stats(st1, params["bn1_g"], params["bn1_b"], count)

    # BN1 + ReLU fused into conv2's input staging; conv2 + partial BN2 stats.
    y2, st2 = _conv_bn_stats(y1, w2, scale1, shift1,
                             apply_affine=True, pre_relu=True)
    scale2, shift2 = _bn_affine_from_stats(st2, params["bn2_g"], params["bn2_b"], count)

    # BN2 + residual + ReLU.  Fold W into the lane dim (W*C wide rows) so the
    # elementwise tile stays lane-dense even with C = 32.
    R2 = N * D * H
    WC = W * planes
    y2_2d = y2.reshape(R2, WC)
    res_2d = x.reshape(R2, WC)
    scale_row = jnp.tile(scale2.reshape(-1), (W,)).reshape(1, WC)
    shift_row = jnp.tile(shift2.reshape(-1), (W,)).reshape(1, WC)
    out2d = _bn_add_relu(y2_2d, res_2d, scale_row, shift_row)

    out = out2d.reshape(N, D, H, W, planes)
    return jnp.transpose(out, (0, 4, 1, 2, 3))   # back to NCDHW


# --------------------------- Pure-JAX reference -----------------------------

def _ref_basic_block(x, params, stride=1):
    def conv(a, w, s=1, p=1):
        return jax.lax.conv_general_dilated(
            a, w, window_strides=(s, s, s), padding=[(p, p)] * 3,
            dimension_numbers=("NCDHW", "OIDHW", "NCDHW"),
            precision=jax.lax.Precision.HIGHEST)

    def bn(a, g, b):
        mean = a.mean(axis=(0, 2, 3, 4), keepdims=True)
        var = ((a - mean) ** 2).mean(axis=(0, 2, 3, 4), keepdims=True)
        return ((a - mean) * jax.lax.rsqrt(var + BN_EPS)
                * g.reshape(1, -1, 1, 1, 1) + b.reshape(1, -1, 1, 1, 1))

    residual = x
    out = jnp.maximum(bn(conv(x, params["conv1_w"], s=stride),
                         params["bn1_g"], params["bn1_b"]), 0.0)
    out = bn(conv(out, params["conv2_w"]), params["bn2_g"], params["bn2_b"])
    return jnp.maximum(out + residual, 0.0)


# --------------------------------- main -------------------------------------

if __name__ == "__main__":
    # BasicBlock (expansion=1): inplanes == planes, stride=1, downsample=None.
    planes = 32
    inplanes = planes
    N, D, H, W = 2, 4, 8, 8
    stride = 1

    key = jax.random.PRNGKey(0)
    ks = jax.random.split(key, 7)
    params = {
        "conv1_w": 0.1 * jax.random.normal(ks[0], (planes, inplanes, 3, 3, 3), jnp.float32),
        "conv2_w": 0.1 * jax.random.normal(ks[1], (planes, planes, 3, 3, 3), jnp.float32),
        "bn1_g": 1.0 + 0.1 * jax.random.normal(ks[2], (planes,), jnp.float32),
        "bn1_b": 0.1 * jax.random.normal(ks[3], (planes,), jnp.float32),
        "bn2_g": 1.0 + 0.1 * jax.random.normal(ks[4], (planes,), jnp.float32),
        "bn2_b": 0.1 * jax.random.normal(ks[5], (planes,), jnp.float32),
    }
    x = jax.random.normal(ks[6], (N, inplanes, D, H, W), jnp.float32)

    out = jax.block_until_ready(basic_block_forward(x, params, stride=stride))
    ref = jax.block_until_ready(_ref_basic_block(x, params, stride=stride))

    assert out.shape == ref.shape == (N, planes, D, H, W), (out.shape, ref.shape)
    max_err = float(jnp.max(jnp.abs(out - ref)))
    mean_err = float(jnp.mean(jnp.abs(out - ref)))
    # bf16 MXU operands + bf16 HBM intermediates vs an f32 HIGHEST reference.
    assert max_err < 7.5e-2 and mean_err < 1e-2, (max_err, mean_err)

    print("KERNEL_OK")
</pallas_src>

<mosaic_0001>
module attributes {stable_mosaic.version = 11 : i64} {
  func.func @_conv3x3x3_kernel(%arg0: i32, %arg1: i32, %arg2: memref<1x4x8x8x32xf32, #tpu.memory_space<vmem>>, %arg3: memref<864x32xbf16, #tpu.memory_space<vmem>>, %arg4: memref<1x32xf32, #tpu.memory_space<vmem>>, %arg5: memref<1x32xf32, #tpu.memory_space<vmem>>, %arg6: memref<1x1x8x8x32xbf16, #tpu.memory_space<vmem>>, %arg7: memref<1x2x32xf32, #tpu.memory_space<vmem>>, %arg8: memref<3x10x16x32xbf16, #tpu.memory_space<vmem>>, %arg9: memref<64x864xbf16, #tpu.memory_space<vmem>>) attributes {dimension_semantics = [#tpu.dimension_semantics<parallel>, #tpu.dimension_semantics<arbitrary>], iteration_bounds = array<i64: 2, 4>, scalar_prefetch = 0 : i64, scratch_operands = 2 : i64, tpu.core_type = #tpu.core_type<tc>, window_params = [{transform_indices = @transform_0, window_bounds = array<i64: 1, 4, 8, 8, 32>}, {pipeline_mode = #tpu.pipeline_mode<synchronous>, transform_indices = @transform_1, window_bounds = array<i64: 864, 32>}, {pipeline_mode = #tpu.pipeline_mode<synchronous>, transform_indices = @transform_2, window_bounds = array<i64: 1, 32>}, {pipeline_mode = #tpu.pipeline_mode<synchronous>, transform_indices = @transform_3, window_bounds = array<i64: 1, 32>}, {transform_indices = @transform_4, window_bounds = array<i64: 1, 1, 8, 8, 32>}, {transform_indices = @transform_5, window_bounds = array<i64: 1, 2, 32>}]} {
    %c0_i32 = arith.constant 0 : i32
    %0 = arith.cmpi eq, %arg1, %c0_i32 : i32
    %1 = arith.extui %0 : i1 to i32
    %c0_i32_0 = arith.constant 0 : i32
    %2 = arith.cmpi ne, %1, %c0_i32_0 : i32
    scf.if %2 {
      %cst_173 = arith.constant 0.000000e+00 : bf16
      %166 = vector.broadcast %cst_173 : bf16 to vector<3x10x16x32xbf16>
      %c0_174 = arith.constant 0 : index
      %c0_175 = arith.constant 0 : index
      %c0_176 = arith.constant 0 : index
      %c0_177 = arith.constant 0 : index
      %167 = vector.load %arg8[%c0_174, %c0_175, %c0_176, %c0_177] : memref<3x10x16x32xbf16, #tpu.memory_space<vmem>>, vector<3x10x16x32xbf16>
      tpu.vector_store %arg8[%c0_174, %c0_175, %c0_176, %c0_177], %166 {strides = array<i32>} : memref<3x10x16x32xbf16, #tpu.memory_space<vmem>>, vector<3x10x16x32xbf16>,
      %cst_178 = arith.constant 0.000000e+00 : f32
      %168 = vector.broadcast %cst_178 : f32 to vector<2x32xf32>
      %c0_179 = arith.constant 0 : index
      %c0_180 = arith.constant 0 : index
      %c0_181 = arith.constant 0 : index
      %169 = vector.load %arg7[%c0_179, %c0_180, %c0_181] : memref<1x2x32xf32, #tpu.memory_space<vmem>>, vector<1x2x32xf32>
      %170 = vector.shape_cast %169 : vector<1x2x32xf32> to vector<2x32xf32>
      %171 = vector.shape_cast %168 : vector<2x32xf32> to vector<1x2x32xf32>
      tpu.vector_store %arg7[%c0_179, %c0_180, %c0_181], %171 {strides = array<i32>} : memref<1x2x32xf32, #tpu.memory_space<vmem>>, vector<1x2x32xf32>,
    } else {
    }
    %c0_i32_1 = arith.constant 0 : i32
    %3 = arith.addi %arg1, %c0_i32_1 : i32
    %c1_i32 = arith.constant 1 : i32
    %4 = arith.subi %3, %c1_i32 : i32
    %c0_i32_2 = arith.constant 0 : i32
    %5 = arith.cmpi sge, %4, %c0_i32_2 : i32
    %c3_i32 = arith.constant 3 : i32
    %6 = arith.cmpi sle, %4, %c3_i32 : i32
    %7 = arith.andi %5, %6 : i1
    %c0_i32_3 = arith.constant 0 : i32
    %c3_i32_4 = arith.constant 3 : i32
    %8 = arith.maxsi %c0_i32_3, %4 : i32
    %9 = arith.minsi %c3_i32_4, %8 : i32
    %c0 = arith.constant 0 : index
    %10 = arith.index_cast %9 : i32 to index
    %c0_5 = arith.constant 0 : index
    %c0_6 = arith.constant 0 : index
    %c0_7 = arith.constant 0 : index
    %11 = vector.load %arg2[%c0, %10, %c0_5, %c0_6, %c0_7] : memref<1x4x8x8x32xf32, #tpu.memory_space<vmem>>, vector<1x1x8x8x32xf32>
    %12 = vector.shape_cast %11 : vector<1x1x8x8x32xf32> to vector<8x8x32xf32>
    %cst = arith.constant 0.000000e+00 : f32
    %13 = vector.broadcast %cst : f32 to vector<8x8x32xf32>
    %14 = arith.select %7, %12, %13 : vector<8x8x32xf32>
    %15 = arith.truncf %14 : vector<8x8x32xf32> to vector<8x8x32xbf16>
    %c0_8 = arith.constant 0 : index
    %c1 = arith.constant 1 : index
    %c1_9 = arith.constant 1 : index
    %c0_10 = arith.constant 0 : index
    %16 = vector.load %arg8[%c0_8, %c1, %c1_9, %c0_10] : memref<3x10x16x32xbf16, #tpu.memory_space<vmem>>, vector<1x8x8x32xbf16>
    %17 = vector.shape_cast %16 : vector<1x8x8x32xbf16> to vector<8x8x32xbf16>
    %18 = vector.shape_cast %15 : vector<8x8x32xbf16> to vector<1x8x8x32xbf16>
    tpu.vector_store %arg8[%c0_8, %c1, %c1_9, %c0_10], %18 {strides = array<i32>} : memref<3x10x16x32xbf16, #tpu.memory_space<vmem>>, vector<1x8x8x32xbf16>,
    %c1_i32_11 = arith.constant 1 : i32
    %19 = arith.addi %arg1, %c1_i32_11 : i32
    %c1_i32_12 = arith.constant 1 : i32
    %20 = arith.subi %19, %c1_i32_12 : i32
    %c0_i32_13 = arith.constant 0 : i32
    %21 = arith.cmpi sge, %20, %c0_i32_13 : i32
    %c3_i32_14 = arith.constant 3 : i32
    %22 = arith.cmpi sle, %20, %c3_i32_14 : i32
    %23 = arith.andi %21, %22 : i1
    %c0_i32_15 = arith.constant 0 : i32
    %c3_i32_16 = arith.constant 3 : i32
    %24 = arith.maxsi %c0_i32_15, %20 : i32
    %25 = arith.minsi %c3_i32_16, %24 : i32
    %c0_17 = arith.constant 0 : index
    %26 = arith.index_cast %25 : i32 to index
    %c0_18 = arith.constant 0 : index
    %c0_19 = arith.constant 0 : index
    %c0_20 = arith.constant 0 : index
    %27 = vector.load %arg2[%c0_17, %26, %c0_18, %c0_19, %c0_20] : memref<1x4x8x8x32xf32, #tpu.memory_space<vmem>>, vector<1x1x8x8x32xf32>
    %28 = vector.shape_cast %27 : vector<1x1x8x8x32xf32> to vector<8x8x32xf32>
    %cst_21 = arith.constant 0.000000e+00 : f32
    %29 = vector.broadcast %cst_21 : f32 to vector<8x8x32xf32>
    %30 = arith.select %23, %28, %29 : vector<8x8x32xf32>
    %31 = arith.truncf %30 : vector<8x8x32xf32> to vector<8x8x32xbf16>
    %c1_22 = arith.constant 1 : index
    %c1_23 = arith.constant 1 : index
    %c1_24 = arith.constant 1 : index
    %c0_25 = arith.constant 0 : index
    %32 = vector.load %arg8[%c1_22, %c1_23, %c1_24, %c0_25] : memref<3x10x16x32xbf16, #tpu.memory_space<vmem>>, vector<1x8x8x32xbf16>
    %33 = vector.shape_cast %32 : vector<1x8x8x32xbf16> to vector<8x8x32xbf16>
    %34 = vector.shape_cast %31 : vector<8x8x32xbf16> to vector<1x8x8x32xbf16>
    tpu.vector_store %arg8[%c1_22, %c1_23, %c1_24, %c0_25], %34 {strides = array<i32>} : memref<3x10x16x32xbf16, #tpu.memory_space<vmem>>, vector<1x8x8x32xbf16>,
    %c2_i32 = arith.constant 2 : i32
    %35 = arith.addi %arg1, %c2_i32 : i32
    %c1_i32_26 = arith.constant 1 : i32
    %36 = arith.subi %35, %c1_i32_26 : i32
    %c0_i32_27 = arith.constant 0 : i32
    %37 = arith.cmpi sge, %36, %c0_i32_27 : i32
    %c3_i32_28 = arith.constant 3 : i32
    %38 = arith.cmpi sle, %36, %c3_i32_28 : i32
    %39 = arith.andi %37, %38 : i1
    %c0_i32_29 = arith.constant 0 : i32
    %c3_i32_30 = arith.constant 3 : i32
    %40 = arith.maxsi %c0_i32_29, %36 : i32
    %41 = arith.minsi %c3_i32_30, %40 : i32
    %c0_31 = arith.constant 0 : index
    %42 = arith.index_cast %41 : i32 to index
    %c0_32 = arith.constant 0 : index
    %c0_33 = arith.constant 0 : index
    %c0_34 = arith.constant 0 : index
    %43 = vector.load %arg2[%c0_31, %42, %c0_32, %c0_33, %c0_34] : memref<1x4x8x8x32xf32, #tpu.memory_space<vmem>>, vector<1x1x8x8x32xf32>
    %44 = vector.shape_cast %43 : vector<1x1x8x8x32xf32> to vector<8x8x32xf32>
    %cst_35 = arith.constant 0.000000e+00 : f32
    %45 = vector.broadcast %cst_35 : f32 to vector<8x8x32xf32>
    %46 = arith.select %39, %44, %45 : vector<8x8x32xf32>
    %47 = arith.truncf %46 : vector<8x8x32xf32> to vector<8x8x32xbf16>
    %c2 = arith.constant 2 : index
    %c1_36 = arith.constant 1 : index
    %c1_37 = arith.constant 1 : index
    %c0_38 = arith.constant 0 : index
    %48 = vector.load %arg8[%c2, %c1_36, %c1_37, %c0_38] : memref<3x10x16x32xbf16, #tpu.memory_space<vmem>>, vector<1x8x8x32xbf16>
    %49 = vector.shape_cast %48 : vector<1x8x8x32xbf16> to vector<8x8x32xbf16>
    %50 = vector.shape_cast %47 : vector<8x8x32xbf16> to vector<1x8x8x32xbf16>
    tpu.vector_store %arg8[%c2, %c1_36, %c1_37, %c0_38], %50 {strides = array<i32>} : memref<3x10x16x32xbf16, #tpu.memory_space<vmem>>, vector<1x8x8x32xbf16>,
    %c0_39 = arith.constant 0 : index
    %c0_40 = arith.constant 0 : index
    %c0_41 = arith.constant 0 : index
    %c0_42 = arith.constant 0 : index
    %51 = vector.load %arg8[%c0_39, %c0_40, %c0_41, %c0_42] : memref<3x10x16x32xbf16, #tpu.memory_space<vmem>>, vector<1x8x8x32xbf16>
    %52 = vector.shape_cast %51 : vector<1x8x8x32xbf16> to vector<8x8x32xbf16>
    %53 = vector.shape_cast %52 : vector<8x8x32xbf16> to vector<64x32xbf16>
    %c0_43 = arith.constant 0 : index
    %c0_44 = arith.constant 0 : index
    %c1_45 = arith.constant 1 : index
    %c0_46 = arith.constant 0 : index
    %54 = vector.load %arg8[%c0_43, %c0_44, %c1_45, %c0_46] : memref<3x10x16x32xbf16, #tpu.memory_space<vmem>>, vector<1x8x8x32xbf16>
    %55 = vector.shape_cast %54 : vector<1x8x8x32xbf16> to vector<8x8x32xbf16>
    %56 = vector.shape_cast %55 : vector<8x8x32xbf16> to vector<64x32xbf16>
    %c0_47 = arith.constant 0 : index
    %c0_48 = arith.constant 0 : index
    %c2_49 = arith.constant 2 : index
    %c0_50 = arith.constant 0 : index
    %57 = vector.load %arg8[%c0_47, %c0_48, %c2_49, %c0_50] : memref<3x10x16x32xbf16, #tpu.memory_space<vmem>>, vector<1x8x8x32xbf16>
    %58 = vector.shape_cast %57 : vector<1x8x8x32xbf16> to vector<8x8x32xbf16>
    %59 = vector.shape_cast %58 : vector<8x8x32xbf16> to vector<64x32xbf16>
    %c0_51 = arith.constant 0 : index
    %c1_52 = arith.constant 1 : index
    %c0_53 = arith.constant 0 : index
    %c0_54 = arith.constant 0 : index
    %60 = vector.load %arg8[%c0_51, %c1_52, %c0_53, %c0_54] : memref<3x10x16x32xbf16, #tpu.memory_space<vmem>>, vector<1x8x8x32xbf16>
    %61 = vector.shape_cast %60 : vector<1x8x8x32xbf16> to vector<8x8x32xbf16>
    %62 = vector.shape_cast %61 : vector<8x8x32xbf16> to vector<64x32xbf16>
    %63 = tpu.concatenate %53, %56, %59, %62 in 1 : vector<64x32xbf16>, vector<64x32xbf16>, vector<64x32xbf16>, vector<64x32xbf16> -> vector<64x128xbf16>
    %c0_55 = arith.constant 0 : index
    %c0_56 = arith.constant 0 : index
    %64 = vector.load %arg9[%c0_55, %c0_56] : memref<64x864xbf16, #tpu.memory_space<vmem>>, vector<64x128xbf16>
    tpu.vector_store %arg9[%c0_55, %c0_56], %63 {strides = array<i32>} : memref<64x864xbf16, #tpu.memory_space<vmem>>, vector<64x128xbf16>,
    %c0_57 = arith.constant 0 : index
    %c1_58 = arith.constant 1 : index
    %c1_59 = arith.constant 1 : index
    %c0_60 = arith.constant 0 : index
    %65 = vector.load %arg8[%c0_57, %c1_58, %c1_59, %c0_60] : memref<3x10x16x32xbf16, #tpu.memory_space<vmem>>, vector<1x8x8x32xbf16>
    %66 = vector.shape_cast %65 : vector<1x8x8x32xbf16> to vector<8x8x32xbf16>
    %67 = vector.shape_cast %66 : vector<8x8x32xbf16> to vector<64x32xbf16>
    %c0_61 = arith.constant 0 : index
    %c1_62 = arith.constant 1 : index
    %c2_63 = arith.constant 2 : index
    %c0_64 = arith.constant 0 : index
    %68 = vector.load %arg8[%c0_61, %c1_62, %c2_63, %c0_64] : memref<3x10x16x32xbf16, #tpu.memory_space<vmem>>, vector<1x8x8x32xbf16>
    %69 = vector.shape_cast %68 : vector<1x8x8x32xbf16> to vector<8x8x32xbf16>
    %70 = vector.shape_cast %69 : vector<8x8x32xbf16> to vector<64x32xbf16>
    %c0_65 = arith.constant 0 : index
    %c2_66 = arith.constant 2 : index
    %c0_67 = arith.constant 0 : index
    %c0_68 = arith.constant 0 : index
    %71 = vector.load %arg8[%c0_65, %c2_66, %c0_67, %c0_68] : memref<3x10x16x32xbf16, #tpu.memory_space<vmem>>, vector<1x8x8x32xbf16>
    %72 = vector.shape_cast %71 : vector<1x8x8x32xbf16> to vector<8x8x32xbf16>
    %73 = vector.shape_cast %72 : vector<8x8x32xbf16> to vector<64x32xbf16>
    %c0_69 = arith.constant 0 : index
    %c2_70 = arith.constant 2 : index
    %c1_71 = arith.constant 1 : index
    %c0_72 = arith.constant 0 : index
    %74 = vector.load %arg8[%c0_69, %c2_70, %c1_71, %c0_72] : memref<3x10x16x32xbf16, #tpu.memory_space<vmem>>, vector<1x8x8x32xbf16>
    %75 = vector.shape_cast %74 : vector<1x8x8x32xbf16> to vector<8x8x32xbf16>
    %76 = vector.shape_cast %75 : vector<8x8x32xbf16> to vector<64x32xbf16>
    %77 = tpu.concatenate %67, %70, %73, %76 in 1 : vector<64x32xbf16>, vector<64x32xbf16>, vector<64x32xbf16>, vector<64x32xbf16> -> vector<64x128xbf16>
    %c0_73 = arith.constant 0 : index
    %c128 = arith.constant 128 : index
    %78 = vector.load %arg9[%c0_73, %c128] : memref<64x864xbf16, #tpu.memory_space<vmem>>, vector<64x128xbf16>
    tpu.vector_store %arg9[%c0_73, %c128], %77 {strides = array<i32>} : memref<64x864xbf16, #tpu.memory_space<vmem>>, vector<64x128xbf16>,
    %c0_74 = arith.constant 0 : index
    %c2_75 = arith.constant 2 : index
    %c2_76 = arith.constant 2 : index
    %c0_77 = arith.constant 0 : index
    %79 = vector.load %arg8[%c0_74, %c2_75, %c2_76, %c0_77] : memref<3x10x16x32xbf16, #tpu.memory_space<vmem>>, vector<1x8x8x32xbf16>
    %80 = vector.shape_cast %79 : vector<1x8x8x32xbf16> to vector<8x8x32xbf16>
    %81 = vector.shape_cast %80 : vector<8x8x32xbf16> to vector<64x32xbf16>
    %c1_78 = arith.constant 1 : index
    %c0_79 = arith.constant 0 : index
    %c0_80 = arith.constant 0 : index
    %c0_81 = arith.constant 0 : index
    %82 = vector.load %arg8[%c1_78, %c0_79, %c0_80, %c0_81] : memref<3x10x16x32xbf16, #tpu.memory_space<vmem>>, vector<1x8x8x32xbf16>
    %83 = vector.shape_cast %82 : vector<1x8x8x32xbf16> to vector<8x8x32xbf16>
    %84 = vector.shape_cast %83 : vector<8x8x32xbf16> to vector<64x32xbf16>
    %c1_82 = arith.constant 1 : index
    %c0_83 = arith.constant 0 : index
    %c1_84 = arith.constant 1 : index
    %c0_85 = arith.constant 0 : index
    %85 = vector.load %arg8[%c1_82, %c0_83, %c1_84, %c0_85] : memref<3x10x16x32xbf16, #tpu.memory_space<vmem>>, vector<1x8x8x32xbf16>
    %86 = vector.shape_cast %85 : vector<1x8x8x32xbf16> to vector<8x8x32xbf16>
    %87 = vector.shape_cast %86 : vector<8x8x32xbf16> to vector<64x32xbf16>
    %c1_86 = arith.constant 1 : index
    %c0_87 = arith.constant 0 : index
    %c2_88 = arith.constant 2 : index
    %c0_89 = arith.constant 0 : index
    %88 = vector.load %arg8[%c1_86, %c0_87, %c2_88, %c0_89] : memref<3x10x16x32xbf16, #tpu.memory_space<vmem>>, vector<1x8x8x32xbf16>
    %89 = vector.shape_cast %88 : vector<1x8x8x32xbf16> to vector<8x8x32xbf16>
    %90 = vector.shape_cast %89 : vector<8x8x32xbf16> to vector<64x32xbf16>
    %91 = tpu.concatenate %81, %84, %87, %90 in 1 : vector<64x32xbf16>, vector<64x32xbf16>, vector<64x32xbf16>, vector<64x32xbf16> -> vector<64x128xbf16>
    %c0_90 = arith.constant 0 : index
    %c256 = arith.constant 256 : index
    %92 = vector.load %arg9[%c0_90, %c256] : memref<64x864xbf16, #tpu.memory_space<vmem>>, vector<64x128xbf16>
    tpu.vector_store %arg9[%c0_90, %c256], %91 {strides = array<i32>} : memref<64x864xbf16, #tpu.memory_space<vmem>>, vector<64x128xbf16>,
    %c1_91 = arith.constant 1 : index
    %c1_92 = arith.constant 1 : index
    %c0_93 = arith.constant 0 : index
    %c0_94 = arith.constant 0 : index
    %93 = vector.load %arg8[%c1_91, %c1_92, %c0_93, %c0_94] : memref<3x10x16x32xbf16, #tpu.memory_space<vmem>>, vector<1x8x8x32xbf16>
    %94 = vector.shape_cast %93 : vector<1x8x8x32xbf16> to vector<8x8x32xbf16>
    %95 = vector.shape_cast %94 : vector<8x8x32xbf16> to vector<64x32xbf16>
    %c1_95 = arith.constant 1 : index
    %c1_96 = arith.constant 1 : index
    %c1_97 = arith.constant 1 : index
    %c0_98 = arith.constant 0 : index
    %96 = vector.load %arg8[%c1_95, %c1_96, %c1_97, %c0_98] : memref<3x10x16x32xbf16, #tpu.memory_space<vmem>>, vector<1x8x8x32xbf16>
    %97 = vector.shape_cast %96 : vector<1x8x8x32xbf16> to vector<8x8x32xbf16>
    %98 = vector.shape_cast %97 : vector<8x8x32xbf16> to vector<64x32xbf16>
    %c1_99 = arith.constant 1 : index
    %c1_100 = arith.constant 1 : index
    %c2_101 = arith.constant 2 : index
    %c0_102 = arith.constant 0 : index
    %99 = vector.load %arg8[%c1_99, %c1_100, %c2_101, %c0_102] : memref<3x10x16x32xbf16, #tpu.memory_space<vmem>>, vector<1x8x8x32xbf16>
    %100 = vector.shape_cast %99 : vector<1x8x8x32xbf16> to vector<8x8x32xbf16>
    %101 = vector.shape_cast %100 : vector<8x8x32xbf16> to vector<64x32xbf16>
    %c1_103 = arith.constant 1 : index
    %c2_104 = arith.constant 2 : index
    %c0_105 = arith.constant 0 : index
    %c0_106 = arith.constant 0 : index
    %102 = vector.load %arg8[%c1_103, %c2_104, %c0_105, %c0_106] : memref<3x10x16x32xbf16, #tpu.memory_space<vmem>>, vector<1x8x8x32xbf16>
    %103 = vector.shape_cast %102 : vector<1x8x8x32xbf16> to vector<8x8x32xbf16>
    %104 = vector.shape_cast %103 : vector<8x8x32xbf16> to vector<64x32xbf16>
    %105 = tpu.concatenate %95, %98, %101, %104 in 1 : vector<64x32xbf16>, vector<64x32xbf16>, vector<64x32xbf16>, vector<64x32xbf16> -> vector<64x128xbf16>
    %c0_107 = arith.constant 0 : index
    %c384 = arith.constant 384 : index
    %106 = vector.load %arg9[%c0_107, %c384] : memref<64x864xbf16, #tpu.memory_space<vmem>>, vector<64x128xbf16>
    tpu.vector_store %arg9[%c0_107, %c384], %105 {strides = array<i32>} : memref<64x864xbf16, #tpu.memory_space<vmem>>, vector<64x128xbf16>,
    %c1_108 = arith.constant 1 : index
    %c2_109 = arith.constant 2 : index
    %c1_110 = arith.constant 1 : index
    %c0_111 = arith.constant 0 : index
    %107 = vector.load %arg8[%c1_108, %c2_109, %c1_110, %c0_111] : memref<3x10x16x32xbf16, #tpu.memory_space<vmem>>, vector<1x8x8x32xbf16>
    %108 = vector.shape_cast %107 : vector<1x8x8x32xbf16> to vector<8x8x32xbf16>
    %109 = vector.shape_cast %108 : vector<8x8x32xbf16> to vector<64x32xbf16>
    %c1_112 = arith.constant 1 : index
    %c2_113 = arith.constant 2 : index
    %c2_114 = arith.constant 2 : index
    %c0_115 = arith.constant 0 : index
    %110 = vector.load %arg8[%c1_112, %c2_113, %c2_114, %c0_115] : memref<3x10x16x32xbf16, #tpu.memory_space<vmem>>, vector<1x8x8x32xbf16>
    %111 = vector.shape_cast %110 : vector<1x8x8x32xbf16> to vector<8x8x32xbf16>
    %112 = vector.shape_cast %111 : vector<8x8x32xbf16> to vector<64x32xbf16>
    %c2_116 = arith.constant 2 : index
    %c0_117 = arith.constant 0 : index
    %c0_118 = arith.constant 0 : index
    %c0_119 = arith.constant 0 : index
    %113 = vector.load %arg8[%c2_116, %c0_117, %c0_118, %c0_119] : memref<3x10x16x32xbf16, #tpu.memory_space<vmem>>, vector<1x8x8x32xbf16>
    %114 = vector.shape_cast %113 : vector<1x8x8x32xbf16> to vector<8x8x32xbf16>
    %115 = vector.shape_cast %114 : vector<8x8x32xbf16> to vector<64x32xbf16>
    %c2_120 = arith.constant 2 : index
    %c0_121 = arith.constant 0 : index
    %c1_122 = arith.constant 1 : index
    %c0_123 = arith.constant 0 : index
    %116 = vector.load %arg8[%c2_120, %c0_121, %c1_122, %c0_123] : memref<3x10x16x32xbf16, #tpu.memory_space<vmem>>, vector<1x8x8x32xbf16>
    %117 = vector.shape_cast %116 : vector<1x8x8x32xbf16> to vector<8x8x32xbf16>
    %118 = vector.shape_cast %117 : vector<8x8x32xbf16> to vector<64x32xbf16>
    %119 = tpu.concatenate %109, %112, %115, %118 in 1 : vector<64x32xbf16>, vector<64x32xbf16>, vector<64x32xbf16>, vector<64x32xbf16> -> vector<64x128xbf16>
    %c0_124 = arith.constant 0 : index
    %c512 = arith.constant 512 : index
    %120 = vector.load %arg9[%c0_124, %c512] : memref<64x864xbf16, #tpu.memory_space<vmem>>, vector<64x128xbf16>
    tpu.vector_store %arg9[%c0_124, %c512], %119 {strides = array<i32>} : memref<64x864xbf16, #tpu.memory_space<vmem>>, vector<64x128xbf16>,
    %c2_125 = arith.constant 2 : index
    %c0_126 = arith.constant 0 : index
    %c2_127 = arith.constant 2 : index
    %c0_128 = arith.constant 0 : index
    %121 = vector.load %arg8[%c2_125, %c0_126, %c2_127, %c0_128] : memref<3x10x16x32xbf16, #tpu.memory_space<vmem>>, vector<1x8x8x32xbf16>
    %122 = vector.shape_cast %121 : vector<1x8x8x32xbf16> to vector<8x8x32xbf16>
    %123 = vector.shape_cast %122 : vector<8x8x32xbf16> to vector<64x32xbf16>
    %c2_129 = arith.constant 2 : index
    %c1_130 = arith.constant 1 : index
    %c0_131 = arith.constant 0 : index
    %c0_132 = arith.constant 0 : index
    %124 = vector.load %arg8[%c2_129, %c1_130, %c0_131, %c0_132] : memref<3x10x16x32xbf16, #tpu.memory_space<vmem>>, vector<1x8x8x32xbf16>
    %125 = vector.shape_cast %124 : vector<1x8x8x32xbf16> to vector<8x8x32xbf16>
    %126 = vector.shape_cast %125 : vector<8x8x32xbf16> to vector<64x32xbf16>
    %c2_133 = arith.constant 2 : index
    %c1_134 = arith.constant 1 : index
    %c1_135 = arith.constant 1 : index
    %c0_136 = arith.constant 0 : index
    %127 = vector.load %arg8[%c2_133, %c1_134, %c1_135, %c0_136] : memref<3x10x16x32xbf16, #tpu.memory_space<vmem>>, vector<1x8x8x32xbf16>
    %128 = vector.shape_cast %127 : vector<1x8x8x32xbf16> to vector<8x8x32xbf16>
    %129 = vector.shape_cast %128 : vector<8x8x32xbf16> to vector<64x32xbf16>
    %c2_137 = arith.constant 2 : index
    %c1_138 = arith.constant 1 : index
    %c2_139 = arith.constant 2 : index
    %c0_140 = arith.constant 0 : index
    %130 = vector.load %arg8[%c2_137, %c1_138, %c2_139, %c0_140] : memref<3x10x16x32xbf16, #tpu.memory_space<vmem>>, vector<1x8x8x32xbf16>
    %131 = vector.shape_cast %130 : vector<1x8x8x32xbf16> to vector<8x8x32xbf16>
    %132 = vector.shape_cast %131 : vector<8x8x32xbf16> to vector<64x32xbf16>
    %133 = tpu.concatenate %123, %126, %129, %132 in 1 : vector<64x32xbf16>, vector<64x32xbf16>, vector<64x32xbf16>, vector<64x32xbf16> -> vector<64x128xbf16>
    %c0_141 = arith.constant 0 : index
    %c640 = arith.constant 640 : index
    %134 = vector.load %arg9[%c0_141, %c640] : memref<64x864xbf16, #tpu.memory_space<vmem>>, vector<64x128xbf16>
    tpu.vector_store %arg9[%c0_141, %c640], %133 {strides = array<i32>} : memref<64x864xbf16, #tpu.memory_space<vmem>>, vector<64x128xbf16>,
    %c2_142 = arith.constant 2 : index
    %c2_143 = arith.constant 2 : index
    %c0_144 = arith.constant 0 : index
    %c0_145 = arith.constant 0 : index
    %135 = vector.load %arg8[%c2_142, %c2_143, %c0_144, %c0_145] : memref<3x10x16x32xbf16, #tpu.memory_space<vmem>>, vector<1x8x8x32xbf16>
    %136 = vector.shape_cast %135 : vector<1x8x8x32xbf16> to vector<8x8x32xbf16>
    %137 = vector.shape_cast %136 : vector<8x8x32xbf16> to vector<64x32xbf16>
    %c2_146 = arith.constant 2 : index
    %c2_147 = arith.constant 2 : index
    %c1_148 = arith.constant 1 : index
    %c0_149 = arith.constant 0 : index
    %138 = vector.load %arg8[%c2_146, %c2_147, %c1_148, %c0_149] : memref<3x10x16x32xbf16, #tpu.memory_space<vmem>>, vector<1x8x8x32xbf16>
    %139 = vector.shape_cast %138 : vector<1x8x8x32xbf16> to vector<8x8x32xbf16>
    %140 = vector.shape_cast %139 : vector<8x8x32xbf16> to vector<64x32xbf16>
    %c2_150 = arith.constant 2 : index
    %c2_151 = arith.constant 2 : index
    %c2_152 = arith.constant 2 : index
    %c0_153 = arith.constant 0 : index
    %141 = vector.load %arg8[%c2_150, %c2_151, %c2_152, %c0_153] : memref<3x10x16x32xbf16, #tpu.memory_space<vmem>>, vector<1x8x8x32xbf16>
    %142 = vector.shape_cast %141 : vector<1x8x8x32xbf16> to vector<8x8x32xbf16>
    %143 = vector.shape_cast %142 : vector<8x8x32xbf16> to vector<64x32xbf16>
    %144 = tpu.concatenate %137, %140, %143 in 1 : vector<64x32xbf16>, vector<64x32xbf16>, vector<64x32xbf16> -> vector<64x96xbf16>
    %c0_154 = arith.constant 0 : index
    %c768 = arith.constant 768 : index
    %145 = vector.load %arg9[%c0_154, %c768] : memref<64x864xbf16, #tpu.memory_space<vmem>>, vector<64x96xbf16>
    tpu.vector_store %arg9[%c0_154, %c768], %144 {strides = array<i32>} : memref<64x864xbf16, #tpu.memory_space<vmem>>, vector<64x96xbf16>,
    %c0_155 = arith.constant 0 : index
    %c0_156 = arith.constant 0 : index
    %146 = vector.load %arg9[%c0_155, %c0_156] : memref<64x864xbf16, #tpu.memory_space<vmem>>, vector<64x864xbf16>
    %c0_157 = arith.constant 0 : index
    %c0_158 = arith.constant 0 : index
    %147 = vector.load %arg3[%c0_157, %c0_158] : memref<864x32xbf16, #tpu.memory_space<vmem>>, vector<864x32xbf16>
    %cst_159 = arith.constant dense<0.000000e+00> : vector<64x32xf32>
    %148 = tpu.matmul %146, %147, %cst_159 {dimension_numbers = #tpu.dot_dimension_numbers<[1], [0], [0], [1], [0, 0, 1, 1], [], []>} : vector<64x864xbf16>, vector<864x32xbf16>, vector<64x32xf32> -> vector<64x32xf32>
    %149 = vector.shape_cast %148 : vector<64x32xf32> to vector<8x8x32xf32>
    %150 = arith.truncf %149 : vector<8x8x32xf32> to vector<8x8x32xbf16>
    %c0_160 = arith.constant 0 : index
    %c0_161 = arith.constant 0 : index
    %c0_162 = arith.constant 0 : index
    %c0_163 = arith.constant 0 : index
    %c0_164 = arith.constant 0 : index
    %151 = vector.load %arg6[%c0_160, %c0_161, %c0_162, %c0_163, %c0_164] : memref<1x1x8x8x32xbf16, #tpu.memory_space<vmem>>, vector<1x1x8x8x32xbf16>
    %152 = vector.shape_cast %151 : vector<1x1x8x8x32xbf16> to vector<8x8x32xbf16>
    %153 = vector.shape_cast %150 : vector<8x8x32xbf16> to vector<1x1x8x8x32xbf16>
    tpu.vector_store %arg6[%c0_160, %c0_161, %c0_162, %c0_163, %c0_164], %153 {strides = array<i32>} : memref<1x1x8x8x32xbf16, #tpu.memory_space<vmem>>, vector<1x1x8x8x32xbf16>,
    %cst_165 = arith.constant dense<0.000000e+00> : vector<32xf32>
    %154 = vector.multi_reduction <add>, %148, %cst_165 [0] : vector<64x32xf32> to vector<32xf32>
    %155 = vector.shape_cast %154 : vector<32xf32> to vector<1x32xf32>
    %156 = arith.mulf %148, %148 : vector<64x32xf32>
    %cst_166 = arith.constant dense<0.000000e+00> : vector<32xf32>
    %157 = vector.multi_reduction <add>, %156, %cst_166 [0] : vector<64x32xf32> to vector<32xf32>
    %158 = vector.shape_cast %157 : vector<32xf32> to vector<1x32xf32>
    %159 = tpu.concatenate %155, %158 in 0 : vector<1x32xf32>, vector<1x32xf32> -> vector<2x32xf32>
    %c0_167 = arith.constant 0 : index
    %c0_168 = arith.constant 0 : index
    %c0_169 = arith.constant 0 : index
    %160 = vector.load %arg7[%c0_167, %c0_168, %c0_169] : memref<1x2x32xf32, #tpu.memory_space<vmem>>, vector<1x2x32xf32>
    %161 = vector.shape_cast %160 : vector<1x2x32xf32> to vector<2x32xf32>
    %162 = arith.addf %161, %159 : vector<2x32xf32>
    %c0_170 = arith.constant 0 : index
    %c0_171 = arith.constant 0 : index
    %c0_172 = arith.constant 0 : index
    %163 = vector.load %arg7[%c0_170, %c0_171, %c0_172] : memref<1x2x32xf32, #tpu.memory_space<vmem>>, vector<1x2x32xf32>
    %164 = vector.shape_cast %163 : vector<1x2x32xf32> to vector<2x32xf32>
    %165 = vector.shape_cast %162 : vector<2x32xf32> to vector<1x2x32xf32>
    tpu.vector_store %arg7[%c0_170, %c0_171, %c0_172], %165 {strides = array<i32>} : memref<1x2x32xf32, #tpu.memory_space<vmem>>, vector<1x2x32xf32>,
    return
  }
  func.func @transform_0(%arg0: i32, %arg1: i32) -> (i32, i32, i32, i32, i32) {
    %c0_i32 = arith.constant 0 : i32
    %c0_i32_0 = arith.constant 0 : i32
    %c0_i32_1 = arith.constant 0 : i32
    %c0_i32_2 = arith.constant 0 : i32
    %c0_i32_3 = arith.constant 0 : i32
    return %arg0, %c0_i32, %c0_i32_0, %c0_i32_1, %c0_i32_2 : i32, i32, i32, i32, i32
  }
  func.func @transform_1(%arg0: i32, %arg1: i32) -> (i32, i32) {
    %c0_i32 = arith.constant 0 : i32
    %c0_i32_0 = arith.constant 0 : i32
    %c0_i32_1 = arith.constant 0 : i32
    return %c0_i32, %c0_i32_0 : i32, i32
  }
  func.func @transform_2(%arg0: i32, %arg1: i32) -> (i32, i32) {
    %c0_i32 = arith.constant 0 : i32
    %c0_i32_0 = arith.constant 0 : i32
    %c0_i32_1 = arith.constant 0 : i32
    return %c0_i32, %c0_i32_0 : i32, i32
  }
  func.func @transform_3(%arg0: i32, %arg1: i32) -> (i32, i32) {
    %c0_i32 = arith.constant 0 : i32
    %c0_i32_0 = arith.constant 0 : i32
    %c0_i32_1 = arith.constant 0 : i32
    return %c0_i32, %c0_i32_0 : i32, i32
  }
  func.func @transform_4(%arg0: i32, %arg1: i32) -> (i32, i32, i32, i32, i32) {
    %c0_i32 = arith.constant 0 : i32
    %c0_i32_0 = arith.constant 0 : i32
    %c0_i32_1 = arith.constant 0 : i32
    %c0_i32_2 = arith.constant 0 : i32
    return %arg0, %arg1, %c0_i32, %c0_i32_0, %c0_i32_1 : i32, i32, i32, i32, i32
  }
  func.func @transform_5(%arg0: i32, %arg1: i32) -> (i32, i32, i32) {
    %c0_i32 = arith.constant 0 : i32
    %c0_i32_0 = arith.constant 0 : i32
    %c0_i32_1 = arith.constant 0 : i32
    return %arg0, %c0_i32, %c0_i32_0 : i32, i32, i32
  }
}

module attributes {stable_mosaic.version = 11 : i64} {
  func.func @_conv3x3x3_kernel(%arg0: i32, %arg1: i32, %arg2: memref<1x4x8x8x32xbf16, #tpu.memory_space<vmem>>, %arg3: memref<864x32xbf16, #tpu.memory_space<vmem>>, %arg4: memref<1x32xf32, #tpu.memory_space<vmem>>, %arg5: memref<1x32xf32, #tpu.memory_space<vmem>>, %arg6: memref<1x1x8x8x32xbf16, #tpu.memory_space<vmem>>, %arg7: memref<1x2x32xf32, #tpu.memory_space<vmem>>, %arg8: memref<3x10x16x32xbf16, #tpu.memory_space<vmem>>, %arg9: memref<64x864xbf16, #tpu.memory_space<vmem>>) attributes {dimension_semantics = [#tpu.dimension_semantics<parallel>, #tpu.dimension_semantics<arbitrary>], iteration_bounds = array<i64: 2, 4>, scalar_prefetch = 0 : i64, scratch_operands = 2 : i64, tpu.core_type = #tpu.core_type<tc>, window_params = [{transform_indices = @transform_0, window_bounds = array<i64: 1, 4, 8, 8, 32>}, {pipeline_mode = #tpu.pipeline_mode<synchronous>, transform_indices = @transform_1, window_bounds = array<i64: 864, 32>}, {pipeline_mode = #tpu.pipeline_mode<synchronous>, transform_indices = @transform_2, window_bounds = array<i64: 1, 32>}, {pipeline_mode = #tpu.pipeline_mode<synchronous>, transform_indices = @transform_3, window_bounds = array<i64: 1, 32>}, {transform_indices = @transform_4, window_bounds = array<i64: 1, 1, 8, 8, 32>}, {transform_indices = @transform_5, window_bounds = array<i64: 1, 2, 32>}]} {
    %c0_i32 = arith.constant 0 : i32
    %0 = arith.cmpi eq, %arg1, %c0_i32 : i32
    %1 = arith.extui %0 : i1 to i32
    %c0_i32_0 = arith.constant 0 : i32
    %2 = arith.cmpi ne, %1, %c0_i32_0 : i32
    scf.if %2 {
      %cst_188 = arith.constant 0.000000e+00 : bf16
      %199 = vector.broadcast %cst_188 : bf16 to vector<3x10x16x32xbf16>
      %c0_189 = arith.constant 0 : index
      %c0_190 = arith.constant 0 : index
      %c0_191 = arith.constant 0 : index
      %c0_192 = arith.constant 0 : index
      %200 = vector.load %arg8[%c0_189, %c0_190, %c0_191, %c0_192] : memref<3x10x16x32xbf16, #tpu.memory_space<vmem>>, vector<3x10x16x32xbf16>
      tpu.vector_store %arg8[%c0_189, %c0_190, %c0_191, %c0_192], %199 {strides = array<i32>} : memref<3x10x16x32xbf16, #tpu.memory_space<vmem>>, vector<3x10x16x32xbf16>,
      %cst_193 = arith.constant 0.000000e+00 : f32
      %201 = vector.broadcast %cst_193 : f32 to vector<2x32xf32>
      %c0_194 = arith.constant 0 : index
      %c0_195 = arith.constant 0 : index
      %c0_196 = arith.constant 0 : index
      %202 = vector.load %arg7[%c0_194, %c0_195, %c0_196] : memref<1x2x32xf32, #tpu.memory_space<vmem>>, vector<1x2x32xf32>
      %203 = vector.shape_cast %202 : vector<1x2x32xf32> to vector<2x32xf32>
      %204 = vector.shape_cast %201 : vector<2x32xf32> to vector<1x2x32xf32>
      tpu.vector_store %arg7[%c0_194, %c0_195, %c0_196], %204 {strides = array<i32>} : memref<1x2x32xf32, #tpu.memory_space<vmem>>, vector<1x2x32xf32>,
    } else {
    }
    %c0_i32_1 = arith.constant 0 : i32
    %3 = arith.addi %arg1, %c0_i32_1 : i32
    %c1_i32 = arith.constant 1 : i32
    %4 = arith.subi %3, %c1_i32 : i32
    %c0_i32_2 = arith.constant 0 : i32
    %5 = arith.cmpi sge, %4, %c0_i32_2 : i32
    %c3_i32 = arith.constant 3 : i32
    %6 = arith.cmpi sle, %4, %c3_i32 : i32
    %7 = arith.andi %5, %6 : i1
    %c0_i32_3 = arith.constant 0 : i32
    %c3_i32_4 = arith.constant 3 : i32
    %8 = arith.maxsi %c0_i32_3, %4 : i32
    %9 = arith.minsi %c3_i32_4, %8 : i32
    %c0 = arith.constant 0 : index
    %10 = arith.index_cast %9 : i32 to index
    %c0_5 = arith.constant 0 : index
    %c0_6 = arith.constant 0 : index
    %c0_7 = arith.constant 0 : index
    %11 = vector.load %arg2[%c0, %10, %c0_5, %c0_6, %c0_7] : memref<1x4x8x8x32xbf16, #tpu.memory_space<vmem>>, vector<1x1x8x8x32xbf16>
    %12 = vector.shape_cast %11 : vector<1x1x8x8x32xbf16> to vector<8x8x32xbf16>
    %13 = arith.extf %12 : vector<8x8x32xbf16> to vector<8x8x32xf32>
    %c0_8 = arith.constant 0 : index
    %c0_9 = arith.constant 0 : index
    %14 = vector.load %arg4[%c0_8, %c0_9] : memref<1x32xf32, #tpu.memory_space<vmem>>, vector<1x32xf32>
    %15 = vector.shape_cast %14 : vector<1x32xf32> to vector<1x1x32xf32>
    %16 = vector.broadcast %15 : vector<1x1x32xf32> to vector<8x8x32xf32>
    %17 = arith.mulf %13, %16 : vector<8x8x32xf32>
    %c0_10 = arith.constant 0 : index
    %c0_11 = arith.constant 0 : index
    %18 = vector.load %arg5[%c0_10, %c0_11] : memref<1x32xf32, #tpu.memory_space<vmem>>, vector<1x32xf32>
    %19 = vector.shape_cast %18 : vector<1x32xf32> to vector<1x1x32xf32>
    %20 = vector.broadcast %19 : vector<1x1x32xf32> to vector<8x8x32xf32>
    %21 = arith.addf %17, %20 : vector<8x8x32xf32>
    %cst = arith.constant 0.000000e+00 : f32
    %22 = vector.broadcast %cst : f32 to vector<8x8x32xf32>
    %23 = arith.maximumf %21, %22 : vector<8x8x32xf32>
    %cst_12 = arith.constant 0.000000e+00 : f32
    %24 = vector.broadcast %cst_12 : f32 to vector<8x8x32xf32>
    %25 = arith.select %7, %23, %24 : vector<8x8x32xf32>
    %26 = arith.truncf %25 : vector<8x8x32xf32> to vector<8x8x32xbf16>
    %c0_13 = arith.constant 0 : index
    %c1 = arith.constant 1 : index
    %c1_14 = arith.constant 1 : index
    %c0_15 = arith.constant 0 : index
    %27 = vector.load %arg8[%c0_13, %c1, %c1_14, %c0_15] : memref<3x10x16x32xbf16, #tpu.memory_space<vmem>>, vector<1x8x8x32xbf16>
    %28 = vector.shape_cast %27 : vector<1x8x8x32xbf16> to vector<8x8x32xbf16>
    %29 = vector.shape_cast %26 : vector<8x8x32xbf16> to vector<1x8x8x32xbf16>
    tpu.vector_store %arg8[%c0_13, %c1, %c1_14, %c0_15], %29 {strides = array<i32>} : memref<3x10x16x32xbf16, #tpu.memory_space<vmem>>, vector<1x8x8x32xbf16>,
    %c1_i32_16 = arith.constant 1 : i32
    %30 = arith.addi %arg1, %c1_i32_16 : i32
    %c1_i32_17 = arith.constant 1 : i32
    %31 = arith.subi %30, %c1_i32_17 : i32
    %c0_i32_18 = arith.constant 0 : i32
    %32 = arith.cmpi sge, %31, %c0_i32_18 : i32
    %c3_i32_19 = arith.constant 3 : i32
    %33 = arith.cmpi sle, %31, %c3_i32_19 : i32
    %34 = arith.andi %32, %33 : i1
    %c0_i32_20 = arith.constant 0 : i32
    %c3_i32_21 = arith.constant 3 : i32
    %35 = arith.maxsi %c0_i32_20, %31 : i32
    %36 = arith.minsi %c3_i32_21, %35 : i32
    %c0_22 = arith.constant 0 : index
    %37 = arith.index_cast %36 : i32 to index
    %c0_23 = arith.constant 0 : index
    %c0_24 = arith.constant 0 : index
    %c0_25 = arith.constant 0 : index
    %38 = vector.load %arg2[%c0_22, %37, %c0_23, %c0_24, %c0_25] : memref<1x4x8x8x32xbf16, #tpu.memory_space<vmem>>, vector<1x1x8x8x32xbf16>
    %39 = vector.shape_cast %38 : vector<1x1x8x8x32xbf16> to vector<8x8x32xbf16>
    %40 = arith.extf %39 : vector<8x8x32xbf16> to vector<8x8x32xf32>
    %c0_26 = arith.constant 0 : index
    %c0_27 = arith.constant 0 : index
    %41 = vector.load %arg4[%c0_26, %c0_27] : memref<1x32xf32, #tpu.memory_space<vmem>>, vector<1x32xf32>
    %42 = vector.shape_cast %41 : vector<1x32xf32> to vector<1x1x32xf32>
    %43 = vector.broadcast %42 : vector<1x1x32xf32> to vector<8x8x32xf32>
    %44 = arith.mulf %40, %43 : vector<8x8x32xf32>
    %c0_28 = arith.constant 0 : index
    %c0_29 = arith.constant 0 : index
    %45 = vector.load %arg5[%c0_28, %c0_29] : memref<1x32xf32, #tpu.memory_space<vmem>>, vector<1x32xf32>
    %46 = vector.shape_cast %45 : vector<1x32xf32> to vector<1x1x32xf32>
    %47 = vector.broadcast %46 : vector<1x1x32xf32> to vector<8x8x32xf32>
    %48 = arith.addf %44, %47 : vector<8x8x32xf32>
    %cst_30 = arith.constant 0.000000e+00 : f32
    %49 = vector.broadcast %cst_30 : f32 to vector<8x8x32xf32>
    %50 = arith.maximumf %48, %49 : vector<8x8x32xf32>
    %cst_31 = arith.constant 0.000000e+00 : f32
    %51 = vector.broadcast %cst_31 : f32 to vector<8x8x32xf32>
    %52 = arith.select %34, %50, %51 : vector<8x8x32xf32>
    %53 = arith.truncf %52 : vector<8x8x32xf32> to vector<8x8x32xbf16>
    %c1_32 = arith.constant 1 : index
    %c1_33 = arith.constant 1 : index
    %c1_34 = arith.constant 1 : index
    %c0_35 = arith.constant 0 : index
    %54 = vector.load %arg8[%c1_32, %c1_33, %c1_34, %c0_35] : memref<3x10x16x32xbf16, #tpu.memory_space<vmem>>, vector<1x8x8x32xbf16>
    %55 = vector.shape_cast %54 : vector<1x8x8x32xbf16> to vector<8x8x32xbf16>
    %56 = vector.shape_cast %53 : vector<8x8x32xbf16> to vector<1x8x8x32xbf16>
    tpu.vector_store %arg8[%c1_32, %c1_33, %c1_34, %c0_35], %56 {strides = array<i32>} : memref<3x10x16x32xbf16, #tpu.memory_space<vmem>>, vector<1x8x8x32xbf16>,
    %c2_i32 = arith.constant 2 : i32
    %57 = arith.addi %arg1, %c2_i32 : i32
    %c1_i32_36 = arith.constant 1 : i32
    %58 = arith.subi %57, %c1_i32_36 : i32
    %c0_i32_37 = arith.constant 0 : i32
    %59 = arith.cmpi sge, %58, %c0_i32_37 : i32
    %c3_i32_38 = arith.constant 3 : i32
    %60 = arith.cmpi sle, %58, %c3_i32_38 : i32
    %61 = arith.andi %59, %60 : i1
    %c0_i32_39 = arith.constant 0 : i32
    %c3_i32_40 = arith.constant 3 : i32
    %62 = arith.maxsi %c0_i32_39, %58 : i32
    %63 = arith.minsi %c3_i32_40, %62 : i32
    %c0_41 = arith.constant 0 : index
    %64 = arith.index_cast %63 : i32 to index
    %c0_42 = arith.constant 0 : index
    %c0_43 = arith.constant 0 : index
    %c0_44 = arith.constant 0 : index
    %65 = vector.load %arg2[%c0_41, %64, %c0_42, %c0_43, %c0_44] : memref<1x4x8x8x32xbf16, #tpu.memory_space<vmem>>, vector<1x1x8x8x32xbf16>
    %66 = vector.shape_cast %65 : vector<1x1x8x8x32xbf16> to vector<8x8x32xbf16>
    %67 = arith.extf %66 : vector<8x8x32xbf16> to vector<8x8x32xf32>
    %c0_45 = arith.constant 0 : index
    %c0_46 = arith.constant 0 : index
    %68 = vector.load %arg4[%c0_45, %c0_46] : memref<1x32xf32, #tpu.memory_space<vmem>>, vector<1x32xf32>
    %69 = vector.shape_cast %68 : vector<1x32xf32> to vector<1x1x32xf32>
    %70 = vector.broadcast %69 : vector<1x1x32xf32> to vector<8x8x32xf32>
    %71 = arith.mulf %67, %70 : vector<8x8x32xf32>
    %c0_47 = arith.constant 0 : index
    %c0_48 = arith.constant 0 : index
    %72 = vector.load %arg5[%c0_47, %c0_48] : memref<1x32xf32, #tpu.memory_space<vmem>>, vector<1x32xf32>
    %73 = vector.shape_cast %72 : vector<1x32xf32> to vector<1x1x32xf32>
    %74 = vector.broadcast %73 : vector<1x1x32xf32> to vector<8x8x32xf32>
    %75 = arith.addf %71, %74 : vector<8x8x32xf32>
    %cst_49 = arith.constant 0.000000e+00 : f32
    %76 = vector.broadcast %cst_49 : f32 to vector<8x8x32xf32>
    %77 = arith.maximumf %75, %76 : vector<8x8x32xf32>
    %cst_50 = arith.constant 0.000000e+00 : f32
    %78 = vector.broadcast %cst_50 : f32 to vector<8x8x32xf32>
    %79 = arith.select %61, %77, %78 : vector<8x8x32xf32>
    %80 = arith.truncf %79 : vector<8x8x32xf32> to vector<8x8x32xbf16>
    %c2 = arith.constant 2 : index
    %c1_51 = arith.constant 1 : index
    %c1_52 = arith.constant 1 : index
    %c0_53 = arith.constant 0 : index
    %81 = vector.load %arg8[%c2, %c1_51, %c1_52, %c0_53] : memref<3x10x16x32xbf16, #tpu.memory_space<vmem>>, vector<1x8x8x32xbf16>
    %82 = vector.shape_cast %81 : vector<1x8x8x32xbf16> to vector<8x8x32xbf16>
    %83 = vector.shape_cast %80 : vector<8x8x32xbf16> to vector<1x8x8x32xbf16>
    tpu.vector_store %arg8[%c2, %c1_51, %c1_52, %c0_53], %83 {strides = array<i32>} : memref<3x10x16x32xbf16, #tpu.memory_space<vmem>>, vector<1x8x8x32xbf16>,
    %c0_54 = arith.constant 0 : index
    %c0_55 = arith.constant 0 : index
    %c0_56 = arith.constant 0 : index
    %c0_57 = arith.constant 0 : index
    %84 = vector.load %arg8[%c0_54, %c0_55, %c0_56, %c0_57] : memref<3x10x16x32xbf16, #tpu.memory_space<vmem>>, vector<1x8x8x32xbf16>
    %85 = vector.shape_cast %84 : vector<1x8x8x32xbf16> to vector<8x8x32xbf16>
    %86 = vector.shape_cast %85 : vector<8x8x32xbf16> to vector<64x32xbf16>
    %c0_58 = arith.constant 0 : index
    %c0_59 = arith.constant 0 : index
    %c1_60 = arith.constant 1 : index
    %c0_61 = arith.constant 0 : index
    %87 = vector.load %arg8[%c0_58, %c0_59, %c1_60, %c0_61] : memref<3x10x16x32xbf16, #tpu.memory_space<vmem>>, vector<1x8x8x32xbf16>
    %88 = vector.shape_cast %87 : vector<1x8x8x32xbf16> to vector<8x8x32xbf16>
    %89 = vector.shape_cast %88 : vector<8x8x32xbf16> to vector<64x32xbf16>
    %c0_62 = arith.constant 0 : index
    %c0_63 = arith.constant 0 : index
    %c2_64 = arith.constant 2 : index
    %c0_65 = arith.constant 0 : index
    %90 = vector.load %arg8[%c0_62, %c0_63, %c2_64, %c0_65] : memref<3x10x16x32xbf16, #tpu.memory_space<vmem>>, vector<1x8x8x32xbf16>
    %91 = vector.shape_cast %90 : vector<1x8x8x32xbf16> to vector<8x8x32xbf16>
    %92 = vector.shape_cast %91 : vector<8x8x32xbf16> to vector<64x32xbf16>
    %c0_66 = arith.constant 0 : index
    %c1_67 = arith.constant 1 : index
    %c0_68 = arith.constant 0 : index
    %c0_69 = arith.constant 0 : index
    %93 = vector.load %arg8[%c0_66, %c1_67, %c0_68, %c0_69] : memref<3x10x16x32xbf16, #tpu.memory_space<vmem>>, vector<1x8x8x32xbf16>
    %94 = vector.shape_cast %93 : vector<1x8x8x32xbf16> to vector<8x8x32xbf16>
    %95 = vector.shape_cast %94 : vector<8x8x32xbf16> to vector<64x32xbf16>
    %96 = tpu.concatenate %86, %89, %92, %95 in 1 : vector<64x32xbf16>, vector<64x32xbf16>, vector<64x32xbf16>, vector<64x32xbf16> -> vector<64x128xbf16>
    %c0_70 = arith.constant 0 : index
    %c0_71 = arith.constant 0 : index
    %97 = vector.load %arg9[%c0_70, %c0_71] : memref<64x864xbf16, #tpu.memory_space<vmem>>, vector<64x128xbf16>
    tpu.vector_store %arg9[%c0_70, %c0_71], %96 {strides = array<i32>} : memref<64x864xbf16, #tpu.memory_space<vmem>>, vector<64x128xbf16>,
    %c0_72 = arith.constant 0 : index
    %c1_73 = arith.constant 1 : index
    %c1_74 = arith.constant 1 : index
    %c0_75 = arith.constant 0 : index
    %98 = vector.load %arg8[%c0_72, %c1_73, %c1_74, %c0_75] : memref<3x10x16x32xbf16, #tpu.memory_space<vmem>>, vector<1x8x8x32xbf16>
    %99 = vector.shape_cast %98 : vector<1x8x8x32xbf16> to vector<8x8x32xbf16>
    %100 = vector.shape_cast %99 : vector<8x8x32xbf16> to vector<64x32xbf16>
    %c0_76 = arith.constant 0 : index
    %c1_77 = arith.constant 1 : index
    %c2_78 = arith.constant 2 : index
    %c0_79 = arith.constant 0 : index
    %101 = vector.load %arg8[%c0_76, %c1_77, %c2_78, %c0_79] : memref<3x10x16x32xbf16, #tpu.memory_space<vmem>>, vector<1x8x8x32xbf16>
    %102 = vector.shape_cast %101 : vector<1x8x8x32xbf16> to vector<8x8x32xbf16>
    %103 = vector.shape_cast %102 : vector<8x8x32xbf16> to vector<64x32xbf16>
    %c0_80 = arith.constant 0 : index
    %c2_81 = arith.constant 2 : index
    %c0_82 = arith.constant 0 : index
    %c0_83 = arith.constant 0 : index
    %104 = vector.load %arg8[%c0_80, %c2_81, %c0_82, %c0_83] : memref<3x10x16x32xbf16, #tpu.memory_space<vmem>>, vector<1x8x8x32xbf16>
    %105 = vector.shape_cast %104 : vector<1x8x8x32xbf16> to vector<8x8x32xbf16>
    %106 = vector.shape_cast %105 : vector<8x8x32xbf16> to vector<64x32xbf16>
    %c0_84 = arith.constant 0 : index
    %c2_85 = arith.constant 2 : index
    %c1_86 = arith.constant 1 : index
    %c0_87 = arith.constant 0 : index
    %107 = vector.load %arg8[%c0_84, %c2_85, %c1_86, %c0_87] : memref<3x10x16x32xbf16, #tpu.memory_space<vmem>>, vector<1x8x8x32xbf16>
    %108 = vector.shape_cast %107 : vector<1x8x8x32xbf16> to vector<8x8x32xbf16>
    %109 = vector.shape_cast %108 : vector<8x8x32xbf16> to vector<64x32xbf16>
    %110 = tpu.concatenate %100, %103, %106, %109 in 1 : vector<64x32xbf16>, vector<64x32xbf16>, vector<64x32xbf16>, vector<64x32xbf16> -> vector<64x128xbf16>
    %c0_88 = arith.constant 0 : index
    %c128 = arith.constant 128 : index
    %111 = vector.load %arg9[%c0_88, %c128] : memref<64x864xbf16, #tpu.memory_space<vmem>>, vector<64x128xbf16>
    tpu.vector_store %arg9[%c0_88, %c128], %110 {strides = array<i32>} : memref<64x864xbf16, #tpu.memory_space<vmem>>, vector<64x128xbf16>,
    %c0_89 = arith.constant 0 : index
    %c2_90 = arith.constant 2 : index
    %c2_91 = arith.constant 2 : index
    %c0_92 = arith.constant 0 : index
    %112 = vector.load %arg8[%c0_89, %c2_90, %c2_91, %c0_92] : memref<3x10x16x32xbf16, #tpu.memory_space<vmem>>, vector<1x8x8x32xbf16>
    %113 = vector.shape_cast %112 : vector<1x8x8x32xbf16> to vector<8x8x32xbf16>
    %114 = vector.shape_cast %113 : vector<8x8x32xbf16> to vector<64x32xbf16>
    %c1_93 = arith.constant 1 : index
    %c0_94 = arith.constant 0 : index
    %c0_95 = arith.constant 0 : index
    %c0_96 = arith.constant 0 : index
    %115 = vector.load %arg8[%c1_93, %c0_94, %c0_95, %c0_96] : memref<3x10x16x32xbf16, #tpu.memory_space<vmem>>, vector<1x8x8x32xbf16>
    %116 = vector.shape_cast %115 : vector<1x8x8x32xbf16> to vector<8x8x32xbf16>
    %117 = vector.shape_cast %116 : vector<8x8x32xbf16> to vector<64x32xbf16>
    %c1_97 = arith.constant 1 : index
    %c0_98 = arith.constant 0 : index
    %c1_99 = arith.constant 1 : index
    %c0_100 = arith.constant 0 : index
    %118 = vector.load %arg8[%c1_97, %c0_98, %c1_99, %c0_100] : memref<3x10x16x32xbf16, #tpu.memory_space<vmem>>, vector<1x8x8x32xbf16>
    %119 = vector.shape_cast %118 : vector<1x8x8x32xbf16> to vector<8x8x32xbf16>
    %120 = vector.shape_cast %119 : vector<8x8x32xbf16> to vector<64x32xbf16>
    %c1_101 = arith.constant 1 : index
    %c0_102 = arith.constant 0 : index
    %c2_103 = arith.constant 2 : index
    %c0_104 = arith.constant 0 : index
    %121 = vector.load %arg8[%c1_101, %c0_102, %c2_103, %c0_104] : memref<3x10x16x32xbf16, #tpu.memory_space<vmem>>, vector<1x8x8x32xbf16>
    %122 = vector.shape_cast %121 : vector<1x8x8x32xbf16> to vector<8x8x32xbf16>
    %123 = vector.shape_cast %122 : vector<8x8x32xbf16> to vector<64x32xbf16>
    %124 = tpu.concatenate %114, %117, %120, %123 in 1 : vector<64x32xbf16>, vector<64x32xbf16>, vector<64x32xbf16>, vector<64x32xbf16> -> vector<64x128xbf16>
    %c0_105 = arith.constant 0 : index
    %c256 = arith.constant 256 : index
    %125 = vector.load %arg9[%c0_105, %c256] : memref<64x864xbf16, #tpu.memory_space<vmem>>, vector<64x128xbf16>
    tpu.vector_store %arg9[%c0_105, %c256], %124 {strides = array<i32>} : memref<64x864xbf16, #tpu.memory_space<vmem>>, vector<64x128xbf16>,
    %c1_106 = arith.constant 1 : index
    %c1_107 = arith.constant 1 : index
    %c0_108 = arith.constant 0 : index
    %c0_109 = arith.constant 0 : index
    %126 = vector.load %arg8[%c1_106, %c1_107, %c0_108, %c0_109] : memref<3x10x16x32xbf16, #tpu.memory_space<vmem>>, vector<1x8x8x32xbf16>
    %127 = vector.shape_cast %126 : vector<1x8x8x32xbf16> to vector<8x8x32xbf16>
    %128 = vector.shape_cast %127 : vector<8x8x32xbf16> to vector<64x32xbf16>
    %c1_110 = arith.constant 1 : index
    %c1_111 = arith.constant 1 : index
    %c1_112 = arith.constant 1 : index
    %c0_113 = arith.constant 0 : index
    %129 = vector.load %arg8[%c1_110, %c1_111, %c1_112, %c0_113] : memref<3x10x16x32xbf16, #tpu.memory_space<vmem>>, vector<1x8x8x32xbf16>
    %130 = vector.shape_cast %129 : vector<1x8x8x32xbf16> to vector<8x8x32xbf16>
    %131 = vector.shape_cast %130 : vector<8x8x32xbf16> to vector<64x32xbf16>
    %c1_114 = arith.constant 1 : index
    %c1_115 = arith.constant 1 : index
    %c2_116 = arith.constant 2 : index
    %c0_117 = arith.constant 0 : index
    %132 = vector.load %arg8[%c1_114, %c1_115, %c2_116, %c0_117] : memref<3x10x16x32xbf16, #tpu.memory_space<vmem>>, vector<1x8x8x32xbf16>
    %133 = vector.shape_cast %132 : vector<1x8x8x32xbf16> to vector<8x8x32xbf16>
    %134 = vector.shape_cast %133 : vector<8x8x32xbf16> to vector<64x32xbf16>
    %c1_118 = arith.constant 1 : index
    %c2_119 = arith.constant 2 : index
    %c0_120 = arith.constant 0 : index
    %c0_121 = arith.constant 0 : index
    %135 = vector.load %arg8[%c1_118, %c2_119, %c0_120, %c0_121] : memref<3x10x16x32xbf16, #tpu.memory_space<vmem>>, vector<1x8x8x32xbf16>
    %136 = vector.shape_cast %135 : vector<1x8x8x32xbf16> to vector<8x8x32xbf16>
    %137 = vector.shape_cast %136 : vector<8x8x32xbf16> to vector<64x32xbf16>
    %138 = tpu.concatenate %128, %131, %134, %137 in 1 : vector<64x32xbf16>, vector<64x32xbf16>, vector<64x32xbf16>, vector<64x32xbf16> -> vector<64x128xbf16>
    %c0_122 = arith.constant 0 : index
    %c384 = arith.constant 384 : index
    %139 = vector.load %arg9[%c0_122, %c384] : memref<64x864xbf16, #tpu.memory_space<vmem>>, vector<64x128xbf16>
    tpu.vector_store %arg9[%c0_122, %c384], %138 {strides = array<i32>} : memref<64x864xbf16, #tpu.memory_space<vmem>>, vector<64x128xbf16>,
    %c1_123 = arith.constant 1 : index
    %c2_124 = arith.constant 2 : index
    %c1_125 = arith.constant 1 : index
    %c0_126 = arith.constant 0 : index
    %140 = vector.load %arg8[%c1_123, %c2_124, %c1_125, %c0_126] : memref<3x10x16x32xbf16, #tpu.memory_space<vmem>>, vector<1x8x8x32xbf16>
    %141 = vector.shape_cast %140 : vector<1x8x8x32xbf16> to vector<8x8x32xbf16>
    %142 = vector.shape_cast %141 : vector<8x8x32xbf16> to vector<64x32xbf16>
    %c1_127 = arith.constant 1 : index
    %c2_128 = arith.constant 2 : index
    %c2_129 = arith.constant 2 : index
    %c0_130 = arith.constant 0 : index
    %143 = vector.load %arg8[%c1_127, %c2_128, %c2_129, %c0_130] : memref<3x10x16x32xbf16, #tpu.memory_space<vmem>>, vector<1x8x8x32xbf16>
    %144 = vector.shape_cast %143 : vector<1x8x8x32xbf16> to vector<8x8x32xbf16>
    %145 = vector.shape_cast %144 : vector<8x8x32xbf16> to vector<64x32xbf16>
    %c2_131 = arith.constant 2 : index
    %c0_132 = arith.constant 0 : index
    %c0_133 = arith.constant 0 : index
    %c0_134 = arith.constant 0 : index
    %146 = vector.load %arg8[%c2_131, %c0_132, %c0_133, %c0_134] : memref<3x10x16x32xbf16, #tpu.memory_space<vmem>>, vector<1x8x8x32xbf16>
    %147 = vector.shape_cast %146 : vector<1x8x8x32xbf16> to vector<8x8x32xbf16>
    %148 = vector.shape_cast %147 : vector<8x8x32xbf16> to vector<64x32xbf16>
    %c2_135 = arith.constant 2 : index
    %c0_136 = arith.constant 0 : index
    %c1_137 = arith.constant 1 : index
    %c0_138 = arith.constant 0 : index
    %149 = vector.load %arg8[%c2_135, %c0_136, %c1_137, %c0_138] : memref<3x10x16x32xbf16, #tpu.memory_space<vmem>>, vector<1x8x8x32xbf16>
    %150 = vector.shape_cast %149 : vector<1x8x8x32xbf16> to vector<8x8x32xbf16>
    %151 = vector.shape_cast %150 : vector<8x8x32xbf16> to vector<64x32xbf16>
    %152 = tpu.concatenate %142, %145, %148, %151 in 1 : vector<64x32xbf16>, vector<64x32xbf16>, vector<64x32xbf16>, vector<64x32xbf16> -> vector<64x128xbf16>
    %c0_139 = arith.constant 0 : index
    %c512 = arith.constant 512 : index
    %153 = vector.load %arg9[%c0_139, %c512] : memref<64x864xbf16, #tpu.memory_space<vmem>>, vector<64x128xbf16>
    tpu.vector_store %arg9[%c0_139, %c512], %152 {strides = array<i32>} : memref<64x864xbf16, #tpu.memory_space<vmem>>, vector<64x128xbf16>,
    %c2_140 = arith.constant 2 : index
    %c0_141 = arith.constant 0 : index
    %c2_142 = arith.constant 2 : index
    %c0_143 = arith.constant 0 : index
    %154 = vector.load %arg8[%c2_140, %c0_141, %c2_142, %c0_143] : memref<3x10x16x32xbf16, #tpu.memory_space<vmem>>, vector<1x8x8x32xbf16>
    %155 = vector.shape_cast %154 : vector<1x8x8x32xbf16> to vector<8x8x32xbf16>
    %156 = vector.shape_cast %155 : vector<8x8x32xbf16> to vector<64x32xbf16>
    %c2_144 = arith.constant 2 : index
    %c1_145 = arith.constant 1 : index
    %c0_146 = arith.constant 0 : index
    %c0_147 = arith.constant 0 : index
    %157 = vector.load %arg8[%c2_144, %c1_145, %c0_146, %c0_147] : memref<3x10x16x32xbf16, #tpu.memory_space<vmem>>, vector<1x8x8x32xbf16>
    %158 = vector.shape_cast %157 : vector<1x8x8x32xbf16> to vector<8x8x32xbf16>
    %159 = vector.shape_cast %158 : vector<8x8x32xbf16> to vector<64x32xbf16>
    %c2_148 = arith.constant 2 : index
    %c1_149 = arith.constant 1 : index
    %c1_150 = arith.constant 1 : index
    %c0_151 = arith.constant 0 : index
    %160 = vector.load %arg8[%c2_148, %c1_149, %c1_150, %c0_151] : memref<3x10x16x32xbf16, #tpu.memory_space<vmem>>, vector<1x8x8x32xbf16>
    %161 = vector.shape_cast %160 : vector<1x8x8x32xbf16> to vector<8x8x32xbf16>
    %162 = vector.shape_cast %161 : vector<8x8x32xbf16> to vector<64x32xbf16>
    %c2_152 = arith.constant 2 : index
    %c1_153 = arith.constant 1 : index
    %c2_154 = arith.constant 2 : index
    %c0_155 = arith.constant 0 : index
    %163 = vector.load %arg8[%c2_152, %c1_153, %c2_154, %c0_155] : memref<3x10x16x32xbf16, #tpu.memory_space<vmem>>, vector<1x8x8x32xbf16>
    %164 = vector.shape_cast %163 : vector<1x8x8x32xbf16> to vector<8x8x32xbf16>
    %165 = vector.shape_cast %164 : vector<8x8x32xbf16> to vector<64x32xbf16>
    %166 = tpu.concatenate %156, %159, %162, %165 in 1 : vector<64x32xbf16>, vector<64x32xbf16>, vector<64x32xbf16>, vector<64x32xbf16> -> vector<64x128xbf16>
    %c0_156 = arith.constant 0 : index
    %c640 = arith.constant 640 : index
    %167 = vector.load %arg9[%c0_156, %c640] : memref<64x864xbf16, #tpu.memory_space<vmem>>, vector<64x128xbf16>
    tpu.vector_store %arg9[%c0_156, %c640], %166 {strides = array<i32>} : memref<64x864xbf16, #tpu.memory_space<vmem>>, vector<64x128xbf16>,
    %c2_157 = arith.constant 2 : index
    %c2_158 = arith.constant 2 : index
    %c0_159 = arith.constant 0 : index
    %c0_160 = arith.constant 0 : index
    %168 = vector.load %arg8[%c2_157, %c2_158, %c0_159, %c0_160] : memref<3x10x16x32xbf16, #tpu.memory_space<vmem>>, vector<1x8x8x32xbf16>
    %169 = vector.shape_cast %168 : vector<1x8x8x32xbf16> to vector<8x8x32xbf16>
    %170 = vector.shape_cast %169 : vector<8x8x32xbf16> to vector<64x32xbf16>
    %c2_161 = arith.constant 2 : index
    %c2_162 = arith.constant 2 : index
    %c1_163 = arith.constant 1 : index
    %c0_164 = arith.constant 0 : index
    %171 = vector.load %arg8[%c2_161, %c2_162, %c1_163, %c0_164] : memref<3x10x16x32xbf16, #tpu.memory_space<vmem>>, vector<1x8x8x32xbf16>
    %172 = vector.shape_cast %171 : vector<1x8x8x32xbf16> to vector<8x8x32xbf16>
    %173 = vector.shape_cast %172 : vector<8x8x32xbf16> to vector<64x32xbf16>
    %c2_165 = arith.constant 2 : index
    %c2_166 = arith.constant 2 : index
    %c2_167 = arith.constant 2 : index
    %c0_168 = arith.constant 0 : index
    %174 = vector.load %arg8[%c2_165, %c2_166, %c2_167, %c0_168] : memref<3x10x16x32xbf16, #tpu.memory_space<vmem>>, vector<1x8x8x32xbf16>
    %175 = vector.shape_cast %174 : vector<1x8x8x32xbf16> to vector<8x8x32xbf16>
    %176 = vector.shape_cast %175 : vector<8x8x32xbf16> to vector<64x32xbf16>
    %177 = tpu.concatenate %170, %173, %176 in 1 : vector<64x32xbf16>, vector<64x32xbf16>, vector<64x32xbf16> -> vector<64x96xbf16>
    %c0_169 = arith.constant 0 : index
    %c768 = arith.constant 768 : index
    %178 = vector.load %arg9[%c0_169, %c768] : memref<64x864xbf16, #tpu.memory_space<vmem>>, vector<64x96xbf16>
    tpu.vector_store %arg9[%c0_169, %c768], %177 {strides = array<i32>} : memref<64x864xbf16, #tpu.memory_space<vmem>>, vector<64x96xbf16>,
    %c0_170 = arith.constant 0 : index
    %c0_171 = arith.constant 0 : index
    %179 = vector.load %arg9[%c0_170, %c0_171] : memref<64x864xbf16, #tpu.memory_space<vmem>>, vector<64x864xbf16>
    %c0_172 = arith.constant 0 : index
    %c0_173 = arith.constant 0 : index
    %180 = vector.load %arg3[%c0_172, %c0_173] : memref<864x32xbf16, #tpu.memory_space<vmem>>, vector<864x32xbf16>
    %cst_174 = arith.constant dense<0.000000e+00> : vector<64x32xf32>
    %181 = tpu.matmul %179, %180, %cst_174 {dimension_numbers = #tpu.dot_dimension_numbers<[1], [0], [0], [1], [0, 0, 1, 1], [], []>} : vector<64x864xbf16>, vector<864x32xbf16>, vector<64x32xf32> -> vector<64x32xf32>
    %182 = vector.shape_cast %181 : vector<64x32xf32> to vector<8x8x32xf32>
    %183 = arith.truncf %182 : vector<8x8x32xf32> to vector<8x8x32xbf16>
    %c0_175 = arith.constant 0 : index
    %c0_176 = arith.constant 0 : index
    %c0_177 = arith.constant 0 : index
    %c0_178 = arith.constant 0 : index
    %c0_179 = arith.constant 0 : index
    %184 = vector.load %arg6[%c0_175, %c0_176, %c0_177, %c0_178, %c0_179] : memref<1x1x8x8x32xbf16, #tpu.memory_space<vmem>>, vector<1x1x8x8x32xbf16>
    %185 = vector.shape_cast %184 : vector<1x1x8x8x32xbf16> to vector<8x8x32xbf16>
    %186 = vector.shape_cast %183 : vector<8x8x32xbf16> to vector<1x1x8x8x32xbf16>
    tpu.vector_store %arg6[%c0_175, %c0_176, %c0_177, %c0_178, %c0_179], %186 {strides = array<i32>} : memref<1x1x8x8x32xbf16, #tpu.memory_space<vmem>>, vector<1x1x8x8x32xbf16>,
    %cst_180 = arith.constant dense<0.000000e+00> : vector<32xf32>
    %187 = vector.multi_reduction <add>, %181, %cst_180 [0] : vector<64x32xf32> to vector<32xf32>
    %188 = vector.shape_cast %187 : vector<32xf32> to vector<1x32xf32>
    %189 = arith.mulf %181, %181 : vector<64x32xf32>
    %cst_181 = arith.constant dense<0.000000e+00> : vector<32xf32>
    %190 = vector.multi_reduction <add>, %189, %cst_181 [0] : vector<64x32xf32> to vector<32xf32>
    %191 = vector.shape_cast %190 : vector<32xf32> to vector<1x32xf32>
    %192 = tpu.concatenate %188, %191 in 0 : vector<1x32xf32>, vector<1x32xf32> -> vector<2x32xf32>
    %c0_182 = arith.constant 0 : index
    %c0_183 = arith.constant 0 : index
    %c0_184 = arith.constant 0 : index
    %193 = vector.load %arg7[%c0_182, %c0_183, %c0_184] : memref<1x2x32xf32, #tpu.memory_space<vmem>>, vector<1x2x32xf32>
    %194 = vector.shape_cast %193 : vector<1x2x32xf32> to vector<2x32xf32>
    %195 = arith.addf %194, %192 : vector<2x32xf32>
    %c0_185 = arith.constant 0 : index
    %c0_186 = arith.constant 0 : index
    %c0_187 = arith.constant 0 : index
    %196 = vector.load %arg7[%c0_185, %c0_186, %c0_187] : memref<1x2x32xf32, #tpu.memory_space<vmem>>, vector<1x2x32xf32>
    %197 = vector.shape_cast %196 : vector<1x2x32xf32> to vector<2x32xf32>
    %198 = vector.shape_cast %195 : vector<2x32xf32> to vector<1x2x32xf32>
    tpu.vector_store %arg7[%c0_185, %c0_186, %c0_187], %198 {strides = array<i32>} : memref<1x2x32xf32, #tpu.memory_space<vmem>>, vector<1x2x32xf32>,
    return
  }
  func.func @transform_0(%arg0: i32, %arg1: i32) -> (i32, i32, i32, i32, i32) {
    %c0_i32 = arith.constant 0 : i32
    %c0_i32_0 = arith.constant 0 : i32
    %c0_i32_1 = arith.constant 0 : i32
    %c0_i32_2 = arith.constant 0 : i32
    %c0_i32_3 = arith.constant 0 : i32
    return %arg0, %c0_i32, %c0_i32_0, %c0_i32_1, %c0_i32_2 : i32, i32, i32, i32, i32
  }
  func.func @transform_1(%arg0: i32, %arg1: i32) -> (i32, i32) {
    %c0_i32 = arith.constant 0 : i32
    %c0_i32_0 = arith.constant 0 : i32
    %c0_i32_1 = arith.constant 0 : i32
    return %c0_i32, %c0_i32_0 : i32, i32
  }
  func.func @transform_2(%arg0: i32, %arg1: i32) -> (i32, i32) {
    %c0_i32 = arith.constant 0 : i32
    %c0_i32_0 = arith.constant 0 : i32
    %c0_i32_1 = arith.constant 0 : i32
    return %c0_i32, %c0_i32_0 : i32, i32
  }
  func.func @transform_3(%arg0: i32, %arg1: i32) -> (i32, i32) {
    %c0_i32 = arith.constant 0 : i32
    %c0_i32_0 = arith.constant 0 : i32
    %c0_i32_1 = arith.constant 0 : i32
    return %c0_i32, %c0_i32_0 : i32, i32
  }
  func.func @transform_4(%arg0: i32, %arg1: i32) -> (i32, i32, i32, i32, i32) {
    %c0_i32 = arith.constant 0 : i32
    %c0_i32_0 = arith.constant 0 : i32
    %c0_i32_1 = arith.constant 0 : i32
    %c0_i32_2 = arith.constant 0 : i32
    return %arg0, %arg1, %c0_i32, %c0_i32_0, %c0_i32_1 : i32, i32, i32, i32, i32
  }
  func.func @transform_5(%arg0: i32, %arg1: i32) -> (i32, i32, i32) {
    %c0_i32 = arith.constant 0 : i32
    %c0_i32_0 = arith.constant 0 : i32
    %c0_i32_1 = arith.constant 0 : i32
    return %arg0, %c0_i32, %c0_i32_0 : i32, i32, i32
  }
}

module attributes {stable_mosaic.version = 11 : i64} {
  func.func @_bn_add_relu_kernel(%arg0: i32, %arg1: memref<64x256xbf16, #tpu.memory_space<vmem>>, %arg2: memref<64x256xf32, #tpu.memory_space<vmem>>, %arg3: memref<1x256xf32, #tpu.memory_space<vmem>>, %arg4: memref<1x256xf32, #tpu.memory_space<vmem>>, %arg5: memref<64x256xf32, #tpu.memory_space<vmem>>) attributes {dimension_semantics = [#tpu.dimension_semantics<parallel>], iteration_bounds = array<i64: 1>, scalar_prefetch = 0 : i64, scratch_operands = 0 : i64, tpu.core_type = #tpu.core_type<tc>, window_params = [{transform_indices = @transform_0, window_bounds = array<i64: 64, 256>}, {transform_indices = @transform_1, window_bounds = array<i64: 64, 256>}, {pipeline_mode = #tpu.pipeline_mode<synchronous>, transform_indices = @transform_2, window_bounds = array<i64: 1, 256>}, {pipeline_mode = #tpu.pipeline_mode<synchronous>, transform_indices = @transform_3, window_bounds = array<i64: 1, 256>}, {transform_indices = @transform_4, window_bounds = array<i64: 64, 256>}]} {
    %c0 = arith.constant 0 : index
    %c0_0 = arith.constant 0 : index
    %0 = vector.load %arg1[%c0, %c0_0] : memref<64x256xbf16, #tpu.memory_space<vmem>>, vector<64x256xbf16>
    %1 = arith.extf %0 : vector<64x256xbf16> to vector<64x256xf32>
    %c0_1 = arith.constant 0 : index
    %c0_2 = arith.constant 0 : index
    %2 = vector.load %arg2[%c0_1, %c0_2] : memref<64x256xf32, #tpu.memory_space<vmem>>, vector<64x256xf32>
    %c0_3 = arith.constant 0 : index
    %c0_4 = arith.constant 0 : index
    %3 = vector.load %arg3[%c0_3, %c0_4] : memref<1x256xf32, #tpu.memory_space<vmem>>, vector<1x256xf32>
    %4 = vector.broadcast %3 : vector<1x256xf32> to vector<64x256xf32>
    %5 = arith.mulf %1, %4 : vector<64x256xf32>
    %c0_5 = arith.constant 0 : index
    %c0_6 = arith.constant 0 : index
    %6 = vector.load %arg4[%c0_5, %c0_6] : memref<1x256xf32, #tpu.memory_space<vmem>>, vector<1x256xf32>
    %7 = vector.broadcast %6 : vector<1x256xf32> to vector<64x256xf32>
    %8 = arith.addf %5, %7 : vector<64x256xf32>
    %9 = arith.addf %8, %2 : vector<64x256xf32>
    %cst = arith.constant 0.000000e+00 : f32
    %10 = vector.broadcast %cst : f32 to vector<64x256xf32>
    %11 = arith.maximumf %9, %10 : vector<64x256xf32>
    %c0_7 = arith.constant 0 : index
    %c0_8 = arith.constant 0 : index
    %12 = vector.load %arg5[%c0_7, %c0_8] : memref<64x256xf32, #tpu.memory_space<vmem>>, vector<64x256xf32>
    tpu.vector_store %arg5[%c0_7, %c0_8], %11 {strides = array<i32>} : memref<64x256xf32, #tpu.memory_space<vmem>>, vector<64x256xf32>,
    return
  }
  func.func @transform_0(%arg0: i32) -> (i32, i32) {
    %c0_i32 = arith.constant 0 : i32
    %c0_i32_0 = arith.constant 0 : i32
    return %arg0, %c0_i32 : i32, i32
  }
  func.func @transform_1(%arg0: i32) -> (i32, i32) {
    %c0_i32 = arith.constant 0 : i32
    %c0_i32_0 = arith.constant 0 : i32
    return %arg0, %c0_i32 : i32, i32
  }
  func.func @transform_2(%arg0: i32) -> (i32, i32) {
    %c0_i32 = arith.constant 0 : i32
    %c0_i32_0 = arith.constant 0 : i32
    %c0_i32_1 = arith.constant 0 : i32
    return %c0_i32, %c0_i32_0 : i32, i32
  }
  func.func @transform_3(%arg0: i32) -> (i32, i32) {
    %c0_i32 = arith.constant 0 : i32
    %c0_i32_0 = arith.constant 0 : i32
    %c0_i32_1 = arith.constant 0 : i32
    return %c0_i32, %c0_i32_0 : i32, i32
  }
  func.func @transform_4(%arg0: i32) -> (i32, i32) {
    %c0_i32 = arith.constant 0 : i32
    %c0_i32_0 = arith.constant 0 : i32
    return %arg0, %c0_i32 : i32, i32
  }
}

</mosaic_0001>

<bundles_post_ra>
// kernel: tile.10
= control target key start
LH: loop header
LB: loop body
LE: loop exit
PB: predicated region body
PF: predicated region fallthrough
CT: control target
= control target key end

     0   :  { %s22_s0 = inlined_call_operand.vmem [shape: f32[32], index: 0, kind: input, shape index: {}]   ;;  %s23_s1 = inlined_call_operand.vmem [shape: f32[8,32], index: 1, kind: output, shape index: {}]  }
   0x1   :  { %v4_v0 = vld [vmem:[%s22_s0] ss:$0 sm:$0xff] }
   0x2   :  { %5 = vst [vmem:[%s23_s1] sm:$0xff] %v4_v0 }

// kernel: tile.11
= control target key start
LH: loop header
LB: loop body
LE: loop exit
PB: predicated region body
PF: predicated region fallthrough
CT: control target
= control target key end

     0   :  { %s7_s6 = smov 3  ;;  %s14_s9 = smov 3  ;;  %vm4_vm0 = vcmask 261120   ;;  %vm11_vm1 = vcmask 1048320   ;;  %vm18_vm2 = vcmask 785920   ;;  %vm25_vm3 = vcmask 523520   ;;  %s76_s0 = inlined_call_operand.vmem [shape: f32[8,32], index: 0, kind: input, shape index: {}]   ;;  %s77_s1 = inlined_call_operand.vmem [shape: f32[1,256], index: 1, kind: output, shape index: {}]  }
   0x1   :  { %v38_v0 = vld [vmem:[%s76_s0 + $0x3] ss:$4 sm:%s7_s6]   ;;  %s45_s10 = smov 96   ;;  %s21_s11 = smov 3  ;;  %v39_v1 = vld [vmem:[%s76_s0 + $0x2] ss:$4 sm:%s14_s9]  }
   0x2   :  { %9 = vrot.lane.b32.xlu0 %v38_v0, %s45_s10  ;;  %v40_v2 = vld [vmem:[%s76_s0 + $0x1] ss:$4 sm:%s21_s11]   ;;  %s2_s16 = smov 3  ;;  %s46_s17 = smov 32  }
   0x3   :  { %23 = vrot.lane.b32.xlu1 %v40_v2, %s46_s17  ;;  %v3_v3 = vld [vmem:[%s76_s0] ss:$4 sm:%s2_s16]   ;;  %s47_s0 = smov 64  }
   0x4   :  { %5 = vst.msk [vmem:[#allocation0] ss:$8 sm:$0x3] %vm4_vm0, %v3_v3  }
   0x6   :  { %16 = vrot.lane.b32.xlu0 %v39_v1, %s47_s0 }
  0x74   :  { %v10_v4 = vpop.permute.xlu0 %9  }
  0x75   :  { %12 = vst.msk [vmem:[#allocation0] ss:$8 sm:$0x3] %vm11_vm1, %v10_v4   ;;  %v24_v5 = vpop.permute.xlu1 %23  }
  0x78   :  { %v17_v6 = vpop.permute.xlu0 %16  }
  0x79   :  { %19 = vst.msk [vmem:[#allocation0] ss:$8 sm:$0x3] %vm18_vm2, %v17_v6  }
  0x7a   :  { %26 = vst.msk [vmem:[#allocation0] ss:$8 sm:$0x3] %vm25_vm3, %v24_v5  }
  0x81   :  { %v30_v7 = vld [vmem:[#allocation0] sm:$0x1]  ;;  %v34_v8 = vld [vmem:[#allocation0 + $0x8] sm:$0x1] }
  0x82   :  { %32 = vst [vmem:[%s77_s1] sm:$0x1] %v30_v7  ;;  %41 = vst [vmem:[%s77_s1 + $0x1] sm:$0x1] %v34_v8 }

// kernel: basic_block_forward.5
= control target key start
LH: loop header
LB: loop body
LE: loop exit
PB: predicated region body
PF: predicated region fallthrough
CT: control target
= control target key end

     0   :  { %v59_v0 = vlaneseq  ;;  %s356_s0 = inlined_call_operand.vmem [shape: bf16[64,256], index: 0, kind: input, shape index: {}]   ;;  %s357_s2 = inlined_call_operand.vmem [shape: f32[1,256], index: 2, kind: input, shape index: {}]   ;;  %s358_s3 = inlined_call_operand.vmem [shape: f32[1,256], index: 3, kind: input, shape index: {}]   ;;  %s359_s1 = inlined_call_operand.vmem [shape: f32[64,256], index: 1, kind: input, shape index: {}]   ;;  %s360_s4 = inlined_call_operand.vmem [shape: f32[64,256], index: 4, kind: output, shape index: {}]  }
   0x1   :  { %v17_v1 = vld [vmem:[%s356_s0] sm:$0xff]  ;;  %v18_v3 = vld [vmem:[%s356_s0 + $0x8] sm:$0xff]  ;;  %v19_v8 = vld [vmem:[%s356_s0 + $0x10] sm:$0xff] }
   0x2   :  { %v60_v2 = vshrl.u32 %v59_v0, 7  ;;  %v25_v4 = vunpack.c.l.bf16 %v17_v1  ;;  %v57_v5 = vld [vmem:[%s357_s2] sm:$0x3]  ;;  %v26_v7 = vunpack.c.h.bf16 %v17_v1  ;;  %v27_v11 = vunpack.c.l.bf16 %v18_v3  ;;  %v20_v13 = vld [vmem:[%s356_s0 + $0x18] sm:$0xff]  ;;  %v22_v23 = vld [vmem:[%s356_s0 + $0x28] sm:$0xff] }
   0x3   :  { %v85_v6 = vld [vmem:[%s358_s3] sm:$0x3]  ;;  %v28_v12 = vunpack.c.h.bf16 %v18_v3  ;;  %v29_v14 = vunpack.c.l.bf16 %v19_v8  ;;  %v30_v15 = vunpack.c.h.bf16 %v19_v8  ;;  %v31_v16 = vunpack.c.l.bf16 %v20_v13  ;;  %v42_v30 = vld [vmem:[%s359_s1 + $0x8] sm:$0xff]  ;;  %v43_v34 = vld [vmem:[%s359_s1 + $0x10] sm:$0xff] }
   0x4   :  { %v61_v9 = vsub.s32 0, %v60_v2  ;;  %v65_v10 = vsub.s32 1, %v60_v2  ;;  %v32_v17 = vunpack.c.h.bf16 %v20_v13  ;;  %v21_v18 = vld [vmem:[%s356_s0 + $0x20] sm:$0xff]  ;;  %v35_v26 = vunpack.c.l.bf16 %v22_v23  ;;  %v44_v35 = vld [vmem:[%s359_s1 + $0x18] sm:$0xff]  ;;  %v46_v45 = vld [vmem:[%s359_s1 + $0x28] sm:$0xff] }
   0x5   :  { %v33_v24 = vunpack.c.l.bf16 %v21_v18  ;;  %v34_v25 = vunpack.c.h.bf16 %v21_v18  ;;  %v36_v27 = vunpack.c.h.bf16 %v22_v23  ;;  %v41_v28 = vld [vmem:[%s359_s1] sm:$0xff]  ;;  %v47_v46 = vld [vmem:[%s359_s1 + $0x30] sm:$0xff]  ;;  %v48_v47 = vld [vmem:[%s359_s1 + $0x38] sm:$0xff] }
   0x6   :  { %v211_v19 = vrot.slane %v57_v5, %v61_v9  ;;  %v213_v20 = vrot.slane %v85_v6, %v61_v9  ;;  %v215_v21 = vrot.slane %v57_v5, %v65_v10  ;;  %v217_v22 = vrot.slane %v85_v6, %v65_v10  ;;  %v45_v36 = vld [vmem:[%s359_s1 + $0x20] sm:$0xff]  ;;  %v23_v0 = vld [vmem:[%s356_s0 + $0x30] sm:$0xff]  ;;  %v24_v1 = vld [vmem:[%s356_s0 + $0x38] sm:$0xff] }
   0x7   :  { %v49_v6 = vld [vmem:[%s359_s1 + $0x40] sm:$0xff]  ;;  %v52_v13 = vld [vmem:[%s359_s1 + $0x58] sm:$0xff] }
   0x8   :  { %v69_v29 = vmul.f32 %v211_v19, %v25_v4  ;;  %v70_v31 = vmul.f32 %v215_v21, %v26_v7  ;;  %v71_v32 = vmul.f32 %v211_v19, %v27_v11  ;;  %v72_v33 = vmul.f32 %v215_v21, %v28_v12  ;;  %v50_v11 = vld [vmem:[%s359_s1 + $0x48] sm:$0xff]  ;;  %v51_v12 = vld [vmem:[%s359_s1 + $0x50] sm:$0xff] }
   0x9   :  { %v73_v37 = vmul.f32 %v211_v19, %v29_v14  ;;  %v74_v38 = vmul.f32 %v215_v21, %v30_v15  ;;  %v75_v39 = vmul.f32 %v211_v19, %v31_v16  ;;  %v76_v40 = vmul.f32 %v215_v21, %v32_v17 }
   0xa   :  { %v97_v41 = vadd.f32 %v213_v20, %v69_v29  ;;  %v98_v42 = vadd.f32 %v217_v22, %v70_v31  ;;  %v99_v43 = vadd.f32 %v213_v20, %v71_v32  ;;  %v100_v44 = vadd.f32 %v217_v22, %v72_v33 }
   0xb   :  { %v101_v48 = vadd.f32 %v213_v20, %v73_v37  ;;  %v102_v49 = vadd.f32 %v217_v22, %v74_v38  ;;  %v103_v50 = vadd.f32 %v213_v20, %v75_v39  ;;  %v104_v51 = vadd.f32 %v217_v22, %v76_v40  ;;  %v56_v37 = vld [vmem:[%s359_s1 + $0x78] sm:$0xff] }
   0xc   :  { %v113_v52 = vadd.f32 %v97_v41, %v41_v28  ;;  %v114_v53 = vadd.f32 %v98_v42, %v42_v30  ;;  %v115_v54 = vadd.f32 %v99_v43, %v43_v34  ;;  %v116_v55 = vadd.f32 %v100_v44, %v44_v35  ;;  %v54_v35 = vld [vmem:[%s359_s1 + $0x68] sm:$0xff] }
   0xd   :  { %v117_v56 = vadd.f32 %v101_v48, %v45_v36  ;;  %v118_v57 = vadd.f32 %v102_v49, %v46_v45  ;;  %v119_v58 = vadd.f32 %v103_v50, %v47_v46  ;;  %v120_v59 = vadd.f32 %v104_v51, %v48_v47  ;;  %v55_v36 = vld [vmem:[%s359_s1 + $0x70] sm:$0xff] }
   0xe   :  { %v129_v60 = vmax.f32 %v113_v52, 0.0  ;;  %v130_v61 = vmax.f32 %v114_v53, 0.0  ;;  %v131_v62 = vmax.f32 %v115_v54, 0.0  ;;  %v132_v63 = vmax.f32 %v116_v55, 0.0 }
   0xf   :  { %v133_v2 = vmax.f32 %v117_v56, 0.0  ;;  %v134_v3 = vmax.f32 %v118_v57, 0.0  ;;  %v135_v4 = vmax.f32 %v119_v58, 0.0  ;;  %v136_v5 = vmax.f32 %v120_v59, 0.0 }
  0x10   :  { %145 = vst [vmem:[%s360_s4] sm:$0xff] %v129_v60  ;;  %146 = vst [vmem:[%s360_s4 + $0x8] sm:$0xff] %v130_v61  ;;  %v77_v7 = vmul.f32 %v211_v19, %v33_v24  ;;  %v78_v8 = vmul.f32 %v215_v21, %v34_v25  ;;  %v79_v9 = vmul.f32 %v211_v19, %v35_v26  ;;  %v37_v14 = vunpack.c.l.bf16 %v23_v0  ;;  %v53_v26 = vld [vmem:[%s359_s1 + $0x60] sm:$0xff] }
  0x11   :  { %147 = vst [vmem:[%s360_s4 + $0x10] sm:$0xff] %v131_v62  ;;  %148 = vst [vmem:[%s360_s4 + $0x18] sm:$0xff] %v132_v63  ;;  %v80_v10 = vmul.f32 %v215_v21, %v36_v27  ;;  %v38_v15 = vunpack.c.h.bf16 %v23_v0  ;;  %v39_v16 = vunpack.c.l.bf16 %v24_v1  ;;  %v40_v17 = vunpack.c.h.bf16 %v24_v1 }
  0x12   :  { %149 = vst [vmem:[%s360_s4 + $0x20] sm:$0xff] %v133_v2  ;;  %150 = vst [vmem:[%s360_s4 + $0x28] sm:$0xff] %v134_v3  ;;  %v105_v18 = vadd.f32 %v213_v20, %v77_v7  ;;  %v106_v23 = vadd.f32 %v217_v22, %v78_v8  ;;  %v107_v24 = vadd.f32 %v213_v20, %v79_v9 }
  0x13   :  { %151 = vst [vmem:[%s360_s4 + $0x30] sm:$0xff] %v135_v4  ;;  %152 = vst [vmem:[%s360_s4 + $0x38] sm:$0xff] %v136_v5  ;;  %v108_v25 = vadd.f32 %v217_v22, %v80_v10  ;;  %v81_v27 = vmul.f32 %v211_v19, %v37_v14  ;;  %v82_v28 = vmul.f32 %v215_v21, %v38_v15 }
  0x14   :  { %v83_v29 = vmul.f32 %v211_v19, %v39_v16  ;;  %v84_v30 = vmul.f32 %v215_v21, %v40_v17  ;;  %v121_v31 = vadd.f32 %v105_v18, %v49_v6  ;;  %v122_v32 = vadd.f32 %v106_v23, %v50_v11 }
  0x15   :  { %v123_v33 = vadd.f32 %v107_v24, %v51_v12  ;;  %v124_v34 = vadd.f32 %v108_v25, %v52_v13  ;;  %v109_v19 = vadd.f32 %v213_v20, %v81_v27  ;;  %v110_v21 = vadd.f32 %v217_v22, %v82_v28 }
  0x16   :  { %v111_v38 = vadd.f32 %v213_v20, %v83_v29  ;;  %v112_v39 = vadd.f32 %v217_v22, %v84_v30  ;;  %v137_v40 = vmax.f32 %v121_v31, 0.0  ;;  %v138_v41 = vmax.f32 %v122_v32, 0.0 }
  0x17   :  { %v139_v42 = vmax.f32 %v123_v33, 0.0  ;;  %v140_v43 = vmax.f32 %v124_v34, 0.0  ;;  %v125_v44 = vadd.f32 %v109_v19, %v53_v26  ;;  %v126_v45 = vadd.f32 %v110_v21, %v54_v35 }
  0x18   :  { %v127_v46 = vadd.f32 %v111_v38, %v55_v36  ;;  %v128_v47 = vadd.f32 %v112_v39, %v56_v37  ;;  %153 = vst [vmem:[%s360_s4 + $0x40] sm:$0xff] %v137_v40  ;;  %154 = vst [vmem:[%s360_s4 + $0x48] sm:$0xff] %v138_v41 }
  0x19   :  { %155 = vst [vmem:[%s360_s4 + $0x50] sm:$0xff] %v139_v42  ;;  %156 = vst [vmem:[%s360_s4 + $0x58] sm:$0xff] %v140_v43  ;;  %v141_v20 = vmax.f32 %v125_v44, 0.0  ;;  %v142_v22 = vmax.f32 %v126_v45, 0.0 }
  0x1a   :  { %v143_v48 = vmax.f32 %v127_v46, 0.0  ;;  %v144_v49 = vmax.f32 %v128_v47, 0.0 }
  0x1b   :  { %157 = vst [vmem:[%s360_s4 + $0x60] sm:$0xff] %v141_v20  ;;  %158 = vst [vmem:[%s360_s4 + $0x68] sm:$0xff] %v142_v22 }
  0x1c   :  { %159 = vst [vmem:[%s360_s4 + $0x70] sm:$0xff] %v143_v48  ;;  %160 = vst [vmem:[%s360_s4 + $0x78] sm:$0xff] %v144_v49 }

// kernel: basic_block_forward.3
= control target key start
LH: loop header
LB: loop body
LE: loop exit
PB: predicated region body
PF: predicated region fallthrough
CT: control target
= control target key end

     0   :  { %s5945_s18 = smov 0   ;;  %s5947_s19 = smov 0   ;;  %s7499_s0 = inlined_call_operand.vmem [shape: f32[2,4,8,8,32], index: 0, kind: input, shape index: {}]   ;;  %s7500_s1 = inlined_call_operand.vmem [shape: bf16[864,32], index: 1, kind: input, shape index: {}]   ;;  %s7501_s2 = inlined_call_operand.vmem [shape: f32[1,32], index: 2, kind: input, shape index: {}]   ;;  %s7502_s3 = inlined_call_operand.vmem [shape: f32[1,32], index: 3, kind: input, shape index: {}]   ;;  %s7503_s4 = inlined_call_operand.vmem [shape: bf16[2,4,8,8,32], index: 4, kind: output, shape index: {0}]   ;;  %s7504_s5 = inlined_call_operand.vmem [shape: f32[2,2,32], index: 5, kind: output, shape index: {1}]  }
   0x1   :  { %s5949_s20 = smov 0   ;;  %s5951_s21 = smov 0  }
   0x2   :  { %s5953_s22 = smov 0  }
   0x3 LB: > { %s25_s2 = sadd.s32 1, %s5900_s20  ;;  %s28_s3 = sadd.s32 1, %s5904_s21  ;;  %s5908_s22 = sphi %s5953_s22, %s16_s22   ;;  %s5904_s21 = sphi %s5951_s21, %s7525_s21   ;;  %s5900_s20 = sphi %s5949_s20, %s7524_s20   ;;  %s5896_s19 = sphi %s5947_s19, %s7523_s19   ;;  %s5892_s18 = sphi %s5945_s18, %s7522_s18  }
   0x4   : > { %p26_p0 = scmp.ge.s32.totalorder %s25_s2, 4  ;;  %p4657_p1 = scmp.ge.s32.totalorder %s5908_s22, 1 }
   0x5   : > { %p204_p2 = scmp.lt.s32.totalorder %s5908_s22, 9 }
   0x6   : > { %s7527_s2 = smov (%p26_p0, %s25_s2), 0  ;;  %s7529_s3 = smov (!%p26_p0, %s28_s3), %s5904_s21 }
   0x7   : > { %p205_p3 = pnand %p4657_p1, %p204_p2  ;;  %p30_p4 = scmp.ge.s32.totalorder %s7529_s3, 2 }
   0x8   : > { %p240_p5 = scmp.lt.s32.totalorder (!%p205_p3), %s5896_s19, 1  ;;  %p247_p6 = scmp.lt.s32.totalorder (!%p205_p3), %s5892_s18, 3 }
   0x9   : > { %s7531_s3 = smov (%p30_p4, %s7529_s3), 0  ;;  %208 = sbr.rel (%p205_p3) target bundleno = 710 (0x2c6), region = 36 }
   0xa   : > { %p4664_p7 = scmp.ne.s32.totalorder (!%p205_p3), %s5892_s18, 0 }
  0x10   : > { %s7533_s19 = smov (!%p240_p5, %s5896_s19), 1  ;;  %262 = sbr.rel (%p4664_p7) target bundleno = 35 (0x23), region = 40 }
  0x11   : > { %s248_s23 = scalar_select %p247_p6, %s5892_s18, 3 }
  0x12   : > { %s5214_s24 = sshll.u32 %s7533_s19, 8  ;;  %s4661_s25 = sshll.u32 %s7533_s19, 5  ;;  %vm263_vm0 = vcmask (!%p4664_p7), 261120   ;;  %vm294_vm1 = vcmask (!%p4664_p7), 254976   ;;  %v5910_v0 = vmov (!%p4664_p7), 0   ;;  %v5911_v1 = vmov (!%p4664_p7), 0.0  }
  0x13   : > { %s5984_s28 = scalar_lea.vmem %s7499_s0, %s5214_s24  ;;  %s4660_s29 = sshll.u32 %s248_s23, 3  ;;  %264 = vst.msk [vmem:[#allocation2] sm:$0xff] (!%p4664_p7), %vm263_vm0, %v5910_v0  ;;  %265 = vst.msk [vmem:[#allocation2 + $0x8] sm:$0xff] (!%p4664_p7), %vm263_vm0, %v5910_v0 }
  0x14   : > { %s251_s30 = sadd.s32 %s4661_s25, %s4660_s29  ;;  %s4663_s6 = sshll.u32 %s7533_s19, 1  ;;  %266 = vst.msk [vmem:[#allocation2 + $0x10] sm:$0xff] (!%p4664_p7), %vm263_vm0, %v5910_v0  ;;  %267 = vst.msk [vmem:[#allocation2 + $0x18] sm:$0xff] (!%p4664_p7), %vm263_vm0, %v5910_v0 }
  0x15   : > { %s4662_s7 = sshll.u32 %s251_s30, 2  ;;  %s5989_s10 = scalar_lea.vmem %s7504_s5, %s4663_s6  ;;  %268 = vst.msk [vmem:[#allocation2 + $0x20] sm:$0xff] (!%p4664_p7), %vm263_vm0, %v5910_v0  ;;  %269 = vst.msk [vmem:[#allocation2 + $0x28] sm:$0xff] (!%p4664_p7), %vm263_vm0, %v5910_v0 }
  0x16   : > { %s5994_s13 = scalar_lea.vmem %s7503_s4, %s4662_s7  ;;  %270 = vst.msk [vmem:[#allocation2 + $0x30] sm:$0xff] (!%p4664_p7), %vm263_vm0, %v5910_v0  ;;  %271 = vst.msk [vmem:[#allocation2 + $0x38] sm:$0xff] (!%p4664_p7), %vm263_vm0, %v5910_v0 }
  0x17   : > { %272 = vst.msk [vmem:[#allocation2 + $0x40] sm:$0xff] %vm263_vm0, %v5910_v0  ;;  %273 = vst.msk [vmem:[#allocation2 + $0x48] sm:$0xff] %vm263_vm0, %v5910_v0 }
  0x18   : > { %274 = vst.msk [vmem:[#allocation2 + $0x50] sm:$0xff] %vm263_vm0, %v5910_v0  ;;  %275 = vst.msk [vmem:[#allocation2 + $0x58] sm:$0xff] %vm263_vm0, %v5910_v0 }
  0x19   : > { %276 = vst.msk [vmem:[#allocation2 + $0x60] sm:$0xff] %vm263_vm0, %v5910_v0  ;;  %277 = vst.msk [vmem:[#allocation2 + $0x68] sm:$0xff] %vm263_vm0, %v5910_v0 }
  0x1a   : > { %278 = vst.msk [vmem:[#allocation2 + $0x70] sm:$0xff] %vm263_vm0, %v5910_v0  ;;  %279 = vst.msk [vmem:[#allocation2 + $0x78] sm:$0xff] %vm263_vm0, %v5910_v0 }
  0x1b   : > { %280 = vst.msk [vmem:[#allocation2 + $0x80] sm:$0xff] %vm263_vm0, %v5910_v0  ;;  %281 = vst.msk [vmem:[#allocation2 + $0x88] sm:$0xff] %vm263_vm0, %v5910_v0 }
  0x1c   : > { %282 = vst.msk [vmem:[#allocation2 + $0x90] sm:$0xff] %vm263_vm0, %v5910_v0  ;;  %283 = vst.msk [vmem:[#allocation2 + $0x98] sm:$0xff] %vm263_vm0, %v5910_v0 }
  0x1d   : > { %284 = vst.msk [vmem:[#allocation2 + $0xa0] sm:$0xff] %vm263_vm0, %v5910_v0  ;;  %285 = vst.msk [vmem:[#allocation2 + $0xa8] sm:$0xff] %vm263_vm0, %v5910_v0 }
  0x1e   : > { %286 = vst.msk [vmem:[#allocation2 + $0xb0] sm:$0xff] %vm263_vm0, %v5910_v0  ;;  %287 = vst.msk [vmem:[#allocation2 + $0xb8] sm:$0xff] %vm263_vm0, %v5910_v0 }
  0x1f   : > { %288 = vst.msk [vmem:[#allocation2 + $0xc0] sm:$0xff] %vm263_vm0, %v5910_v0  ;;  %289 = vst.msk [vmem:[#allocation2 + $0xc8] sm:$0xff] %vm263_vm0, %v5910_v0 }
  0x20   : > { %290 = vst.msk [vmem:[#allocation2 + $0xd0] sm:$0xff] %vm263_vm0, %v5910_v0  ;;  %291 = vst.msk [vmem:[#allocation2 + $0xd8] sm:$0xff] %vm263_vm0, %v5910_v0 }
  0x21   : > { %292 = vst.msk [vmem:[#allocation2 + $0xe0] sm:$0xff] %vm263_vm0, %v5910_v0  ;;  %293 = vst.msk [vmem:[#allocation2 + $0xe8] sm:$0xff] %vm263_vm0, %v5910_v0 }
  0x22   : > { %295 = vst.msk [vmem:[%s5989_s10] sm:$0x3] %vm294_vm1, %v5911_v1 }
  0x23 PF: > { %p426_p8 = scmp.ge.s32.totalorder %s5892_s18, 0  ;;  %p427_p9 = scmp.le.s32.totalorder %s5892_s18, 3  ;;  %v1682_v2 = vld [vmem:[#allocation2 + $0x50] sm:$0x1f]  ;;  %vm400_vm2 = vsmask.f32 4354 }
  0x24   : > { %p430_p10 = scmp.gt.s32.totalorder %s5892_s18, 0  ;;  %s6039_s19 = sadd.s32 4294967295, %s5892_s18  ;;  %v4838_v3 = vcombine.low %v1682_v2, %v1682_v2  ;;  %v6043_v7 = vld [vmem:[#allocation2 + $0x50] sm:$0x1e]  ;;  %vm399_vm3 = vcmask 258048   ;;  %v4839_v9 = vcombine.high %v1682_v2, %v1682_v2  ;;  %vm898_vm7 = vcmask 1042432  }
  0x25   : > { %p428_p11 = pnand %p427_p9, %p426_p8  ;;  %p297_p13 = scmp.ge.s32.totalorder %s6039_s19, 0  ;;  %v4854_v25 = vcombine.low %v6043_v7, %v6043_v7  ;;  %v531_v28 = vld [vmem:[#allocation2 + $0x60] sm:$0x1f]  ;;  %vm735_vm4 = vsmask.f32 3328  ;;  %vm6072_vm6 = vmand %vm399_vm3, %vm400_vm2  ;;  %vm899_vm8 = vcmask 1046532   ;;  %v4855_v41 = vcombine.high %v6043_v7, %v6043_v7 }
  0x26   : > { %s431_s14 = scalar_select %p430_p10, %s5892_s18, 0  ;;  %v850_v4 = vld [vmem:[#allocation2] sm:$0x1e]  ;;  %v1731_v10 = vshrl.u32 %v4838_v3, 16  ;;  %v1734_v11 = vshll.u32 %v4838_v3, 16  ;;  %v6066_v30 = vshll.u32 %v4839_v9, 16  ;;  %vm6132_vm10 = vmor %vm898_vm7, %vm899_vm8 }
  0x27   : > { %s4678_s15 = scalar_select %p428_p11, 0, 1  ;;  %v687_v5 = vld [vmem:[#allocation2] sm:$0x1f]  ;;  %v4702_v14 = vcombine.low %v850_v4, %v850_v4  ;;  %v4703_v15 = vcombine.high %v850_v4, %v850_v4  ;;  %vm736_vm5 = vsmask.f32 7440 }
  0x28   : > { %s7535_s14 = smov (!%p247_p6, %s431_s14), 3  ;;  %v4686_v6 = vcombine.low %v687_v5, %v687_v5  ;;  %p298_p0 = scmp.le.s32.totalorder %s6039_s19, 3  ;;  %v4687_v16 = vcombine.high %v687_v5, %v687_v5  ;;  %v1733_v19 = vrot.slane %v1731_v10, 4  ;;  %v1736_v20 = vrot.slane %v1734_v11, 5  ;;  %v534_v32 = vld [vmem:[#allocation2 + $0x68] sm:$0x1f]  ;;  %vm6125_vm9 = vmor %vm735_vm4, %vm736_vm5 }
  0x29   : > { %p5416_p12 = scmp.eq.s32.totalorder %s4678_s15, 1  ;;  %s4677_s16 = sshll.u32 %s7535_s14, 6  ;;  %v528_v38 = vld [vmem:[#allocation2 + $0x58] sm:$0x1f]  ;;  %v1324_v45 = vld [vmem:[#allocation2 + $0x48] sm:$0x1f] }
  0x2a   : > { %s6036_s17 = scalar_lea.vmem %s5984_s28, %s4677_s16  ;;  %p301_p1 = scmp.gt.s32.totalorder %s6039_s19, 0  ;;  %v739_v21 = vshrl.u32 %v4686_v6, 16  ;;  %v1737_v29 = vor.u32 %v1736_v20, %v1733_v19  ;;  %v742_v35 = vshll.u32 %v4686_v6, 16  ;;  %v6078_v40 = vshll.u32 %v4687_v16, 16  ;;  %v411_v16 = vld [vmem:[#allocation2 + $0x20] sm:$0x1f] }
  0x2b   : > { %s6041_s23 = scalar_select %p5416_p12, 255, 0  ;;  %v6086_v47 = vrot.slane %v4702_v14, 9  ;;  %v6088_v48 = vrot.slane %v4703_v15, 5  ;;  %v1742_v52 = vrot.slane %v6066_v30, 5  ;;  %v4796_v55 = vcombine.low %v1324_v45, %v1324_v45 }
  0x2c   : > { %p4665_p2 = scmp.lt.s32.totalorder %s6039_s19, 3  ;;  %p6059_p3 = pnand %p298_p0, %p297_p13  ;;  %v741_v39 = vrot.slane %v739_v21, 4  ;;  %v744_v44 = vrot.slane %v742_v35, 5  ;;  %v1738_v51 = vrot.slane %v1737_v29, 4  ;;  %v4797_v56 = vcombine.high %v1324_v45, %v1324_v45  ;;  %v414_v19 = vld [vmem:[#allocation2 + $0x28] sm:$0x1f] }
  0x2d   : > { %v5418_v8 = vld [vmem:[%s6036_s17 + $0x8] sm:%s6041_s23]  ;;  %v5421_v12 = vld [vmem:[%s6036_s17 + $0x10] sm:%s6041_s23]  ;;  %s302_s25 = scalar_select %p301_p1, %s6039_s19, 0  ;;  %v750_v58 = vrot.slane %v6078_v40, 5  ;;  %v6105_v59 = vrot.slane %v4854_v25, 9  ;;  %v1464_v61 = vshrl.u32 %v4796_v55, 16 }
  0x2e   : > { %v456_v13 = vpack.c.bf16 %v5418_v8, %v5418_v8  ;;  %v457_v17 = vpack.c.bf16 %v5421_v12, %v5421_v12  ;;  %v5425_v18 = vld [vmem:[%s6036_s17] sm:%s6041_s23]  ;;  %s4671_s26 = scalar_select %p6059_p3, 0, 1  ;;  %v745_v54 = vor.u32 %v744_v44, %v741_v39  ;;  %v1467_v62 = vshll.u32 %v4796_v55, 16 }
  0x2f   : > { %v455_v24 = vpack.c.bf16 %v5425_v18, %v5425_v18  ;;  %s7537_s25 = smov (!%p4665_p2, %s302_s25), 3  ;;  %v6109_v63 = vshll.u32 %v4797_v56, 16  ;;  %v6113_v2 = vrot.slane %v4855_v41, 5  ;;  %v6117_v6 = vrot.slane %v1464_v61, 4  ;;  %s5912_s7 = smov 96  }
  0x30   : > { %v471_v22 = vshrl.u32 %v456_v13, 16  ;;  %v474_v23 = vshll.u32 %v456_v13, 16  ;;  %v478_v26 = vshrl.u32 %v457_v17, 16  ;;  %v481_v27 = vshll.u32 %v457_v17, 16  ;;  %p6082_p4 = scmp.eq.s32.totalorder %s4671_s26, 1  ;;  %s4670_s29 = sshll.u32 %s7537_s25, 6 }
  0x31   : > { %v464_v33 = vshrl.u32 %v455_v24, 16  ;;  %v467_v34 = vshll.u32 %v455_v24, 16  ;;  %s6093_s30 = scalar_lea.vmem %s5984_s28, %s4670_s29  ;;  %v746_v5 = vrot.slane %v745_v54, 4  ;;  %v6119_v7 = vrot.slane %v1467_v62, 5  ;;  %s5913_s8 = smov 32  }
  0x32   : > { %v473_v31 = vrot.slane %v471_v22, 7  ;;  %v480_v37 = vrot.slane %v478_v26, 7  ;;  %s6100_s6 = scalar_select %p6082_p4, 255, 0  ;;  %v1475_v13 = vrot.slane %v6109_v63, 5  ;;  %vm1029_vm11 = vcmask 261120  }
  0x33   : > { %v466_v43 = vrot.slane %v464_v33, 7  ;;  %v405_v26 = vld [vmem:[#allocation2 + $0x10] sm:$0x1f]  ;;  %v1893_v33 = vsel %vm6132_vm10, %v6105_v59, %v6113_v2  ;;  %v6153_v39 = vsel %vm6125_vm9, %v746_v5, %v750_v58  ;;  %v1470_v40 = vor.u32 %v6119_v7, %v6117_v6  ;;  %v402_v61 = vld [vmem:[#allocation2 + $0x8] sm:$0x1f]  ;;  %s5914_s9 = smov 64  }
  0x34   : > { %v476_v42 = vor.u32 %v474_v23, %v473_v31  ;;  %v483_v46 = vor.u32 %v481_v27, %v480_v37  ;;  %v5429_v60 = vld [vmem:[%s6093_s30 + $0x18] sm:%s6100_s6]  ;;  %v5432_v0 = vld [vmem:[%s6093_s30 + $0x20] sm:%s6100_s6]  ;;  %v6138_v27 = vsel %vm6125_vm9, %v1738_v51, %v1742_v52  ;;  %s6264_s11 = sadd.s32 1, %s5892_s18  ;;  %vm1042_vm12 = vcmask 523264  }
  0x35   : > { %v469_v50 = vor.u32 %v467_v34, %v466_v43  ;;  %v329_v1 = vpack.c.bf16 %v5429_v60, %v5429_v60  ;;  %v330_v3 = vpack.c.bf16 %v5432_v0, %v5432_v0  ;;  %v5436_v4 = vld [vmem:[%s6093_s30 + $0x8] sm:%s6100_s6]  ;;  %v5439_v10 = vld [vmem:[%s6093_s30 + $0x10] sm:%s6100_s6]  ;;  %v408_v43 = vld [vmem:[#allocation2 + $0x18] sm:$0x1f]  ;;  %p557_p5 = scmp.gt.s32.totalorder %s6264_s11, 0  ;;  %p553_p6 = scmp.ge.s32.totalorder %s6264_s11, 0 }
  0x36   : > { %v532_v49 = vsel %vm6072_vm6, %v476_v42, %v531_v28  ;;  %v535_v53 = vsel %vm6072_vm6, %v483_v46, %v534_v32  ;;  %v327_v11 = vpack.c.bf16 %v5436_v4, %v5436_v4  ;;  %v328_v17 = vpack.c.bf16 %v5439_v10, %v5439_v10  ;;  %v5443_v37 = vld [vmem:[%s6093_s30] sm:%s6100_s6]  ;;  %v5456_v51 = vld [vmem:[%s6093_s30 + $0x28] sm:%s6100_s6]  ;;  %p554_p7 = scmp.le.s32.totalorder %s6264_s11, 3  ;;  %p4679_p8 = scmp.lt.s32.totalorder %s6264_s11, 3 }
  0x37   : > { %533 = vst [vmem:[#allocation2 + $0x60] sm:$0x1f] %v532_v49  ;;  %536 = vst [vmem:[#allocation2 + $0x68] sm:$0x1f] %v535_v53  ;;  %v529_v57 = vsel %vm6072_vm6, %v469_v50, %v528_v38  ;;  %v356_v8 = vshrl.u32 %v329_v1, 16  ;;  %v359_v9 = vshll.u32 %v329_v1, 16  ;;  %v904_v28 = vsel %vm6132_vm10, %v6086_v47, %v6088_v48 }
  0x38   : > { %530 = vst [vmem:[#allocation2 + $0x58] sm:$0x1f] %v529_v57  ;;  %v363_v14 = vshrl.u32 %v330_v3, 16  ;;  %v366_v15 = vshll.u32 %v330_v3, 16  ;;  %v342_v20 = vshrl.u32 %v327_v11, 16  ;;  %v345_v21 = vshll.u32 %v327_v11, 16  ;;  %p6296_p9 = pnand %p554_p7, %p553_p6 }
  0x39   : > { %v358_v18 = vrot.slane %v356_v8, 7  ;;  %v349_v25 = vshrl.u32 %v328_v17, 16  ;;  %v352_v32 = vshll.u32 %v328_v17, 16  ;;  %v326_v44 = vpack.c.bf16 %v5443_v37, %v5443_v37  ;;  %v5463_v58 = vld [vmem:[%s6093_s30 + $0x30] sm:%s6100_s6]  ;;  %s558_s18 = scalar_select %p557_p5, %s6264_s11, 0 }
  0x3a   : > { %v365_v24 = vrot.slane %v363_v14, 7  ;;  %v344_v31 = vrot.slane %v342_v20, 7  ;;  %v331_v57 = vpack.c.bf16 %v5456_v51, %v5456_v51  ;;  %v332_v62 = vpack.c.bf16 %v5463_v58, %v5463_v58  ;;  %v417_v11 = vld [vmem:[#allocation2 + $0x30] sm:$0x1f]  ;;  %v420_v20 = vld [vmem:[#allocation2 + $0x38] sm:$0x1f] }
  0x3b   : > { %v361_v30 = vor.u32 %v359_v9, %v358_v18  ;;  %v351_v35 = vrot.slane %v349_v25, 7  ;;  %v335_v55 = vshrl.u32 %v326_v44, 16  ;;  %v338_v56 = vshll.u32 %v326_v44, 16  ;;  %v6184_v25 = vld [vmem:[%s6093_s30 + $0x38] sm:%s6100_s6]  ;;  %s7539_s18 = smov (!%p4679_p8, %s558_s18), 3 }
  0x3c   : > { %v368_v34 = vor.u32 %v366_v15, %v365_v24  ;;  %v347_v42 = vor.u32 %v345_v21, %v344_v31  ;;  %v370_v8 = vshrl.u32 %v331_v57, 16  ;;  %v373_v9 = vshll.u32 %v331_v57, 16  ;;  %s4685_s14 = scalar_select %p6296_p9, 0, 1 }
  0x3d   : > { %v412_v41 = vsel %vm6072_vm6, %v361_v30, %v411_v16  ;;  %v354_v50 = vor.u32 %v352_v32, %v351_v35  ;;  %v337_v5 = vrot.slane %v335_v55, 7  ;;  %v377_v14 = vshrl.u32 %v332_v62, 16  ;;  %s4684_s15 = sshll.u32 %s7539_s18, 6 }
  0x3e   : > { %v5422_v23 = vld [vmem:[#allocation2 + $0x60] ss:$8 sps:$4 sm:$0xff]   ;;  %413 = vst [vmem:[#allocation2 + $0x20] sm:$0x1f] %v412_v41  ;;  %v415_v49 = vsel %vm6072_vm6, %v368_v34, %v414_v19  ;;  %v406_v54 = vsel %vm6072_vm6, %v347_v42, %v405_v26  ;;  %v380_v15 = vshll.u32 %v332_v62, 16  ;;  %v372_v19 = vrot.slane %v370_v8, 7  ;;  %s6318_s19 = scalar_lea.vmem %s5984_s28, %s4684_s15 }
  0x3f   : > { %v5426_v29 = vld [vmem:[#allocation2 + $0x50] ss:$8 sps:$4 sm:$0xff]   ;;  %2375 = vrot.lane.b32.xlu1 %v5422_v23, %s5912_s7  ;;  %v2207_v45 = vld [vmem:[#allocation2 + $0x60] sm:$0x1e]  ;;  %416 = vst [vmem:[#allocation2 + $0x28] sm:$0x1f] %v415_v49  ;;  %v409_v60 = vsel %vm6072_vm6, %v354_v50, %v408_v43  ;;  %v340_v18 = vor.u32 %v338_v56, %v337_v5 }
  0x40   : > { %v2206_v38 = vld [vmem:[#allocation2 + $0x58] sm:$0x1e]  ;;  %1954 = vrot.lane.b32.xlu0 %v5426_v29, %s5913_s8  ;;  %v4912_v53 = vcombine.low %v2207_v45, %v2207_v45  ;;  %407 = vst [vmem:[#allocation2 + $0x10] sm:$0x1f] %v406_v54  ;;  %v4913_v0 = vcombine.high %v2207_v45, %v2207_v45  ;;  %410 = vst [vmem:[#allocation2 + $0x18] sm:$0x1f] %v409_v60  ;;  %v375_v37 = vor.u32 %v373_v9, %v372_v19 }
  0x41   : > { %v4910_v46 = vcombine.low %v2206_v38, %v2206_v38  ;;  %v4911_v52 = vcombine.high %v2206_v38, %v2206_v38  ;;  %v6170_v3 = vld [vmem:[#allocation2 + $0x58] sm:$0x1f]  ;;  %v6180_v24 = vld [vmem:[#allocation2 + $0x60] sm:$0x1f]  ;;  %v379_v26 = vrot.slane %v377_v14, 7  ;;  %v403_v34 = vsel %vm6072_vm6, %v340_v18, %v402_v61  ;;  %p5664_p10 = scmp.eq.s32.totalorder %s4685_s14, 1 }
  0x42   : > { %v6172_v4 = vld [vmem:[#allocation2 + $0x58] sm:$0x1f]  ;;  %v4927_v16 = vrot.slane %v4912_v53, 9  ;;  %v2260_v17 = vrot.slane %v4913_v0, 5  ;;  %v6178_v23 = vcombine.low %v6170_v3, %v6170_v3  ;;  %v4841_v30 = vcombine.high %v6170_v3, %v6170_v3  ;;  %404 = vst [vmem:[#allocation2 + $0x8] sm:$0x1f] %v403_v34 }
  0x43   : > { %v4926_v1 = vrot.slane %v4910_v46, 9  ;;  %v2256_v10 = vrot.slane %v4911_v52, 5  ;;  %v6192_v31 = vcombine.low %v6172_v4, %v6172_v4  ;;  %v6194_v32 = vld [vmem:[#allocation2 + $0x58] sm:$0x1e]  ;;  %v4895_v41 = vcombine.high %v6172_v4, %v6172_v4  ;;  %s6314_s16 = scalar_select %p5664_p10, 255, 0 }
  0x44   : > { %v2261_v29 = vsel %vm6132_vm10, %v4927_v16, %v2260_v17  ;;  %v382_v46 = vor.u32 %v380_v15, %v379_v26  ;;  %v6204_v49 = vcombine.low %v6180_v24, %v6180_v24  ;;  %v418_v51 = vsel %vm6072_vm6, %v375_v37, %v417_v11 }
  0x45   : > { %v2257_v21 = vsel %vm6132_vm10, %v4926_v1, %v2256_v10  ;;  %v1231_v35 = vld [vmem:[#allocation2 + $0x20] sm:$0x1e]  ;;  %v4897_v54 = vcombine.high %v6180_v24, %v6180_v24  ;;  %419 = vst [vmem:[#allocation2 + $0x30] sm:$0x1f] %v418_v51  ;;  %v4856_v61 = vcombine.low %v6194_v32, %v6194_v32  ;;  %vm1051_vm13 = vcmask 785408  }
  0x46   : > { %v6198_v38 = vcombine.low %v2257_v21, %v2261_v29  ;;  %v5433_v42 = vld [vmem:[#allocation2 + $0x20] ss:$8 sps:$4 sm:$0xff]   ;;  %v4764_v43 = vcombine.low %v1231_v35, %v1231_v35  ;;  %v4765_v44 = vcombine.high %v1231_v35, %v1231_v35  ;;  %v421_v60 = vsel %vm6072_vm6, %v382_v46, %v420_v20 }
  0x47   : > { %v1232_v45 = vld [vmem:[#allocation2 + $0x28] sm:$0x1e]  ;;  %v1229_v50 = vld [vmem:[#allocation2 + $0x10] sm:$0x1e]  ;;  %1531 = vrot.lane.b32.xlu0 %v5433_v42, %s5914_s9  ;;  %v1230_v58 = vld [vmem:[#allocation2 + $0x18] sm:$0x1e] }
  0x48   : > { %v4766_v52 = vcombine.low %v1232_v45, %v1232_v45  ;;  %v4767_v53 = vcombine.high %v1232_v45, %v1232_v45  ;;  %v5440_v55 = vld [vmem:[#allocation2 + $0x10] ss:$8 sps:$4 sm:$0xff]   ;;  %v4760_v56 = vcombine.low %v1229_v50, %v1229_v50  ;;  %v4761_v57 = vcombine.high %v1229_v50, %v1229_v50  ;;  %422 = vst [vmem:[#allocation2 + $0x38] sm:$0x1f] %v421_v60  ;;  %v854_v14 = vld [vmem:[#allocation2 + $0x20] sm:$0x1e] }
  0x49   : > { %v4762_v62 = vcombine.low %v1230_v58, %v1230_v58  ;;  %v4763_v0 = vcombine.high %v1230_v58, %v1230_v58  ;;  %v4777_v1 = vrot.slane %v4764_v43, 9  ;;  %v1290_v5 = vrot.slane %v4765_v44, 5  ;;  %1529 = vrot.lane.b32.xlu1 %v5440_v55, %s5914_s9  ;;  %v855_v18 = vld [vmem:[#allocation2 + $0x28] sm:$0x1e]  ;;  %v852_v20 = vld [vmem:[#allocation2 + $0x10] sm:$0x1e] }
  0x4a   : > { %v4775_v8 = vrot.slane %v4760_v56, 9  ;;  %v1282_v9 = vrot.slane %v4761_v57, 5  ;;  %v4778_v10 = vrot.slane %v4766_v52, 9  ;;  %v1294_v11 = vrot.slane %v4767_v53, 5  ;;  %v1228_v35 = vld [vmem:[#allocation2 + $0x8] sm:$0x1e] }
  0x4b   : > { %v4776_v15 = vrot.slane %v4762_v62, 9  ;;  %v1286_v16 = vrot.slane %v4763_v0, 5  ;;  %v1291_v17 = vsel %vm6132_vm10, %v4777_v1, %v1290_v5  ;;  %v4710_v19 = vcombine.low %v854_v14, %v854_v14  ;;  %v5448_v37 = vld [vmem:[#allocation2 + $0x8] ss:$8 sps:$4 sm:$0xff]   ;;  %v5453_v52 = vld [vmem:[#allocation2 + $0x18] ss:$8 sps:$4 sm:$0xff]  }
  0x4c   : > { %v1283_v21 = vsel %vm6132_vm10, %v4775_v8, %v1282_v9  ;;  %v1295_v26 = vsel %vm6132_vm10, %v4778_v10, %v1294_v11  ;;  %v4711_v29 = vcombine.high %v854_v14, %v854_v14  ;;  %v4712_v34 = vcombine.low %v855_v18, %v855_v18  ;;  %v851_v55 = vld [vmem:[#allocation2 + $0x8] sm:$0x1e]  ;;  %v1233_v56 = vld [vmem:[#allocation2 + $0x30] sm:$0x1e] }
  0x4d   : > { %v1287_v42 = vsel %vm6132_vm10, %v4776_v15, %v1286_v16  ;;  %v4713_v43 = vcombine.high %v855_v18, %v855_v18  ;;  %v4706_v44 = vcombine.low %v852_v20, %v852_v20  ;;  %v4707_v45 = vcombine.high %v852_v20, %v852_v20  ;;  %1021 = vrot.lane.b32.xlu1 %v5448_v37, %s5912_s7 }
  0x4e   : > { %v4758_v46 = vcombine.low %v1228_v35, %v1228_v35  ;;  %v4759_v50 = vcombine.high %v1228_v35, %v1228_v35  ;;  %v4803_v51 = vcombine.low %v1287_v42, %v1291_v17  ;;  %v4722_v53 = vrot.slane %v4710_v19, 9  ;;  %v853_v19 = vld [vmem:[#allocation2 + $0x18] sm:$0x1e] }
  0x4f   : > { %v919_v57 = vrot.slane %v4711_v29, 5  ;;  %v4723_v58 = vrot.slane %v4712_v34, 9  ;;  %v4704_v60 = vcombine.low %v851_v55, %v851_v55  ;;  %v4705_v62 = vcombine.high %v851_v55, %v851_v55  ;;  %v5464_v29 = vld [vmem:[#allocation2 + $0x30] ss:$8 sps:$4 sm:$0xff]  }
  0x50   : > { %v4774_v0 = vrot.slane %v4758_v46, 9  ;;  %v1278_v1 = vrot.slane %v4759_v50, 5  ;;  %v4768_v5 = vcombine.low %v1233_v56, %v1233_v56  ;;  %v4769_v8 = vcombine.high %v1233_v56, %v1233_v56 }
  0x51   : > { %v920_v9 = vsel %vm6132_vm10, %v4722_v53, %v919_v57  ;;  %v923_v10 = vrot.slane %v4713_v43, 5  ;;  %v1745_v11 = vshrl.u32 %v6178_v23, 16  ;;  %v1748_v14 = vshll.u32 %v6178_v23, 16  ;;  %1023 = vrot.lane.b32.xlu1 %v5453_v52, %s5912_s7  ;;  %v688_v23 = vld [vmem:[#allocation2 + $0x8] sm:$0x1f] }
  0x52   : > { %v1279_v15 = vsel %vm6132_vm10, %v4774_v0, %v1278_v1  ;;  %v4779_v16 = vrot.slane %v4768_v5, 9  ;;  %v1298_v17 = vrot.slane %v4769_v8, 5  ;;  %v1754_v18 = vshll.u32 %v4841_v30, 16 }
  0x53   : > { %v4802_v20 = vcombine.low %v1279_v15, %v1283_v21  ;;  %v924_v34 = vsel %vm6132_vm10, %v4723_v58, %v923_v10  ;;  %v1747_v35 = vrot.slane %v1745_v11, 4  ;;  %v1750_v37 = vrot.slane %v1748_v14, 5  ;;  %v1317_v14 = vld [vmem:[#allocation2 + $0x10] sm:$0x1f] }
  0x54   : > { %v1299_v42 = vsel %vm6132_vm10, %v4779_v16, %v1298_v17  ;;  %v4736_v43 = vcombine.low %v920_v9, %v924_v34  ;;  %v1756_v46 = vrot.slane %v1754_v18, 5  ;;  %v4719_v50 = vrot.slane %v4704_v60, 9 }
  0x55   : > { %1501 = vrot.lane.b32.xlu0 %v4802_v20, %s5913_s8  ;;  %v4804_v3 = vcombine.low %v1295_v26, %v1299_v42  ;;  %v1751_v30 = vor.u32 %v1750_v37, %v1747_v35  ;;  %v907_v21 = vrot.slane %v4705_v62, 5  ;;  %v4708_v53 = vcombine.low %v853_v19, %v853_v19  ;;  %1533 = vrot.lane.b32.xlu1 %v5464_v29, %s5914_s9  ;;  %v1318_v20 = vld [vmem:[#allocation2 + $0x18] sm:$0x1f] }
  0x56   : > { %v4709_v52 = vcombine.high %v853_v19, %v853_v19  ;;  %v4720_v55 = vrot.slane %v4706_v44, 9  ;;  %v911_v56 = vrot.slane %v4707_v45, 5  ;;  %v4688_v57 = vcombine.low %v688_v23, %v688_v23 }
  0x57   : > { %v1752_v58 = vrot.slane %v1751_v30, 4  ;;  %v908_v0 = vsel %vm6132_vm10, %v4719_v50, %v907_v21  ;;  %v4721_v1 = vrot.slane %v4708_v53, 9  ;;  %v4689_v5 = vcombine.high %v688_v23, %v688_v23 }
  0x58   : > { %v4734_v26 = vcombine.low %v904_v28, %v908_v0  ;;  %v912_v60 = vsel %vm6132_vm10, %v4720_v55, %v911_v56  ;;  %v915_v44 = vrot.slane %v4709_v52, 5  ;;  %v753_v45 = vshrl.u32 %v4688_v57, 16  ;;  %v689_v56 = vld [vmem:[#allocation2 + $0x10] sm:$0x1f] }
  0x59   : > { %1503 = vrot.lane.b32.xlu0 %v4803_v51, %s5913_s8  ;;  %v6253_v62 = vsel %vm6125_vm9, %v1752_v58, %v1756_v46  ;;  %v756_v8 = vshll.u32 %v4688_v57, 16  ;;  %v762_v9 = vshll.u32 %v4689_v5, 16  ;;  %v2095_v10 = vshrl.u32 %v6192_v31, 16  ;;  %2347 = vrot.lane.b32.xlu1 %v6198_v38, %s5914_s9  ;;  %v690_v5 = vld [vmem:[#allocation2 + $0x18] sm:$0x1f] }
  0x5a   : > { %v4886_v47 = vcombine.low %v6138_v27, %v6253_v62  ;;  %v916_v48 = vsel %vm6132_vm10, %v4721_v1, %v915_v44  ;;  %v755_v28 = vrot.slane %v753_v45, 4  ;;  %v2098_v11 = vshll.u32 %v6192_v31, 16 }
  0x5b   : > { %v4735_v51 = vcombine.low %v912_v60, %v916_v48  ;;  %v758_v15 = vrot.slane %v756_v8, 5  ;;  %v764_v16 = vrot.slane %v762_v9, 5  ;;  %v2097_v17 = vrot.slane %v2095_v10, 4 }
  0x5c   : > { %v2100_v18 = vrot.slane %v2098_v11, 5  ;;  %v2104_v27 = vshll.u32 %v4895_v41, 16  ;;  %v2109_v19 = vshrl.u32 %v6204_v49, 16  ;;  %v2112_v31 = vshll.u32 %v6204_v49, 16 }
  0x5d   : > { %1505 = vrot.lane.b32.xlu0 %v4804_v3, %s5913_s8  ;;  %v759_v38 = vor.u32 %v758_v15, %v755_v28  ;;  %v2118_v29 = vshll.u32 %v4897_v54, 16  ;;  %v4782_v34 = vcombine.low %v1317_v14, %v1317_v14  ;;  %v4783_v35 = vcombine.high %v1317_v14, %v1317_v14  ;;  %993 = vrot.lane.b32.xlu1 %v4734_v26, %s5914_s9 }
  0x5e   : > { %v2101_v37 = vor.u32 %v2100_v18, %v2097_v17  ;;  %v2106_v4 = vrot.slane %v2104_v27, 5  ;;  %v2111_v41 = vrot.slane %v2109_v19, 4  ;;  %v2114_v23 = vrot.slane %v2112_v31, 5 }
  0x5f   : > { %v760_v49 = vrot.slane %v759_v38, 4  ;;  %v2120_v42 = vrot.slane %v2118_v29, 5  ;;  %v4784_v46 = vcombine.low %v1318_v20, %v1318_v20  ;;  %v4785_v50 = vcombine.high %v1318_v20, %v1318_v20 }
  0x60   : > { %v2102_v3 = vrot.slane %v2101_v37, 4  ;;  %v2115_v24 = vor.u32 %v2114_v23, %v2111_v41  ;;  %v1366_v54 = vshrl.u32 %v4782_v34, 16  ;;  %v1369_v30 = vshll.u32 %v4782_v34, 16  ;;  %v1321_v41 = vld [vmem:[#allocation2 + $0x30] sm:$0x1f] }
  0x61   : > { %997 = vrot.lane.b32.xlu0 %v4736_v43, %s5914_s9  ;;  %v765_v21 = vsel %vm6125_vm9, %v760_v49, %v764_v16  ;;  %v1375_v53 = vshll.u32 %v4783_v35, 16  ;;  %v1380_v52 = vshrl.u32 %v4784_v46, 16  ;;  %v1383_v55 = vshll.u32 %v4784_v46, 16  ;;  %995 = vrot.lane.b32.xlu1 %v4735_v51, %s5914_s9  ;;  %v1319_v16 = vld [vmem:[#allocation2 + $0x20] sm:$0x1f] }
  0x62   : > { %v4730_v57 = vcombine.low %v6153_v39, %v765_v21  ;;  %v2107_v58 = vsel %vm6125_vm9, %v2102_v3, %v2106_v4  ;;  %v2116_v0 = vrot.slane %v2115_v24, 4  ;;  %v1368_v1 = vrot.slane %v1366_v54, 4 }
  0x63   : > { %v1371_v43 = vrot.slane %v1369_v30, 5  ;;  %v1377_v26 = vrot.slane %v1375_v53, 5  ;;  %v1382_v60 = vrot.slane %v1380_v52, 4  ;;  %v1385_v44 = vrot.slane %v1383_v55, 5  ;;  %v1322_v30 = vld [vmem:[#allocation2 + $0x38] sm:$0x1f] }
  0x64   : > { %v2121_v45 = vsel %vm6125_vm9, %v2116_v0, %v2120_v42  ;;  %v1389_v62 = vshll.u32 %v4785_v50, 16  ;;  %v4690_v8 = vcombine.low %v689_v56, %v689_v56  ;;  %v4691_v39 = vcombine.high %v689_v56, %v689_v56 }
  0x65   : > { %1974 = vrot.lane.b32.xlu0 %v4886_v47, %s5914_s9  ;;  %v4938_v9 = vcombine.low %v2107_v58, %v2121_v45  ;;  %v1372_v10 = vor.u32 %v1371_v43, %v1368_v1  ;;  %v1386_v48 = vor.u32 %v1385_v44, %v1382_v60  ;;  %v4692_v28 = vcombine.low %v690_v5, %v690_v5  ;;  %v1320_v47 = vld [vmem:[#allocation2 + $0x28] sm:$0x1f] }
  0x66   : > { %v1391_v11 = vrot.slane %v1389_v62, 5  ;;  %v4693_v14 = vcombine.high %v690_v5, %v690_v5  ;;  %v767_v51 = vshrl.u32 %v4690_v8, 16  ;;  %v770_v15 = vshll.u32 %v4690_v8, 16 }
  0x67   : > { %2327 = vrot.lane.b32.xlu1 %v4938_v9, %s5913_s8  ;;  %v1373_v17 = vrot.slane %v1372_v10, 4  ;;  %v1387_v18 = vrot.slane %v1386_v48, 4  ;;  %v776_v27 = vshll.u32 %v4691_v39, 16  ;;  %v781_v19 = vshrl.u32 %v4692_v28, 16  ;;  %v691_v48 = vld [vmem:[#allocation2 + $0x20] sm:$0x1f] }
  0x68   : > { %v769_v31 = vrot.slane %v767_v51, 4  ;;  %v772_v20 = vrot.slane %v770_v15, 5  ;;  %v784_v38 = vshll.u32 %v4692_v28, 16  ;;  %v790_v29 = vshll.u32 %v4693_v14, 16  ;;  %v692_v15 = vld [vmem:[#allocation2 + $0x28] sm:$0x1f] }
  0x69   : > { %973 = vrot.lane.b32.xlu0 %v4730_v57, %s5913_s8  ;;  %v1378_v34 = vsel %vm6125_vm9, %v1373_v17, %v1377_v26  ;;  %v1392_v35 = vsel %vm6125_vm9, %v1387_v18, %v1391_v11  ;;  %v778_v37 = vrot.slane %v776_v27, 5  ;;  %v783_v4 = vrot.slane %v781_v19, 4 }
  0x6a   : > { %v4810_v23 = vcombine.low %v1378_v34, %v1392_v35  ;;  %v773_v49 = vor.u32 %v772_v20, %v769_v31  ;;  %v786_v42 = vrot.slane %v784_v38, 5  ;;  %v792_v46 = vrot.slane %v790_v29, 5 }
  0x6b   : > { %v4786_v50 = vcombine.low %v1319_v16, %v1319_v16  ;;  %v4787_v3 = vcombine.high %v1319_v16, %v1319_v16  ;;  %v4788_v24 = vcombine.low %v1320_v47, %v1320_v47  ;;  %v4789_v54 = vcombine.high %v1320_v47, %v1320_v47 }
  0x6c   : > { %v774_v21 = vrot.slane %v773_v49, 4  ;;  %v787_v53 = vor.u32 %v786_v42, %v783_v4  ;;  %v4790_v52 = vcombine.low %v1321_v41, %v1321_v41  ;;  %v4791_v55 = vcombine.high %v1321_v41, %v1321_v41 }
  0x6d   : > { %1549 = vrot.lane.b32.xlu0 %v4810_v23, %s5912_s7  ;;  %v1394_v56 = vshrl.u32 %v4786_v50, 16  ;;  %v1397_v57 = vshll.u32 %v4786_v50, 16  ;;  %v1403_v58 = vshll.u32 %v4787_v3, 16  ;;  %v1408_v0 = vshrl.u32 %v4788_v24, 16 }
  0x6e   : > { %v779_v1 = vsel %vm6125_vm9, %v774_v21, %v778_v37  ;;  %v788_v5 = vrot.slane %v787_v53, 4  ;;  %v1411_v43 = vshll.u32 %v4788_v24, 16  ;;  %v1417_v26 = vshll.u32 %v4789_v54, 16  ;;  %v5520_v21 = vld [vmem:[%s6036_s17 + $0x18] sm:%s6041_s23] }
  0x6f   : > { %v1396_v60 = vrot.slane %v1394_v56, 4  ;;  %v1399_v44 = vrot.slane %v1397_v57, 5  ;;  %v1405_v45 = vrot.slane %v1403_v58, 5  ;;  %v1410_v62 = vrot.slane %v1408_v0, 4  ;;  %v2048_v57 = vld [vmem:[#allocation2 + $0x68] sm:$0x1f] }
  0x70   : > { %v793_v8 = vsel %vm6125_vm9, %v788_v5, %v792_v46  ;;  %v1413_v39 = vrot.slane %v1411_v43, 5  ;;  %v1419_v9 = vrot.slane %v1417_v26, 5  ;;  %v4792_v10 = vcombine.low %v1322_v30, %v1322_v30 }
  0x71   : > { %v4731_v28 = vcombine.low %v779_v1, %v793_v8  ;;  %v1400_v11 = vor.u32 %v1399_v44, %v1396_v60  ;;  %v4793_v14 = vcombine.high %v1322_v30, %v1322_v30  ;;  %v1422_v51 = vshrl.u32 %v4790_v52, 16 }
  0x72   : > { %v1414_v16 = vor.u32 %v1413_v39, %v1410_v62  ;;  %v1425_v17 = vshll.u32 %v4790_v52, 16  ;;  %v1431_v18 = vshll.u32 %v4791_v55, 16  ;;  %v1436_v27 = vshrl.u32 %v4792_v10, 16 }
  0x73   : > { %975 = vrot.lane.b32.xlu1 %v4731_v28, %s5913_s8  ;;  %v1401_v19 = vrot.slane %v1400_v11, 4  ;;  %v1424_v47 = vrot.slane %v1422_v51, 4  ;;  %v1439_v31 = vshll.u32 %v4792_v10, 16  ;;  %v1445_v20 = vshll.u32 %v4793_v14, 16 }
  0x74   : > { %v1415_v38 = vrot.slane %v1414_v16, 4  ;;  %v1427_v29 = vrot.slane %v1425_v17, 5  ;;  %v1433_v34 = vrot.slane %v1431_v18, 5  ;;  %v1438_v35 = vrot.slane %v1436_v27, 4 }
  0x75   : > { %v1406_v37 = vsel %vm6125_vm9, %v1401_v19, %v1405_v45  ;;  %v1441_v4 = vrot.slane %v1439_v31, 5  ;;  %v1447_v41 = vrot.slane %v1445_v20, 5  ;;  %v4694_v23 = vcombine.low %v691_v48, %v691_v48  ;;  %v1234_v19 = vld [vmem:[#allocation2 + $0x38] sm:$0x1e] }
  0x76   : > { %v1420_v49 = vsel %vm6125_vm9, %v1415_v38, %v1419_v9  ;;  %v1428_v42 = vor.u32 %v1427_v29, %v1424_v47  ;;  %v4695_v46 = vcombine.high %v691_v48, %v691_v48  ;;  %v4696_v50 = vcombine.low %v692_v15, %v692_v15  ;;  %v693_v38 = vld [vmem:[#allocation2 + $0x30] sm:$0x1f]  ;;  %v694_v29 = vld [vmem:[#allocation2 + $0x38] sm:$0x1f] }
  0x77   : > { %v4811_v3 = vcombine.low %v1406_v37, %v1420_v49  ;;  %v1442_v24 = vor.u32 %v1441_v4, %v1438_v35  ;;  %v4697_v54 = vcombine.high %v692_v15, %v692_v15  ;;  %v795_v30 = vshrl.u32 %v4694_v23, 16 }
  0x78   : > { %v1429_v53 = vrot.slane %v1428_v42, 4  ;;  %v798_v52 = vshll.u32 %v4694_v23, 16  ;;  %v804_v55 = vshll.u32 %v4695_v46, 16  ;;  %v809_v56 = vshrl.u32 %v4696_v50, 16  ;;  %v5517_v46 = vld [vmem:[#allocation2 + $0x28] ss:$8 sps:$4 sm:$0xff]  }
  0x79   : > { %1551 = vrot.lane.b32.xlu0 %v4811_v3, %s5912_s7  ;;  %v1443_v58 = vrot.slane %v1442_v24, 4  ;;  %v797_v0 = vrot.slane %v795_v30, 4  ;;  %v812_v1 = vshll.u32 %v4696_v50, 16  ;;  %v818_v5 = vshll.u32 %v4697_v54, 16  ;;  %v423_v54 = vld [vmem:[#allocation2 + $0x40] sm:$0x1f] }
  0x7a   : > { %v1434_v43 = vsel %vm6125_vm9, %v1429_v53, %v1433_v34  ;;  %v800_v26 = vrot.slane %v798_v52, 5  ;;  %v806_v60 = vrot.slane %v804_v55, 5  ;;  %v811_v44 = vrot.slane %v809_v56, 4  ;;  %v2208_v56 = vld [vmem:[#allocation2 + $0x68] sm:$0x1e] }
  0x7b   : > { %v1448_v45 = vsel %vm6125_vm9, %v1443_v58, %v1447_v41  ;;  %v814_v62 = vrot.slane %v812_v1, 5  ;;  %v820_v8 = vrot.slane %v818_v5, 5  ;;  %v4857_v39 = vcombine.high %v6194_v32, %v6194_v32  ;;  %v537_v32 = vld [vmem:[#allocation2 + $0x70] sm:$0x1f] }
  0x7c   : > { %v4812_v9 = vcombine.low %v1434_v43, %v1448_v45  ;;  %v801_v10 = vor.u32 %v800_v26, %v797_v0  ;;  %v4871_v48 = vrot.slane %v4856_v61, 9  ;;  %v458_v28 = vpack.c.bf16 %v5520_v21, %v5520_v21 }
  0x7d   : > { %v815_v11 = vor.u32 %v814_v62, %v811_v44  ;;  %v1896_v14 = vrot.slane %v4857_v39, 5  ;;  %v4898_v51 = vcombine.low %v2048_v57, %v2048_v57  ;;  %v4899_v15 = vcombine.high %v2048_v57, %v2048_v57  ;;  %v6363_v44 = vld [vmem:[#allocation2 + $0x30] sm:$0x1e] }
  0x7e   : > { %1553 = vrot.lane.b32.xlu1 %v4812_v9, %s5912_s7  ;;  %v802_v16 = vrot.slane %v801_v10, 4  ;;  %v485_v17 = vshrl.u32 %v458_v28, 16  ;;  %v488_v18 = vshll.u32 %v458_v28, 16  ;;  %v333_v27 = vpack.c.bf16 %v6184_v25, %v6184_v25  ;;  %v6375_v9 = vld [vmem:[#allocation2 + $0x38] sm:$0x1e] }
  0x7f   : > { %v816_v47 = vrot.slane %v815_v11, 4  ;;  %v1897_v31 = vsel %vm6132_vm10, %v4871_v48, %v1896_v14  ;;  %v2123_v61 = vshrl.u32 %v4898_v51, 16  ;;  %v2126_v20 = vshll.u32 %v4898_v51, 16 }
  0x80   : > { %v807_v34 = vsel %vm6125_vm9, %v802_v16, %v806_v60  ;;  %v4890_v35 = vcombine.low %v1893_v33, %v1897_v31  ;;  %v487_v25 = vrot.slane %v485_v17, 7  ;;  %v2132_v37 = vshll.u32 %v4899_v15, 16 }
  0x81   : > { %v821_v4 = vsel %vm6125_vm9, %v816_v47, %v820_v8  ;;  %v2125_v41 = vrot.slane %v2123_v61, 4  ;;  %v2128_v23 = vrot.slane %v2126_v20, 5  ;;  %v384_v49 = vshrl.u32 %v333_v27, 16 }
  0x82   : > { %v4732_v42 = vcombine.low %v807_v34, %v821_v4  ;;  %1994 = vrot.lane.b32.xlu1 %v4890_v35, %s5912_s7  ;;  %v490_v50 = vor.u32 %v488_v18, %v487_v25  ;;  %v2134_v3 = vrot.slane %v2132_v37, 5  ;;  %v387_v24 = vshll.u32 %v333_v27, 16 }
  0x83   : > { %v2129_v30 = vor.u32 %v2128_v23, %v2125_v41  ;;  %v386_v21 = vrot.slane %v384_v49, 7  ;;  %v4770_v59 = vcombine.low %v1234_v19, %v1234_v19  ;;  %v4771_v2 = vcombine.high %v1234_v19, %v1234_v19 }
  0x84   : > { %977 = vrot.lane.b32.xlu0 %v4732_v42, %s5913_s8  ;;  %v538_v33 = vsel %vm6072_vm6, %v490_v50, %v537_v32  ;;  %v4698_v53 = vcombine.low %v693_v38, %v693_v38  ;;  %v4699_v52 = vcombine.high %v693_v38, %v693_v38  ;;  %v4700_v55 = vcombine.low %v694_v29, %v694_v29 }
  0x85   : > { %539 = vst [vmem:[#allocation2 + $0x70] sm:$0x1f] %v538_v33  ;;  %v2130_v57 = vrot.slane %v2129_v30, 4  ;;  %v389_v58 = vor.u32 %v387_v24, %v386_v21  ;;  %v6359_v0 = vrot.slane %v4770_v59, 9  ;;  %v6361_v1 = vrot.slane %v4771_v2, 5  ;;  %v5684_v59 = vld [vmem:[%s7500_s1] sm:$0xff]  }
  0x86   : > { %v4701_v5 = vcombine.high %v694_v29, %v694_v29  ;;  %v823_v43 = vshrl.u32 %v4698_v53, 16  ;;  %v826_v26 = vshll.u32 %v4698_v53, 16  ;;  %v832_v60 = vshll.u32 %v4699_v52, 16 }
  0x87   : > { %v6367_v45 = vsel %vm6125_vm9, %v2130_v57, %v2134_v3  ;;  %v424_v62 = vsel %vm6072_vm6, %v389_v58, %v423_v54  ;;  %v1303_v8 = vsel %vm6132_vm10, %v6359_v0, %v6361_v1  ;;  %v837_v39 = vshrl.u32 %v4700_v55, 16 }
  0x88   : > { %1025 = vrot.lane.b32.xlu0 %v5517_v46, %s5912_s7  ;;  %425 = vst [vmem:[#allocation2 + $0x40] sm:$0x1f] %v424_v62  ;;  %v825_v10 = vrot.slane %v823_v43, 4  ;;  %v828_v48 = vrot.slane %v826_v26, 5  ;;  %v834_v28 = vrot.slane %v832_v60, 5  ;;  %v840_v11 = vshll.u32 %v4700_v55, 16 }
  0x89   : > { %v839_v14 = vrot.slane %v837_v39, 4  ;;  %v846_v51 = vshll.u32 %v4701_v5, 16  ;;  %v4914_v15 = vcombine.low %v2208_v56, %v2208_v56  ;;  %v4915_v16 = vcombine.high %v2208_v56, %v2208_v56  ;;  %v1684_v43 = vld [vmem:[#allocation2 + $0x60] sm:$0x1f] }
  0x8a   : > { %v829_v17 = vor.u32 %v828_v48, %v825_v10  ;;  %v842_v18 = vrot.slane %v840_v11, 5  ;;  %v1471_v27 = vrot.slane %v1470_v40, 4  ;;  %v4714_v19 = vcombine.low %v6363_v44, %v6363_v44  ;;  %v5552_v39 = vld [vmem:[%s6036_s17 + $0x20] sm:%s6041_s23] }
  0x8b   : > { %v848_v47 = vrot.slane %v846_v51, 5  ;;  %v4928_v31 = vrot.slane %v4914_v15, 9  ;;  %v2264_v32 = vrot.slane %v4915_v16, 5  ;;  %v4715_v61 = vcombine.high %v6363_v44, %v6363_v44  ;;  %v5695_v51 = vld [vmem:[%s7500_s1 + $0x8] sm:$0xff]  }
  0x8c   : > { %v2049_v20 = vld [vmem:[#allocation2 + $0x70] sm:$0x1f]  ;;  %v830_v38 = vrot.slane %v829_v17, 4  ;;  %v843_v29 = vor.u32 %v842_v18, %v839_v14  ;;  %v6389_v35 = vsel %vm6125_vm9, %v1471_v27, %v1475_v13  ;;  %v4716_v6 = vcombine.low %v6375_v9, %v6375_v9  ;;  %v5683_v13 = vld [vmem:[%s7500_s1 + $0x40] sm:$0xff]   ;;  %v1685_v14 = vld [vmem:[#allocation2 + $0x68] sm:$0x1f] }
  0x8d   : > { %v2209_v34 = vld [vmem:[#allocation2 + $0x70] sm:$0x1e]  ;;  %v4900_v7 = vcombine.low %v2049_v20, %v2049_v20  ;;  %v4901_v40 = vcombine.high %v2049_v20, %v2049_v20  ;;  %v2265_v23 = vsel %vm6132_vm10, %v4928_v31, %v2264_v32  ;;  %v4717_v63 = vcombine.high %v6375_v9, %v6375_v9  ;;  %5221 = vmatprep.subr.bf16.mxu0 %v5683_v13  ;;  %v5694_v9 = vld [vmem:[%s7500_s1 + $0x48] sm:$0xff]  }
  0x8e   : > { %v4916_v25 = vcombine.low %v2209_v34, %v2209_v34  ;;  %v4917_v37 = vcombine.high %v2209_v34, %v2209_v34  ;;  %v6395_v4 = vsel %vm6125_vm9, %v830_v38, %v834_v28  ;;  %v844_v41 = vrot.slane %v843_v29, 4  ;;  %5222 = vmatpush3.bf16.msra.mxu0 %v5684_v59 }
  0x8f   : > { %v2137_v49 = vshrl.u32 %v4900_v7, 16  ;;  %v2140_v42 = vshll.u32 %v4900_v7, 16  ;;  %v2146_v46 = vshll.u32 %v4901_v40, 16  ;;  %v1235_v50 = vld [vmem:[#allocation2 + $0x40] sm:$0x1e]  ;;  %v4724_v62 = vrot.slane %v4714_v19, 9  ;;  %5223 = vmatprep.subr.bf16.mxu0 %v5694_v9 }
  0x90   : > { %v4929_v3 = vrot.slane %v4916_v25, 9  ;;  %v4772_v24 = vcombine.low %v1235_v50, %v1235_v50  ;;  %v4773_v54 = vcombine.high %v1235_v50, %v1235_v50  ;;  %v849_v30 = vsel %vm6125_vm9, %v844_v41, %v848_v47  ;;  %v1323_v55 = vld [vmem:[#allocation2 + $0x40] sm:$0x1f] }
  0x91   : > { %v2268_v21 = vrot.slane %v4917_v37, 5  ;;  %v2139_v2 = vrot.slane %v2137_v49, 4  ;;  %v2142_v33 = vrot.slane %v2140_v42, 5  ;;  %v2148_v53 = vrot.slane %v2146_v46, 5  ;;  %v5532_v1 = vld [vmem:[#allocation2 + $0x40] ss:$8 sps:$4 sm:$0xff]  }
  0x92   : > { %v4733_v52 = vcombine.low %v6395_v4, %v849_v30  ;;  %v4781_v56 = vrot.slane %v4772_v24, 9  ;;  %v1306_v57 = vrot.slane %v4773_v54, 5  ;;  %v4794_v5 = vcombine.low %v1323_v55, %v1323_v55  ;;  %5224 = vmatpush3.bf16.msra.mxu0 %v5695_v51  ;;  %v1844_v4 = vld [vmem:[#allocation2 + $0x60] sm:$0x1e]  ;;  %v1845_v49 = vld [vmem:[#allocation2 + $0x68] sm:$0x1e] }
  0x93   : > { %v2269_v58 = vsel %vm6132_vm10, %v4929_v3, %v2268_v21  ;;  %v2143_v26 = vor.u32 %v2142_v33, %v2139_v2  ;;  %v4795_v44 = vcombine.high %v1323_v55, %v1323_v55  ;;  %v927_v11 = vrot.slane %v4715_v61, 5  ;;  %v5565_v55 = vld [vmem:[%s6318_s19] sm:%s6314_s16]  ;;  %v6454_v51 = vld [vmem:[#allocation2 + $0x68] sm:$0x1e] }
  0x94   : > { %v6412_v60 = vcombine.low %v2265_v23, %v2269_v58  ;;  %v1307_v10 = vsel %vm6132_vm10, %v4781_v56, %v1306_v57  ;;  %v1450_v48 = vshrl.u32 %v4794_v5, 16  ;;  %v1453_v28 = vshll.u32 %v4794_v5, 16  ;;  %v540_v23 = vld [vmem:[#allocation2 + $0x78] sm:$0x1f]  ;;  %v5568_v56 = vld [vmem:[%s6318_s19 + $0x8] sm:%s6314_s16] }
  0x95   : > { %v2144_v15 = vrot.slane %v2143_v26, 4  ;;  %v4805_v16 = vcombine.low %v1303_v8, %v1307_v10  ;;  %v1459_v17 = vshll.u32 %v4795_v44, 16  ;;  %v4725_v18 = vrot.slane %v4716_v6, 9  ;;  %v5541_v6 = vld [vmem:[#allocation2 + $0x60] ss:$8 sps:$4 sm:$0xff]  }
  0x96   : > { %v1452_v27 = vrot.slane %v1450_v48, 4  ;;  %v1455_v19 = vrot.slane %v1453_v28, 5  ;;  %v928_v47 = vsel %vm6132_vm10, %v4724_v62, %v927_v11  ;;  %v931_v31 = vrot.slane %v4717_v63, 5  ;;  %v6449_v26 = vld [vmem:[#allocation2 + $0x60] sm:$0x1e] }
  0x97   : > { %v2149_v32 = vsel %vm6125_vm9, %v2144_v15, %v2148_v53  ;;  %1507 = vrot.lane.b32.xlu0 %v4805_v16, %s5913_s8  ;;  %v1461_v61 = vrot.slane %v1459_v17, 5  ;;  %v459_v20 = vpack.c.bf16 %v5552_v39, %v5552_v39  ;;  %v4842_v38 = vcombine.low %v1684_v43, %v1684_v43 }
  0x98   : > { %v4939_v0 = vcombine.low %v6367_v45, %v2149_v32  ;;  %v1456_v8 = vor.u32 %v1455_v19, %v1452_v27  ;;  %v932_v29 = vsel %vm6132_vm10, %v4725_v18, %v931_v31  ;;  %v4843_v34 = vcombine.high %v1684_v43, %v1684_v43  ;;  %v5572_v43 = vld [vmem:[%s6036_s17 + $0x28] sm:%s6041_s23]  ;;  %v5592_v27 = vld [vmem:[%s6036_s17 + $0x30] sm:%s6041_s23] }
  0x99   : > { %v4737_v7 = vcombine.low %v928_v47, %v932_v29  ;;  %v492_v40 = vshrl.u32 %v459_v20, 16  ;;  %v495_v25 = vshll.u32 %v459_v20, 16  ;;  %v4844_v37 = vcombine.low %v1685_v14, %v1685_v14  ;;  %v5708_v19 = vld [vmem:[%s7500_s1 + $0x50] sm:$0xff]   ;;  %v6474_v20 = vld [vmem:[#allocation2 + $0xa0] sm:$0x1f] }
  0x9a   : > { %2329 = vrot.lane.b32.xlu1 %v4939_v0, %s5913_s8  ;;  %v1457_v41 = vrot.slane %v1456_v8, 4  ;;  %v4845_v63 = vcombine.high %v1685_v14, %v1685_v14  ;;  %v1759_v13 = vshrl.u32 %v4842_v38, 16  ;;  %v1762_v45 = vshll.u32 %v4842_v38, 16  ;;  %v5709_v38 = vld [vmem:[%s7500_s1 + $0x10] sm:$0xff]   ;;  %5225 = vmatprep.subr.bf16.mxu0 %v5708_v19 }
  0x9b   : > { %979 = vrot.lane.b32.xlu0 %v4733_v52, %s5913_s8  ;;  %v494_v42 = vrot.slane %v492_v40, 7  ;;  %v1768_v46 = vshll.u32 %v4843_v34, 16  ;;  %v1773_v50 = vshrl.u32 %v4844_v37, 16  ;;  %v1776_v3 = vshll.u32 %v4844_v37, 16  ;;  %5226 = vmatpush3.bf16.msra.mxu0 %v5709_v38 }
  0x9c   : > { %v1462_v24 = vsel %vm6125_vm9, %v1457_v41, %v1461_v61  ;;  %v1761_v54 = vrot.slane %v1759_v13, 4  ;;  %v1764_v30 = vrot.slane %v1762_v45, 5  ;;  %v1782_v21 = vshll.u32 %v4845_v63, 16  ;;  %v6472_v61 = vld [vmem:[#allocation2 + $0x70] sm:$0x1f] }
  0x9d   : > { %v4813_v59 = vcombine.low %v1462_v24, %v6389_v35  ;;  %v497_v2 = vor.u32 %v495_v25, %v494_v42  ;;  %v1770_v33 = vrot.slane %v1768_v46, 5  ;;  %v1775_v53 = vrot.slane %v1773_v50, 4  ;;  %v655_v25 = vld [vmem:[#allocation2 + $0xa8] sm:$0x1f]  ;;  %v543_v13 = vld [vmem:[#allocation2 + $0x80] sm:$0x1f] }
  0x9e   : > { %1535 = vrot.lane.b32.xlu1 %v5532_v1, %s5914_s9  ;;  %v1765_v52 = vor.u32 %v1764_v30, %v1761_v54  ;;  %v1778_v57 = vrot.slane %v1776_v3, 5  ;;  %v1784_v58 = vrot.slane %v1782_v21, 5  ;;  %v4858_v5 = vcombine.low %v1844_v4, %v1844_v4 }
  0x9f   : > { %1956 = vrot.lane.b32.xlu0 %v5541_v6, %s5913_s8  ;;  %v541_v44 = vsel %vm6072_vm6, %v497_v2, %v540_v23  ;;  %v4859_v35 = vcombine.high %v1844_v4, %v1844_v4  ;;  %v4860_v62 = vcombine.low %v1845_v49, %v1845_v49  ;;  %v4861_v39 = vcombine.high %v1845_v49, %v1845_v49  ;;  %v5562_v6 = vld [vmem:[#allocation2 + $0x38] ss:$8 sps:$4 sm:$0xff]   ;;  %v658_v23 = vld [vmem:[#allocation2 + $0xb0] sm:$0x1f] }
  0xa0   : > { %542 = vst [vmem:[#allocation2 + $0x78] sm:$0x1f] %v541_v44  ;;  %v1766_v9 = vrot.slane %v1765_v52, 4  ;;  %v1779_v10 = vor.u32 %v1778_v57, %v1775_v53  ;;  %v4872_v48 = vrot.slane %v4858_v5, 9  ;;  %v582_v17 = vpack.c.bf16 %v5565_v55, %v5565_v55  ;;  %v5710_v4 = vld [vmem:[%s7500_s1 + $0xc0] sm:$0xff]  }
  0xa1   : > { %v1900_v28 = vrot.slane %v4859_v35, 5  ;;  %v4873_v11 = vrot.slane %v4860_v62, 9  ;;  %v1904_v14 = vrot.slane %v4861_v39, 5  ;;  %v583_v18 = vpack.c.bf16 %v5568_v56, %v5568_v56  ;;  %5261 = vmatprep.subr.bf16.mxu1 %v5710_v4 }
  0xa2   : > { %2349 = vrot.lane.b32.xlu1 %v6412_v60, %s5914_s9  ;;  %v1771_v15 = vsel %vm6125_vm9, %v1766_v9, %v1770_v33  ;;  %v1780_v16 = vrot.slane %v1779_v10, 4  ;;  %v460_v60 = vpack.c.bf16 %v5572_v43, %v5572_v43  ;;  %v4966_v32 = vcombine.low %v6449_v26, %v6449_v26  ;;  %v5719_v9 = vld [vmem:[%s7500_s1 + $0x58] sm:$0xff]   ;;  %v5720_v10 = vld [vmem:[%s7500_s1 + $0x80] sm:$0xff]  }
  0xa3   : > { %999 = vrot.lane.b32.xlu0 %v4737_v7, %s5914_s9  ;;  %v1901_v47 = vsel %vm6132_vm10, %v4872_v48, %v1900_v28  ;;  %v1905_v31 = vsel %vm6132_vm10, %v4873_v11, %v1904_v14  ;;  %v591_v8 = vshrl.u32 %v582_v17, 16  ;;  %v594_v29 = vshll.u32 %v582_v17, 16  ;;  %5227 = vmatprep.subr.bf16.mxu0 %v5719_v9 }
  0xa4   : > { %v1785_v0 = vsel %vm6125_vm9, %v1780_v16, %v1784_v58  ;;  %v4891_v1 = vcombine.low %v1901_v47, %v1905_v31  ;;  %v598_v7 = vshrl.u32 %v583_v18, 16  ;;  %v601_v40 = vshll.u32 %v583_v18, 16  ;;  %5262 = vmatpush3.bf16.msra.mxu1 %v5720_v10 }
  0xa5   : > { %v4887_v34 = vcombine.low %v1771_v15, %v1785_v0  ;;  %v499_v37 = vshrl.u32 %v460_v60, 16  ;;  %v593_v41 = vrot.slane %v591_v8, 7  ;;  %v502_v63 = vshll.u32 %v460_v60, 16  ;;  %v5722_v60 = vld [vmem:[%s7500_s1 + $0xc8] sm:$0xff]  }
  0xa6   : > { %1555 = vrot.lane.b32.xlu1 %v4813_v59, %s5912_s7  ;;  %v4967_v45 = vcombine.high %v6449_v26, %v6449_v26  ;;  %v4968_v49 = vcombine.low %v6454_v51, %v6454_v51  ;;  %v600_v46 = vrot.slane %v598_v7, 7  ;;  %v4969_v3 = vcombine.high %v6454_v51, %v6454_v51  ;;  %v5721_v51 = vld [vmem:[%s7500_s1 + $0x18] sm:$0xff]   ;;  %v546_v0 = vld [vmem:[#allocation2 + $0x88] sm:$0x1f]  ;;  %v6550_v7 = vld [vmem:[#allocation2 + $0x70] sm:$0x1e]  ;;  %5263 = vmatprep.subr.bf16.mxu1 %v5722_v60 }
  0xa7   : > { %v5553_v42 = vld [vmem:[#allocation2 + $0x70] ss:$8 sps:$4 sm:$0xff]   ;;  %1976 = vrot.lane.b32.xlu0 %v4887_v34, %s5914_s9  ;;  %v501_v50 = vrot.slane %v499_v37, 7  ;;  %v6492_v24 = vpack.c.bf16 %v5592_v27, %v5592_v27  ;;  %v596_v54 = vor.u32 %v594_v29, %v593_v41  ;;  %v6496_v59 = vcombine.low %v6472_v61, %v6472_v61  ;;  %5228 = vmatpush3.bf16.msra.mxu0 %v5721_v51 }
  0xa8   : > { %v2050_v30 = vld [vmem:[#allocation2 + $0x78] sm:$0x1f]  ;;  %v4847_v2 = vcombine.high %v6472_v61, %v6472_v61  ;;  %v6502_v33 = vcombine.low %v6474_v20, %v6474_v20  ;;  %v603_v53 = vor.u32 %v601_v40, %v600_v46  ;;  %v4982_v43 = vrot.slane %v4966_v32, 9 }
  0xa9   : > { %v2210_v21 = vld [vmem:[#allocation2 + $0x78] sm:$0x1e]  ;;  %v504_v55 = vor.u32 %v502_v63, %v501_v50  ;;  %v4902_v56 = vcombine.low %v2050_v30, %v2050_v30  ;;  %v4903_v52 = vcombine.high %v2050_v30, %v2050_v30  ;;  %v656_v57 = vsel %vm6072_vm6, %v596_v54, %v655_v25 }
  0xaa   : > { %2377 = vrot.lane.b32.xlu1 %v5553_v42, %s5912_s7  ;;  %v4918_v58 = vcombine.low %v2210_v21, %v2210_v21  ;;  %v4919_v5 = vcombine.high %v2210_v21, %v2210_v21  ;;  %v6507_v26 = vld [vmem:[#allocation2 + $0x78] sm:$0x1f]  ;;  %657 = vst [vmem:[#allocation2 + $0xa8] sm:$0x1f] %v656_v57  ;;  %v659_v44 = vsel %vm6072_vm6, %v603_v53, %v658_v23  ;;  %v2629_v14 = vrot.slane %v4967_v45, 5 }
  0xab   : > { %1027 = vrot.lane.b32.xlu0 %v5562_v6, %s5912_s7  ;;  %v544_v35 = vsel %vm6072_vm6, %v504_v55, %v543_v13  ;;  %v2151_v62 = vshrl.u32 %v4902_v56, 16  ;;  %v2154_v39 = vshll.u32 %v4902_v56, 16  ;;  %660 = vst [vmem:[#allocation2 + $0xb0] sm:$0x1f] %v659_v44  ;;  %v2160_v48 = vshll.u32 %v4903_v52, 16 }
  0xac   : > { %545 = vst [vmem:[#allocation2 + $0x80] sm:$0x1f] %v544_v35  ;;  %v6520_v28 = vrot.slane %v4918_v58, 9  ;;  %v6522_v11 = vrot.slane %v4919_v5, 5  ;;  %v4983_v17 = vrot.slane %v4968_v49, 9  ;;  %v2633_v18 = vrot.slane %v4969_v3, 5 }
  0xad   : > { %v2153_v15 = vrot.slane %v2151_v62, 4  ;;  %v2156_v16 = vrot.slane %v2154_v39, 5  ;;  %v2162_v27 = vrot.slane %v2160_v48, 5  ;;  %v2630_v47 = vsel %vm6132_vm10, %v4982_v43, %v2629_v14 }
  0xae   : > { %1996 = vrot.lane.b32.xlu1 %v4891_v1, %s5912_s7  ;;  %v2273_v19 = vsel %vm6132_vm10, %v6520_v28, %v6522_v11  ;;  %v506_v31 = vshrl.u32 %v6492_v24, 16  ;;  %v2634_v61 = vsel %vm6132_vm10, %v4983_v17, %v2633_v18  ;;  %v509_v38 = vshll.u32 %v6492_v24, 16 }
  0xaf   : > { %v2157_v32 = vor.u32 %v2156_v16, %v2153_v15  ;;  %v6543_v1 = vcombine.low %v6507_v26, %v6507_v26  ;;  %v6545_v8 = vcombine.low %v2630_v47, %v2634_v61  ;;  %v4849_v34 = vcombine.high %v6507_v26, %v6507_v26  ;;  %v5734_v26 = vld [vmem:[%s7500_s1 + $0x60] sm:$0xff]  }
  0xb0   : > { %v508_v29 = vrot.slane %v506_v31, 7  ;;  %v1787_v6 = vshrl.u32 %v6496_v59, 16  ;;  %v1790_v25 = vshll.u32 %v6496_v59, 16  ;;  %v6553_v37 = vshll.u32 %v4847_v2, 16  ;;  %5229 = vmatprep.subr.bf16.mxu0 %v5734_v26 }
  0xb1   : > { %v2158_v40 = vrot.slane %v2157_v32, 4  ;;  %v1801_v4 = vshrl.u32 %v6543_v1, 16  ;;  %v3032_v41 = vld [vmem:[#allocation2 + $0xa8] sm:$0x1f]  ;;  %v1804_v13 = vshll.u32 %v6543_v1, 16  ;;  %v4991_v45 = vcombine.high %v6474_v20, %v6474_v20 }
  0xb2   : > { %v511_v23 = vor.u32 %v509_v38, %v508_v29  ;;  %v6556_v63 = vrot.slane %v1787_v6, 4  ;;  %v5569_v49 = vld [vmem:[#allocation2 + $0xa8] ss:$8 sps:$4 sm:$0xff]   ;;  %v5046_v50 = vcombine.low %v3032_v41, %v3032_v41  ;;  %v5047_v3 = vcombine.high %v3032_v41, %v3032_v41 }
  0xb3   : > { %v2051_v42 = vld [vmem:[#allocation2 + $0x80] sm:$0x1f]  ;;  %v6563_v46 = vsel %vm6125_vm9, %v2158_v40, %v2162_v27  ;;  %v4862_v24 = vcombine.low %v6550_v7, %v6550_v7  ;;  %v3033_v59 = vld [vmem:[#allocation2 + $0xb0] sm:$0x1f]  ;;  %v4863_v53 = vcombine.high %v6550_v7, %v6550_v7  ;;  %3304 = vrot.lane.b32.xlu1 %v5569_v49, %s5913_s8  ;;  %v1792_v32 = vrot.slane %v1790_v25, 5  ;;  %v5749_v20 = vld [vmem:[%s7500_s1 + $0x28] sm:$0xff]  }
  0xb4   : > { %v4904_v54 = vcombine.low %v2051_v42, %v2051_v42  ;;  %v4905_v30 = vcombine.high %v2051_v42, %v2051_v42  ;;  %v2211_v21 = vld [vmem:[#allocation2 + $0x80] sm:$0x1e]  ;;  %v547_v2 = vsel %vm6072_vm6, %v511_v23, %v546_v0  ;;  %v5048_v52 = vcombine.low %v3033_v59, %v3033_v59  ;;  %v3192_v38 = vld [vmem:[#allocation2 + $0xa8] sm:$0x1e]  ;;  %v3193_v49 = vld [vmem:[#allocation2 + $0xb0] sm:$0x1e] }
  0xb5   : > { %v4920_v55 = vcombine.low %v2211_v21, %v2211_v21  ;;  %v4921_v56 = vcombine.high %v2211_v21, %v2211_v21  ;;  %v5049_v57 = vcombine.high %v3033_v59, %v3033_v59  ;;  %548 = vst [vmem:[#allocation2 + $0x88] sm:$0x1f] %v547_v2  ;;  %v3081_v44 = vshrl.u32 %v5046_v50, 16  ;;  %v5581_v2 = vld [vmem:[#allocation2 + $0x70] ss:$8 sps:$4 sm:$0xff]  }
  0xb6   : > { %v2165_v58 = vshrl.u32 %v4904_v54, 16  ;;  %v2168_v5 = vshll.u32 %v4904_v54, 16  ;;  %v2174_v43 = vshll.u32 %v4905_v30, 16  ;;  %v3084_v39 = vshll.u32 %v5046_v50, 16 }
  0xb7   : > { %v4931_v35 = vrot.slane %v4920_v55, 9  ;;  %v2276_v62 = vrot.slane %v4921_v56, 5  ;;  %v3090_v9 = vshll.u32 %v5047_v3, 16  ;;  %v3083_v11 = vrot.slane %v3081_v44, 4 }
  0xb8   : > { %v2167_v10 = vrot.slane %v2165_v58, 4  ;;  %v2170_v48 = vrot.slane %v2168_v5, 5  ;;  %v2176_v28 = vrot.slane %v2174_v43, 5  ;;  %v3086_v51 = vrot.slane %v3084_v39, 5 }
  0xb9   : > { %v2277_v14 = vsel %vm6132_vm10, %v4931_v35, %v2276_v62  ;;  %v3092_v15 = vrot.slane %v3090_v9, 5  ;;  %v3095_v16 = vshrl.u32 %v5048_v52, 16  ;;  %v3098_v27 = vshll.u32 %v5048_v52, 16 }
  0xba   : > { %v2171_v17 = vor.u32 %v2170_v48, %v2167_v10  ;;  %v4944_v18 = vcombine.low %v2273_v19, %v2277_v14  ;;  %v3104_v47 = vshll.u32 %v5049_v57, 16  ;;  %v3087_v31 = vor.u32 %v3086_v51, %v3083_v11  ;;  %v5735_v57 = vld [vmem:[%s7500_s1 + $0x88] sm:$0xff]   ;;  %v1847_v10 = vld [vmem:[#allocation2 + $0x78] sm:$0x1e]  ;;  %v5736_v48 = vld [vmem:[%s7500_s1 + $0x20] sm:$0xff]  }
  0xbb   : > { %v3097_v60 = vrot.slane %v3095_v16, 4  ;;  %v1798_v61 = vrot.slane %v6553_v37, 5  ;;  %v3100_v1 = vrot.slane %v3098_v27, 5  ;;  %v1803_v6 = vrot.slane %v1801_v4, 4  ;;  %5264 = vmatpush3.bf16.msra.mxu1 %v5735_v57  ;;  %v5738_v16 = vld [vmem:[%s7500_s1 + $0xd0] sm:$0xff]   ;;  %5230 = vmatpush3.bf16.msra.mxu0 %v5736_v48 }
  0xbc   : > { %v2172_v0 = vrot.slane %v2171_v17, 4  ;;  %2351 = vrot.lane.b32.xlu1 %v4944_v18, %s5914_s9  ;;  %v3106_v29 = vrot.slane %v3104_v47, 5  ;;  %v3088_v40 = vrot.slane %v3087_v31, 4  ;;  %v1793_v41 = vor.u32 %v1792_v32, %v6556_v63  ;;  %v2669_v63 = vld [vmem:[#allocation2 + $0xa8] sm:$0x1f]  ;;  %v5748_v32 = vld [vmem:[%s7500_s1 + $0x90] sm:$0xff]   ;;  %5265 = vmatprep.subr.bf16.mxu1 %v5738_v16 }
  0xbd   : > { %v1806_v23 = vrot.slane %v1804_v13, 5  ;;  %v1810_v19 = vshll.u32 %v4849_v34, 16  ;;  %v3101_v37 = vor.u32 %v3100_v1, %v3097_v60  ;;  %v5062_v42 = vcombine.low %v3192_v38, %v3192_v38  ;;  %v5747_v17 = vld [vmem:[%s7500_s1 + $0x68] sm:$0xff]   ;;  %v5616_v60 = vld [vmem:[%s6318_s19 + $0x18] sm:%s6314_s16] }
  0xbe   : > { %v2177_v25 = vsel %vm6125_vm9, %v2172_v0, %v2176_v28  ;;  %v5063_v50 = vcombine.high %v3192_v38, %v3192_v38  ;;  %v3093_v4 = vsel %vm6125_vm9, %v3088_v40, %v3092_v15  ;;  %v1794_v54 = vrot.slane %v1793_v41, 4  ;;  %v5613_v15 = vld [vmem:[%s6318_s19 + $0x10] sm:%s6314_s16]  ;;  %v5593_v18 = vld [vmem:[#allocation2 + $0x80] ss:$8 sps:$4 sm:$0xff]   ;;  %v5620_v41 = vld [vmem:[%s6036_s17 + $0x38] sm:%s6041_s23]  ;;  %5231 = vmatprep.subr.bf16.mxu0 %v5747_v17 }
  0xbf   : > { %v4940_v3 = vcombine.low %v6563_v46, %v2177_v25  ;;  %v1807_v30 = vor.u32 %v1806_v23, %v1803_v6  ;;  %v3102_v34 = vrot.slane %v3101_v37, 4  ;;  %v1812_v13 = vrot.slane %v1810_v19, 5  ;;  %5266 = vmatpush3.bf16.msra.mxu1 %v5748_v32  ;;  %v5751_v23 = vld [vmem:[%s7500_s1 + $0xd8] sm:$0xff]   ;;  %5232 = vmatpush3.bf16.msra.mxu0 %v5749_v20  ;;  %v549_v17 = vld [vmem:[#allocation2 + $0x90] sm:$0x1f]  ;;  %v5774_v32 = vld [vmem:[%s7500_s1 + $0xe8] sm:$0xff]  }
  0xc0   : > { %v5064_v21 = vcombine.low %v3193_v49, %v3193_v49  ;;  %v5065_v59 = vcombine.high %v3193_v49, %v3193_v49  ;;  %v6591_v46 = vsel %vm6125_vm9, %v1794_v54, %v1798_v61  ;;  %v5078_v56 = vrot.slane %v5062_v42, 9  ;;  %v5757_v42 = vld [vmem:[%s7500_s1 + $0x70] sm:$0xff]   ;;  %5267 = vmatprep.subr.bf16.mxu1 %v5751_v23 }
  0xc1   : > { %2331 = vrot.lane.b32.xlu0 %v4940_v3, %s5913_s8  ;;  %v1808_v55 = vrot.slane %v1807_v30, 4  ;;  %v3242_v52 = vrot.slane %v5063_v50, 5  ;;  %v3107_v58 = vsel %vm6125_vm9, %v3102_v34, %v3106_v29  ;;  %v4992_v44 = vcombine.low %v2669_v63, %v2669_v63  ;;  %v5758_v50 = vld [vmem:[%s7500_s1 + $0x98] sm:$0xff]   ;;  %v2052_v30 = vld [vmem:[#allocation2 + $0x88] sm:$0x1f]  ;;  %5233 = vmatprep.subr.bf16.mxu0 %v5757_v42 }
  0xc2   : > { %v5079_v5 = vrot.slane %v5064_v21, 9  ;;  %v3246_v43 = vrot.slane %v5065_v59, 5  ;;  %v5094_v35 = vcombine.low %v3093_v4, %v3107_v58  ;;  %v4993_v9 = vcombine.high %v2669_v63, %v2669_v63  ;;  %v2212_v34 = vld [vmem:[#allocation2 + $0x88] sm:$0x1e] }
  0xc3   : > { %v6600_v62 = vsel %vm6125_vm9, %v1808_v55, %v1812_v13  ;;  %v3243_v39 = vsel %vm6132_vm10, %v5078_v56, %v3242_v52  ;;  %v2717_v14 = vshrl.u32 %v6502_v33, 16  ;;  %v2720_v51 = vshll.u32 %v6502_v33, 16  ;;  %v6661_v55 = vpop.permute.xlu1 %2375  ;;  %v6663_v56 = vpop.permute.xlu0 %1954  ;;  %5268 = vmatpush3.bf16.msra.mxu1 %v5758_v50  ;;  %v5761_v52 = vld [vmem:[%s7500_s1 + $0xe0] sm:$0xff]  }
  0xc4   : > { %v4888_v28 = vcombine.low %v6591_v46, %v6600_v62  ;;  %v3247_v11 = vsel %vm6132_vm10, %v5079_v5, %v3246_v43  ;;  %3324 = vrot.lane.b32.xlu1 %v5094_v35, %s5914_s9  ;;  %v2726_v47 = vshll.u32 %v4991_v45, 16  ;;  %v2731_v33 = vshrl.u32 %v4992_v44, 16  ;;  %v5770_v35 = vld [vmem:[%s7500_s1 + $0x78] sm:$0xff]   ;;  %5269 = vmatprep.subr.bf16.mxu1 %v5761_v52 }
  0xc5   : > { %1958 = vrot.lane.b32.xlu0 %v5581_v2, %s5913_s8  ;;  %v5098_v27 = vcombine.low %v3243_v39, %v3247_v11  ;;  %v2734_v31 = vshll.u32 %v4992_v44, 16  ;;  %v2719_v61 = vrot.slane %v2717_v14, 4  ;;  %v2722_v38 = vrot.slane %v2720_v51, 5  ;;  %v661_v44 = vld [vmem:[#allocation2 + $0xb8] sm:$0x1f]  ;;  %v5771_v39 = vld [vmem:[%s7500_s1 + $0xa0] sm:$0xff]  }
  0xc6   : > { %v2740_v0 = vshll.u32 %v4993_v9, 16  ;;  %v4864_v1 = vcombine.low %v1847_v10, %v1847_v10  ;;  %v2728_v45 = vrot.slane %v2726_v47, 5  ;;  %v2733_v29 = vrot.slane %v2731_v33, 4  ;;  %v5602_v9 = vld [vmem:[#allocation2 + $0xa0] ss:$8 sps:$4 sm:$0xff]   ;;  %v5772_v46 = vld [vmem:[%s7500_s1 + $0x38] sm:$0xff]  }
  0xc7   : > { %v2736_v6 = vrot.slane %v2734_v31, 5  ;;  %v4865_v40 = vcombine.high %v1847_v10, %v1847_v10  ;;  %v2723_v19 = vor.u32 %v2722_v38, %v2719_v61  ;;  %v4874_v25 = vrot.slane %v4862_v24, 9  ;;  %v664_v11 = vld [vmem:[#allocation2 + $0xc0] sm:$0x1f]  ;;  %v2581_v33 = vld [vmem:[#allocation2 + $0x70] sm:$0x1e]  ;;  %5270 = vmatpush3.bf16.msra.mxu1 %v5771_v39  ;;  %v6699_v23 = vpop.permute.xlu0 %1531 }
  0xc8   : > { %v2742_v49 = vrot.slane %v2740_v0, 5  ;;  %v1908_v37 = vrot.slane %v4863_v53, 5  ;;  %2379 = vrot.lane.b32.xlu1 %v5593_v18, %s5912_s7  ;;  %v4875_v4 = vrot.slane %v4864_v1, 9  ;;  %v584_v54 = vpack.c.bf16 %v5613_v15, %v5613_v15  ;;  %5271 = vmatprep.subr.bf16.mxu1 %v5774_v32 }
  0xc9   : > { %2852 = vrot.lane.b32.xlu0 %v6545_v8, %s5913_s8  ;;  %v2737_v3 = vor.u32 %v2736_v6, %v2733_v29  ;;  %v1912_v24 = vrot.slane %v4865_v40, 5  ;;  %v2724_v7 = vrot.slane %v2723_v19, 4  ;;  %v585_v63 = vpack.c.bf16 %v5616_v60, %v5616_v60  ;;  %v5759_v8 = vld [vmem:[%s7500_s1 + $0x30] sm:$0xff]   ;;  %v2582_v60 = vld [vmem:[#allocation2 + $0x78] sm:$0x1e]  ;;  %v6701_v19 = vpop.permute.xlu1 %1529 }
  0xca   : > { %v1909_v53 = vsel %vm6132_vm10, %v4874_v25, %v1908_v37  ;;  %v462_v26 = vpack.c.bf16 %v5620_v41, %v5620_v41  ;;  %v605_v59 = vshrl.u32 %v584_v54, 16  ;;  %v608_v2 = vshll.u32 %v584_v54, 16  ;;  %5234 = vmatpush3.bf16.msra.mxu0 %v5759_v8  ;;  %v1688_v40 = vld [vmem:[#allocation2 + $0x80] sm:$0x1f]  ;;  %v6697_v41 = vld [vmem:[#allocation2 + $0x88] sm:$0x1f] }
  0xcb   : > { %v2738_v13 = vrot.slane %v2737_v3, 4  ;;  %v1913_v21 = vsel %vm6132_vm10, %v4875_v4, %v1912_v24  ;;  %v2729_v57 = vsel %vm6125_vm9, %v2724_v7, %v2728_v45  ;;  %v612_v5 = vshrl.u32 %v585_v63, 16  ;;  %5235 = vmatprep.subr.bf16.mxu0 %v5770_v35  ;;  %v6716_v8 = vld [vmem:[#allocation2 + $0x10] sm:$0x1e] }
  0xcc   : > { %v4892_v58 = vcombine.low %v1909_v53, %v1913_v21  ;;  %v615_v43 = vshll.u32 %v585_v63, 16  ;;  %3344 = vrot.lane.b32.xlu1 %v5098_v27, %s5912_s7  ;;  %v607_v48 = vrot.slane %v605_v59, 7  ;;  %v513_v14 = vshrl.u32 %v462_v26, 16 }
  0xcd   : > { %1978 = vrot.lane.b32.xlu0 %v4888_v28, %s5914_s9  ;;  %v2743_v10 = vsel %vm6125_vm9, %v2738_v13, %v2742_v49  ;;  %v516_v51 = vshll.u32 %v462_v26, 16  ;;  %v614_v16 = vrot.slane %v612_v5, 7  ;;  %v4906_v18 = vcombine.low %v2052_v30, %v2052_v30  ;;  %v5783_v13 = vld [vmem:[%s7500_s1 + $0xa8] sm:$0xff]   ;;  %v6735_v35 = vpop.permute.xlu1 %1021 }
  0xce   : > { %v5018_v15 = vcombine.low %v2729_v57, %v2743_v10  ;;  %v4907_v47 = vcombine.high %v2052_v30, %v2052_v30  ;;  %v610_v62 = vor.u32 %v608_v2, %v607_v48  ;;  %v515_v28 = vrot.slane %v513_v14, 7  ;;  %5236 = vmatpush3.bf16.msra.mxu0 %v5772_v46  ;;  %5272 = vmatpush3.bf16.msra.mxu1 %v5783_v13 }
  0xcf   : > { %v4922_v27 = vcombine.low %v2212_v34, %v2212_v34  ;;  %v4923_v31 = vcombine.high %v2212_v34, %v2212_v34  ;;  %v617_v61 = vor.u32 %v615_v43, %v614_v16  ;;  %v2179_v38 = vshrl.u32 %v4906_v18, 16  ;;  %v6731_v43 = vld [vmem:[#allocation2 + $0x18] sm:$0x1e] }
  0xd0   : > { %v2182_v0 = vshll.u32 %v4906_v18, 16  ;;  %v2188_v1 = vshll.u32 %v4907_v47, 16  ;;  %2900 = vrot.lane.b32.xlu1 %v5018_v15, %s5912_s7  ;;  %v662_v20 = vsel %vm6072_vm6, %v610_v62, %v661_v44  ;;  %v518_v45 = vor.u32 %v516_v51, %v515_v28  ;;  %v6733_v44 = vpop.permute.xlu0 %1501 }
  0xd1   : > { %2880 = vrot.lane.b32.xlu0 %v5602_v9, %s5914_s9  ;;  %v6693_v29 = vrot.slane %v4922_v27, 9  ;;  %v6695_v6 = vrot.slane %v4923_v31, 5  ;;  %663 = vst [vmem:[#allocation2 + $0xb8] sm:$0x1f] %v662_v20  ;;  %v665_v49 = vsel %vm6072_vm6, %v617_v61, %v664_v11  ;;  %v2181_v25 = vrot.slane %v2179_v38, 4  ;;  %v5784_v11 = vld [vmem:[%s7500_s1 + $0xf0] sm:$0xff]  }
  0xd2   : > { %v2184_v37 = vrot.slane %v2182_v0, 5  ;;  %v2190_v42 = vrot.slane %v2188_v1, 5  ;;  %666 = vst [vmem:[#allocation2 + $0xc0] sm:$0x1f] %v665_v49  ;;  %v550_v50 = vsel %vm6072_vm6, %v518_v45, %v549_v17  ;;  %v4970_v3 = vcombine.low %v2581_v33, %v2581_v33  ;;  %5273 = vmatprep.subr.bf16.mxu1 %v5784_v11 }
  0xd3   : > { %v4971_v4 = vcombine.high %v2581_v33, %v2581_v33  ;;  %551 = vst [vmem:[#allocation2 + $0x90] sm:$0x1f] %v550_v50  ;;  %v4972_v54 = vcombine.low %v2582_v60, %v2582_v60  ;;  %v4973_v30 = vcombine.high %v2582_v60, %v2582_v60  ;;  %v4850_v7 = vcombine.low %v1688_v40, %v1688_v40 }
  0xd4   : > { %v2185_v24 = vor.u32 %v2184_v37, %v2181_v25  ;;  %v6708_v53 = vrot.slane %v4970_v3, 9  ;;  %v4851_v26 = vcombine.high %v1688_v40, %v1688_v40  ;;  %v6714_v34 = vcombine.low %v6697_v41, %v6697_v41  ;;  %v6763_v25 = vpop.permute.xlu0 %1503  ;;  %v6765_v37 = vpop.permute.xlu1 %1023 }
  0xd5   : > { %1998 = vrot.lane.b32.xlu0 %v4892_v58, %s5912_s7  ;;  %v6710_v63 = vrot.slane %v4971_v4, 5  ;;  %v6721_v59 = vrot.slane %v4972_v54, 9  ;;  %v6723_v2 = vrot.slane %v4973_v30, 5  ;;  %v2281_v52 = vsel %vm6132_vm10, %v6693_v29, %v6695_v6 }
  0xd6   : > { %v2186_v21 = vrot.slane %v2185_v24, 4  ;;  %v4853_v57 = vcombine.high %v6697_v41, %v6697_v41  ;;  %v1815_v58 = vshrl.u32 %v4850_v7, 16  ;;  %v1818_v5 = vshll.u32 %v4850_v7, 16  ;;  %v5791_v41 = vld [vmem:[%s7500_s1 + $0xf8] sm:$0xff]  }
  0xd7   : > { %v2638_v39 = vsel %vm6132_vm10, %v6708_v53, %v6710_v63  ;;  %v6741_v9 = vshll.u32 %v4851_v26, 16  ;;  %v1829_v10 = vshrl.u32 %v6714_v34, 16  ;;  %v1832_v48 = vshll.u32 %v6714_v34, 16 }
  0xd8   : > { %v6750_v14 = vsel %vm6125_vm9, %v2186_v21, %v2190_v42  ;;  %v3034_v51 = vld [vmem:[#allocation2 + $0xb8] sm:$0x1f]  ;;  %v2642_v15 = vsel %vm6132_vm10, %v6721_v59, %v6723_v2  ;;  %v1817_v16 = vrot.slane %v1815_v58, 4  ;;  %v1820_v17 = vrot.slane %v1818_v5, 5 }
  0xd9   : > { %v5617_v18 = vld [vmem:[#allocation2 + $0xb8] ss:$8 sps:$4 sm:$0xff]   ;;  %v5050_v33 = vcombine.low %v3034_v51, %v3034_v51  ;;  %v5051_v46 = vcombine.high %v3034_v51, %v3034_v51  ;;  %v4814_v62 = vcombine.low %v6716_v8, %v6716_v8  ;;  %v4815_v28 = vcombine.high %v6716_v8, %v6716_v8 }
  0xda   : > { %v3035_v47 = vld [vmem:[#allocation2 + $0xc0] sm:$0x1f]  ;;  %v2053_v27 = vld [vmem:[#allocation2 + $0x90] sm:$0x1f]  ;;  %v1821_v61 = vor.u32 %v1820_v17, %v1817_v16  ;;  %v4816_v38 = vcombine.low %v6731_v43, %v6731_v43  ;;  %3306 = vrot.lane.b32.xlu1 %v5617_v18, %s5913_s8  ;;  %v4817_v7 = vcombine.high %v6731_v43, %v6731_v43  ;;  %v5011_v8 = vcombine.low %v2638_v39, %v2642_v15 }
  0xdb   : > { %v2213_v31 = vld [vmem:[#allocation2 + $0x90] sm:$0x1e]  ;;  %v5052_v60 = vcombine.low %v3035_v47, %v3035_v47  ;;  %v5053_v32 = vcombine.high %v3035_v47, %v3035_v47  ;;  %v4908_v0 = vcombine.low %v2053_v27, %v2053_v27  ;;  %v4909_v1 = vcombine.high %v2053_v27, %v2053_v27 }
  0xdc   : > { %v4924_v20 = vcombine.low %v2213_v31, %v2213_v31  ;;  %v4925_v45 = vcombine.high %v2213_v31, %v2213_v31  ;;  %v3109_v29 = vshrl.u32 %v5050_v33, 16  ;;  %v3112_v6 = vshll.u32 %v5050_v33, 16  ;;  %v3194_v33 = vld [vmem:[#allocation2 + $0xb8] sm:$0x1e] }
  0xdd   : > { %v3118_v40 = vshll.u32 %v5051_v46, 16  ;;  %v3123_v49 = vshrl.u32 %v5052_v60, 16  ;;  %v2193_v42 = vshrl.u32 %v4908_v0, 16  ;;  %v2196_v50 = vshll.u32 %v4908_v0, 16 }
  0xde   : > { %v2202_v3 = vshll.u32 %v4909_v1, 16  ;;  %v4933_v4 = vrot.slane %v4924_v20, 9  ;;  %v2284_v24 = vrot.slane %v4925_v45, 5  ;;  %v3111_v54 = vrot.slane %v3109_v29, 4  ;;  %v3195_v1 = vld [vmem:[#allocation2 + $0xc0] sm:$0x1e]  ;;  %v6772_v20 = vpop.permute.xlu0 %1505  ;;  %v6774_v45 = vpop.permute.xlu1 %1533 }
  0xdf   : > { %v3114_v30 = vrot.slane %v3112_v6, 5  ;;  %v2195_v26 = vrot.slane %v2193_v42, 4  ;;  %v2198_v34 = vrot.slane %v2196_v50, 5  ;;  %v3120_v13 = vrot.slane %v3118_v40, 5 }
  0xe0   : > { %v3125_v21 = vrot.slane %v3123_v49, 4  ;;  %v2285_v58 = vsel %vm6132_vm10, %v4933_v4, %v2284_v24  ;;  %v3126_v11 = vshll.u32 %v5052_v60, 16  ;;  %v3132_v51 = vshll.u32 %v5053_v32, 16 }
  0xe1   : > { %v3115_v5 = vor.u32 %v3114_v30, %v3111_v54  ;;  %v2199_v16 = vor.u32 %v2198_v34, %v2195_v26  ;;  %v2204_v17 = vrot.slane %v2202_v3, 5  ;;  %v4945_v18 = vcombine.low %v2281_v52, %v2285_v58  ;;  %v2670_v30 = vld [vmem:[#allocation2 + $0xb0] sm:$0x1f]  ;;  %v5629_v26 = vld [vmem:[#allocation2 + $0x80] ss:$8 sps:$4 sm:$0xff]  }
  0xe2   : > { %v1822_v47 = vrot.slane %v1821_v61, 4  ;;  %v3128_v27 = vrot.slane %v3126_v11, 5  ;;  %v1826_v31 = vrot.slane %v6741_v9, 5  ;;  %v1831_v0 = vrot.slane %v1829_v10, 4  ;;  %v5785_v61 = vld [vmem:[%s7500_s1 + $0xb0] sm:$0xff]  }
  0xe3   : > { %v3116_v46 = vrot.slane %v3115_v5, 4  ;;  %v2200_v29 = vrot.slane %v2199_v16, 4  ;;  %2353 = vrot.lane.b32.xlu1 %v4945_v18, %s5914_s9  ;;  %v3134_v60 = vrot.slane %v3132_v51, 5  ;;  %v1834_v32 = vrot.slane %v1832_v48, 5  ;;  %5274 = vmatpush3.bf16.msra.mxu1 %v5785_v61  ;;  %v5798_v5 = vld [vmem:[%s7500_s1 + $0x140] sm:$0xff]   ;;  %v6810_v18 = vpop.permute.xlu0 %997 }
  0xe4   : > { %v1838_v52 = vshll.u32 %v4853_v57, 16  ;;  %v3129_v10 = vor.u32 %v3128_v27, %v3125_v21  ;;  %v5066_v6 = vcombine.low %v3194_v33, %v3194_v33  ;;  %v5067_v40 = vcombine.high %v3194_v33, %v3194_v33  ;;  %v5792_v57 = vld [vmem:[%s7500_s1 + $0xb8] sm:$0xff]   ;;  %5275 = vmatprep.subr.bf16.mxu1 %v5791_v41  ;;  %5301 = vmatprep.subr.bf16.mxu0 %v5798_v5 }
  0xe5   : > { %v3121_v9 = vsel %vm6125_vm9, %v3116_v46, %v3120_v13  ;;  %v2205_v49 = vsel %vm6125_vm9, %v2200_v29, %v2204_v17  ;;  %v1835_v42 = vor.u32 %v1834_v32, %v1831_v0  ;;  %v5068_v48 = vcombine.low %v3195_v1, %v3195_v1  ;;  %v2671_v17 = vld [vmem:[#allocation2 + $0xb8] sm:$0x1f]  ;;  %v1849_v29 = vld [vmem:[#allocation2 + $0x88] sm:$0x1e] }
  0xe6   : > { %v1840_v50 = vrot.slane %v1838_v52, 5  ;;  %v4941_v3 = vcombine.low %v6750_v14, %v2205_v49  ;;  %v3130_v4 = vrot.slane %v3129_v10, 4  ;;  %v5069_v24 = vcombine.high %v3195_v1, %v3195_v1 }
  0xe7   : > { %v5080_v54 = vrot.slane %v5066_v6, 9  ;;  %v6796_v34 = vsel %vm6125_vm9, %v1822_v47, %v1826_v31  ;;  %v1836_v13 = vrot.slane %v1835_v42, 4  ;;  %v3250_v21 = vrot.slane %v5067_v40, 5  ;;  %v6812_v47 = vpop.permute.xlu1 %2347  ;;  %v1848_v31 = vld [vmem:[#allocation2 + $0x80] sm:$0x1e]  ;;  %5276 = vmatpush3.bf16.msra.mxu1 %v5792_v57 }
  0xe8   : > { %v5081_v58 = vrot.slane %v5068_v48, 9  ;;  %2333 = vrot.lane.b32.xlu0 %v4941_v3, %s5913_s8  ;;  %v3135_v14 = vsel %vm6125_vm9, %v3130_v4, %v3134_v60  ;;  %v3254_v11 = vrot.slane %v5069_v24, 5  ;;  %v4830_v51 = vrot.slane %v4814_v62, 9  ;;  %v2584_v42 = vld [vmem:[#allocation2 + $0x88] sm:$0x1e] }
  0xe9   : > { %v1643_v16 = vrot.slane %v4815_v28, 5  ;;  %v5095_v33 = vcombine.low %v3121_v9, %v3135_v14  ;;  %v1841_v46 = vsel %vm6125_vm9, %v1836_v13, %v1840_v50  ;;  %v3251_v27 = vsel %vm6132_vm10, %v5080_v54, %v3250_v21  ;;  %v5638_v28 = vld [vmem:[#allocation2 + $0x90] ss:$8 sps:$4 sm:$0xff]   ;;  %v2583_v9 = vld [vmem:[#allocation2 + $0x80] sm:$0x1e]  ;;  %v6843_v50 = vpop.permute.xlu0 %1974 }
  0xea   : > { %v4831_v62 = vrot.slane %v4816_v38, 9  ;;  %v4889_v0 = vcombine.low %v6796_v34, %v1841_v46  ;;  %v3255_v38 = vsel %vm6132_vm10, %v5081_v58, %v3254_v11  ;;  %v1647_v1 = vrot.slane %v4817_v7, 5 }
  0xeb   : > { %3326 = vrot.lane.b32.xlu1 %v5095_v33, %s5914_s9  ;;  %v1644_v59 = vsel %vm6132_vm10, %v4830_v51, %v1643_v16  ;;  %v4994_v2 = vcombine.low %v2670_v30, %v2670_v30  ;;  %v4995_v60 = vcombine.high %v2670_v30, %v2670_v30  ;;  %v4996_v53 = vcombine.low %v2671_v17, %v2671_v17  ;;  %v6845_v48 = vpop.permute.xlu1 %993  ;;  %v1069_v16 = vld [vmem:[#allocation2 + $0x10] sm:$0x1f] }
  0xec   : > { %1960 = vrot.lane.b32.xlu0 %v5629_v26, %s5913_s8  ;;  %v5099_v63 = vcombine.low %v3251_v27, %v3255_v38  ;;  %v1648_v39 = vsel %vm6132_vm10, %v4831_v62, %v1647_v1  ;;  %v4997_v15 = vcombine.high %v2671_v17, %v2671_v17  ;;  %v4866_v32 = vcombine.low %v1848_v31, %v1848_v31  ;;  %v5647_v62 = vld [vmem:[#allocation2 + $0xb0] ss:$8 sps:$4 sm:$0xff]  }
  0xed   : > { %v2745_v52 = vshrl.u32 %v4994_v2, 16  ;;  %v2748_v43 = vshll.u32 %v4994_v2, 16  ;;  %v2754_v7 = vshll.u32 %v4995_v60, 16  ;;  %v4867_v61 = vcombine.high %v1848_v31, %v1848_v31 }
  0xee   : > { %v2759_v10 = vshrl.u32 %v4996_v53, 16  ;;  %v2762_v6 = vshll.u32 %v4996_v53, 16  ;;  %v2768_v40 = vshll.u32 %v4997_v15, 16  ;;  %v4868_v49 = vcombine.low %v1849_v29, %v1849_v29 }
  0xef   : > { %2381 = vrot.lane.b32.xlu1 %v5638_v28, %s5912_s7  ;;  %v6848_v41 = vcombine.low %v1644_v59, %v1648_v39  ;;  %v2747_v57 = vrot.slane %v2745_v52, 4  ;;  %v2750_v3 = vrot.slane %v2748_v43, 5  ;;  %v2756_v4 = vrot.slane %v2754_v7, 5  ;;  %v6857_v1 = vpop.permute.xlu1 %995  ;;  %v5866_v39 = vld [vmem:[%s6318_s19 + $0x20] sm:%s6314_s16] }
  0xf0   : > { %2854 = vrot.lane.b32.xlu0 %v5011_v8, %s5913_s8  ;;  %v2761_v24 = vrot.slane %v2759_v10, 4  ;;  %v2764_v54 = vrot.slane %v2762_v6, 5  ;;  %v2770_v30 = vrot.slane %v2768_v40, 5  ;;  %v4869_v26 = vcombine.high %v1849_v29, %v1849_v29  ;;  %v6859_v29 = vpop.permute.xlu0 %973  ;;  %v1068_v10 = vld [vmem:[#allocation2 + $0x8] sm:$0x1f] }
  0xf1   : > { %v2751_v34 = vor.u32 %v2750_v3, %v2747_v57  ;;  %v4876_v13 = vrot.slane %v4866_v32, 9  ;;  %v1916_v21 = vrot.slane %v4867_v61, 5  ;;  %v4877_v58 = vrot.slane %v4868_v49, 9  ;;  %v5867_v32 = vld [vmem:[%s6318_s19 + $0x28] sm:%s6314_s16]  ;;  %v3397_v57 = vld [vmem:[#allocation2 + $0xb0] sm:$0x1f] }
  0xf2   : > { %v2765_v5 = vor.u32 %v2764_v54, %v2761_v24  ;;  %v1920_v14 = vrot.slane %v4869_v26, 5  ;;  %v4974_v11 = vcombine.low %v2583_v9, %v2583_v9  ;;  %v4975_v51 = vcombine.high %v2583_v9, %v2583_v9 }
  0xf3   : > { %3346 = vrot.lane.b32.xlu1 %v5099_v63, %s5912_s7  ;;  %v2752_v17 = vrot.slane %v2751_v34, 4  ;;  %v1917_v33 = vsel %vm6132_vm10, %v4876_v13, %v1916_v21  ;;  %v4976_v46 = vcombine.low %v2584_v42, %v2584_v42  ;;  %v4977_v27 = vcombine.high %v2584_v42, %v2584_v42  ;;  %v667_v34 = vld [vmem:[#allocation2 + $0xc8] sm:$0x1f] }
  0xf4   : > { %1980 = vrot.lane.b32.xlu0 %v4889_v0, %s5914_s9  ;;  %v2766_v31 = vrot.slane %v2765_v5, 4  ;;  %v1921_v8 = vsel %vm6132_vm10, %v4877_v58, %v1920_v14  ;;  %v4986_v28 = vrot.slane %v4974_v11, 9  ;;  %v2645_v38 = vrot.slane %v4975_v51, 5  ;;  %v3398_v58 = vld [vmem:[#allocation2 + $0xb8] sm:$0x1f]  ;;  %v6875_v5 = vpop.permute.xlu1 %2327  ;;  %v6877_v14 = vpop.permute.xlu0 %1549 }
  0xf5   : > { %v2757_v59 = vsel %vm6125_vm9, %v2752_v17, %v2756_v4  ;;  %v4893_v2 = vcombine.low %v1917_v33, %v1921_v8  ;;  %v4987_v60 = vrot.slane %v4976_v46, 9  ;;  %v2649_v53 = vrot.slane %v4977_v27, 5  ;;  %v670_v11 = vld [vmem:[#allocation2 + $0xd0] sm:$0x1f] }
  0xf6   : > { %v2771_v0 = vsel %vm6125_vm9, %v2766_v31, %v2770_v30  ;;  %v2646_v63 = vsel %vm6132_vm10, %v4986_v28, %v2645_v38  ;;  %v586_v15 = vpack.c.bf16 %v5866_v39, %v5866_v39  ;;  %v587_v52 = vpack.c.bf16 %v5867_v32, %v5867_v32  ;;  %v6885_v39 = vld [vmem:[#allocation2 + $0x18] sm:$0x1f] }
  0xf7   : > { %v5019_v43 = vcombine.low %v2757_v59, %v2771_v0  ;;  %v2650_v7 = vsel %vm6132_vm10, %v4987_v60, %v2649_v53  ;;  %v4744_v61 = vcombine.low %v1069_v16, %v1069_v16  ;;  %v4745_v9 = vcombine.high %v1069_v16, %v1069_v16 }
  0xf8   : > { %2882 = vrot.lane.b32.xlu0 %v5647_v62, %s5914_s9  ;;  %v5012_v6 = vcombine.low %v2646_v63, %v2650_v7  ;;  %v619_v40 = vshrl.u32 %v586_v15, 16  ;;  %v622_v49 = vshll.u32 %v586_v15, 16  ;;  %v626_v42 = vshrl.u32 %v587_v52, 16 }
  0xf9   : > { %2902 = vrot.lane.b32.xlu1 %v5019_v43, %s5912_s7  ;;  %v629_v3 = vshll.u32 %v587_v52, 16  ;;  %v1131_v4 = vshrl.u32 %v4744_v61, 16  ;;  %v1134_v24 = vshll.u32 %v4744_v61, 16  ;;  %v1140_v54 = vshll.u32 %v4745_v9, 16  ;;  %v6887_v43 = vld [vmem:[#allocation2 + $0x20] sm:$0x1f] }
  0xfa   : > { %v621_v30 = vrot.slane %v619_v40, 7  ;;  %v628_v26 = vrot.slane %v626_v42, 7  ;;  %v4742_v13 = vcombine.low %v1068_v10, %v1068_v10  ;;  %v4743_v21 = vcombine.high %v1068_v10, %v1068_v10  ;;  %v6891_v40 = vpop.permute.xlu0 %1551 }
  0xfb   : > { %v1133_v51 = vrot.slane %v1131_v4, 4  ;;  %v1136_v16 = vrot.slane %v1134_v24, 5  ;;  %v1142_v17 = vrot.slane %v1140_v54, 5  ;;  %v5102_v33 = vcombine.low %v3397_v57, %v3397_v57  ;;  %v6898_v4 = vld [vmem:[#allocation2 + $0x28] sm:$0x1f] }
  0xfc   : > { %2000 = vrot.lane.b32.xlu0 %v4893_v2, %s5912_s7  ;;  %v624_v46 = vor.u32 %v622_v49, %v621_v30  ;;  %v631_v27 = vor.u32 %v629_v3, %v628_v26  ;;  %v1117_v62 = vshrl.u32 %v4742_v13, 16  ;;  %v1120_v31 = vshll.u32 %v4742_v13, 16  ;;  %v6900_v24 = vld [vmem:[#allocation2 + $0x30] sm:$0x1f] }
  0xfd   : > { %2856 = vrot.lane.b32.xlu1 %v5012_v6, %s5913_s8  ;;  %v1137_v8 = vor.u32 %v1136_v16, %v1133_v51  ;;  %v1126_v28 = vshll.u32 %v4743_v21, 16  ;;  %v5103_v38 = vcombine.high %v3397_v57, %v3397_v57  ;;  %v5104_v59 = vcombine.low %v3398_v58, %v3398_v58  ;;  %v6889_v6 = vpop.permute.xlu1 %975  ;;  %v6902_v13 = vld [vmem:[#allocation2 + $0xb0] sm:$0x1e] }
  0xfe   : > { %v668_v60 = vsel %vm6072_vm6, %v624_v46, %v667_v34  ;;  %v671_v53 = vsel %vm6072_vm6, %v631_v27, %v670_v11  ;;  %v1119_v0 = vrot.slane %v1117_v62, 4  ;;  %v1122_v63 = vrot.slane %v1120_v31, 5 }
  0xff   : > { %669 = vst [vmem:[#allocation2 + $0xc8] sm:$0x1f] %v668_v60  ;;  %672 = vst [vmem:[#allocation2 + $0xd0] sm:$0x1f] %v671_v53  ;;  %v1138_v2 = vrot.slane %v1137_v8, 4  ;;  %v1128_v15 = vrot.slane %v1126_v28, 5  ;;  %v5105_v32 = vcombine.high %v3398_v58, %v3398_v58  ;;  %v6896_v49 = vsel %vm1029_vm11, %v6848_v41, %v6663_v56  ;;  %v6934_v53 = vpop.permute.xlu0 %977 }
 0x100   : > { %v3446_v52 = vshrl.u32 %v5102_v33, 16  ;;  %v1123_v7 = vor.u32 %v1122_v63, %v1119_v0  ;;  %v3449_v61 = vshll.u32 %v5102_v33, 16  ;;  %v3455_v9 = vshll.u32 %v5103_v38, 16 }
 0x101   : > { %v3460_v10 = vshrl.u32 %v5104_v59, 16  ;;  %v3463_v57 = vshll.u32 %v5104_v59, 16  ;;  %v3469_v3 = vshll.u32 %v5105_v32, 16  ;;  %v6906_v21 = vsel %vm6125_vm9, %v1138_v2, %v1142_v17  ;;  %v6932_v60 = vpop.permute.xlu1 %1553 }
 0x102   : > { %v3448_v42 = vrot.slane %v3446_v52, 4  ;;  %v1124_v54 = vrot.slane %v1123_v7, 4  ;;  %v3451_v30 = vrot.slane %v3449_v61, 5  ;;  %v3457_v26 = vrot.slane %v3455_v9, 5 }
 0x103   : > { %v3462_v34 = vrot.slane %v3460_v10, 4  ;;  %v3465_v58 = vrot.slane %v3463_v57, 5  ;;  %v3471_v56 = vrot.slane %v3469_v3, 5  ;;  %v4746_v41 = vcombine.low %v6885_v39, %v6885_v39 }
 0x104   : > { %v6912_v11 = vsel %vm6125_vm9, %v1124_v54, %v1128_v15  ;;  %v3452_v51 = vor.u32 %v3451_v30, %v3448_v42  ;;  %v4747_v16 = vcombine.high %v6885_v39, %v6885_v39  ;;  %v4748_v33 = vcombine.low %v6887_v43, %v6887_v43 }
 0x105   : > { %v3466_v46 = vor.u32 %v3465_v58, %v3462_v34  ;;  %v4749_v17 = vcombine.high %v6887_v43, %v6887_v43  ;;  %v1145_v27 = vshrl.u32 %v4746_v41, 16  ;;  %v1148_v62 = vshll.u32 %v4746_v41, 16  ;;  %v6948_v58 = vld [vmem:[%s7500_s1 + $0x180] sm:$0xff]  }
 0x106   : > { %v5670_v31 = vld [vmem:[#allocation2 + $0xc8] ss:$8 sps:$4 sm:$0xff]   ;;  %v6924_v28 = vcombine.low %v6898_v4, %v6898_v4  ;;  %v6930_v59 = vcombine.low %v6900_v24, %v6900_v24  ;;  %v3453_v0 = vrot.slane %v3452_v51, 4  ;;  %5351 = vmatprep.subr.bf16.mxu1 %v6948_v58  ;;  %vm4465_vm14 = vcmask 257024  }
 0x107   : > { %v3467_v63 = vrot.slane %v3466_v46, 4  ;;  %v3036_v39 = vld [vmem:[#allocation2 + $0xc8] sm:$0x1f]  ;;  %v3037_v2 = vld [vmem:[#allocation2 + $0xd0] sm:$0x1f]  ;;  %3308 = vrot.lane.b32.xlu0 %v5670_v31, %s5913_s8  ;;  %v1147_v42 = vrot.slane %v1145_v27, 4 }
 0x108   : > { %v5054_v52 = vcombine.low %v3036_v39, %v3036_v39  ;;  %v5055_v43 = vcombine.high %v3036_v39, %v3036_v39  ;;  %v5056_v7 = vcombine.low %v3037_v2, %v3037_v2  ;;  %v5057_v61 = vcombine.high %v3037_v2, %v3037_v2  ;;  %v6953_v39 = vpop.permute.xlu0 %1025 }
 0x109   : > { %v3458_v9 = vsel %vm6125_vm9, %v3453_v0, %v3457_v26  ;;  %v3472_v10 = vsel %vm6125_vm9, %v3467_v63, %v3471_v56  ;;  %v1150_v57 = vrot.slane %v1148_v62, 5  ;;  %v1154_v27 = vshll.u32 %v4747_v16, 16  ;;  %v3196_v62 = vld [vmem:[#allocation2 + $0xc8] sm:$0x1e]  ;;  %v6951_v63 = vpop.permute.xlu1 %1994 }
 0x10a   : > { %v5146_v3 = vcombine.low %v3458_v9, %v3472_v10  ;;  %v3137_v54 = vshrl.u32 %v5054_v52, 16  ;;  %v3140_v30 = vshll.u32 %v5054_v52, 16  ;;  %v3146_v34 = vshll.u32 %v5055_v43, 16 }
 0x10b   : > { %v3151_v41 = vshrl.u32 %v5056_v7, 16  ;;  %v3154_v51 = vshll.u32 %v5056_v7, 16  ;;  %v3160_v46 = vshll.u32 %v5057_v61, 16  ;;  %v1151_v31 = vor.u32 %v1150_v57, %v1147_v42  ;;  %v3197_v57 = vld [vmem:[#allocation2 + $0xd0] sm:$0x1e] }
 0x10c   : > { %3669 = vrot.lane.b32.xlu1 %v5146_v3, %s5913_s8  ;;  %v3139_v26 = vrot.slane %v3137_v54, 4  ;;  %v3142_v0 = vrot.slane %v3140_v30, 5  ;;  %v3148_v56 = vrot.slane %v3146_v34, 5  ;;  %v1156_v61 = vrot.slane %v1154_v27, 5 }
 0x10d   : > { %v3153_v2 = vrot.slane %v3151_v41, 4  ;;  %v3156_v52 = vrot.slane %v3154_v51, 5  ;;  %v3162_v43 = vrot.slane %v3160_v46, 5  ;;  %v1152_v9 = vrot.slane %v1151_v31, 4  ;;  %v6960_v27 = vpop.permute.xlu1 %2329 }
 0x10e   : > { %v3143_v7 = vor.u32 %v3142_v0, %v3139_v26  ;;  %v1159_v10 = vshrl.u32 %v4748_v33, 16  ;;  %v1162_v42 = vshll.u32 %v4748_v33, 16  ;;  %v1168_v54 = vshll.u32 %v4749_v17, 16  ;;  %v6962_v17 = vpop.permute.xlu0 %1507 }
 0x10f   : > { %v3157_v3 = vor.u32 %v3156_v52, %v3153_v2  ;;  %v5070_v30 = vcombine.low %v3196_v62, %v3196_v62  ;;  %v5071_v16 = vcombine.high %v3196_v62, %v3196_v62  ;;  %v1157_v32 = vsel %vm6125_vm9, %v1152_v9, %v1156_v61 }
 0x110   : > { %v3144_v34 = vrot.slane %v3143_v7, 4  ;;  %v1161_v15 = vrot.slane %v1159_v10, 4  ;;  %v1164_v8 = vrot.slane %v1162_v42, 5  ;;  %v1170_v41 = vrot.slane %v1168_v54, 5  ;;  %v5693_v54 = vld [vmem:[#allocation2 + $0xc0] ss:$8 sps:$4 sm:$0xff]  }
 0x111   : > { %v3158_v38 = vrot.slane %v3157_v3, 4  ;;  %v5072_v51 = vcombine.low %v3197_v57, %v3197_v57  ;;  %v5073_v46 = vcombine.high %v3197_v57, %v3197_v57  ;;  %v5082_v33 = vrot.slane %v5070_v30, 9 }
 0x112   : > { %v3149_v31 = vsel %vm6125_vm9, %v3144_v34, %v3148_v56  ;;  %v1165_v26 = vor.u32 %v1164_v8, %v1161_v15  ;;  %v3258_v0 = vrot.slane %v5071_v16, 5  ;;  %v1173_v9 = vshrl.u32 %v6924_v28, 16  ;;  %v3558_v16 = vld [vmem:[#allocation2 + $0xb8] sm:$0x1e] }
 0x113   : > { %v3163_v62 = vsel %vm6125_vm9, %v3158_v38, %v3162_v43  ;;  %v5083_v2 = vrot.slane %v5072_v51, 9  ;;  %v3262_v52 = vrot.slane %v5073_v46, 5  ;;  %v1176_v8 = vshll.u32 %v6924_v28, 16 }
 0x114   : > { %v5096_v7 = vcombine.low %v3149_v31, %v3163_v62  ;;  %v1166_v61 = vrot.slane %v1165_v26, 4  ;;  %v3259_v10 = vsel %vm6132_vm10, %v5082_v33, %v3258_v0  ;;  %v1175_v56 = vrot.slane %v1173_v9, 4  ;;  %v3399_v62 = vld [vmem:[#allocation2 + $0xc0] sm:$0x1f] }
 0x115   : > { %v3263_v15 = vsel %vm6132_vm10, %v5083_v2, %v3262_v52  ;;  %v7514_v42 = vcombine.high %v6898_v4, %v6898_v4  ;;  %v1187_v38 = vshrl.u32 %v6930_v59, 16  ;;  %v1178_v30 = vrot.slane %v1176_v8, 5  ;;  %v6993_v2 = vpop.permute.xlu1 %1535  ;;  %v3400_v52 = vld [vmem:[#allocation2 + $0xc8] sm:$0x1f] }
 0x116   : > { %3328 = vrot.lane.b32.xlu0 %v5096_v7, %s5914_s9  ;;  %v1171_v43 = vsel %vm6125_vm9, %v1166_v61, %v1170_v41  ;;  %v5100_v3 = vcombine.low %v3259_v10, %v3263_v15  ;;  %v1190_v28 = vshll.u32 %v6930_v59, 16  ;;  %v7515_v34 = vcombine.low %v6912_v11, %v6906_v21  ;;  %v6995_v21 = vpop.permute.xlu0 %979 }
 0x117   : > { %v1182_v57 = vshll.u32 %v7514_v42, 16  ;;  %v4799_v51 = vcombine.low %v1157_v32, %v1171_v43  ;;  %v1189_v46 = vrot.slane %v1187_v38, 4  ;;  %v7516_v31 = vcombine.high %v6900_v24, %v6900_v24 }
 0x118   : > { %v6985_v4 = vsel %vm1029_vm11, %v7515_v34, %v6733_v44  ;;  %3348 = vrot.lane.b32.xlu1 %v5100_v3, %s5912_s7  ;;  %v1179_v41 = vor.u32 %v1178_v30, %v1175_v56  ;;  %v1192_v0 = vrot.slane %v1190_v28, 5  ;;  %v5119_v59 = vcombine.high %v6902_v13, %v6902_v13 }
 0x119   : > { %v1196_v26 = vshll.u32 %v7516_v31, 16  ;;  %v1184_v33 = vrot.slane %v1182_v57, 5  ;;  %v6999_v44 = vsel %vm1029_vm11, %v4799_v51, %v6763_v25  ;;  %v5120_v24 = vcombine.low %v3558_v16, %v3558_v16 }
 0x11a   : > { %v5121_v32 = vcombine.high %v3558_v16, %v3558_v16  ;;  %2884 = vrot.lane.b32.xlu0 %v5693_v54, %s5914_s9  ;;  %v1180_v9 = vrot.slane %v1179_v41, 4  ;;  %v1193_v7 = vor.u32 %v1192_v0, %v1189_v46  ;;  %v7517_v61 = vcombine.low %v6902_v13, %v6902_v13  ;;  %v3559_v16 = vld [vmem:[#allocation2 + $0xc0] sm:$0x1e]  ;;  %v7015_v41 = vpop.permute.xlu0 %1956 }
 0x11b   : > { %v1198_v11 = vrot.slane %v1196_v26, 5  ;;  %v3607_v8 = vrot.slane %v5119_v59, 5  ;;  %v5135_v15 = vrot.slane %v5120_v24, 9  ;;  %v5106_v42 = vcombine.low %v3399_v62, %v3399_v62  ;;  %v7013_v26 = vpop.permute.xlu1 %2349  ;;  %v3560_v24 = vld [vmem:[#allocation2 + $0xc8] sm:$0x1e] }
 0x11c   : > { %v5134_v10 = vrot.slane %v7517_v61, 9  ;;  %v3611_v56 = vrot.slane %v5121_v32, 5  ;;  %v5107_v57 = vcombine.high %v3399_v62, %v3399_v62  ;;  %v1185_v25 = vsel %vm6125_vm9, %v1180_v9, %v1184_v33 }
 0x11d   : > { %v1194_v38 = vrot.slane %v1193_v7, 4  ;;  %v5108_v3 = vcombine.low %v3400_v52, %v3400_v52  ;;  %v5109_v30 = vcombine.high %v3400_v52, %v3400_v52  ;;  %v3474_v28 = vshrl.u32 %v5106_v42, 16 }
 0x11e   : > { %v3608_v43 = vsel %vm6132_vm10, %v5134_v10, %v3607_v8  ;;  %v3612_v54 = vsel %vm6132_vm10, %v5135_v15, %v3611_v56  ;;  %v3477_v13 = vshll.u32 %v5106_v42, 16  ;;  %v3483_v46 = vshll.u32 %v5107_v57, 16  ;;  %v2672_v15 = vld [vmem:[#allocation2 + $0xc0] sm:$0x1f] }
 0x11f   : > { %v1199_v34 = vsel %vm6125_vm9, %v1194_v38, %v1198_v11  ;;  %v5150_v51 = vcombine.low %v3608_v43, %v3612_v54  ;;  %v3488_v31 = vshrl.u32 %v5108_v3, 16  ;;  %v3476_v0 = vrot.slane %v3474_v28, 4  ;;  %v2673_v38 = vld [vmem:[#allocation2 + $0xc8] sm:$0x1f] }
 0x120   : > { %v4800_v33 = vcombine.low %v1185_v25, %v1199_v34  ;;  %v3479_v59 = vrot.slane %v3477_v13, 5  ;;  %v3491_v62 = vshll.u32 %v5108_v3, 16  ;;  %v3485_v32 = vrot.slane %v3483_v46, 5 }
 0x121   : > { %3689 = vrot.lane.b32.xlu1 %v5150_v51, %s5914_s9  ;;  %v3490_v52 = vrot.slane %v3488_v31, 4  ;;  %v3497_v9 = vshll.u32 %v5109_v30, 16  ;;  %v5122_v7 = vcombine.low %v3559_v16, %v3559_v16  ;;  %v5123_v8 = vcombine.high %v3559_v16, %v3559_v16  ;;  %v7024_v51 = vpop.permute.xlu1 %1555  ;;  %v7026_v16 = vpop.permute.xlu0 %999 }
 0x122   : > { %v1565_v11 = vsel %vm1029_vm11, %v4800_v33, %v6772_v20  ;;  %v3480_v61 = vor.u32 %v3479_v59, %v3476_v0  ;;  %v3493_v10 = vrot.slane %v3491_v62, 5  ;;  %v5124_v57 = vcombine.low %v3560_v24, %v3560_v24 }
 0x123   : > { %v7022_v56 = vsel %vm1042_vm12, %v1565_v11, %v6774_v45  ;;  %v3499_v42 = vrot.slane %v3497_v9, 5  ;;  %v5125_v25 = vcombine.high %v3560_v24, %v3560_v24  ;;  %v5136_v54 = vrot.slane %v5122_v7, 9 }
 0x124   : > { %v3481_v43 = vrot.slane %v3480_v61, 4  ;;  %v3494_v3 = vor.u32 %v3493_v10, %v3490_v52  ;;  %v3615_v30 = vrot.slane %v5123_v8, 5  ;;  %v5137_v28 = vrot.slane %v5124_v57, 9  ;;  %v2585_v61 = vld [vmem:[#allocation2 + $0x90] sm:$0x1e] }
 0x125   : > { %v3619_v13 = vrot.slane %v5125_v25, 5  ;;  %v4998_v34 = vcombine.low %v2672_v15, %v2672_v15  ;;  %v4999_v20 = vcombine.high %v2672_v15, %v2672_v15  ;;  %v5000_v33 = vcombine.low %v2673_v38, %v2673_v38  ;;  %v2586_v57 = vld [vmem:[#allocation2 + $0x98] sm:$0x1e] }
 0x126   : > { %v3486_v45 = vsel %vm6125_vm9, %v3481_v43, %v3485_v32  ;;  %v3495_v46 = vrot.slane %v3494_v3, 4  ;;  %v3616_v31 = vsel %vm6132_vm10, %v5136_v54, %v3615_v30  ;;  %v5001_v59 = vcombine.high %v2673_v38, %v2673_v38 }
 0x127   : > { %v3620_v0 = vsel %vm6132_vm10, %v5137_v28, %v3619_v13  ;;  %v2773_v62 = vshrl.u32 %v4998_v34, 16  ;;  %v2776_v24 = vshll.u32 %v4998_v34, 16  ;;  %v2782_v7 = vshll.u32 %v4999_v20, 16  ;;  %v7043_v13 = vpop.permute.xlu1 %2377  ;;  %v7045_v34 = vpop.permute.xlu0 %1976 }
 0x128   : > { %v3500_v52 = vsel %vm6125_vm9, %v3495_v46, %v3499_v42  ;;  %v5151_v9 = vcombine.low %v3616_v31, %v3620_v0  ;;  %v2787_v11 = vshrl.u32 %v5000_v33, 16  ;;  %v2790_v15 = vshll.u32 %v5000_v33, 16  ;;  %v5868_v31 = vld [vmem:[%s6318_s19 + $0x30] sm:%s6314_s16] }
 0x129   : > { %v5147_v10 = vcombine.low %v3486_v45, %v3500_v52  ;;  %v2775_v32 = vrot.slane %v2773_v62, 4  ;;  %v2778_v8 = vrot.slane %v2776_v24, 5  ;;  %v2784_v25 = vrot.slane %v2782_v7, 5  ;;  %v5737_v62 = vld [vmem:[#allocation2] ss:$8 sps:$4 sm:$0xff]  }
 0x12a   : > { %3691 = vrot.lane.b32.xlu1 %v5151_v9, %s5914_s9  ;;  %v2789_v38 = vrot.slane %v2787_v11, 4  ;;  %v2796_v43 = vshll.u32 %v5001_v59, 16  ;;  %v7040_v42 = vsel %vm1042_vm12, %v6896_v49, %v6843_v50  ;;  %v2792_v54 = vrot.slane %v2790_v15, 5  ;;  %v5869_v9 = vld [vmem:[%s6318_s19 + $0x38] sm:%s6314_s16] }
 0x12b   : > { %3671 = vrot.lane.b32.xlu0 %v5147_v10, %s5913_s8  ;;  %v2779_v3 = vor.u32 %v2778_v8, %v2775_v32  ;;  %v4978_v30 = vcombine.low %v2585_v61, %v2585_v61  ;;  %v4979_v28 = vcombine.high %v2585_v61, %v2585_v61  ;;  %v4980_v45 = vcombine.low %v2586_v57, %v2586_v57  ;;  %v5750_v15 = vld [vmem:[#allocation2 + $0x58] ss:$8 sps:$4 sm:$0xff]  }
 0x12c   : > { %v2798_v20 = vrot.slane %v2796_v43, 5  ;;  %v4981_v46 = vcombine.high %v2586_v57, %v2586_v57  ;;  %v588_v33 = vpack.c.bf16 %v5868_v31, %v5868_v31  ;;  %v2793_v50 = vor.u32 %v2792_v54, %v2789_v38  ;;  %v3401_v54 = vld [vmem:[#allocation2 + $0xd0] sm:$0x1f]  ;;  %v7063_v31 = vpop.permute.xlu0 %1027 }
 0x12d   : > { %v2780_v0 = vrot.slane %v2779_v3, 4  ;;  %v4988_v49 = vrot.slane %v4978_v30, 9  ;;  %v2653_v59 = vrot.slane %v4979_v28, 5  ;;  %v4989_v24 = vrot.slane %v4980_v45, 9  ;;  %v673_v45 = vld [vmem:[#allocation2 + $0xd8] sm:$0x1f] }
 0x12e   : > { %v2657_v52 = vrot.slane %v4981_v46, 5  ;;  %v589_v7 = vpack.c.bf16 %v5869_v9, %v5869_v9  ;;  %v633_v11 = vshrl.u32 %v588_v33, 16  ;;  %v2794_v10 = vrot.slane %v2793_v50, 4  ;;  %v7061_v46 = vpop.permute.xlu1 %1996 }
 0x12f   : > { %v2785_v61 = vsel %vm6125_vm9, %v2780_v0, %v2784_v25  ;;  %v2654_v32 = vsel %vm6132_vm10, %v4988_v49, %v2653_v59  ;;  %v636_v8 = vshll.u32 %v588_v33, 16  ;;  %v1032_v25 = vsel %vm1029_vm11, %v5737_v62, %v6859_v29  ;;  %v5760_v59 = vld [vmem:[#allocation2 + $0x10] ss:$8 sps:$4 sm:$0xff]  }
 0x130   : > { %v2658_v57 = vsel %vm6132_vm10, %v4989_v24, %v2657_v52  ;;  %v635_v38 = vrot.slane %v633_v11, 7  ;;  %v640_v43 = vshrl.u32 %v589_v7, 16  ;;  %v643_v3 = vshll.u32 %v589_v7, 16 }
 0x131   : > { %v2799_v30 = vsel %vm6125_vm9, %v2794_v10, %v2798_v20  ;;  %v5013_v28 = vcombine.low %v2654_v32, %v2658_v57  ;;  %v1044_v49 = vsel %vm1042_vm12, %v1032_v25, %v6845_v48  ;;  %v676_v20 = vld [vmem:[#allocation2 + $0xe0] sm:$0x1f]  ;;  %v5110_v52 = vcombine.low %v3401_v54, %v3401_v54  ;;  %v3561_v32 = vld [vmem:[#allocation2 + $0xd0] sm:$0x1e] }
 0x132   : > { %v5020_v33 = vcombine.low %v2785_v61, %v2799_v30  ;;  %v638_v0 = vor.u32 %v636_v8, %v635_v38  ;;  %v642_v50 = vrot.slane %v640_v43, 7  ;;  %v1053_v24 = vsel %vm1051_vm13, %v1044_v49, %v6735_v35  ;;  %v5773_v57 = vld [vmem:[#allocation2 + $0x20] ss:$8 sps:$4 sm:$0xff]  }
 0x133   : > { %2858 = vrot.lane.b32.xlu1 %v5013_v28, %s5913_s8  ;;  %v5111_v9 = vcombine.high %v3401_v54, %v3401_v54  ;;  %v2385_v29 = vsel %vm1029_vm11, %v5750_v15, %v6875_v5  ;;  %v1570_v11 = vsel %vm1042_vm12, %v6985_v4, %v6701_v19  ;;  %v3502_v35 = vshrl.u32 %v5110_v52, 16  ;;  %v3404_v4 = vld [vmem:[#allocation2 + $0xe8] sm:$0x1f] }
 0x134   : > { %2904 = vrot.lane.b32.xlu0 %v5020_v33, %s5912_s7  ;;  %v645_v62 = vor.u32 %v643_v3, %v642_v50  ;;  %v674_v7 = vsel %vm6072_vm6, %v638_v0, %v673_v45  ;;  %v2396_v48 = vsel %vm1042_vm12, %v2385_v29, %v6812_v47  ;;  %v3505_v61 = vshll.u32 %v5110_v52, 16  ;;  %v7096_v3 = vld [vmem:[#allocation2 + $0xe8] sm:$0x1e]  ;;  %v7114_v50 = vld [vmem:[#allocation2 + $0xd0] sm:$0x1f] }
 0x135   : > { %675 = vst [vmem:[#allocation2 + $0xd8] sm:$0x1f] %v674_v7  ;;  %v3511_v10 = vshll.u32 %v5111_v9, 16  ;;  %v2404_v5 = vsel %vm1051_vm13, %v2396_v48, %v6661_v55  ;;  %v1578_v15 = vsel %vm1051_vm13, %v1570_v11, %v6877_v14  ;;  %v1035_v47 = vsel %vm1029_vm11, %v5760_v59, %v6889_v6  ;;  %v5799_v55 = vld [vmem:[%s7500_s1 + $0x100] sm:$0xff]   ;;  %v7098_v6 = vpop.permute.xlu1 %3304 }
 0x136   : > { %v677_v8 = vsel %vm6072_vm6, %v645_v62, %v676_v20  ;;  %v1572_v19 = vsel %vm1042_vm12, %v6999_v44, %v6699_v23  ;;  %4294 = vmatprep.mubr.bf16.mxu1 %v2404_v5  ;;  %v3504_v36 = vrot.slane %v3502_v35, 4  ;;  %v3507_v38 = vrot.slane %v3505_v61, 5  ;;  %4229 = vmatprep.mubr.bf16.mxu0 %v1578_v15  ;;  %v7100_v23 = vpop.permute.xlu0 %2331  ;;  %v5805_v44 = vld [vmem:[%s7500_s1 + $0x148] sm:$0xff]   ;;  %v5812_v35 = vld [vmem:[%s7500_s1 + $0x110] sm:$0xff]  }
 0x137   : > { %678 = vst [vmem:[#allocation2 + $0xe0] sm:$0x1f] %v677_v8  ;;  %v3513_v43 = vrot.slane %v3511_v10, 5  ;;  %v1046_v14 = vsel %vm1042_vm12, %v1035_v47, %v6857_v1  ;;  %v1581_v30 = vsel %vm1051_vm13, %v1572_v19, %v6891_v40  ;;  %v5126_v28 = vcombine.low %v3561_v32, %v3561_v32  ;;  %4230 = vmatmul.mubr.bf16.vlgmr.msra.gmra.mrb[0].mxu0 %v1053_v24  ;;  %v5806_v20 = vld [vmem:[%s7500_s1 + $0x108] sm:$0xff]  }
 0x138   : > { %v1056_v54 = vsel %vm1051_vm13, %v1046_v14, %v6765_v37  ;;  %v5127_v45 = vcombine.high %v3561_v32, %v3561_v32  ;;  %v3508_v1 = vor.u32 %v3507_v38, %v3504_v36  ;;  %v7109_v25 = vcombine.low %v3404_v4, %v3404_v4  ;;  %4237 = vmatprep.mubr.bf16.mxu0 %v1581_v30  ;;  %v5850_v19 = vld [vmem:[%s7500_s1 + $0x188] sm:$0xff]  }
 0x139   : > { %v5117_v33 = vcombine.high %v3404_v4, %v3404_v4  ;;  %v1584_v0 = vsel %vm1051_vm13, %v7022_v56, %v6932_v60  ;;  %v7116_v49 = vrot.slane %v5126_v28, 9  ;;  %v7122_v40 = vsel %vm1029_vm11, %v5773_v57, %v6934_v53  ;;  %5302 = vmatpush3.bf16.msra.mxu0 %v5799_v55  ;;  %v5811_v53 = vld [vmem:[%s7500_s1 + $0x150] sm:$0xff]   ;;  %v7155_v15 = vpop.permute.xlu1 %2351 }
 0x13a   : > { %v7118_v37 = vrot.slane %v5127_v45, 5  ;;  %v3509_v60 = vrot.slane %v3508_v1, 4  ;;  %v3544_v56 = vshrl.u32 %v7109_v25, 16  ;;  %v3547_v24 = vshll.u32 %v7109_v25, 16  ;;  %5303 = vmatprep.subr.bf16.mxu0 %v5805_v44  ;;  %v7157_v47 = vpop.permute.xlu0 %1958  ;;  %v5817_v45 = vld [vmem:[%s7500_s1 + $0x158] sm:$0xff]  }
 0x13b   : > { %v7131_v52 = vshll.u32 %v5117_v33, 16  ;;  %v7144_v48 = vcombine.low %v7114_v50, %v7114_v50  ;;  %vm4524_vm15 = vcmask 1040384   ;;  %vm4528_vm0 = vcmask 254976  }
 0x13c   : > { %v3402_v9 = vld [vmem:[#allocation2 + $0xd8] sm:$0x1f]  ;;  %v7153_v5 = vsel %vm6125_vm9, %v3509_v60, %v3513_v43  ;;  %v2023_v43 = vsel %vm1051_vm13, %v7040_v42, %v6951_v63 }
 0x13d   : > { %v3038_v29 = vld [vmem:[#allocation2 + $0xd8] sm:$0x1f]  ;;  %v5112_v61 = vcombine.low %v3402_v9, %v3402_v9  ;;  %v5113_v10 = vcombine.high %v3402_v9, %v3402_v9  ;;  %5304 = vmatpush3.bf16.msra.mxu0 %v5806_v20  ;;  %4295 = vmatmul.mubr.bf16.vlgmr.msra.gmra.mrb[0].mxu1 %v2023_v43 }
 0x13e   : > { %v5058_v32 = vcombine.low %v3038_v29, %v3038_v29  ;;  %v3198_v8 = vld [vmem:[#allocation2 + $0xd8] sm:$0x1e]  ;;  %v3039_v57 = vld [vmem:[#allocation2 + $0xe0] sm:$0x1f]  ;;  %v5059_v55 = vcombine.high %v3038_v29, %v3038_v29  ;;  %5305 = vmatprep.subr.bf16.mxu0 %v5811_v53  ;;  %5352 = vmatpush3.bf16.msra.mxu1 %v6948_v58  ;;  %v7176_v58 = vpop.permute.xlu1 %3324 }
 0x13f   : > { %v5733_v4 = vld [vmem:[#allocation2 + $0xd8] ss:$8 sps:$4 sm:$0xff]   ;;  %v5074_v36 = vcombine.low %v3198_v8, %v3198_v8  ;;  %v5075_v38 = vcombine.high %v3198_v8, %v3198_v8  ;;  %v3516_v14 = vshrl.u32 %v5112_v61, 16  ;;  %v3519_v44 = vshll.u32 %v5112_v61, 16  ;;  %4238 = vmatmul.mubr.bf16.gmra.mrb[4].mxu0 %v1056_v54  ;;  %5353 = vmatprep.subr.bf16.mxu1 %v5850_v19  ;;  %v5851_v54 = vld [vmem:[%s7500_s1 + $0x190] sm:$0xff]  }
 0x140   : > { %v3525_v30 = vshll.u32 %v5113_v10, 16  ;;  %v5060_v28 = vcombine.low %v3039_v57, %v3039_v57  ;;  %3310 = vrot.lane.b32.xlu0 %v5733_v4, %s5913_s8  ;;  %v5061_v1 = vcombine.high %v3039_v57, %v3039_v57  ;;  %v3165_v33 = vshrl.u32 %v5058_v32, 16  ;;  %v3199_v29 = vld [vmem:[#allocation2 + $0xe0] sm:$0x1e]  ;;  %4245 = vmatprep.mubr.bf16.mxu0 %v1584_v0  ;;  %v5818_v4 = vld [vmem:[%s7500_s1 + $0x118] sm:$0xff]  }
 0x141   : > { %v3168_v60 = vshll.u32 %v5058_v32, 16  ;;  %v3174_v9 = vshll.u32 %v5059_v55, 16  ;;  %v3518_v63 = vrot.slane %v3516_v14, 4  ;;  %v3521_v42 = vrot.slane %v3519_v44, 5  ;;  %5306 = vmatpush3.bf16.msra.mxu0 %v5812_v35  ;;  %v3562_v14 = vld [vmem:[#allocation2 + $0xd8] sm:$0x1e]  ;;  %v7178_v44 = vpop.permute.xlu0 %2852 }
 0x142   : > { %v3527_v20 = vrot.slane %v3525_v30, 5  ;;  %v3179_v61 = vshrl.u32 %v5060_v28, 16  ;;  %v3167_v53 = vrot.slane %v3165_v33, 4  ;;  %v3182_v43 = vshll.u32 %v5060_v28, 16  ;;  %5307 = vmatprep.subr.bf16.mxu0 %v5817_v45  ;;  %v5819_v35 = vld [vmem:[%s7500_s1 + $0x160] sm:$0xff]   ;;  %5354 = vmatpush3.bf16.msra.mxu1 %v5850_v19  ;;  %v5821_v19 = vld [vmem:[%s7500_s1 + $0x168] sm:$0xff]  }
 0x143   : > { %v3170_v10 = vrot.slane %v3168_v60, 5  ;;  %v3176_v8 = vrot.slane %v3174_v9, 5  ;;  %v3522_v32 = vor.u32 %v3521_v42, %v3518_v63  ;;  %v3188_v55 = vshll.u32 %v5061_v1, 16  ;;  %v3403_v9 = vld [vmem:[#allocation2 + $0xe0] sm:$0x1f]  ;;  %5355 = vmatprep.subr.bf16.mxu1 %v5851_v54 }
 0x144   : > { %v3181_v57 = vrot.slane %v3179_v61, 4  ;;  %v5076_v0 = vcombine.low %v3199_v29, %v3199_v29  ;;  %v3184_v28 = vrot.slane %v3182_v43, 5  ;;  %v5077_v33 = vcombine.high %v3199_v29, %v3199_v29  ;;  %v5820_v45 = vld [vmem:[%s7500_s1 + $0x120] sm:$0xff]  }
 0x145   : > { %v3171_v30 = vor.u32 %v3170_v10, %v3167_v53  ;;  %v5084_v60 = vrot.slane %v5074_v36, 9  ;;  %v3523_v11 = vrot.slane %v3522_v32, 4  ;;  %v3190_v63 = vrot.slane %v3188_v55, 5  ;;  %5308 = vmatpush3.bf16.msra.mxu0 %v5818_v4  ;;  %v5853_v10 = vld [vmem:[%s7500_s1 + $0x198] sm:$0xff]  }
 0x146   : > { %v3266_v42 = vrot.slane %v5075_v38, 5  ;;  %v5085_v1 = vrot.slane %v5076_v0, 9  ;;  %v3185_v7 = vor.u32 %v3184_v28, %v3181_v57  ;;  %v3270_v59 = vrot.slane %v5077_v33, 5  ;;  %5309 = vmatprep.subr.bf16.mxu0 %v5819_v35  ;;  %v7203_v35 = vpop.permute.xlu0 %1978  ;;  %5356 = vmatpush3.bf16.msra.mxu1 %v5851_v54 }
 0x147   : > { %v3172_v61 = vrot.slane %v3171_v30, 4  ;;  %v5128_v62 = vcombine.low %v3562_v14, %v3562_v14  ;;  %v3528_v29 = vsel %vm6125_vm9, %v3523_v11, %v3527_v20  ;;  %v5129_v53 = vcombine.high %v3562_v14, %v3562_v14  ;;  %v7201_v14 = vpop.permute.xlu1 %2379  ;;  %5357 = vmatprep.subr.bf16.mxu1 %v5853_v10 }
 0x148   : > { %v3267_v36 = vsel %vm6132_vm10, %v5084_v60, %v3266_v42  ;;  %v5114_v38 = vcombine.low %v3403_v9, %v3403_v9  ;;  %v5148_v43 = vcombine.low %v7153_v5, %v3528_v29  ;;  %v3186_v11 = vrot.slane %v3185_v7, 4 }
 0x149   : > { %v3177_v4 = vsel %vm6125_vm9, %v3172_v61, %v3176_v8  ;;  %v3271_v20 = vsel %vm6132_vm10, %v5085_v1, %v3270_v59  ;;  %v5139_v57 = vrot.slane %v5128_v62, 9  ;;  %v3627_v55 = vrot.slane %v5129_v53, 5  ;;  %v3563_v59 = vld [vmem:[#allocation2 + $0xe0] sm:$0x1e]  ;;  %5310 = vmatpush3.bf16.msra.mxu0 %v5820_v45  ;;  %v5822_v62 = vld [vmem:[%s7500_s1 + $0x128] sm:$0xff]  }
 0x14a   : > { %v5101_v32 = vcombine.low %v3267_v36, %v3271_v20  ;;  %v5115_v0 = vcombine.high %v3403_v9, %v3403_v9  ;;  %3673 = vrot.lane.b32.xlu1 %v5148_v43, %s5913_s8  ;;  %v3191_v5 = vsel %vm6125_vm9, %v3186_v11, %v3190_v63  ;;  %v3530_v30 = vshrl.u32 %v5114_v38, 16  ;;  %v2675_v9 = vld [vmem:[#allocation2 + $0xd8] sm:$0x1f]  ;;  %5311 = vmatprep.subr.bf16.mxu0 %v5821_v19  ;;  %v5854_v63 = vld [vmem:[%s7500_s1 + $0x1a0] sm:$0xff]   ;;  %v5824_v11 = vld [vmem:[%s7500_s1 + $0x130] sm:$0xff]  }
 0x14b   : > { %v3533_v8 = vshll.u32 %v5114_v38, 16  ;;  %v3546_v7 = vrot.slane %v3544_v56, 4  ;;  %v5097_v28 = vcombine.low %v3177_v4, %v3191_v5  ;;  %v3628_v54 = vsel %vm6132_vm10, %v5139_v57, %v3627_v55  ;;  %v5823_v56 = vld [vmem:[%s7500_s1 + $0x170] sm:$0xff]   ;;  %5358 = vmatpush3.bf16.msra.mxu1 %v5853_v10  ;;  %v5863_v5 = vld [vmem:[%s7500_s1 + $0x1a8] sm:$0xff]  }
 0x14c   : > { %v3539_v33 = vshll.u32 %v5115_v0, 16  ;;  %v3549_v60 = vrot.slane %v3547_v24, 5  ;;  %v7518_v42 = vsel %vm6132_vm10, %v7116_v49, %v7118_v37  ;;  %v3532_v61 = vrot.slane %v3530_v30, 4  ;;  %v5756_v45 = vld [vmem:[#allocation2 + $0xd0] ss:$8 sps:$4 sm:$0xff]   ;;  %v7242_v0 = vpop.permute.xlu0 %2880  ;;  %5359 = vmatprep.subr.bf16.mxu1 %v5854_v63 }
 0x14d   : > { %v5152_v1 = vcombine.low %v7518_v42, %v3628_v54  ;;  %v3535_v25 = vrot.slane %v3533_v8, 5  ;;  %v3555_v24 = vrot.slane %v7131_v52, 5  ;;  %3330 = vrot.lane.b32.xlu0 %v5097_v28, %s5914_s9  ;;  %v5130_v53 = vcombine.low %v3563_v59, %v3563_v59  ;;  %5312 = vmatpush3.bf16.msra.mxu0 %v5822_v62  ;;  %v5786_v62 = vld [vmem:[#allocation2 + $0x68] ss:$8 sps:$4 sm:$0xff]  }
 0x14e   : > { %v3541_v29 = vrot.slane %v3539_v33, 5  ;;  %v3550_v36 = vor.u32 %v3549_v60, %v3546_v7  ;;  %v5131_v38 = vcombine.high %v3563_v59, %v3563_v59  ;;  %3350 = vrot.lane.b32.xlu1 %v5101_v32, %s5912_s7  ;;  %v7519_v43 = vcombine.low %v7096_v3, %v7096_v3  ;;  %v7240_v32 = vpop.permute.xlu1 %3344  ;;  %5313 = vmatprep.subr.bf16.mxu0 %v5823_v56 }
 0x14f   : > { %v3536_v19 = vor.u32 %v3535_v25, %v3532_v61  ;;  %v7520_v37 = vcombine.high %v7096_v3, %v7096_v3  ;;  %v5004_v52 = vcombine.low %v2675_v9, %v2675_v9  ;;  %v5140_v57 = vrot.slane %v5130_v53, 9  ;;  %v5830_v3 = vld [vmem:[%s7500_s1 + $0x178] sm:$0xff]   ;;  %5360 = vmatpush3.bf16.msra.mxu1 %v5854_v63 }
 0x150   : > { %v5141_v49 = vrot.slane %v7519_v43, 9  ;;  %v3551_v20 = vrot.slane %v3550_v36, 4  ;;  %v3631_v10 = vrot.slane %v5131_v38, 5  ;;  %v5005_v55 = vcombine.high %v2675_v9, %v2675_v9  ;;  %v1074_v25 = vld [vmem:[#allocation2 + $0x38] sm:$0x1f]  ;;  %5361 = vmatprep.subr.bf16.mxu1 %v5863_v5 }
 0x151   : > { %v3635_v4 = vrot.slane %v7520_v37, 5  ;;  %v3537_v30 = vrot.slane %v3536_v19, 4  ;;  %v2801_v7 = vshrl.u32 %v7144_v48, 16  ;;  %v2804_v59 = vshll.u32 %v7144_v48, 16  ;;  %2886 = vrot.lane.b32.xlu0 %v5756_v45, %s5914_s9  ;;  %5314 = vmatpush3.bf16.msra.mxu0 %v5824_v11  ;;  %v1075_v38 = vld [vmem:[#allocation2 + $0x40] sm:$0x1f]  ;;  %v7278_v11 = vpop.permute.xlu0 %1998 }
 0x152   : > { %v3556_v28 = vsel %vm6125_vm9, %v3551_v20, %v3555_v24  ;;  %v3632_v54 = vsel %vm6132_vm10, %v5140_v57, %v3631_v10  ;;  %v7521_v33 = vcombine.high %v7114_v50, %v7114_v50  ;;  %v2815_v9 = vshrl.u32 %v5004_v52, 16  ;;  %3693 = vrot.lane.b32.xlu1 %v5152_v1, %s5914_s9  ;;  %5315 = vmatprep.subr.bf16.mxu0 %v5830_v3  ;;  %v5831_v50 = vld [vmem:[%s7500_s1 + $0x138] sm:$0xff]  }
 0x153   : > { %v3636_v8 = vsel %vm6132_vm10, %v5141_v49, %v3635_v4  ;;  %v3542_v48 = vsel %vm6125_vm9, %v3537_v30, %v3541_v29  ;;  %v2803_v42 = vrot.slane %v2801_v7, 4  ;;  %v2806_v61 = vrot.slane %v2804_v59, 5  ;;  %5362 = vmatpush3.bf16.msra.mxu1 %v5863_v5  ;;  %v1595_v5 = vld [vmem:[#allocation2 + $0x20] sm:$0x1e] }
 0x154   : > { %v2810_v60 = vshll.u32 %v7521_v33, 16  ;;  %v5153_v56 = vcombine.low %v3632_v54, %v3636_v8  ;;  %v5149_v24 = vcombine.low %v3542_v48, %v3556_v28  ;;  %v2817_v36 = vrot.slane %v2815_v9, 4 }
 0x155   : > { %v2818_v53 = vshll.u32 %v5004_v52, 16  ;;  %v2807_v63 = vor.u32 %v2806_v61, %v2803_v42  ;;  %v2824_v1 = vshll.u32 %v5005_v55, 16  ;;  %v1048_v29 = vsel %vm1042_vm12, %v7122_v40, %v6810_v18  ;;  %v7276_v52 = vpop.permute.xlu1 %2900  ;;  %5316 = vmatpush3.bf16.msra.mxu0 %v5831_v50 }
 0x156   : > { %v2812_v45 = vrot.slane %v2810_v60, 5  ;;  %v2388_v19 = vsel %vm1029_vm11, %v5786_v62, %v6960_v27  ;;  %3675 = vrot.lane.b32.xlu0 %v5149_v24, %s5913_s8  ;;  %v1059_v49 = vsel %vm1051_vm13, %v1048_v29, %v6953_v39  ;;  %v4754_v37 = vcombine.low %v1074_v25, %v1074_v25  ;;  %3695 = vrot.lane.b32.xlu1 %v5153_v56, %s5914_s9  ;;  %v5793_v27 = vld [vmem:[#allocation2 + $0x30] ss:$8 sps:$4 sm:$0xff]   ;;  %v1596_v60 = vld [vmem:[#allocation2 + $0x28] sm:$0x1e] }
 0x157   : > { %v2820_v43 = vrot.slane %v2818_v53, 5  ;;  %v4755_v4 = vcombine.high %v1074_v25, %v1074_v25  ;;  %v2808_v20 = vrot.slane %v2807_v63, 4  ;;  %v2826_v18 = vrot.slane %v2824_v1, 5  ;;  %4246 = vmatmul.mubr.bf16.gmra.mrb[8].mxu0 %v1059_v49  ;;  %v2944_v29 = vld [vmem:[#allocation2 + $0xa0] sm:$0x1e] }
 0x158   : > { %v4756_v40 = vcombine.low %v1075_v38, %v1075_v38  ;;  %v4757_v57 = vcombine.high %v1075_v38, %v1075_v38  ;;  %v1201_v55 = vshrl.u32 %v4754_v37, 16  ;;  %v1204_v3 = vshll.u32 %v4754_v37, 16 }
 0x159   : > { %v2821_v10 = vor.u32 %v2820_v43, %v2817_v36  ;;  %v1210_v30 = vshll.u32 %v4755_v4, 16  ;;  %v2813_v39 = vsel %vm6125_vm9, %v2808_v20, %v2812_v45  ;;  %v1041_v42 = vsel %vm1029_vm11, %v5793_v27, %v6995_v21  ;;  %v7289_v36 = vpop.permute.xlu1 %3306  ;;  %v2945_v4 = vld [vmem:[#allocation2 + $0xa8] sm:$0x1e] }
 0x15a   : > { %v1215_v8 = vshrl.u32 %v4756_v40, 16  ;;  %v1218_v7 = vshll.u32 %v4756_v40, 16  ;;  %v1224_v59 = vshll.u32 %v4757_v57, 16  ;;  %v1203_v28 = vrot.slane %v1201_v55, 4  ;;  %v7291_v53 = vpop.permute.xlu0 %2333  ;;  %v5804_v40 = vld [vmem:[#allocation2 + $0x78] ss:$8 sps:$4 sm:$0xff]  }
 0x15b   : > { %v2822_v62 = vrot.slane %v2821_v10, 4  ;;  %v1206_v54 = vrot.slane %v1204_v3, 5  ;;  %v1212_v33 = vrot.slane %v1210_v30, 5  ;;  %v2398_v24 = vsel %vm1042_vm12, %v2388_v19, %v7013_v26 }
 0x15c   : > { %v1217_v9 = vrot.slane %v1215_v8, 4  ;;  %v1220_v48 = vrot.slane %v1218_v7, 5  ;;  %v1226_v56 = vrot.slane %v1224_v59, 5  ;;  %v4818_v45 = vcombine.low %v1595_v5, %v1595_v5  ;;  %v1597_v8 = vld [vmem:[#allocation2 + $0x30] sm:$0x1e] }
 0x15d   : > { %v2827_v61 = vsel %vm6125_vm9, %v2822_v62, %v2826_v18  ;;  %v1207_v25 = vor.u32 %v1206_v54, %v1203_v28  ;;  %v4819_v63 = vcombine.high %v1595_v5, %v1595_v5  ;;  %v4820_v1 = vcombine.low %v1596_v60, %v1596_v60  ;;  %v7308_v62 = vpop.permute.xlu1 %2353 }
 0x15e   : > { %v5021_v38 = vcombine.low %v2813_v39, %v2827_v61  ;;  %v1221_v50 = vor.u32 %v1220_v48, %v1217_v9  ;;  %v4821_v49 = vcombine.high %v1596_v60, %v1596_v60  ;;  %v4832_v21 = vrot.slane %v4818_v45, 9  ;;  %v1598_v9 = vld [vmem:[#allocation2 + $0x38] sm:$0x1e] }
 0x15f   : > { %v1208_v43 = vrot.slane %v1207_v25, 4  ;;  %v1050_v37 = vsel %vm1042_vm12, %v1041_v42, %v7026_v16  ;;  %v1651_v19 = vrot.slane %v4819_v63, 5  ;;  %v4833_v20 = vrot.slane %v4820_v1, 9  ;;  %v2420_v1 = vld [vmem:[#allocation2 + $0x68] sm:$0x1f] }
 0x160   : > { %2906 = vrot.lane.b32.xlu0 %v5021_v38, %s5912_s7  ;;  %v1222_v26 = vrot.slane %v1221_v50, 4  ;;  %v2407_v18 = vsel %vm1051_vm13, %v2398_v24, %v7043_v13  ;;  %v1655_v27 = vrot.slane %v4821_v49, 5  ;;  %v1062_v10 = vsel %vm1051_vm13, %v1050_v37, %v7063_v31  ;;  %v7310_v31 = vpop.permute.xlu0 %1960 }
 0x161   : > { %v1213_v57 = vsel %vm6125_vm9, %v1208_v43, %v1212_v33  ;;  %v5022_v55 = vcombine.low %v2944_v29, %v2944_v29  ;;  %4302 = vmatprep.mubr.bf16.mxu1 %v2407_v18  ;;  %v1652_v3 = vsel %vm6132_vm10, %v4832_v21, %v1651_v19  ;;  %v5023_v30 = vcombine.high %v2944_v29, %v2944_v29 }
 0x162   : > { %v1227_v16 = vsel %vm6125_vm9, %v1222_v26, %v1226_v56  ;;  %v5024_v39 = vcombine.low %v2945_v4, %v2945_v4  ;;  %v1656_v7 = vsel %vm6132_vm10, %v4833_v20, %v1655_v27  ;;  %v5025_v59 = vcombine.high %v2945_v4, %v2945_v4  ;;  %v7332_v4 = vpop.permute.xlu1 %3326 }
 0x163   : > { %v4801_v13 = vcombine.low %v1213_v57, %v1227_v16  ;;  %v5038_v5 = vrot.slane %v5022_v55, 9  ;;  %v4879_v28 = vcombine.low %v1652_v3, %v1656_v7  ;;  %v2994_v54 = vrot.slane %v5023_v30, 5 }
 0x164   : > { %v5039_v33 = vrot.slane %v5024_v39, 9  ;;  %v2391_v60 = vsel %vm1029_vm11, %v5804_v40, %v7100_v23  ;;  %v2998_v56 = vrot.slane %v5025_v59, 5  ;;  %v4822_v61 = vcombine.low %v1597_v8, %v1597_v8  ;;  %v2419_v23 = vld [vmem:[#allocation2 + $0x60] sm:$0x1f] }
 0x165   : > { %v1568_v48 = vsel %vm1029_vm11, %v4801_v13, %v6962_v17  ;;  %v2400_v42 = vsel %vm1042_vm12, %v2391_v60, %v7155_v15  ;;  %v2007_v24 = vsel %vm1029_vm11, %v4879_v28, %v7015_v41  ;;  %v2995_v45 = vsel %vm6132_vm10, %v5038_v5, %v2994_v54  ;;  %v2946_v13 = vld [vmem:[#allocation2 + $0xb0] sm:$0x1e] }
 0x166   : > { %v1576_v25 = vsel %vm1042_vm12, %v1568_v48, %v6993_v2  ;;  %v4823_v38 = vcombine.high %v1597_v8, %v1597_v8  ;;  %v2017_v17 = vsel %vm1042_vm12, %v2007_v24, %v7045_v34  ;;  %v2999_v15 = vsel %vm6132_vm10, %v5039_v33, %v2998_v56  ;;  %v7334_v34 = vpop.permute.xlu0 %2854  ;;  %v2382_v48 = vpop.permute.xlu1 %2381 }
 0x167   : > { %v1587_v50 = vsel %vm1051_vm13, %v1576_v25, %v7024_v51  ;;  %v4824_v63 = vcombine.low %v1598_v9, %v1598_v9  ;;  %v2026_v2 = vsel %vm1051_vm13, %v2017_v17, %v7061_v46  ;;  %v5086_v41 = vcombine.low %v2995_v45, %v2999_v15 }
 0x168   : > { %4253 = vmatprep.mubr.bf16.mxu0 %v1587_v50  ;;  %v4825_v29 = vcombine.high %v1598_v9, %v1598_v9  ;;  %v4834_v43 = vrot.slane %v4822_v61, 9  ;;  %v1659_v49 = vrot.slane %v4823_v38, 5  ;;  %4303 = vmatmul.mubr.bf16.gmra.mrb[4].mxu1 %v2026_v2  ;;  %v4950_v51 = vcombine.low %v2419_v23, %v2419_v23  ;;  %v1599_v50 = vld [vmem:[#allocation2 + $0x40] sm:$0x1e] }
 0x169   : > { %v4835_v21 = vrot.slane %v4824_v63, 9  ;;  %4254 = vmatmul.mubr.bf16.gmra.mrb[12].mxu0 %v1062_v10  ;;  %v4951_v37 = vcombine.high %v2419_v23, %v2419_v23  ;;  %v3354_v26 = vsel %vm1029_vm11, %v5086_v41, %v7098_v6  ;;  %v4952_v20 = vcombine.low %v2420_v1, %v2420_v1  ;;  %v5829_v23 = vld [vmem:[#allocation2 + $0x88] ss:$8 sps:$4 sm:$0xff]  }
 0x16a   : > { %v1663_v19 = vrot.slane %v4825_v29, 5  ;;  %v4953_v46 = vcombine.high %v2420_v1, %v2420_v1  ;;  %v1660_v18 = vsel %vm6132_vm10, %v4834_v43, %v1659_v49  ;;  %v3365_v40 = vsel %vm1042_vm12, %v3354_v26, %v7176_v58  ;;  %v2947_v58 = vld [vmem:[#allocation2 + $0xb8] sm:$0x1e]  ;;  %v7350_v56 = vpop.permute.xlu0 %1980  ;;  %v1600_v63 = vld [vmem:[#allocation2 + $0x48] sm:$0x1e] }
 0x16b   : > { %v2468_v57 = vshrl.u32 %v4950_v51, 16  ;;  %v2471_v27 = vshll.u32 %v4950_v51, 16  ;;  %v2477_v55 = vshll.u32 %v4951_v37, 16  ;;  %v2482_v16 = vshrl.u32 %v4952_v20, 16  ;;  %v2421_v41 = vld [vmem:[#allocation2 + $0x70] sm:$0x1f] }
 0x16c   : > { %v1664_v10 = vsel %vm6132_vm10, %v4835_v21, %v1663_v19  ;;  %v2485_v3 = vshll.u32 %v4952_v20, 16  ;;  %v2491_v8 = vshll.u32 %v4953_v46, 16  ;;  %v2410_v28 = vsel %vm1051_vm13, %v2400_v42, %v7201_v14  ;;  %v2422_v19 = vld [vmem:[#allocation2 + $0x78] sm:$0x1f]  ;;  %v3347_v20 = vpop.permute.xlu1 %3346 }
 0x16d   : > { %v4880_v30 = vcombine.low %v1660_v18, %v1664_v10  ;;  %v2470_v39 = vrot.slane %v2468_v57, 4  ;;  %v2473_v6 = vrot.slane %v2471_v27, 5  ;;  %v2479_v7 = vrot.slane %v2477_v55, 5  ;;  %4310 = vmatprep.mubr.bf16.mxu1 %v2410_v28 }
 0x16e   : > { %v2484_v59 = vrot.slane %v2482_v16, 4  ;;  %v2487_v5 = vrot.slane %v2485_v3, 5  ;;  %v2493_v60 = vrot.slane %v2491_v8, 5  ;;  %v3373_v9 = vsel %vm1051_vm13, %v3365_v40, %v7240_v32  ;;  %v2883_v46 = vpop.permute.xlu0 %2882 }
 0x16f   : > { %v2010_v54 = vsel %vm1029_vm11, %v4880_v30, %v7157_v47  ;;  %v2474_v33 = vor.u32 %v2473_v6, %v2470_v39  ;;  %v5026_v24 = vcombine.low %v2946_v13, %v2946_v13  ;;  %v5027_v45 = vcombine.high %v2946_v13, %v2946_v13  ;;  %4359 = vmatprep.mubr.bf16.mxu0 %v3373_v9 }
 0x170   : > { %v2488_v61 = vor.u32 %v2487_v5, %v2484_v59  ;;  %v2019_v25 = vsel %vm1042_vm12, %v2010_v54, %v7203_v35  ;;  %v5028_v42 = vcombine.low %v2947_v58, %v2947_v58  ;;  %v5029_v38 = vcombine.high %v2947_v58, %v2947_v58  ;;  %v2903_v9 = vpop.permute.xlu1 %2902 }
 0x171   : > { %v2475_v14 = vrot.slane %v2474_v33, 4  ;;  %v2029_v47 = vsel %vm1051_vm13, %v2019_v25, %v7278_v11  ;;  %v5040_v17 = vrot.slane %v5026_v24, 9  ;;  %v3002_v15 = vrot.slane %v5027_v45, 5 }
 0x172   : > { %v2489_v32 = vrot.slane %v2488_v61, 4  ;;  %4311 = vmatmul.mubr.bf16.gmra.mrb[8].mxu1 %v2029_v47  ;;  %v5041_v35 = vrot.slane %v5028_v42, 9  ;;  %v3006_v2 = vrot.slane %v5029_v38, 5  ;;  %v4826_v43 = vcombine.low %v1599_v50, %v1599_v50  ;;  %v2001_v61 = vpop.permute.xlu0 %2000 }
 0x173   : > { %v2480_v1 = vsel %vm6125_vm9, %v2475_v14, %v2479_v7  ;;  %v3003_v11 = vsel %vm6132_vm10, %v5040_v17, %v3002_v15  ;;  %v4827_v49 = vcombine.high %v1599_v50, %v1599_v50  ;;  %v4828_v37 = vcombine.low %v1600_v63, %v1600_v63  ;;  %v2948_v50 = vld [vmem:[#allocation2 + $0xc0] sm:$0x1e] }
 0x174   : > { %v2494_v29 = vsel %vm6125_vm9, %v2489_v32, %v2493_v60  ;;  %v3007_v51 = vsel %vm6132_vm10, %v5041_v35, %v3006_v2  ;;  %v4829_v26 = vcombine.high %v1600_v63, %v1600_v63  ;;  %v2394_v18 = vsel %vm1029_vm11, %v5829_v23, %v7291_v53  ;;  %v7389_v63 = vpop.permute.xlu1 %2856 }
 0x175   : > { %v5006_v21 = vcombine.low %v2480_v1, %v2494_v29  ;;  %v4836_v40 = vrot.slane %v4826_v43, 9  ;;  %v1667_v57 = vrot.slane %v4827_v49, 5  ;;  %v4954_v27 = vcombine.low %v2421_v41, %v2421_v41 }
 0x176   : > { %v4837_v55 = vrot.slane %v4828_v37, 9  ;;  %v1671_v16 = vrot.slane %v4829_v26, 5  ;;  %v4955_v3 = vcombine.high %v2421_v41, %v2421_v41  ;;  %v5087_v39 = vcombine.low %v3003_v11, %v3007_v51 }
 0x177   : > { %v2910_v10 = vsel %vm1029_vm11, %v5006_v21, %v7178_v44  ;;  %v1668_v6 = vsel %vm6132_vm10, %v4836_v40, %v1667_v57  ;;  %v4956_v8 = vcombine.low %v2422_v19, %v2422_v19  ;;  %v2402_v13 = vsel %vm1042_vm12, %v2394_v18, %v7308_v62  ;;  %v2423_v57 = vld [vmem:[#allocation2 + $0x80] sm:$0x1f] }
 0x178   : > { %v2921_v30 = vsel %vm1042_vm12, %v2910_v10, %v7242_v0  ;;  %v1672_v44 = vsel %vm6132_vm10, %v4837_v55, %v1671_v16  ;;  %v4957_v7 = vcombine.high %v2422_v19, %v2422_v19  ;;  %v2496_v5 = vshrl.u32 %v4954_v27, 16 }
 0x179   : > { %v2929_v53 = vsel %vm1051_vm13, %v2921_v30, %v7276_v52  ;;  %v4881_v59 = vcombine.low %v1668_v6, %v1672_v44  ;;  %v2499_v28 = vshll.u32 %v4954_v27, 16  ;;  %v2505_v0 = vshll.u32 %v4955_v3, 16  ;;  %v3309_v49 = vpop.permute.xlu0 %3308  ;;  %v2424_v27 = vld [vmem:[#allocation2 + $0x88] sm:$0x1f] }
 0x17a   : > { %4360 = vmatmul.mubr.bf16.vlgmr.msra.gmra.mrb[16].mxu0 %v2929_v53  ;;  %v2510_v58 = vshrl.u32 %v4956_v8, 16  ;;  %v2513_v54 = vshll.u32 %v4956_v8, 16  ;;  %v2519_v33 = vshll.u32 %v4957_v7, 16  ;;  %v2413_v60 = vsel %vm1051_vm13, %v2402_v13, %v2382_v48  ;;  %v5849_v7 = vld [vmem:[#allocation2 + $0xb0] ss:$8 sps:$4 sm:$0xff]  }
 0x17b   : > { %v3357_v52 = vsel %vm1029_vm11, %v5087_v39, %v7289_v36  ;;  %v2013_v62 = vsel %vm1029_vm11, %v4881_v59, %v7310_v31  ;;  %v2498_v25 = vrot.slane %v2496_v5, 4  ;;  %v2501_v24 = vrot.slane %v2499_v28, 5  ;;  %4318 = vmatprep.mubr.bf16.mxu1 %v2413_v60 }
 0x17c   : > { %v3367_v45 = vsel %vm1042_vm12, %v3357_v52, %v7332_v4  ;;  %v2512_v14 = vrot.slane %v2510_v58, 4  ;;  %v2515_v47 = vrot.slane %v2513_v54, 5  ;;  %v2021_v42 = vsel %vm1042_vm12, %v2013_v62, %v7350_v56  ;;  %v2949_v56 = vld [vmem:[#allocation2 + $0xc8] sm:$0x1e] }
 0x17d   : > { %v2502_v48 = vor.u32 %v2501_v24, %v2498_v25  ;;  %v2507_v38 = vrot.slane %v2505_v0, 5  ;;  %v3376_v23 = vsel %vm1051_vm13, %v3367_v45, %v3347_v20  ;;  %v2032_v36 = vsel %vm1051_vm13, %v2021_v42, %v2001_v61 }
 0x17e   : > { %v2516_v32 = vor.u32 %v2515_v47, %v2512_v14  ;;  %v2521_v31 = vrot.slane %v2519_v33, 5  ;;  %4367 = vmatprep.mubr.bf16.mxu0 %v3376_v23  ;;  %4319 = vmatmul.mubr.bf16.gmra.mrb[12].mxu1 %v2032_v36  ;;  %v5030_v4 = vcombine.low %v2948_v50, %v2948_v50  ;;  %v5031_v41 = vcombine.high %v2948_v50, %v2948_v50  ;;  %v3670_v20 = vpop.permute.xlu1 %3669 }
 0x17f   : > { %v2503_v17 = vrot.slane %v2502_v48, 4  ;;  %v5032_v29 = vcombine.low %v2949_v56, %v2949_v56  ;;  %v5033_v11 = vcombine.high %v2949_v56, %v2949_v56  ;;  %v4960_v3 = vcombine.low %v2424_v27, %v2424_v27  ;;  %v5852_v48 = vld [vmem:[#allocation2 + $0xc0] ss:$8 sps:$4 sm:$0xff]  }
 0x180   : > { %v2517_v15 = vrot.slane %v2516_v32, 4  ;;  %v5042_v43 = vrot.slane %v5030_v4, 9  ;;  %v3010_v51 = vrot.slane %v5031_v41, 5  ;;  %v4959_v59 = vcombine.high %v2423_v57, %v2423_v57  ;;  %v2950_v41 = vld [vmem:[#allocation2 + $0xd0] sm:$0x1e] }
 0x181   : > { %v2508_v1 = vsel %vm6125_vm9, %v2503_v17, %v2507_v38  ;;  %v5043_v26 = vrot.slane %v5032_v29, 9  ;;  %v3014_v19 = vrot.slane %v5033_v11, 5  ;;  %v2538_v13 = vshrl.u32 %v4960_v3, 16  ;;  %v2951_v29 = vld [vmem:[#allocation2 + $0xd8] sm:$0x1e] }
 0x182   : > { %v2522_v35 = vsel %vm6125_vm9, %v2517_v15, %v2521_v31  ;;  %v3011_v40 = vsel %vm6132_vm10, %v5042_v43, %v3010_v51  ;;  %v2541_v44 = vshll.u32 %v4960_v3, 16  ;;  %v4961_v5 = vcombine.high %v2424_v27, %v2424_v27  ;;  %v2425_v51 = vld [vmem:[#allocation2 + $0x90] sm:$0x1f] }
 0x183   : > { %v5007_v2 = vcombine.low %v2508_v1, %v2522_v35  ;;  %v3015_v10 = vsel %vm6132_vm10, %v5043_v26, %v3014_v19  ;;  %v2540_v58 = vrot.slane %v2538_v13, 4  ;;  %v3699_v33 = vsel %vm1029_vm11, %v5849_v7, %v3670_v20 }
 0x184   : > { %v5088_v55 = vcombine.low %v3011_v40, %v3015_v10  ;;  %v2543_v54 = vrot.slane %v2541_v44, 5  ;;  %v2533_v52 = vshll.u32 %v4959_v59, 16  ;;  %v2547_v25 = vshll.u32 %v4961_v5, 16 }
 0x185   : > { %v2913_v21 = vsel %vm1029_vm11, %v5007_v2, %v7334_v34  ;;  %v4958_v34 = vcombine.low %v2423_v57, %v2423_v57  ;;  %v5034_v11 = vcombine.low %v2950_v41, %v2950_v41  ;;  %v5035_v43 = vcombine.high %v2950_v41, %v2950_v41 }
 0x186   : > { %v2923_v37 = vsel %vm1042_vm12, %v2913_v21, %v2883_v46  ;;  %v3360_v46 = vsel %vm1029_vm11, %v5088_v55, %v3309_v49  ;;  %v2544_v62 = vor.u32 %v2543_v54, %v2540_v58  ;;  %v2535_v14 = vrot.slane %v2533_v52, 5  ;;  %v5864_v54 = vld [vmem:[#allocation2 + $0xd0] ss:$8 sps:$4 sm:$0xff]  }
 0x187   : > { %v2932_v18 = vsel %vm1051_vm13, %v2923_v37, %v2903_v9  ;;  %v2524_v8 = vshrl.u32 %v4958_v34, 16  ;;  %v2527_v53 = vshll.u32 %v4958_v34, 16  ;;  %v2549_v42 = vrot.slane %v2547_v25, 5  ;;  %v2426_v37 = vld [vmem:[#allocation2 + $0x98] sm:$0x1f] }
 0x188   : > { %4368 = vmatmul.mubr.bf16.gmra.mrb[20].mxu0 %v2932_v18  ;;  %v3329_v16 = vpop.permute.xlu0 %3328  ;;  %v2545_v47 = vrot.slane %v2544_v62, 4  ;;  %v5036_v49 = vcombine.low %v2951_v29, %v2951_v29  ;;  %v5037_v21 = vcombine.high %v2951_v29, %v2951_v29  ;;  %v5044_v26 = vrot.slane %v5034_v11, 9 }
 0x189   : > { %v3369_v30 = vsel %vm1042_vm12, %v3360_v46, %v3329_v16  ;;  %v2526_v28 = vrot.slane %v2524_v8, 4  ;;  %v2529_v0 = vrot.slane %v2527_v53, 5  ;;  %v3018_v19 = vrot.slane %v5035_v43, 5 }
 0x18a   : > { %v3349_v39 = vpop.permute.xlu1 %3348  ;;  %v2550_v32 = vsel %vm6125_vm9, %v2545_v47, %v2549_v42  ;;  %v3022_v20 = vrot.slane %v5037_v21, 5  ;;  %v4962_v18 = vcombine.low %v2425_v51, %v2425_v51  ;;  %v4964_v40 = vcombine.low %v2426_v37, %v2426_v37  ;;  %v5865_v47 = vld [vmem:[#allocation2 + $0xe0] ss:$8 sps:$4 sm:$0xff]  }
 0x18b   : > { %v3379_v6 = vsel %vm1051_vm13, %v3369_v30, %v3349_v39  ;;  %v2530_v61 = vor.u32 %v2529_v0, %v2526_v28  ;;  %v3019_v27 = vsel %vm6132_vm10, %v5044_v26, %v3018_v19  ;;  %v4963_v39 = vcombine.high %v2425_v51, %v2425_v51 }
 0x18c   : > { %4375 = vmatprep.mubr.bf16.mxu0 %v3379_v6  ;;  %v2885_v24 = vpop.permute.xlu0 %2884  ;;  %v2552_v55 = vshrl.u32 %v4962_v18, 16  ;;  %v2555_v16 = vshll.u32 %v4962_v18, 16  ;;  %v2566_v34 = vshrl.u32 %v4964_v40, 16  ;;  %v2569_v3 = vshll.u32 %v4964_v40, 16 }
 0x18d   : > { %v2531_v45 = vrot.slane %v2530_v61, 4  ;;  %v4965_v6 = vcombine.high %v2426_v37, %v2426_v37  ;;  %v2561_v5 = vshll.u32 %v4963_v39, 16 }
 0x18e   : > { %v2554_v8 = vrot.slane %v2552_v55, 4  ;;  %v2557_v53 = vrot.slane %v2555_v16, 5  ;;  %v2568_v13 = vrot.slane %v2566_v34, 4  ;;  %v2571_v44 = vrot.slane %v2569_v3, 5 }
 0x18f   : > { %v2536_v50 = vsel %vm6125_vm9, %v2531_v45, %v2535_v14  ;;  %v2575_v58 = vshll.u32 %v4965_v6, 16  ;;  %v2563_v61 = vrot.slane %v2561_v5, 5 }
 0x190   : > { %v5008_v15 = vcombine.low %v2536_v50, %v2550_v32  ;;  %v2558_v0 = vor.u32 %v2557_v53, %v2554_v8  ;;  %v2572_v22 = vor.u32 %v2571_v44, %v2568_v13 }
 0x192   : > { %v2916_v4 = vsel %vm1029_vm11, %v5008_v15, %v7389_v63  ;;  %v5045_v63 = vrot.slane %v5036_v49, 9  ;;  %v2559_v62 = vrot.slane %v2558_v0, 4  ;;  %v2573_v25 = vrot.slane %v2572_v22, 4 }
 0x193   : > { %v3690_v60 = vpop.permute.xlu1 %3689  ;;  %v2925_v1 = vsel %vm1042_vm12, %v2916_v4, %v2885_v24  ;;  %v2577_v24 = vrot.slane %v2575_v58, 5 }
 0x194   : > { %v3710_v9 = vsel %vm1042_vm12, %v3699_v33, %v3690_v60  ;;  %v3023_v10 = vsel %vm6132_vm10, %v5045_v63, %v3022_v20 }
 0x195   : > { %3721 = vst.msk [vmem:[#allocation3 + $0x30] sm:$0xff] %vm1051_vm13, %v3710_v9  ;;  %v5089_v46 = vcombine.low %v3019_v27, %v3023_v10 }
 0x19c   : > { %v3692_v38 = vpop.permute.xlu1 %3691  ;;  %v3731_v23 = vld [vmem:[#allocation3 + $0x30] sm:$0xff] }
 0x19d   : > { %v3672_v36 = vpop.permute.xlu0 %3671  ;;  %5363 = vmatprep.mubr.msk.bf16.mxu1 %vm1051_vm13, %v3731_v23  ;;  %v2578_v23 = vsel %vm6125_vm9, %v2573_v25, %v2577_v24 }
 0x19e   : > { %v3702_v31 = vsel %vm1029_vm11, %v5852_v48, %v3672_v36 }
 0x19f   : > { %v3713_v17 = vsel %vm1042_vm12, %v3702_v31, %v3692_v38  ;;  %v2564_v38 = vsel %vm6125_vm9, %v2559_v62, %v2563_v61 }
 0x1a0   : > { %3722 = vst.msk [vmem:[#allocation3 + $0x68] sm:$0xff] %vm1051_vm13, %v3713_v17  ;;  %v5009_v31 = vcombine.low %v2564_v38, %v2578_v23 }
 0x1a5   : > { %v2859_v57 = vpop.permute.xlu1 %2858 }
 0x1a6   : > { %v2905_v56 = vpop.permute.xlu0 %2904  ;;  %v2919_v15 = vsel %vm1029_vm11, %v5009_v31, %v2859_v57 }
 0x1a7   : > { %v2935_v35 = vsel %vm1051_vm13, %v2925_v1, %v2905_v56  ;;  %v3738_v2 = vld [vmem:[#allocation3 + $0x68] sm:$0xff] }
 0x1a8   : > { %4376 = vmatmul.mubr.bf16.gmra.mrb[24].mxu0 %v2935_v35  ;;  %5364 = vmatmul.mubr.msk.bf16.vlgmr.msra.gmra.mrb[16].mxu1 %vm1051_vm13, %v3738_v2 }
 0x1b2   : > { %v3311_v30 = vpop.permute.xlu0 %3310 }
 0x1b3   : > { %v3363_v59 = vsel %vm1029_vm11, %v5089_v46, %v3311_v30 }
 0x1bc   : > { %v3674_v7 = vpop.permute.xlu1 %3673 }
 0x1bd   : > { %v3705_v45 = vsel %vm1029_vm11, %v5864_v54, %v3674_v7 }
 0x1bf   : > { %v3331_v28 = vpop.permute.xlu0 %3330 }
 0x1c0   : > { %v3371_v33 = vsel %vm1042_vm12, %v3363_v59, %v3331_v28  ;;  %v3351_v60 = vpop.permute.xlu1 %3350 }
 0x1c1   : > { %v3382_v9 = vsel %vm1051_vm13, %v3371_v33, %v3351_v60 }
 0x1c2   : > { %4383 = vmatprep.mubr.bf16.mxu0 %v3382_v9 }
 0x1c3   : > { %v2887_v52 = vpop.permute.xlu0 %2886 }
 0x1c4   : > { %v3694_v14 = vpop.permute.xlu1 %3693  ;;  %v2927_v4 = vsel %vm1042_vm12, %v2919_v15, %v2887_v52 }
 0x1c5   : > { %v3716_v42 = vsel %vm1042_vm12, %v3705_v45, %v3694_v14 }
 0x1c6   : > { %3723 = vst.msk [vmem:[#allocation3 + $0xa0] sm:$0xff] %vm1051_vm13, %v3716_v42 }
 0x1c8   : > { %v3676_v48 = vpop.permute.xlu0 %3675  ;;  %v3696_v50 = vpop.permute.xlu1 %3695 }
 0x1c9   : > { %v3708_v36 = vsel %vm1029_vm11, %v5865_v47, %v3676_v48 }
 0x1ca   : > { %v3719_v32 = vsel %vm1042_vm12, %v3708_v36, %v3696_v50 }
 0x1cb   : > { %3724 = vst.msk [vmem:[#allocation3 + $0xd8] sm:$0xff] %vm1051_vm13, %v3719_v32 }
 0x1cd   : > { %v3745_v17 = vld [vmem:[#allocation3 + $0xa0] sm:$0xff] }
 0x1ce   : > { %5367 = vmatprep.mubr.msk.bf16.mxu1 %vm1051_vm13, %v3745_v17 }
 0x1d2   : > { %v2907_v1 = vpop.permute.xlu0 %2906  ;;  %v3752_v12 = vld [vmem:[#allocation3 + $0xd8] sm:$0xff] }
 0x1d3   : > { %v2938_v56 = vsel %vm1051_vm13, %v2927_v4, %v2907_v1  ;;  %5368 = vmatmul.mubr.msk.bf16.gmra.mrb[20].mxu1 %vm1051_vm13, %v3752_v12 }
 0x1d4   : > { %4384 = vmatmul.mubr.bf16.gmra.mrb[28].mxu0 %v2938_v56 }
 0x20a   : > { %v5237_v35 = vpop.f32.mrb[0].mxu0 }
 0x20b   : > { %v5238_v2 = vpop.f32.mrb[1].mxu0 }
 0x20c   : > { %v5239_v41 = vadd.f32 %v5238_v2, %v5237_v35  ;;  %v5240_v29 = vpop.f32.mrb[2].mxu0 }
 0x20d   : > { %v5241_v11 = vpop.f32.mrb[3].mxu0 }
 0x20e   : > { %v5242_v43 = vadd.f32 %v5241_v11, %v5240_v29 }
 0x210   : > { %v5277_v49 = vpop.f32.mrb[0].mxu1 }
 0x211   : > { %v5278_v51 = vpop.f32.mrb[1].mxu1 }
 0x212   : > { %v5243_v21 = vpop.f32.mrb[4].mxu0  ;;  %v5279_v26 = vadd.f32 %v5278_v51, %v5277_v49  ;;  %v5280_v19 = vpop.f32.mrb[2].mxu1 }
 0x213   : > { %v5244_v37 = vpop.f32.mrb[5].mxu0  ;;  %v5281_v18 = vpop.f32.mrb[3].mxu1 }
 0x214   : > { %v5245_v63 = vadd.f32 %v5244_v37, %v5243_v21  ;;  %v5246_v20 = vpop.f32.mrb[6].mxu0  ;;  %v4297_v57 = vadd.f32 %v5279_v26, %v5239_v41  ;;  %v5282_v27 = vadd.f32 %v5281_v18, %v5280_v19 }
 0x215   : > { %v5247_v40 = vpop.f32.mrb[7].mxu0 }
 0x216   : > { %v5248_v10 = vadd.f32 %v5247_v40, %v5246_v20  ;;  %v4300_v55 = vadd.f32 %v5282_v27, %v5242_v43 }
 0x22a   : > { %v5249_v16 = vpop.f32.mrb[8].mxu0 }
 0x22b   : > { %v5250_v34 = vpop.f32.mrb[9].mxu0 }
 0x22c   : > { %v5251_v3 = vadd.f32 %v5250_v34, %v5249_v16  ;;  %v5252_v46 = vpop.f32.mrb[10].mxu0 }
 0x22d   : > { %v5253_v30 = vpop.f32.mrb[11].mxu0 }
 0x22e   : > { %v5254_v39 = vadd.f32 %v5253_v30, %v5252_v46 }
 0x23b   : > { %v5283_v8 = vpop.f32.mrb[4].mxu1 }
 0x23c   : > { %v5255_v6 = vpop.f32.mrb[12].mxu0  ;;  %v5284_v13 = vpop.f32.mrb[5].mxu1 }
 0x23d   : > { %v5256_v53 = vpop.f32.mrb[13].mxu0  ;;  %v5285_v7 = vadd.f32 %v5284_v13, %v5283_v8  ;;  %v5286_v5 = vpop.f32.mrb[6].mxu1 }
 0x23e   : > { %v5257_v44 = vadd.f32 %v5256_v53, %v5255_v6  ;;  %v5258_v59 = vpop.f32.mrb[14].mxu0  ;;  %v5287_v0 = vpop.f32.mrb[7].mxu1 }
 0x23f   : > { %v5259_v28 = vpop.f32.mrb[15].mxu0  ;;  %v4305_v22 = vadd.f32 %v5285_v7, %v5245_v63  ;;  %v5288_v54 = vadd.f32 %v5287_v0, %v5286_v5 }
 0x240   : > { %v5260_v58 = vadd.f32 %v5259_v28, %v5258_v59 }
 0x241   : > { %v4308_v33 = vadd.f32 %v5288_v54, %v5248_v10 }
 0x245   : > { %v5289_v60 = vpop.f32.mrb[8].mxu1 }
 0x246   : > { %v5290_v9 = vpop.f32.mrb[9].mxu1 }
 0x247   : > { %v5291_v61 = vadd.f32 %v5290_v9, %v5289_v60  ;;  %v5292_v52 = vpop.f32.mrb[10].mxu1 }
 0x248   : > { %v5293_v62 = vpop.f32.mrb[11].mxu1 }
 0x249   : > { %v4313_v25 = vadd.f32 %v5291_v61, %v5251_v3  ;;  %v5294_v24 = vadd.f32 %v5293_v62, %v5292_v52 }
 0x24b   : > { %v4316_v45 = vadd.f32 %v5294_v24, %v5254_v39 }
 0x24d   : > { %v5317_v14 = vpop.f32.mrb[16].mxu0 }
 0x24e   : > { %v5318_v47 = vpop.f32.mrb[17].mxu0 }
 0x24f   : > { %v5319_v42 = vadd.f32 %v5318_v47, %v5317_v14  ;;  %v5320_v48 = vpop.f32.mrb[18].mxu0 }
 0x250   : > { %v5321_v38 = vpop.f32.mrb[19].mxu0 }
 0x251   : > { %v5322_v23 = vadd.f32 %v5321_v38, %v5320_v48  ;;  %v4362_v36 = vadd.f32 %v5319_v42, %v4297_v57  ;;  %v5295_v50 = vpop.f32.mrb[12].mxu1 }
 0x252   : > { %v5296_v31 = vpop.f32.mrb[13].mxu1 }
 0x253   : > { %v4365_v32 = vadd.f32 %v5322_v23, %v4300_v55  ;;  %v5297_v17 = vadd.f32 %v5296_v31, %v5295_v50  ;;  %v5298_v15 = vpop.f32.mrb[14].mxu1 }
 0x254   : > { %v5299_v4 = vpop.f32.mrb[15].mxu1 }
 0x255   : > { %v7444_v1 = vadd.f32 %v5297_v17, %v5257_v44  ;;  %v5300_v56 = vadd.f32 %v5299_v4, %v5298_v15 }
 0x257   : > { %v7446_v12 = vadd.f32 %v5300_v56, %v5260_v58 }
 0x25b   : > { %v5323_v35 = vpop.f32.mrb[20].mxu0 }
 0x25c   : > { %v5324_v2 = vpop.f32.mrb[21].mxu0 }
 0x25d   : > { %v5325_v41 = vadd.f32 %v5324_v2, %v5323_v35  ;;  %v5326_v29 = vpop.f32.mrb[22].mxu0 }
 0x25e   : > { %v5327_v11 = vpop.f32.mrb[23].mxu0 }
 0x25f   : > { %v5328_v43 = vadd.f32 %v5327_v11, %v5326_v29  ;;  %v4370_v49 = vadd.f32 %v5325_v41, %v4305_v22 }
 0x261   : > { %v4373_v21 = vadd.f32 %v5328_v43, %v4308_v33 }
 0x27b   : > { %v5329_v51 = vpop.f32.mrb[24].mxu0  ;;  %v5365_v37 = vpop.f32.mrb[16].mxu1 }
 0x27c   : > { %v4435_v26 = vadd.f32 %v5365_v37, %v4370_v49  ;;  %v5330_v19 = vpop.f32.mrb[25].mxu0  ;;  %v4426_v63 = vpop.f32.mrb[17].mxu1 }
 0x27d   : > { %v5331_v20 = vadd.f32 %v5330_v19, %v5329_v51  ;;  %v4427_v18 = vadd.f32 %v4426_v63, %v4362_v36  ;;  %v5332_v40 = vpop.f32.mrb[26].mxu0  ;;  %v5366_v57 = vpop.f32.mrb[18].mxu1 }
 0x27e   : > { %v4459_v27 = vpack.c.bf16 %v4435_v26, %v4435_v26  ;;  %v4438_v10 = vadd.f32 %v5366_v57, %v4373_v21  ;;  %v5333_v55 = vpop.f32.mrb[27].mxu0  ;;  %v4429_v16 = vpop.f32.mrb[19].mxu1  ;;  %v4497_v53 = vmul.f32 %v4435_v26, %v4435_v26  ;;  %v4477_v28 = vsel %vm1029_vm11, %v4435_v26, 0.0 }
 0x27f   : > { %v4457_v34 = vpack.c.bf16 %v4427_v18, %v4427_v18  ;;  %v5334_v3 = vadd.f32 %v5333_v55, %v5332_v40  ;;  %v4495_v30 = vmul.f32 %v4427_v18, %v4427_v18  ;;  %v4430_v39 = vadd.f32 %v4429_v16, %v4365_v32 }
 0x280   : > { %4468 = vst.msk [vmem:[%s5994_s13 + $0x8] sm:$0xf] %vm4465_vm14, %v4459_v27  ;;  %v4460_v46 = vpack.c.bf16 %v4438_v10, %v4438_v10  ;;  %v4378_v6 = vadd.f32 %v5331_v20, %v4313_v25  ;;  %v4474_v13 = vsel %vm1029_vm11, %v4427_v18, 0.0  ;;  %v4498_v22 = vmul.f32 %v4438_v10, %v4438_v10 }
 0x281   : > { %4466 = vst.msk [vmem:[%s5994_s13] sm:$0xf] %vm4465_vm14, %v4457_v34  ;;  %v4381_v8 = vadd.f32 %v5334_v3, %v4316_v45  ;;  %v4458_v44 = vpack.c.bf16 %v4430_v39, %v4430_v39  ;;  %v4475_v7 = vsel %vm1029_vm11, %v4430_v39, 0.0  ;;  %v4496_v59 = vmul.f32 %v4430_v39, %v4430_v39 }
 0x282   : > { %4469 = vst.msk [vmem:[%s5994_s13 + $0xc] sm:$0xf] %vm4465_vm14, %v4460_v46  ;;  %v4476_v5 = vadd.f32 %v4475_v7, %v4474_v13  ;;  %v4503_v0 = vsel %vm1029_vm11, %v4495_v30, 0.0  ;;  %v4506_v60 = vsel %vm1029_vm11, %v4497_v53, 0.0  ;;  %v4479_v9 = vsel %vm1029_vm11, %v4438_v10, 0.0 }
 0x283   : > { %4467 = vst.msk [vmem:[%s5994_s13 + $0x4] sm:$0xf] %vm4465_vm14, %v4458_v44  ;;  %v4504_v58 = vsel %vm1029_vm11, %v4496_v59, 0.0  ;;  %v4508_v62 = vsel %vm1029_vm11, %v4498_v22, 0.0 }
 0x284   : > { %v4478_v54 = vadd.f32 %v4477_v28, %v4476_v5  ;;  %v4505_v33 = vadd.f32 %v4504_v58, %v4503_v0  ;;  %v4526_v28 = vld [vmem:[%s5989_s10] sm:$0x3] }
 0x286   : > { %v4507_v61 = vadd.f32 %v4506_v60, %v4505_v33  ;;  %v4480_v52 = vadd.f32 %v4479_v9, %v4478_v54 }
 0x288   : > { %v4509_v25 = vadd.f32 %v4508_v62, %v4507_v61 }
 0x2a6   : > { %v5369_v45 = vpop.f32.mrb[20].mxu1 }
 0x2a7   : > { %v5335_v24 = vpop.f32.mrb[28].mxu0  ;;  %v4442_v47 = vpop.f32.mrb[21].mxu1 }
 0x2a8   : > { %v5336_v14 = vpop.f32.mrb[29].mxu0  ;;  %v4443_v48 = vadd.f32 %v4442_v47, %v4378_v6  ;;  %v5370_v23 = vpop.f32.mrb[22].mxu1 }
 0x2a9   : > { %v5337_v42 = vadd.f32 %v5336_v14, %v5335_v24  ;;  %v5338_v38 = vpop.f32.mrb[30].mxu0  ;;  %v4445_v50 = vpop.f32.mrb[23].mxu1 }
 0x2aa   : > { %v5339_v36 = vpop.f32.mrb[31].mxu0  ;;  %v4461_v31 = vpack.c.bf16 %v4443_v48, %v4443_v48  ;;  %v4481_v17 = vsel %vm1029_vm11, %v4443_v48, 0.0  ;;  %v4499_v15 = vmul.f32 %v4443_v48, %v4443_v48  ;;  %v4446_v35 = vadd.f32 %v4445_v50, %v4381_v8 }
 0x2ab   : > { %v4386_v32 = vadd.f32 %v5337_v42, %v7444_v1  ;;  %v4482_v4 = vadd.f32 %v4481_v17, %v4480_v52  ;;  %v5340_v56 = vadd.f32 %v5339_v36, %v5338_v38 }
 0x2ac   : > { %4470 = vst.msk [vmem:[%s5994_s13 + $0x10] sm:$0xf] %vm4465_vm14, %v4461_v31  ;;  %v4510_v41 = vsel %vm1029_vm11, %v4499_v15, 0.0  ;;  %v4462_v43 = vpack.c.bf16 %v4446_v35, %v4446_v35  ;;  %v4483_v1 = vsel %vm1029_vm11, %v4446_v35, 0.0  ;;  %v4500_v19 = vmul.f32 %v4446_v35, %v4446_v35 }
 0x2ad   : > { %v4451_v2 = vadd.f32 %v5369_v45, %v4386_v32  ;;  %v4511_v29 = vadd.f32 %v4510_v41, %v4509_v25  ;;  %v4389_v11 = vadd.f32 %v5340_v56, %v7446_v12  ;;  %v4484_v21 = vadd.f32 %v4483_v1, %v4482_v4 }
 0x2ae   : > { %4471 = vst.msk [vmem:[%s5994_s13 + $0x14] sm:$0xf] %vm4465_vm14, %v4462_v43  ;;  %v4512_v40 = vsel %vm1029_vm11, %v4500_v19, 0.0 }
 0x2af   : > { %v4463_v49 = vpack.c.bf16 %v4451_v2, %v4451_v2  ;;  %v4501_v51 = vmul.f32 %v4451_v2, %v4451_v2  ;;  %v4454_v37 = vadd.f32 %v5370_v23, %v4389_v11  ;;  %v4485_v26 = vsel %vm1029_vm11, %v4451_v2, 0.0 }
 0x2b0   : > { %v4486_v63 = vadd.f32 %v4485_v26, %v4484_v21  ;;  %v4513_v27 = vadd.f32 %v4512_v40, %v4511_v29 }
 0x2b1   : > { %4472 = vst.msk [vmem:[%s5994_s13 + $0x18] sm:$0xf] %vm4465_vm14, %v4463_v49  ;;  %v4464_v20 = vpack.c.bf16 %v4454_v37, %v4454_v37  ;;  %v4487_v18 = vsel %vm1029_vm11, %v4454_v37, 0.0  ;;  %v4502_v12 = vmul.f32 %v4454_v37, %v4454_v37  ;;  %v4514_v10 = vsel %vm1029_vm11, %v4501_v51, 0.0 }
 0x2b2   : > { %v4488_v57 = vadd.f32 %v4487_v18, %v4486_v63  ;;  %v4515_v16 = vadd.f32 %v4514_v10, %v4513_v27 }
 0x2b3   : > { %4473 = vst.msk [vmem:[%s5994_s13 + $0x1c] sm:$0xf] %vm4465_vm14, %v4464_v20  ;;  %v4516_v34 = vsel %vm1029_vm11, %v4502_v12, 0.0 }
 0x2b4   : > { %v4489_v55 = vrot.slane %v4488_v57, 4  ;;  %v4517_v46 = vadd.f32 %v4516_v34, %v4515_v16 }
 0x2b6   : > { %v4490_v3 = vadd.f32 %v4489_v55, %v4488_v57  ;;  %v4518_v39 = vrot.slane %v4517_v46, 4 }
 0x2b8   : > { %v4491_v30 = vrot.slane %v4490_v3, 2  ;;  %v4519_v8 = vadd.f32 %v4518_v39, %v4517_v46 }
 0x2ba   : > { %v4492_v6 = vadd.f32 %v4491_v30, %v4490_v3  ;;  %v4520_v53 = vrot.slane %v4519_v8, 2 }
 0x2bc   : > { %v4493_v13 = vrot.slane %v4492_v6, 1  ;;  %v4521_v44 = vadd.f32 %v4520_v53, %v4519_v8 }
 0x2be   : > { %v4522_v7 = vrot.slane %v4521_v44, 1  ;;  %v4494_v59 = vadd.f32 %v4493_v13, %v4492_v6 }
 0x2c0   : > { %v4523_v5 = vadd.f32 %v4522_v7, %v4521_v44 }
 0x2c2   : > { %v4525_v0 = vsel %vm4524_vm15, %v4494_v59, %v4523_v5 }
 0x2c3   : > { %v4527_v22 = vadd.f32 %v4526_v28, %v4525_v0 }
 0x2c5   : > { %4529 = vst.msk [vmem:[%s5989_s10] sm:$0x3] %vm4528_vm0, %v4527_v22 }
 0x2c6 PF: > { %s16_s22 = sadd.s32 1, %s5908_s22   ;;  %s7522_s18 = smov %s5900_s20 }
 0x2c7   : > { %p13_p11 = scmp.ge.s32.totalorder %s16_s22, 10   ;;  %s7523_s19 = smov %s5904_s21 }
 0x2c8   : > { %s7524_s20 = smov %s7527_s2  ;;  %s7525_s21 = smov %s7531_s3 }
 0x2c9   :  { %15 = sbr.rel (!%p13_p11) target bundleno = 3 (0x3), region = 93 }

// kernel: basic_block_forward.4
= control target key start
LH: loop header
LB: loop body
LE: loop exit
PB: predicated region body
PF: predicated region fallthrough
CT: control target
= control target key end

     0   :  { %s6083_s18 = smov 0   ;;  %s6085_s19 = smov 0   ;;  %s7753_s0 = inlined_call_operand.vmem [shape: bf16[2,4,8,8,32], index: 0, kind: input, shape index: {}]   ;;  %s7754_s1 = inlined_call_operand.vmem [shape: bf16[864,32], index: 1, kind: input, shape index: {}]   ;;  %s7755_s2 = inlined_call_operand.vmem [shape: f32[1,32], index: 2, kind: input, shape index: {}]   ;;  %s7756_s3 = inlined_call_operand.vmem [shape: f32[1,32], index: 3, kind: input, shape index: {}]   ;;  %s7757_s4 = inlined_call_operand.vmem [shape: bf16[2,4,8,8,32], index: 4, kind: output, shape index: {0}]   ;;  %s7758_s5 = inlined_call_operand.vmem [shape: f32[2,2,32], index: 5, kind: output, shape index: {1}]  }
   0x1   :  { %s6087_s20 = smov 0   ;;  %s6089_s21 = smov 0  }
   0x2   :  { %s6091_s22 = smov 0  }
   0x3 LB: > { %s25_s23 = sadd.s32 1, %s6038_s20  ;;  %s28_s24 = sadd.s32 1, %s6042_s21  ;;  %s6046_s22 = sphi %s6091_s22, %s16_s22   ;;  %s6042_s21 = sphi %s6089_s21, %s7788_s21   ;;  %s6038_s20 = sphi %s6087_s20, %s7787_s20   ;;  %s6034_s19 = sphi %s6085_s19, %s7786_s19   ;;  %s6030_s18 = sphi %s6083_s18, %s7785_s18  }
   0x4   : > { %p26_p0 = scmp.ge.s32.totalorder %s25_s23, 4  ;;  %p4798_p1 = scmp.ge.s32.totalorder %s6046_s22, 1 }
   0x5   : > { %p204_p2 = scmp.lt.s32.totalorder %s6046_s22, 9 }
   0x6   : > { %s7790_s23 = smov (%p26_p0, %s25_s23), 0  ;;  %s7792_s24 = smov (!%p26_p0, %s28_s24), %s6042_s21 }
   0x7   : > { %p205_p3 = pnand %p4798_p1, %p204_p2  ;;  %p30_p4 = scmp.ge.s32.totalorder %s7792_s24, 2 }
   0x9   : > { %s7794_s24 = smov (%p30_p4, %s7792_s24), 0  ;;  %208 = sbr.rel (%p205_p3) target bundleno = 750 (0x2ee), region = 36 }
  0x10   : > { %p240_p5 = scmp.lt.s32.totalorder %s6034_s19, 1  ;;  %p247_p6 = scmp.lt.s32.totalorder %s6030_s18, 3 }
  0x11   : > { %p4805_p7 = scmp.ne.s32.totalorder %s6030_s18, 0 }
  0x12   : > { %s7796_s19 = smov (!%p240_p5, %s6034_s19), 1  ;;  %vm263_vm0 = vcmask (!%p4805_p7), 261120   ;;  %vm294_vm1 = vcmask (!%p4805_p7), 254976   ;;  %v6048_v0 = vmov (!%p4805_p7), 0   ;;  %v6049_v1 = vmov (!%p4805_p7), 0.0  }
  0x13   : > { %s248_s25 = scalar_select %p247_p6, %s6030_s18, 3 }
  0x14   : > { %s5364_s26 = sshll.u32 %s7796_s19, 7  ;;  %s4802_s27 = sshll.u32 %s7796_s19, 5  ;;  %264 = vst.msk [vmem:[#allocation2] sm:$0xff] (!%p4805_p7), %vm263_vm0, %v6048_v0  ;;  %265 = vst.msk [vmem:[#allocation2 + $0x8] sm:$0xff] (!%p4805_p7), %vm263_vm0, %v6048_v0 }
  0x15   : > { %s6122_s30 = scalar_lea.vmem %s7753_s0, %s5364_s26  ;;  %s4801_s6 = sshll.u32 %s248_s25, 3  ;;  %266 = vst.msk [vmem:[#allocation2 + $0x10] sm:$0xff] (!%p4805_p7), %vm263_vm0, %v6048_v0  ;;  %267 = vst.msk [vmem:[#allocation2 + $0x18] sm:$0xff] (!%p4805_p7), %vm263_vm0, %v6048_v0 }
  0x16   : > { %s251_s7 = sadd.s32 %s4802_s27, %s4801_s6  ;;  %s4804_s8 = sshll.u32 %s7796_s19, 1  ;;  %268 = vst.msk [vmem:[#allocation2 + $0x20] sm:$0xff] (!%p4805_p7), %vm263_vm0, %v6048_v0  ;;  %269 = vst.msk [vmem:[#allocation2 + $0x28] sm:$0xff] (!%p4805_p7), %vm263_vm0, %v6048_v0 }
  0x17   : > { %s4803_s9 = sshll.u32 %s251_s7, 2  ;;  %s6127_s12 = scalar_lea.vmem %s7758_s5, %s4804_s8  ;;  %270 = vst.msk [vmem:[#allocation2 + $0x30] sm:$0xff] (!%p4805_p7), %vm263_vm0, %v6048_v0  ;;  %271 = vst.msk [vmem:[#allocation2 + $0x38] sm:$0xff] (!%p4805_p7), %vm263_vm0, %v6048_v0 }
  0x18   : > { %s6132_s15 = scalar_lea.vmem %s7757_s4, %s4803_s9  ;;  %262 = sbr.rel (%p4805_p7) target bundleno = 36 (0x24), region = 40  ;;  %272 = vst.msk [vmem:[#allocation2 + $0x40] sm:$0xff] (!%p4805_p7), %vm263_vm0, %v6048_v0  ;;  %273 = vst.msk [vmem:[#allocation2 + $0x48] sm:$0xff] (!%p4805_p7), %vm263_vm0, %v6048_v0 }
  0x19   : > { %274 = vst.msk [vmem:[#allocation2 + $0x50] sm:$0xff] (!%p4805_p7), %vm263_vm0, %v6048_v0  ;;  %275 = vst.msk [vmem:[#allocation2 + $0x58] sm:$0xff] (!%p4805_p7), %vm263_vm0, %v6048_v0 }
  0x1a   : > { %276 = vst.msk [vmem:[#allocation2 + $0x60] sm:$0xff] (!%p4805_p7), %vm263_vm0, %v6048_v0  ;;  %277 = vst.msk [vmem:[#allocation2 + $0x68] sm:$0xff] (!%p4805_p7), %vm263_vm0, %v6048_v0 }
  0x1b   : > { %278 = vst.msk [vmem:[#allocation2 + $0x70] sm:$0xff] (!%p4805_p7), %vm263_vm0, %v6048_v0  ;;  %279 = vst.msk [vmem:[#allocation2 + $0x78] sm:$0xff] (!%p4805_p7), %vm263_vm0, %v6048_v0 }
  0x1c   : > { %280 = vst.msk [vmem:[#allocation2 + $0x80] sm:$0xff] (!%p4805_p7), %vm263_vm0, %v6048_v0  ;;  %281 = vst.msk [vmem:[#allocation2 + $0x88] sm:$0xff] (!%p4805_p7), %vm263_vm0, %v6048_v0 }
  0x1d   : > { %282 = vst.msk [vmem:[#allocation2 + $0x90] sm:$0xff] (!%p4805_p7), %vm263_vm0, %v6048_v0  ;;  %283 = vst.msk [vmem:[#allocation2 + $0x98] sm:$0xff] (!%p4805_p7), %vm263_vm0, %v6048_v0 }
  0x1e   : > { %284 = vst.msk [vmem:[#allocation2 + $0xa0] sm:$0xff] (!%p4805_p7), %vm263_vm0, %v6048_v0  ;;  %285 = vst.msk [vmem:[#allocation2 + $0xa8] sm:$0xff] (!%p4805_p7), %vm263_vm0, %v6048_v0 }
  0x1f   : > { %286 = vst.msk [vmem:[#allocation2 + $0xb0] sm:$0xff] %vm263_vm0, %v6048_v0  ;;  %287 = vst.msk [vmem:[#allocation2 + $0xb8] sm:$0xff] %vm263_vm0, %v6048_v0 }
  0x20   : > { %288 = vst.msk [vmem:[#allocation2 + $0xc0] sm:$0xff] %vm263_vm0, %v6048_v0  ;;  %289 = vst.msk [vmem:[#allocation2 + $0xc8] sm:$0xff] %vm263_vm0, %v6048_v0 }
  0x21   : > { %290 = vst.msk [vmem:[#allocation2 + $0xd0] sm:$0xff] %vm263_vm0, %v6048_v0  ;;  %291 = vst.msk [vmem:[#allocation2 + $0xd8] sm:$0xff] %vm263_vm0, %v6048_v0 }
  0x22   : > { %292 = vst.msk [vmem:[#allocation2 + $0xe0] sm:$0xff] %vm263_vm0, %v6048_v0  ;;  %293 = vst.msk [vmem:[#allocation2 + $0xe8] sm:$0xff] %vm263_vm0, %v6048_v0 }
  0x23   : > { %295 = vst.msk [vmem:[%s6127_s12] sm:$0x3] %vm294_vm1, %v6049_v1 }
  0x24 PF: > { %p473_p8 = scmp.ge.s32.totalorder %s6030_s18, 0  ;;  %p474_p9 = scmp.le.s32.totalorder %s6030_s18, 3  ;;  %v6189_v3 = vld [vmem:[%s7755_s2] ss:$0 sm:$0xff]  ;;  %vm1039_vm2 = vcmask 1042432   ;;  %vm1040_vm3 = vcmask 1046532  }
  0x25   : > { %p477_p10 = scmp.gt.s32.totalorder %s6030_s18, 0  ;;  %s6180_s25 = sadd.s32 4294967295, %s6030_s18  ;;  %v1983_v2 = vld [vmem:[#allocation2 + $0x50] sm:$0x1e]  ;;  %v991_v6 = vld [vmem:[#allocation2] sm:$0x1e]  ;;  %vm6228_vm5 = vmor %vm1039_vm2, %vm1040_vm3 }
  0x26   : > { %p6170_p11 = pnand %p474_p9, %p473_p8  ;;  %p297_p12 = scmp.ge.s32.totalorder %s6180_s25, 0  ;;  %v5004_v4 = vcombine.low %v1983_v2, %v1983_v2  ;;  %v5005_v5 = vcombine.high %v1983_v2, %v1983_v2  ;;  %v4852_v10 = vcombine.low %v991_v6, %v991_v6  ;;  %v4853_v11 = vcombine.high %v991_v6, %v991_v6  ;;  %v6201_v15 = vld [vmem:[%s7756_s3] ss:$0 sm:$0xff]  ;;  %v1823_v17 = vld [vmem:[#allocation2 + $0x50] sm:$0x1f] }
  0x27   : > { %s478_s17 = scalar_select %p477_p10, %s6030_s18, 0  ;;  %vm446_vm6 = vcmask 258048   ;;  %vm447_vm7 = vsmask.f32 4354  ;;  %v4988_v29 = vcombine.low %v1823_v17, %v1823_v17  ;;  %v6245_v30 = vld [vmem:[#allocation2] sm:$0x1f]  ;;  %v4989_v35 = vcombine.high %v1823_v17, %v1823_v17 }
  0x28   : > { %s4825_s19 = scalar_select %p6170_p11, 0, 1  ;;  %v6212_v18 = vrot.slane %v5004_v4, 9  ;;  %v6214_v19 = vrot.slane %v5005_v5, 5  ;;  %v6216_v20 = vrot.slane %v4852_v10, 9  ;;  %v6218_v21 = vrot.slane %v4853_v11, 5  ;;  %vm6287_vm9 = vmand %vm446_vm6, %vm447_vm7 }
  0x29   : > { %s7798_s17 = smov (!%p247_p6, %s478_s17), 3  ;;  %p298_p13 = scmp.le.s32.totalorder %s6180_s25, 3  ;;  %v1872_v36 = vshrl.u32 %v4988_v29, 16  ;;  %v1875_v37 = vshll.u32 %v4988_v29, 16  ;;  %v6258_v41 = vcombine.low %v6245_v30, %v6245_v30  ;;  %v6269_v47 = vshll.u32 %v4989_v35, 16 }
  0x2a   : > { %s5370_s26 = sshll.u32 %s7798_s17, 5  ;;  %v6194_v9 = vstv %s4825_s19  ;;  %p301_p0 = scmp.gt.s32.totalorder %s6180_s25, 0  ;;  %v2034_v27 = vsel %vm6228_vm5, %v6212_v18, %v6214_v19  ;;  %v1045_v28 = vsel %vm6228_vm5, %v6216_v20, %v6218_v21  ;;  %v4837_v48 = vcombine.high %v6245_v30, %v6245_v30  ;;  %v625_v1 = vld [vmem:[#allocation2 + $0x60] sm:$0x1f]  ;;  %v628_v10 = vld [vmem:[#allocation2 + $0x68] sm:$0x1f] }
  0x2b   : > { %s6184_s27 = scalar_lea.vmem %s6122_s30, %s5370_s26  ;;  %p4806_p1 = scmp.lt.s32.totalorder %s6180_s25, 3  ;;  %vm540_vm4 = vcmp.eq.s32.totalorder %v6194_v9, 1  ;;  %v6265_v45 = vrot.slane %v1872_v36, 4  ;;  %v6267_v46 = vrot.slane %v1875_v37, 5  ;;  %vm876_vm10 = vsmask.f32 3328 }
  0x2c   : > { %v5391_v7 = vld [vmem:[%s6184_s27] sm:$0xff]   ;;  %v5425_v8 = vld [vmem:[%s6184_s27 + $0x8] sm:$0xff]   ;;  %p6207_p2 = pnand %p298_p13, %p297_p12  ;;  %s6050_s14 = smov 96   ;;  %vm877_vm11 = vsmask.f32 7440  ;;  %vm1170_vm14 = vcmask 261120  }
  0x2d   : > { %v5393_v12 = vunpack.c.h.bf16 %v5391_v7  ;;  %v5396_v13 = vunpack.c.l.bf16 %v5425_v8  ;;  %v5397_v14 = vunpack.c.h.bf16 %v5425_v8  ;;  %v5392_v16 = vunpack.c.l.bf16 %v5391_v7  ;;  %s302_s9 = scalar_select %p301_p0, %s6180_s25, 0  ;;  %vm6419_vm12 = vmor %vm876_vm10, %vm877_vm11 }
  0x2e   : > { %s4815_s10 = scalar_select %p6207_p2, 0, 1  ;;  %vm1183_vm15 = vcmask 523264   ;;  %vm1192_vm0 = vcmask 785408   ;;  %vm4606_vm1 = vcmask 257024   ;;  %vm4665_vm2 = vcmask 1040384  }
  0x2f   : > { %v508_v22 = vmul.f32 %v5393_v12, %v6189_v3  ;;  %v509_v23 = vmul.f32 %v5396_v13, %v6189_v3  ;;  %v507_v24 = vmul.f32 %v5392_v16, %v6189_v3  ;;  %v6233_v26 = vmul.f32 %v5397_v14, %v6189_v3  ;;  %s7800_s9 = smov (!%p4806_p1, %s302_s9), 3  ;;  %v622_v16 = vld [vmem:[#allocation2 + $0x58] sm:$0x1f]  ;;  %s6051_s16 = smov 32  }
  0x30   : > { %v6250_v34 = vstv %s4815_s10  ;;  %s5367_s11 = sshll.u32 %s7800_s9, 5  ;;  %s6052_s17 = smov 64   ;;  %vm4669_vm3 = vcmask 254976  }
  0x31   : > { %v523_v31 = vadd.f32 %v6201_v15, %v508_v22  ;;  %v524_v32 = vadd.f32 %v6201_v15, %v509_v23  ;;  %v522_v33 = vadd.f32 %v6201_v15, %v507_v24  ;;  %vm364_vm8 = vcmp.eq.s32.totalorder %v6250_v34, 1  ;;  %s6254_s13 = scalar_lea.vmem %s6122_s30, %s5367_s11  ;;  %s6571_s19 = sadd.s32 1, %s6030_s18 }
  0x32   : > { %v5422_v42 = vld [vmem:[%s6254_s13 + $0x8] sm:$0xff]   ;;  %v5423_v43 = vld [vmem:[%s6254_s13 + $0x10] sm:$0xff]   ;;  %v6263_v44 = vld [vmem:[%s6254_s13] sm:$0xff]   ;;  %p651_p3 = scmp.gt.s32.totalorder %s6571_s19, 0  ;;  %p647_p4 = scmp.ge.s32.totalorder %s6571_s19, 0 }
  0x33   : > { %v531_v38 = vmax.f32 %v523_v31, 0.0  ;;  %v532_v39 = vmax.f32 %v524_v32, 0.0  ;;  %v530_v40 = vmax.f32 %v522_v33, 0.0  ;;  %v5381_v52 = vunpack.c.h.bf16 %v5422_v42  ;;  %p4826_p5 = scmp.lt.s32.totalorder %s6571_s19, 3  ;;  %p648_p6 = scmp.le.s32.totalorder %s6571_s19, 3 }
  0x34   : > { %v5384_v56 = vunpack.c.l.bf16 %v5423_v43  ;;  %v5377_v58 = vunpack.c.h.bf16 %v6263_v44  ;;  %v5380_v59 = vunpack.c.l.bf16 %v5422_v42  ;;  %v5385_v60 = vunpack.c.h.bf16 %v5423_v43  ;;  %s652_s18 = scalar_select %p651_p3, %s6571_s19, 0 }
  0x35   : > { %v542_v49 = vsel %vm540_vm4, %v531_v38, 0.0  ;;  %v543_v50 = vsel %vm540_vm4, %v532_v39, 0.0  ;;  %v541_v51 = vsel %vm540_vm4, %v530_v40, 0.0  ;;  %v334_v57 = vmul.f32 %v5381_v52, %v6189_v3  ;;  %p6629_p7 = pnand %p648_p6, %p647_p4 }
  0x36   : > { %v550_v53 = vpack.c.bf16 %v542_v49, %v542_v49  ;;  %v551_v54 = vpack.c.bf16 %v543_v50, %v543_v50  ;;  %v549_v55 = vpack.c.bf16 %v541_v51, %v541_v51  ;;  %v335_v5 = vmul.f32 %v5384_v56, %v6189_v3  ;;  %v458_v56 = vld [vmem:[#allocation2 + $0x20] sm:$0x1f]  ;;  %s7802_s18 = smov (!%p4826_p5, %s652_s18), 3 }
  0x37   : > { %v349_v6 = vadd.f32 %v6201_v15, %v334_v57  ;;  %v332_v11 = vmul.f32 %v5377_v58, %v6189_v3  ;;  %v333_v12 = vmul.f32 %v5380_v59, %v6189_v3  ;;  %v336_v23 = vmul.f32 %v5385_v60, %v6189_v3  ;;  %s5373_s28 = sshll.u32 %s7802_s18, 5 }
  0x38   : > { %v565_v61 = vshrl.u32 %v550_v53, 16  ;;  %v568_v62 = vshll.u32 %v550_v53, 16  ;;  %v572_v63 = vshrl.u32 %v551_v54, 16  ;;  %v575_v0 = vshll.u32 %v551_v54, 16  ;;  %s6637_s8 = scalar_lea.vmem %s6122_s30, %s5373_s28 }
  0x39   : > { %v558_v2 = vshrl.u32 %v549_v55, 16  ;;  %v561_v4 = vshll.u32 %v549_v55, 16  ;;  %v350_v17 = vadd.f32 %v6201_v15, %v335_v5  ;;  %v357_v22 = vmax.f32 %v349_v6, 0.0  ;;  %s4835_s9 = scalar_select %p6629_p7, 0, 1 }
  0x3a   : > { %v567_v7 = vrot.slane %v565_v61, 7  ;;  %v574_v8 = vrot.slane %v572_v63, 7  ;;  %v347_v31 = vadd.f32 %v6201_v15, %v332_v11  ;;  %v348_v32 = vadd.f32 %v6201_v15, %v333_v12 }
  0x3b   : > { %v560_v14 = vrot.slane %v558_v2, 7  ;;  %v358_v35 = vmax.f32 %v350_v17, 0.0  ;;  %v368_v36 = vsel %vm364_vm8, %v357_v22, 0.0  ;;  %v351_v37 = vadd.f32 %v6201_v15, %v336_v23 }
  0x3c   : > { %v570_v24 = vor.u32 %v568_v62, %v567_v7  ;;  %v577_v29 = vor.u32 %v575_v0, %v574_v8  ;;  %v376_v40 = vpack.c.bf16 %v368_v36, %v368_v36  ;;  %v355_v42 = vmax.f32 %v347_v31, 0.0  ;;  %v455_v31 = vld [vmem:[#allocation2 + $0x18] sm:$0x1f] }
  0x3d   : > { %v563_v33 = vor.u32 %v561_v4, %v560_v14  ;;  %v369_v49 = vsel %vm364_vm8, %v358_v35, 0.0  ;;  %v356_v50 = vmax.f32 %v348_v32, 0.0  ;;  %v359_v51 = vmax.f32 %v351_v37, 0.0  ;;  %v464_v32 = vld [vmem:[#allocation2 + $0x30] sm:$0x1f] }
  0x3e   : > { %v626_v38 = vsel %vm6287_vm9, %v570_v24, %v625_v1  ;;  %v629_v39 = vsel %vm6287_vm9, %v577_v29, %v628_v10  ;;  %v377_v52 = vpack.c.bf16 %v369_v49, %v369_v49  ;;  %v403_v53 = vshrl.u32 %v376_v40, 16  ;;  %v5424_v1 = vld [vmem:[%s6254_s13 + $0x18] sm:$0xff]   ;;  %v461_v10 = vld [vmem:[#allocation2 + $0x28] sm:$0x1f] }
  0x3f   : > { %627 = vst [vmem:[#allocation2 + $0x60] sm:$0x1f] %v626_v38  ;;  %630 = vst [vmem:[#allocation2 + $0x68] sm:$0x1f] %v629_v39  ;;  %v623_v43 = vsel %vm6287_vm9, %v563_v33, %v622_v16  ;;  %v406_v54 = vshll.u32 %v376_v40, 16  ;;  %v366_v55 = vsel %vm364_vm8, %v355_v42, 0.0  ;;  %v5376_v60 = vunpack.c.l.bf16 %v6263_v44 }
  0x40   : > { %624 = vst [vmem:[#allocation2 + $0x58] sm:$0x1f] %v623_v43  ;;  %v367_v57 = vsel %vm364_vm8, %v356_v50, 0.0  ;;  %v374_v58 = vpack.c.bf16 %v366_v55, %v366_v55  ;;  %v370_v59 = vsel %vm364_vm8, %v359_v51, 0.0  ;;  %v405_v61 = vrot.slane %v403_v53, 7 }
  0x41   : > { %v410_v62 = vshrl.u32 %v377_v52, 16  ;;  %v413_v63 = vshll.u32 %v377_v52, 16  ;;  %v375_v0 = vpack.c.bf16 %v367_v57, %v367_v57  ;;  %v378_v5 = vpack.c.bf16 %v370_v59, %v370_v59  ;;  %v452_v16 = vld [vmem:[#allocation2 + $0x10] sm:$0x1f] }
  0x42   : > { %v389_v2 = vshrl.u32 %v374_v58, 16  ;;  %v392_v4 = vshll.u32 %v374_v58, 16  ;;  %v331_v6 = vmul.f32 %v5376_v60, %v6189_v3  ;;  %v408_v7 = vor.u32 %v406_v54, %v405_v61 }
  0x43   : > { %v412_v8 = vrot.slane %v410_v62, 7  ;;  %v396_v11 = vshrl.u32 %v375_v0, 16  ;;  %v399_v12 = vshll.u32 %v375_v0, 16  ;;  %v417_v17 = vshrl.u32 %v378_v5, 16 }
  0x44   : > { %v391_v14 = vrot.slane %v389_v2, 7  ;;  %v420_v22 = vshll.u32 %v378_v5, 16  ;;  %v346_v44 = vadd.f32 %v6201_v15, %v331_v6  ;;  %v459_v29 = vsel %vm6287_vm9, %v408_v7, %v458_v56 }
  0x45   : > { %v415_v24 = vor.u32 %v413_v63, %v412_v8  ;;  %v5388_v33 = vunpack.c.l.bf16 %v5424_v1  ;;  %v5389_v35 = vunpack.c.h.bf16 %v5424_v1  ;;  %460 = vst [vmem:[#allocation2 + $0x20] sm:$0x1f] %v459_v29  ;;  %v398_v38 = vrot.slane %v396_v11, 7 }
  0x46   : > { %v5626_v23 = vld [vmem:[#allocation2 + $0x60] ss:$8 sps:$4 sm:$0xff]   ;;  %v394_v37 = vor.u32 %v392_v4, %v391_v14  ;;  %v419_v39 = vrot.slane %v417_v17, 7  ;;  %v1878_v40 = vor.u32 %v6267_v46, %v6265_v45  ;;  %v354_v43 = vmax.f32 %v346_v44, 0.0 }
  0x47   : > { %v5627_v36 = vld [vmem:[#allocation2 + $0x50] ss:$8 sps:$4 sm:$0xff]   ;;  %2516 = vrot.lane.b32.xlu1 %v5626_v23, %s6050_s14  ;;  %v462_v42 = vsel %vm6287_vm9, %v415_v24, %v461_v10  ;;  %v337_v49 = vmul.f32 %v5388_v33, %v6189_v3  ;;  %v2348_v51 = vld [vmem:[#allocation2 + $0x60] sm:$0x1e]  ;;  %v338_v52 = vmul.f32 %v5389_v35, %v6189_v3  ;;  %v401_v53 = vor.u32 %v399_v12, %v398_v38  ;;  %v449_v14 = vld [vmem:[#allocation2 + $0x8] sm:$0x1f] }
  0x48   : > { %v2347_v50 = vld [vmem:[#allocation2 + $0x58] sm:$0x1e]  ;;  %2095 = vrot.lane.b32.xlu0 %v5627_v36, %s6051_s16  ;;  %463 = vst [vmem:[#allocation2 + $0x28] sm:$0x1f] %v462_v42  ;;  %v453_v54 = vsel %vm6287_vm9, %v394_v37, %v452_v16  ;;  %v422_v55 = vor.u32 %v420_v22, %v419_v39  ;;  %v365_v57 = vsel %vm364_vm8, %v354_v43, 0.0  ;;  %v5062_v60 = vcombine.low %v2348_v51, %v2348_v51 }
  0x49   : > { %v5060_v56 = vcombine.low %v2347_v50, %v2347_v50  ;;  %454 = vst [vmem:[#allocation2 + $0x10] sm:$0x1f] %v453_v54  ;;  %v352_v58 = vadd.f32 %v6201_v15, %v337_v49  ;;  %v5061_v59 = vcombine.high %v2347_v50, %v2347_v50  ;;  %v6331_v61 = vld [vmem:[#allocation2 + $0x58] sm:$0x1e]  ;;  %v456_v3 = vsel %vm6287_vm9, %v401_v53, %v455_v31  ;;  %v6358_v42 = vld [vmem:[#allocation2 + $0x60] sm:$0x1f] }
  0x4a   : > { %v465_v62 = vsel %vm6287_vm9, %v422_v55, %v464_v32  ;;  %v373_v63 = vpack.c.bf16 %v365_v57, %v365_v57  ;;  %v5063_v0 = vcombine.high %v2348_v51, %v2348_v51  ;;  %v6337_v1 = vld [vmem:[#allocation2 + $0x58] sm:$0x1f]  ;;  %457 = vst [vmem:[#allocation2 + $0x18] sm:$0x1f] %v456_v3  ;;  %v5077_v6 = vrot.slane %v5062_v60, 9 }
  0x4b   : > { %466 = vst [vmem:[#allocation2 + $0x30] sm:$0x1f] %v465_v62  ;;  %v360_v2 = vmax.f32 %v352_v58, 0.0  ;;  %v5076_v4 = vrot.slane %v5060_v56, 9  ;;  %v2397_v5 = vrot.slane %v5061_v59, 5  ;;  %v5006_v11 = vcombine.low %v6331_v61, %v6331_v61 }
  0x4c   : > { %v382_v7 = vshrl.u32 %v373_v63, 16  ;;  %v385_v8 = vshll.u32 %v373_v63, 16  ;;  %v2401_v10 = vrot.slane %v5063_v0, 5  ;;  %v6341_v12 = vld [vmem:[#allocation2 + $0x58] sm:$0x1f]  ;;  %v5007_v22 = vcombine.high %v6331_v61, %v6331_v61 }
  0x4d   : > { %v1372_v16 = vld [vmem:[#allocation2 + $0x20] sm:$0x1e]  ;;  %v2398_v17 = vsel %vm6228_vm5, %v5076_v4, %v2397_v5  ;;  %v6348_v44 = vadd.f32 %v6201_v15, %v338_v52  ;;  %v6352_v23 = vcombine.low %v6337_v1, %v6337_v1  ;;  %v371_v32 = vsel %vm364_vm8, %v360_v2, 0.0 }
  0x4e   : > { %v384_v24 = vrot.slane %v382_v7, 7  ;;  %v4914_v29 = vcombine.low %v1372_v16, %v1372_v16  ;;  %v4915_v31 = vcombine.high %v1372_v16, %v1372_v16  ;;  %v995_v33 = vld [vmem:[#allocation2 + $0x20] sm:$0x1e]  ;;  %v379_v36 = vpack.c.bf16 %v371_v32, %v371_v32 }
  0x4f   : > { %v5628_v35 = vld [vmem:[#allocation2 + $0x20] ss:$8 sps:$4 sm:$0xff]   ;;  %v2402_v37 = vsel %vm6228_vm5, %v5077_v6, %v2401_v10  ;;  %v4860_v38 = vcombine.low %v995_v33, %v995_v33  ;;  %v4861_v39 = vcombine.high %v995_v33, %v995_v33  ;;  %v4991_v51 = vcombine.high %v6337_v1, %v6337_v1 }
  0x50   : > { %v387_v43 = vor.u32 %v385_v8, %v384_v24  ;;  %v1370_v49 = vld [vmem:[#allocation2 + $0x10] sm:$0x1e]  ;;  %v6360_v50 = vcombine.low %v2398_v17, %v2402_v37  ;;  %v6366_v52 = vcombine.low %v6341_v12, %v6341_v12  ;;  %1672 = vrot.lane.b32.xlu0 %v5628_v35, %s6052_s17  ;;  %v4927_v55 = vrot.slane %v4914_v29, 9  ;;  %v1373_v57 = vld [vmem:[#allocation2 + $0x28] sm:$0x1e] }
  0x51   : > { %v4910_v53 = vcombine.low %v1370_v49, %v1370_v49  ;;  %v4911_v54 = vcombine.high %v1370_v49, %v1370_v49  ;;  %v1431_v56 = vrot.slane %v4915_v31, 5  ;;  %v996_v58 = vld [vmem:[#allocation2 + $0x28] sm:$0x1e]  ;;  %v5629_v59 = vld [vmem:[#allocation2 + $0x10] ss:$8 sps:$4 sm:$0xff]   ;;  %v4916_v3 = vcombine.low %v1373_v57, %v1373_v57 }
  0x52   : > { %v450_v60 = vsel %vm6287_vm9, %v387_v43, %v449_v14  ;;  %v4917_v62 = vcombine.high %v1373_v57, %v1373_v57  ;;  %v4862_v63 = vcombine.low %v996_v58, %v996_v58  ;;  %v5630_v0 = vld [vmem:[#allocation2 + $0x28] ss:$8 sps:$4 sm:$0xff]   ;;  %v4863_v6 = vcombine.high %v996_v58, %v996_v58  ;;  %1670 = vrot.lane.b32.xlu1 %v5629_v59, %s6052_s17  ;;  %v1371_v7 = vld [vmem:[#allocation2 + $0x18] sm:$0x1e] }
  0x53   : > { %451 = vst [vmem:[#allocation2 + $0x8] sm:$0x1f] %v450_v60  ;;  %v6371_v2 = vrot.slane %v4910_v53, 9  ;;  %v6373_v4 = vrot.slane %v4911_v54, 5  ;;  %v1432_v5 = vsel %vm6228_vm5, %v4927_v55, %v1431_v56  ;;  %v424_v8 = vshrl.u32 %v379_v36, 16 }
  0x54   : > { %v427_v10 = vshll.u32 %v379_v36, 16  ;;  %v5045_v14 = vcombine.high %v6341_v12, %v6341_v12  ;;  %v6382_v16 = vcombine.low %v6358_v42, %v6358_v42  ;;  %1166 = vrot.lane.b32.xlu0 %v5630_v0, %s6050_s14  ;;  %v4912_v24 = vcombine.low %v1371_v7, %v1371_v7  ;;  %v1374_v31 = vld [vmem:[#allocation2 + $0x30] sm:$0x1e]  ;;  %v467_v35 = vld [vmem:[#allocation2 + $0x38] sm:$0x1f] }
  0x55   : > { %v1424_v17 = vsel %vm6228_vm5, %v6371_v2, %v6373_v4  ;;  %v4913_v29 = vcombine.high %v1371_v7, %v1371_v7  ;;  %v4928_v32 = vrot.slane %v4916_v3, 9  ;;  %v426_v33 = vrot.slane %v424_v8, 7  ;;  %v6389_v56 = vld [vmem:[#allocation2 + $0x10] sm:$0x1e]  ;;  %v994_v34 = vld [vmem:[#allocation2 + $0x18] sm:$0x1e] }
  0x56   : > { %v4918_v36 = vcombine.low %v1374_v31, %v1374_v31  ;;  %v4919_v37 = vcombine.high %v1374_v31, %v1374_v31  ;;  %v1435_v43 = vrot.slane %v4917_v62, 5  ;;  %v4926_v49 = vrot.slane %v4912_v24, 9 }
  0x57   : > { %v1427_v53 = vrot.slane %v4913_v29, 5  ;;  %v4872_v54 = vrot.slane %v4860_v38, 9  ;;  %v1060_v55 = vrot.slane %v4861_v39, 5  ;;  %v429_v57 = vor.u32 %v427_v10, %v426_v33 }
  0x58   : > { %v1436_v58 = vsel %vm6228_vm5, %v4928_v32, %v1435_v43  ;;  %v4929_v59 = vrot.slane %v4918_v36, 9  ;;  %v1439_v60 = vrot.slane %v4919_v37, 5  ;;  %v4873_v2 = vrot.slane %v4862_v63, 9 }
  0x59   : > { %v1428_v3 = vsel %vm6228_vm5, %v4926_v49, %v1427_v53  ;;  %v1061_v0 = vsel %vm6228_vm5, %v4872_v54, %v1060_v55  ;;  %v1064_v62 = vrot.slane %v4863_v6, 5  ;;  %v468_v39 = vsel %vm6287_vm9, %v429_v57, %v467_v35 }
  0x5a   : > { %v5631_v4 = vld [vmem:[#allocation2 + $0x8] ss:$8 sps:$4 sm:$0xff]   ;;  %v4953_v38 = vcombine.low %v1428_v3, %v1432_v5  ;;  %v1440_v8 = vsel %vm6228_vm5, %v4929_v59, %v1439_v60  ;;  %v4856_v10 = vcombine.low %v6389_v56, %v6389_v56  ;;  %469 = vst [vmem:[#allocation2 + $0x38] sm:$0x1f] %v468_v39  ;;  %v5636_v5 = vld [vmem:[#allocation2 + $0x18] ss:$8 sps:$4 sm:$0xff]   ;;  %v5047_v20 = vcombine.high %v6358_v42, %v6358_v42 }
  0x5b   : > { %v1369_v7 = vld [vmem:[#allocation2 + $0x8] sm:$0x1e]  ;;  %v6403_v31 = vcombine.low %v1436_v58, %v1440_v8  ;;  %v1065_v63 = vsel %vm6228_vm5, %v4873_v2, %v1064_v62  ;;  %1162 = vrot.lane.b32.xlu1 %v5631_v4, %s6050_s14  ;;  %v5021_v33 = vrot.slane %v5006_v11, 9  ;;  %v2037_v35 = vrot.slane %v5007_v22, 5 }
  0x5c   : > { %v4908_v24 = vcombine.low %v1369_v7, %v1369_v7  ;;  %v4909_v29 = vcombine.high %v1369_v7, %v1369_v7  ;;  %v992_v6 = vld [vmem:[#allocation2 + $0x8] sm:$0x1e]  ;;  %v6408_v32 = vcombine.low %v1061_v0, %v1065_v63  ;;  %v361_v36 = vmax.f32 %v6348_v44, 0.0 }
  0x5d   : > { %v4854_v49 = vcombine.low %v992_v6, %v992_v6  ;;  %v4855_v53 = vcombine.high %v992_v6, %v992_v6  ;;  %v2038_v55 = vsel %vm6228_vm5, %v5021_v33, %v2037_v35  ;;  %v1879_v61 = vrot.slane %v1878_v40, 4 }
  0x5e   : > { %v4924_v37 = vrot.slane %v4908_v24, 9  ;;  %v1419_v43 = vrot.slane %v4909_v29, 5  ;;  %v372_v11 = vsel %vm364_vm8, %v361_v36, 0.0  ;;  %v1883_v22 = vrot.slane %v6269_v47, 5 }
  0x5f   : > { %v6438_v57 = vcombine.low %v2034_v27, %v2038_v55  ;;  %v380_v58 = vpack.c.bf16 %v372_v11, %v372_v11  ;;  %v4869_v59 = vrot.slane %v4854_v49, 9  ;;  %1164 = vrot.lane.b32.xlu1 %v5636_v5, %s6050_s14  ;;  %v1048_v45 = vrot.slane %v4855_v53, 5 }
  0x60   : > { %v1420_v44 = vsel %vm6228_vm5, %v4924_v37, %v1419_v43  ;;  %v6443_v46 = vsel %vm6419_vm12, %v1879_v61, %v1883_v22  ;;  %v1886_v47 = vshrl.u32 %v6352_v23, 16  ;;  %v1889_v0 = vshll.u32 %v6352_v23, 16  ;;  %v470_v23 = vld [vmem:[#allocation2 + $0x40] sm:$0x1f] }
  0x61   : > { %v4952_v60 = vcombine.low %v1420_v44, %v1424_v17  ;;  %v431_v40 = vshrl.u32 %v380_v58, 16  ;;  %v434_v3 = vshll.u32 %v380_v58, 16  ;;  %v1895_v18 = vshll.u32 %v4991_v51, 16  ;;  %v5641_v19 = vld [vmem:[#allocation2 + $0x30] ss:$8 sps:$4 sm:$0xff]  }
  0x62   : > { %v1375_v27 = vld [vmem:[#allocation2 + $0x38] sm:$0x1e]  ;;  %v1049_v17 = vsel %vm6228_vm5, %v4869_v59, %v1048_v45  ;;  %v4857_v2 = vcombine.high %v6389_v56, %v6389_v56  ;;  %v4858_v62 = vcombine.low %v994_v34, %v994_v34  ;;  %v4859_v4 = vcombine.high %v994_v34, %v994_v34 }
  0x63   : > { %1642 = vrot.lane.b32.xlu0 %v4952_v60, %s6051_s16  ;;  %v433_v7 = vrot.slane %v431_v40, 7  ;;  %v4920_v39 = vcombine.low %v1375_v27, %v1375_v27  ;;  %v4921_v8 = vcombine.high %v1375_v27, %v1375_v27  ;;  %v4884_v1 = vcombine.low %v1045_v28, %v1049_v17  ;;  %1674 = vrot.lane.b32.xlu1 %v5641_v19, %s6052_s17 }
  0x64   : > { %v1888_v51 = vrot.slane %v1886_v47, 4  ;;  %v1891_v24 = vrot.slane %v1889_v0, 5  ;;  %v1897_v29 = vrot.slane %v1895_v18, 5  ;;  %v4870_v63 = vrot.slane %v4856_v10, 9 }
  0x65   : > { %v436_v6 = vor.u32 %v434_v3, %v433_v7  ;;  %v6461_v56 = vrot.slane %v4920_v39, 9  ;;  %v6463_v5 = vrot.slane %v4921_v8, 5  ;;  %v1052_v33 = vrot.slane %v4857_v2, 5 }
  0x66   : > { %v1892_v35 = vor.u32 %v1891_v24, %v1888_v51  ;;  %v4871_v36 = vrot.slane %v4858_v62, 9  ;;  %v1056_v37 = vrot.slane %v4859_v4, 5  ;;  %v2236_v43 = vshrl.u32 %v6366_v52, 16 }
  0x67   : > { %1644 = vrot.lane.b32.xlu0 %v4953_v38, %s6051_s16  ;;  %v471_v21 = vsel %vm6287_vm9, %v436_v6, %v470_v23  ;;  %v1444_v28 = vsel %vm6228_vm5, %v6461_v56, %v6463_v5  ;;  %v1053_v10 = vsel %vm6228_vm5, %v4870_v63, %v1052_v33  ;;  %v829_v38 = vld [vmem:[#allocation2 + $0x8] sm:$0x1f]  ;;  %2488 = vrot.lane.b32.xlu1 %v6360_v50, %s6052_s17  ;;  %v2239_v53 = vshll.u32 %v6366_v52, 16  ;;  %v1458_v63 = vld [vmem:[#allocation2 + $0x10] sm:$0x1f] }
  0x68   : > { %472 = vst [vmem:[#allocation2 + $0x40] sm:$0x1f] %v471_v21  ;;  %v1893_v49 = vrot.slane %v1892_v35, 4  ;;  %v1057_v42 = vsel %vm6228_vm5, %v4871_v36, %v1056_v37  ;;  %v2245_v55 = vshll.u32 %v5045_v14, 16  ;;  %v2238_v61 = vrot.slane %v2236_v43, 4 }
  0x69   : > { %v4885_v11 = vcombine.low %v1053_v10, %v1057_v42  ;;  %v2250_v22 = vshrl.u32 %v6382_v16, 16  ;;  %v2253_v44 = vshll.u32 %v6382_v16, 16  ;;  %v2241_v58 = vrot.slane %v2239_v53, 5  ;;  %v1459_v10 = vld [vmem:[#allocation2 + $0x18] sm:$0x1f] }
  0x6a   : > { %v6491_v50 = vsel %vm6419_vm12, %v1893_v49, %v1897_v29  ;;  %v2247_v59 = vrot.slane %v2245_v55, 5  ;;  %v2259_v52 = vshll.u32 %v5047_v20, 16  ;;  %v4838_v60 = vcombine.low %v829_v38, %v829_v38 }
  0x6b   : > { %1646 = vrot.lane.b32.xlu0 %v6403_v31, %s6051_s16  ;;  %v5036_v12 = vcombine.low %v6443_v46, %v6491_v50  ;;  %v2252_v14 = vrot.slane %v2250_v22, 4  ;;  %v2255_v34 = vrot.slane %v2253_v44, 5  ;;  %2135 = vrot.lane.b32.xlu1 %v6438_v57, %s6050_s14  ;;  %v2242_v16 = vor.u32 %v2241_v58, %v2238_v61 }
  0x6c   : > { %v2261_v45 = vrot.slane %v2259_v52, 5  ;;  %v4839_v47 = vcombine.high %v829_v38, %v829_v38  ;;  %v880_v31 = vshrl.u32 %v6258_v41, 16  ;;  %v883_v3 = vshll.u32 %v6258_v41, 16 }
  0x6d   : > { %v2256_v40 = vor.u32 %v2255_v34, %v2252_v14  ;;  %v889_v0 = vshll.u32 %v4837_v48, 16  ;;  %v894_v18 = vshrl.u32 %v4838_v60, 16  ;;  %v2243_v19 = vrot.slane %v2242_v16, 4  ;;  %v2189_v48 = vld [vmem:[#allocation2 + $0x68] sm:$0x1f] }
  0x6e   : > { %v882_v27 = vrot.slane %v880_v31, 4  ;;  %v897_v17 = vshll.u32 %v4838_v60, 16  ;;  %v903_v57 = vshll.u32 %v4839_v47, 16  ;;  %v885_v4 = vrot.slane %v883_v3, 5  ;;  %v830_v60 = vld [vmem:[#allocation2 + $0x10] sm:$0x1f] }
  0x6f   : > { %1138 = vrot.lane.b32.xlu0 %v6408_v32, %s6052_s17  ;;  %v1376_v2 = vld [vmem:[#allocation2 + $0x40] sm:$0x1e]  ;;  %v2257_v62 = vrot.slane %v2256_v40, 4  ;;  %v891_v7 = vrot.slane %v889_v0, 5  ;;  %v896_v39 = vrot.slane %v894_v18, 4  ;;  %1134 = vrot.lane.b32.xlu1 %v4884_v1, %s6052_s17  ;;  %v2248_v30 = vsel %vm6419_vm12, %v2243_v19, %v2247_v59 }
  0x70   : > { %v4922_v8 = vcombine.low %v1376_v2, %v1376_v2  ;;  %v4923_v23 = vcombine.high %v1376_v2, %v1376_v2  ;;  %v899_v41 = vrot.slane %v897_v17, 5  ;;  %v886_v51 = vor.u32 %v885_v4, %v882_v27  ;;  %v831_v16 = vld [vmem:[#allocation2 + $0x18] sm:$0x1f] }
  0x71   : > { %v2262_v32 = vsel %vm6419_vm12, %v2257_v62, %v2261_v45  ;;  %v905_v24 = vrot.slane %v903_v57, 5  ;;  %v525_v29 = vadd.f32 %v6201_v15, %v6233_v26  ;;  %v5048_v20 = vcombine.low %v2189_v48, %v2189_v48  ;;  %v631_v45 = vld [vmem:[#allocation2 + $0x70] sm:$0x1f] }
  0x72   : > { %v4931_v6 = vrot.slane %v4922_v8, 9  ;;  %v1447_v33 = vrot.slane %v4923_v23, 5  ;;  %v5088_v35 = vcombine.low %v2248_v30, %v2262_v32  ;;  %v900_v36 = vor.u32 %v899_v41, %v896_v39 }
  0x73   : > { %v887_v37 = vrot.slane %v886_v51, 4  ;;  %v533_v1 = vmax.f32 %v525_v29, 0.0  ;;  %v5049_v21 = vcombine.high %v2189_v48, %v2189_v48  ;;  %1136 = vrot.lane.b32.xlu1 %v4885_v11, %s6052_s17  ;;  %v4932_v49 = vcombine.low %v1458_v63, %v1458_v63 }
  0x74   : > { %v1448_v43 = vsel %vm6228_vm5, %v4931_v6, %v1447_v33  ;;  %v901_v38 = vrot.slane %v900_v36, 4  ;;  %v4933_v42 = vcombine.high %v1458_v63, %v1458_v63  ;;  %v2264_v55 = vshrl.u32 %v5048_v20, 16  ;;  %v1461_v33 = vld [vmem:[#allocation2 + $0x28] sm:$0x1f] }
  0x75   : > { %v4955_v15 = vcombine.low %v1444_v28, %v1448_v43  ;;  %v892_v26 = vsel %vm6419_vm12, %v887_v37, %v891_v7  ;;  %v544_v53 = vsel %vm540_vm4, %v533_v1, 0.0  ;;  %v2267_v22 = vshll.u32 %v5048_v20, 16 }
  0x76   : > { %v906_v61 = vsel %vm6419_vm12, %v901_v38, %v905_v24  ;;  %v552_v11 = vpack.c.bf16 %v544_v53, %v544_v53  ;;  %v2273_v44 = vshll.u32 %v5049_v21, 16  ;;  %v2266_v59 = vrot.slane %v2264_v55, 4 }
  0x77   : > { %1648 = vrot.lane.b32.xlu0 %v4955_v15, %s6051_s16  ;;  %v4880_v58 = vcombine.low %v892_v26, %v906_v61  ;;  %v4934_v52 = vcombine.low %v1459_v10, %v1459_v10  ;;  %v4935_v56 = vcombine.high %v1459_v10, %v1459_v10  ;;  %2468 = vrot.lane.b32.xlu1 %v5088_v35, %s6051_s16  ;;  %v2269_v14 = vrot.slane %v2267_v22, 5  ;;  %v1462_v35 = vld [vmem:[#allocation2 + $0x30] sm:$0x1f] }
  0x78   : > { %v579_v5 = vshrl.u32 %v552_v11, 16  ;;  %v582_v28 = vshll.u32 %v552_v11, 16  ;;  %v2275_v34 = vrot.slane %v2273_v44, 5  ;;  %v1507_v47 = vshrl.u32 %v4932_v49, 16 }
  0x79   : > { %v1510_v31 = vshll.u32 %v4932_v49, 16  ;;  %v1516_v40 = vshll.u32 %v4933_v42, 16  ;;  %v1521_v3 = vshrl.u32 %v4934_v52, 16  ;;  %v2270_v18 = vor.u32 %v2269_v14, %v2266_v59 }
  0x7a   : > { %v581_v0 = vrot.slane %v579_v5, 7  ;;  %v1524_v19 = vshll.u32 %v4934_v52, 16  ;;  %v1530_v27 = vshll.u32 %v4935_v56, 16  ;;  %v1509_v17 = vrot.slane %v1507_v47, 4 }
  0x7b   : > { %2115 = vrot.lane.b32.xlu0 %v5036_v12, %s6052_s17  ;;  %v1512_v57 = vrot.slane %v1510_v31, 5  ;;  %v1518_v2 = vrot.slane %v1516_v40, 5  ;;  %v1523_v62 = vrot.slane %v1521_v3, 4  ;;  %v2271_v7 = vrot.slane %v2270_v18, 4  ;;  %v1460_v12 = vld [vmem:[#allocation2 + $0x20] sm:$0x1f] }
  0x7c   : > { %v584_v4 = vor.u32 %v582_v28, %v581_v0  ;;  %v1526_v39 = vrot.slane %v1524_v19, 5  ;;  %v1532_v8 = vrot.slane %v1530_v27, 5  ;;  %v4840_v30 = vcombine.low %v830_v60, %v830_v60  ;;  %v1463_v0 = vld [vmem:[#allocation2 + $0x38] sm:$0x1f] }
  0x7d   : > { %v1513_v23 = vor.u32 %v1512_v57, %v1509_v17  ;;  %v4841_v41 = vcombine.high %v830_v60, %v830_v60  ;;  %v4842_v48 = vcombine.low %v831_v16, %v831_v16  ;;  %v6535_v51 = vsel %vm6419_vm12, %v2271_v7, %v2275_v34 }
  0x7e   : > { %v632_v32 = vsel %vm6287_vm9, %v584_v4, %v631_v45  ;;  %v1527_v46 = vor.u32 %v1526_v39, %v1523_v62  ;;  %v4843_v50 = vcombine.high %v831_v16, %v831_v16  ;;  %v908_v29 = vshrl.u32 %v4840_v30, 16 }
  0x7f   : > { %1114 = vrot.lane.b32.xlu0 %v4880_v58, %s6051_s16  ;;  %633 = vst [vmem:[#allocation2 + $0x70] sm:$0x1f] %v632_v32  ;;  %v1514_v24 = vrot.slane %v1513_v23, 4  ;;  %v911_v63 = vshll.u32 %v4840_v30, 16  ;;  %v917_v6 = vshll.u32 %v4841_v41, 16  ;;  %v922_v37 = vshrl.u32 %v4842_v48, 16 }
  0x80   : > { %v1528_v36 = vrot.slane %v1527_v46, 4  ;;  %v925_v1 = vshll.u32 %v4842_v48, 16  ;;  %v931_v20 = vshll.u32 %v4843_v50, 16  ;;  %v910_v10 = vrot.slane %v908_v29, 4  ;;  %v832_v46 = vld [vmem:[#allocation2 + $0x20] sm:$0x1f] }
  0x81   : > { %v1519_v21 = vsel %vm6419_vm12, %v1514_v24, %v1518_v2  ;;  %v913_v43 = vrot.slane %v911_v63, 5  ;;  %v919_v38 = vrot.slane %v917_v6, 5  ;;  %v924_v42 = vrot.slane %v922_v37, 4  ;;  %v833_v37 = vld [vmem:[#allocation2 + $0x28] sm:$0x1f] }
  0x82   : > { %v1533_v49 = vsel %vm6419_vm12, %v1528_v36, %v1532_v8  ;;  %v927_v15 = vrot.slane %v925_v1, 5  ;;  %v933_v26 = vrot.slane %v931_v20, 5  ;;  %v4936_v61 = vcombine.low %v1460_v12, %v1460_v12 }
  0x83   : > { %v4960_v53 = vcombine.low %v1519_v21, %v1533_v49  ;;  %v914_v55 = vor.u32 %v913_v43, %v910_v10  ;;  %v4937_v11 = vcombine.high %v1460_v12, %v1460_v12  ;;  %v4938_v44 = vcombine.low %v1461_v33, %v1461_v33 }
  0x84   : > { %v928_v22 = vor.u32 %v927_v15, %v924_v42  ;;  %v4939_v58 = vcombine.high %v1461_v33, %v1461_v33  ;;  %v4940_v59 = vcombine.low %v1462_v35, %v1462_v35  ;;  %v1535_v56 = vshrl.u32 %v4936_v61, 16 }
  0x85   : > { %1690 = vrot.lane.b32.xlu0 %v4960_v53, %s6050_s14  ;;  %v915_v52 = vrot.slane %v914_v55, 4  ;;  %v1538_v5 = vshll.u32 %v4936_v61, 16  ;;  %v1544_v28 = vshll.u32 %v4937_v11, 16  ;;  %v1549_v60 = vshrl.u32 %v4938_v44, 16 }
  0x86   : > { %v2190_v14 = vld [vmem:[#allocation2 + $0x70] sm:$0x1f]  ;;  %v929_v34 = vrot.slane %v928_v22, 4  ;;  %v1552_v16 = vshll.u32 %v4938_v44, 16  ;;  %v1558_v45 = vshll.u32 %v4939_v58, 16  ;;  %v1537_v3 = vrot.slane %v1535_v56, 4 }
  0x87   : > { %v5050_v47 = vcombine.low %v2190_v14, %v2190_v14  ;;  %v5051_v31 = vcombine.high %v2190_v14, %v2190_v14  ;;  %v6545_v40 = vsel %vm6419_vm12, %v915_v52, %v919_v38  ;;  %v1540_v19 = vrot.slane %v1538_v5, 5 }
  0x88   : > { %v6549_v18 = vsel %vm6419_vm12, %v929_v34, %v933_v26  ;;  %v1546_v27 = vrot.slane %v1544_v28, 5  ;;  %v1551_v17 = vrot.slane %v1549_v60, 4  ;;  %v1554_v39 = vrot.slane %v1552_v16, 5 }
  0x89   : > { %v2278_v57 = vshrl.u32 %v5050_v47, 16  ;;  %v2281_v2 = vshll.u32 %v5050_v47, 16  ;;  %v2287_v62 = vshll.u32 %v5051_v31, 16  ;;  %v4881_v4 = vcombine.low %v6545_v40, %v6549_v18  ;;  %v834_v47 = vld [vmem:[#allocation2 + $0x30] sm:$0x1f] }
  0x8a   : > { %v1541_v7 = vor.u32 %v1540_v19, %v1537_v3  ;;  %v1560_v8 = vrot.slane %v1558_v45, 5  ;;  %v4941_v23 = vcombine.high %v1462_v35, %v1462_v35  ;;  %v4942_v32 = vcombine.low %v1463_v0, %v1463_v0  ;;  %v2349_v31 = vld [vmem:[#allocation2 + $0x68] sm:$0x1e] }
  0x8b   : > { %v2280_v30 = vrot.slane %v2278_v57, 4  ;;  %v2283_v41 = vrot.slane %v2281_v2, 5  ;;  %v2289_v48 = vrot.slane %v2287_v62, 5  ;;  %v1555_v12 = vor.u32 %v1554_v39, %v1551_v17 }
  0x8c   : > { %v1542_v50 = vrot.slane %v1541_v7, 4  ;;  %v4943_v24 = vcombine.high %v1463_v0, %v1463_v0  ;;  %v1563_v29 = vshrl.u32 %v4940_v59, 16  ;;  %v1566_v6 = vshll.u32 %v4940_v59, 16 }
  0x8d   : > { %v2284_v63 = vor.u32 %v2283_v41, %v2280_v30  ;;  %v1572_v33 = vshll.u32 %v4941_v23, 16  ;;  %v1577_v36 = vshrl.u32 %v4942_v32, 16  ;;  %v1556_v20 = vrot.slane %v1555_v12, 4 }
  0x8e   : > { %v1547_v1 = vsel %vm6419_vm12, %v1542_v50, %v1546_v27  ;;  %v1565_v21 = vrot.slane %v1563_v29, 4  ;;  %v1580_v35 = vshll.u32 %v4942_v32, 16  ;;  %v1568_v43 = vrot.slane %v1566_v6, 5  ;;  %v835_v27 = vld [vmem:[#allocation2 + $0x38] sm:$0x1f] }
  0x8f   : > { %v2285_v10 = vrot.slane %v2284_v63, 4  ;;  %v1574_v38 = vrot.slane %v1572_v33, 5  ;;  %v1579_v49 = vrot.slane %v1577_v36, 4  ;;  %v1561_v42 = vsel %vm6419_vm12, %v1556_v20, %v1560_v8  ;;  %v5706_v6 = vld [vmem:[#allocation2 + $0x40] ss:$8 sps:$4 sm:$0xff]  }
  0x90   : > { %v1582_v15 = vrot.slane %v1580_v35, 5  ;;  %v1586_v26 = vshll.u32 %v4943_v24, 16  ;;  %v4844_v53 = vcombine.low %v832_v46, %v832_v46  ;;  %v4961_v61 = vcombine.low %v1547_v1, %v1561_v42  ;;  %v2350_v24 = vld [vmem:[#allocation2 + $0x70] sm:$0x1e]  ;;  %v1464_v1 = vld [vmem:[#allocation2 + $0x40] sm:$0x1f] }
  0x91   : > { %v2290_v55 = vsel %vm6419_vm12, %v2285_v10, %v2289_v48  ;;  %v1569_v11 = vor.u32 %v1568_v43, %v1565_v21  ;;  %v4845_v22 = vcombine.high %v832_v46, %v832_v46  ;;  %v4846_v52 = vcombine.low %v833_v37, %v833_v37  ;;  %v1465_v21 = vld [vmem:[#allocation2 + $0x48] sm:$0x1f] }
  0x92   : > { %v5089_v44 = vcombine.low %v6535_v51, %v2290_v55  ;;  %v1583_v58 = vor.u32 %v1582_v15, %v1579_v49  ;;  %v1588_v59 = vrot.slane %v1586_v26, 5  ;;  %1692 = vrot.lane.b32.xlu0 %v4961_v61, %s6050_s14  ;;  %v4847_v5 = vcombine.high %v833_v37, %v833_v37 }
  0x93   : > { %v1570_v56 = vrot.slane %v1569_v11, 4  ;;  %v936_v28 = vshrl.u32 %v4844_v53, 16  ;;  %v939_v14 = vshll.u32 %v4844_v53, 16  ;;  %v945_v60 = vshll.u32 %v4845_v22, 16 }
  0x94   : > { %2470 = vrot.lane.b32.xlu1 %v5089_v44, %s6051_s16  ;;  %v1584_v34 = vrot.slane %v1583_v58, 4  ;;  %v950_v16 = vshrl.u32 %v4846_v52, 16  ;;  %v953_v45 = vshll.u32 %v4846_v52, 16  ;;  %v959_v19 = vshll.u32 %v4847_v5, 16 }
  0x95   : > { %v1575_v51 = vsel %vm6419_vm12, %v1570_v56, %v1574_v38  ;;  %v938_v3 = vrot.slane %v936_v28, 4  ;;  %v941_v0 = vrot.slane %v939_v14, 5  ;;  %v947_v57 = vrot.slane %v945_v60, 5 }
  0x96   : > { %v1589_v17 = vsel %vm6419_vm12, %v1584_v34, %v1588_v59  ;;  %v952_v2 = vrot.slane %v950_v16, 4  ;;  %v955_v62 = vrot.slane %v953_v45, 5  ;;  %v961_v8 = vrot.slane %v959_v19, 5  ;;  %v997_v45 = vld [vmem:[#allocation2 + $0x30] sm:$0x1e] }
  0x97   : > { %v4962_v7 = vcombine.low %v1575_v51, %v1589_v17  ;;  %v942_v39 = vor.u32 %v941_v0, %v938_v3  ;;  %v4848_v23 = vcombine.low %v834_v47, %v834_v47  ;;  %v4849_v41 = vcombine.high %v834_v47, %v834_v47  ;;  %v998_v0 = vld [vmem:[#allocation2 + $0x38] sm:$0x1e]  ;;  %v5426_v19 = vld [vmem:[%s6184_s27 + $0x10] sm:$0xff]  }
  0x98   : > { %1116 = vrot.lane.b32.xlu1 %v4881_v4, %s6051_s16  ;;  %v956_v30 = vor.u32 %v955_v62, %v952_v2  ;;  %v4850_v48 = vcombine.low %v835_v27, %v835_v27  ;;  %v4851_v32 = vcombine.high %v835_v27, %v835_v27  ;;  %v5064_v29 = vcombine.low %v2349_v31, %v2349_v31 }
  0x99   : > { %v943_v46 = vrot.slane %v942_v39, 4  ;;  %v964_v50 = vshrl.u32 %v4848_v23, 16  ;;  %v967_v12 = vshll.u32 %v4848_v23, 16  ;;  %v973_v33 = vshll.u32 %v4849_v41, 16 }
  0x9a   : > { %v957_v63 = vrot.slane %v956_v30, 4  ;;  %v978_v36 = vshrl.u32 %v4850_v48, 16  ;;  %v981_v37 = vshll.u32 %v4850_v48, 16  ;;  %v987_v20 = vshll.u32 %v4851_v32, 16  ;;  %v1825_v30 = vld [vmem:[#allocation2 + $0x60] sm:$0x1f] }
  0x9b   : > { %v948_v40 = vsel %vm6419_vm12, %v943_v46, %v947_v57  ;;  %v966_v18 = vrot.slane %v964_v50, 4  ;;  %v969_v4 = vrot.slane %v967_v12, 5  ;;  %v975_v10 = vrot.slane %v973_v33, 5  ;;  %v5715_v57 = vld [vmem:[#allocation2 + $0x60] ss:$8 sps:$4 sm:$0xff]  }
  0x9c   : > { %1694 = vrot.lane.b32.xlu1 %v4962_v7, %s6050_s14  ;;  %v962_v35 = vsel %vm6419_vm12, %v957_v63, %v961_v8  ;;  %v980_v43 = vrot.slane %v978_v36, 4  ;;  %v983_v38 = vrot.slane %v981_v37, 5  ;;  %v989_v15 = vrot.slane %v987_v20, 5  ;;  %v1826_v63 = vld [vmem:[#allocation2 + $0x68] sm:$0x1f] }
  0x9d   : > { %v4882_v49 = vcombine.low %v948_v40, %v962_v35  ;;  %v970_v42 = vor.u32 %v969_v4, %v966_v18  ;;  %v5065_v26 = vcombine.high %v2349_v31, %v2349_v31  ;;  %v5066_v55 = vcombine.low %v2350_v24, %v2350_v24 }
  0x9e   : > { %v984_v53 = vor.u32 %v983_v38, %v980_v43  ;;  %v5067_v61 = vcombine.high %v2350_v24, %v2350_v24  ;;  %v5078_v11 = vrot.slane %v5064_v29, 9  ;;  %v4944_v58 = vcombine.low %v1464_v1, %v1464_v1 }
  0x9f   : > { %1118 = vrot.lane.b32.xlu0 %v4882_v49, %s6051_s16  ;;  %v971_v22 = vrot.slane %v970_v42, 4  ;;  %v2405_v44 = vrot.slane %v5065_v26, 5  ;;  %v4945_v59 = vcombine.high %v1464_v1, %v1464_v1  ;;  %v5079_v56 = vrot.slane %v5066_v55, 9  ;;  %v1985_v26 = vld [vmem:[#allocation2 + $0x60] sm:$0x1e] }
  0xa0   : > { %1676 = vrot.lane.b32.xlu1 %v5706_v6, %s6052_s17  ;;  %v985_v52 = vrot.slane %v984_v53, 4  ;;  %v2409_v5 = vrot.slane %v5067_v61, 5  ;;  %v4946_v28 = vcombine.low %v1465_v21, %v1465_v21  ;;  %v4947_v60 = vcombine.high %v1465_v21, %v1465_v21  ;;  %v6608_v21 = vld [vmem:[%s7755_s2] ss:$0 sm:$0xff] }
  0xa1   : > { %v976_v14 = vsel %vm6419_vm12, %v971_v22, %v975_v10  ;;  %v2406_v34 = vsel %vm6228_vm5, %v5078_v11, %v2405_v44  ;;  %v1591_v16 = vshrl.u32 %v4944_v58, 16  ;;  %v1594_v51 = vshll.u32 %v4944_v58, 16  ;;  %v6622_v55 = vld [vmem:[%s7756_s3] ss:$0 sm:$0xff] }
  0xa2   : > { %v990_v47 = vsel %vm6419_vm12, %v985_v52, %v989_v15  ;;  %v2410_v31 = vsel %vm6228_vm5, %v5079_v56, %v2409_v5  ;;  %v1600_v3 = vshll.u32 %v4945_v59, 16  ;;  %v1605_v62 = vshrl.u32 %v4946_v28, 16 }
  0xa3   : > { %v4883_v27 = vcombine.low %v976_v14, %v990_v47  ;;  %v5093_v17 = vcombine.low %v2406_v34, %v2410_v31  ;;  %v1593_v2 = vrot.slane %v1591_v16, 4  ;;  %v1596_v7 = vrot.slane %v1594_v51, 5  ;;  %v1986_v47 = vld [vmem:[#allocation2 + $0x68] sm:$0x1e] }
  0xa4   : > { %v1602_v39 = vrot.slane %v1600_v3, 5  ;;  %v1608_v8 = vshll.u32 %v4946_v28, 16  ;;  %v1614_v23 = vshll.u32 %v4947_v60, 16  ;;  %v1607_v41 = vrot.slane %v1605_v62, 4  ;;  %v6648_v62 = vld [vmem:[%s7755_s2] ss:$0 sm:$0xff] }
  0xa5   : > { %1120 = vrot.lane.b32.xlu0 %v4883_v27, %s6051_s16  ;;  %2490 = vrot.lane.b32.xlu1 %v5093_v17, %s6052_s17  ;;  %v4864_v48 = vcombine.low %v997_v45, %v997_v45  ;;  %v4865_v32 = vcombine.high %v997_v45, %v997_v45  ;;  %v4866_v46 = vcombine.low %v998_v0, %v998_v0  ;;  %v5400_v37 = vunpack.c.l.bf16 %v5426_v19 }
  0xa6   : > { %v1597_v50 = vor.u32 %v1596_v7, %v1593_v2  ;;  %v1610_v12 = vrot.slane %v1608_v8, 5  ;;  %v1616_v24 = vrot.slane %v1614_v23, 5  ;;  %v4867_v29 = vcombine.high %v998_v0, %v998_v0  ;;  %v5407_v2 = vld [vmem:[%s6637_s8] sm:$0xff]  }
  0xa7   : > { %v4874_v6 = vrot.slane %v4864_v48, 9  ;;  %v1068_v33 = vrot.slane %v4865_v32, 5  ;;  %v4875_v36 = vrot.slane %v4866_v46, 9  ;;  %v5401_v4 = vunpack.c.h.bf16 %v5426_v19  ;;  %v6653_v46 = vld [vmem:[%s7756_s3] ss:$0 sm:$0xff] }
  0xa8   : > { %v1598_v1 = vrot.slane %v1597_v50, 4  ;;  %v1611_v40 = vor.u32 %v1610_v12, %v1607_v41  ;;  %v1072_v18 = vrot.slane %v4867_v29, 5  ;;  %v511_v35 = vmul.f32 %v6608_v21, %v5400_v37  ;;  %v2720_v50 = vld [vmem:[#allocation2 + $0x60] sm:$0x1e]  ;;  %v634_v12 = vld [vmem:[#allocation2 + $0x78] sm:$0x1f] }
  0xa9   : > { %2097 = vrot.lane.b32.xlu0 %v5715_v57, %s6051_s16  ;;  %v1069_v20 = vsel %vm6228_vm5, %v4874_v6, %v1068_v33  ;;  %v4992_v10 = vcombine.low %v1825_v30, %v1825_v30  ;;  %v4993_v43 = vcombine.high %v1825_v30, %v1825_v30  ;;  %v6616_v15 = vmul.f32 %v6608_v21, %v5401_v4  ;;  %v2721_v33 = vld [vmem:[#allocation2 + $0x68] sm:$0x1e] }
  0xaa   : > { %v1603_v38 = vsel %vm6419_vm12, %v1598_v1, %v1602_v39  ;;  %v1612_v49 = vrot.slane %v1611_v40, 4  ;;  %v1073_v42 = vsel %vm6228_vm5, %v4875_v36, %v1072_v18  ;;  %v526_v61 = vadd.f32 %v6622_v55, %v511_v35 }
  0xab   : > { %v4887_v53 = vcombine.low %v1069_v20, %v1073_v42  ;;  %v4994_v11 = vcombine.low %v1826_v63, %v1826_v63  ;;  %v4995_v22 = vcombine.high %v1826_v63, %v1826_v63  ;;  %v1900_v58 = vshrl.u32 %v4992_v10, 16  ;;  %v5836_v42 = vld [vmem:[%s7754_s1 + $0xc0] sm:$0xff]  }
  0xac   : > { %v1617_v44 = vsel %vm6419_vm12, %v1612_v49, %v1616_v24  ;;  %v1903_v59 = vshll.u32 %v4992_v10, 16  ;;  %v1909_v52 = vshll.u32 %v4993_v43, 16  ;;  %v534_v5 = vmax.f32 %v526_v61, 0.0  ;;  %5471 = vmatprep.subr.bf16.mxu1 %v5836_v42 }
  0xad   : > { %v4963_v56 = vcombine.low %v1603_v38, %v1617_v44  ;;  %1140 = vrot.lane.b32.xlu0 %v4887_v53, %s6052_s17  ;;  %v1914_v28 = vshrl.u32 %v4994_v11, 16  ;;  %v1917_v14 = vshll.u32 %v4994_v11, 16  ;;  %v1902_v34 = vrot.slane %v1900_v58, 4  ;;  %v5427_v11 = vld [vmem:[%s6184_s27 + $0x18] sm:$0xff]  }
  0xae   : > { %v1905_v60 = vrot.slane %v1903_v59, 5  ;;  %v1911_v16 = vrot.slane %v1909_v52, 5  ;;  %v1923_v45 = vshll.u32 %v4995_v22, 16  ;;  %v545_v31 = vsel %vm540_vm4, %v534_v5, 0.0  ;;  %v5837_v22 = vld [vmem:[%s7754_s1 + $0x80] sm:$0xff]  }
  0xaf   : > { %1696 = vrot.lane.b32.xlu1 %v4963_v56, %s6050_s14  ;;  %v1916_v51 = vrot.slane %v1914_v28, 4  ;;  %v1919_v3 = vrot.slane %v1917_v14, 5  ;;  %v5008_v0 = vcombine.low %v1985_v26, %v1985_v26  ;;  %v553_v19 = vpack.c.bf16 %v545_v31, %v545_v31  ;;  %v5733_v58 = vld [vmem:[#allocation2 + $0x38] ss:$8 sps:$4 sm:$0xff]   ;;  %5472 = vmatpush3.bf16.msra.mxu1 %v5837_v22 }
  0xb0   : > { %v1906_v27 = vor.u32 %v1905_v60, %v1902_v34  ;;  %v1925_v17 = vrot.slane %v1923_v45, 5  ;;  %v5009_v57 = vcombine.high %v1985_v26, %v1985_v26  ;;  %v5010_v39 = vcombine.low %v1986_v47, %v1986_v47 }
  0xb1   : > { %v1920_v7 = vor.u32 %v1919_v3, %v1916_v51  ;;  %v5011_v8 = vcombine.high %v1986_v47, %v1986_v47  ;;  %v5022_v23 = vrot.slane %v5008_v0, 9  ;;  %v586_v30 = vshrl.u32 %v553_v19, 16  ;;  %v5846_v47 = vld [vmem:[%s7754_s1 + $0x40] sm:$0xff]  }
  0xb2   : > { %v589_v41 = vshll.u32 %v553_v19, 16  ;;  %v1907_v48 = vrot.slane %v1906_v27, 4  ;;  %v2041_v32 = vrot.slane %v5009_v57, 5  ;;  %v5023_v29 = vrot.slane %v5010_v39, 9  ;;  %v5847_v19 = vld [vmem:[%s7754_s1] sm:$0xff]   ;;  %5431 = vmatprep.subr.bf16.mxu0 %v5846_v47 }
  0xb3   : > { %v1921_v24 = vrot.slane %v1920_v7, 4  ;;  %v2045_v63 = vrot.slane %v5011_v8, 5  ;;  %v5408_v6 = vunpack.c.l.bf16 %v5407_v2  ;;  %v588_v36 = vrot.slane %v586_v30, 7  ;;  %v6705_v30 = vld [vmem:[#allocation2 + $0x70] sm:$0x1f]  ;;  %5432 = vmatpush3.bf16.msra.mxu0 %v5847_v19 }
  0xb4   : > { %v1912_v37 = vsel %vm6419_vm12, %v1907_v48, %v1911_v16  ;;  %v2042_v1 = vsel %vm6228_vm5, %v5022_v23, %v2041_v32  ;;  %v5409_v40 = vunpack.c.h.bf16 %v5407_v2  ;;  %v6664_v35 = vstv %s4835_s9  ;;  %v5852_v48 = vld [vmem:[%s7754_s1 + $0xc8] sm:$0xff]  }
  0xb5   : > { %v1926_v18 = vsel %vm6419_vm12, %v1921_v24, %v1925_v17  ;;  %v2046_v4 = vsel %vm6228_vm5, %v5023_v29, %v2045_v63  ;;  %v681_v20 = vmul.f32 %v5408_v6, %v6648_v62  ;;  %v591_v10 = vor.u32 %v589_v41, %v588_v36  ;;  %v6707_v41 = vld [vmem:[#allocation2 + $0xa0] sm:$0x1f]  ;;  %v5853_v29 = vld [vmem:[%s7754_s1 + $0x88] sm:$0xff]   ;;  %5473 = vmatprep.subr.bf16.mxu1 %v5852_v48  ;;  %v6747_v48 = vld [vmem:[#allocation2 + $0x70] sm:$0x1e] }
  0xb6   : > { %v5037_v43 = vcombine.low %v1912_v37, %v1926_v18  ;;  %v6666_v38 = vcombine.low %v2042_v1, %v2046_v4  ;;  %v682_v49 = vmul.f32 %v5409_v40, %v6648_v62  ;;  %vm714_vm13 = vcmp.eq.s32.totalorder %v6664_v35, 1  ;;  %v796_v6 = vld [vmem:[#allocation2 + $0xa8] sm:$0x1f]  ;;  %5474 = vmatpush3.bf16.msra.mxu1 %v5853_v29 }
  0xb7   : > { %v696_v26 = vadd.f32 %v6653_v46, %v681_v20  ;;  %v527_v53 = vadd.f32 %v6622_v55, %v6616_v15  ;;  %v5116_v61 = vcombine.low %v2720_v50, %v2720_v50  ;;  %v635_v44 = vsel %vm6287_vm9, %v591_v10, %v634_v12 }
  0xb8   : > { %2117 = vrot.lane.b32.xlu0 %v5037_v43, %s6052_s17  ;;  %v697_v59 = vadd.f32 %v6653_v46, %v682_v49  ;;  %v5117_v52 = vcombine.high %v2720_v50, %v2720_v50  ;;  %v5118_v56 = vcombine.low %v2721_v33, %v2721_v33  ;;  %636 = vst [vmem:[#allocation2 + $0x78] sm:$0x1f] %v635_v44  ;;  %v5404_v45 = vunpack.c.l.bf16 %v5427_v11 }
  0xb9   : > { %v704_v5 = vmax.f32 %v696_v26, 0.0  ;;  %v535_v28 = vmax.f32 %v527_v53, 0.0  ;;  %v5119_v15 = vcombine.high %v2721_v33, %v2721_v33  ;;  %v5132_v14 = vrot.slane %v5116_v61, 9  ;;  %v637_v33 = vld [vmem:[#allocation2 + $0x80] sm:$0x1f] }
  0xba   : > { %v705_v34 = vmax.f32 %v697_v59, 0.0  ;;  %v2770_v60 = vrot.slane %v5117_v52, 5  ;;  %v5133_v16 = vrot.slane %v5118_v56, 9  ;;  %v5405_v0 = vunpack.c.h.bf16 %v5427_v11  ;;  %v799_v11 = vld [vmem:[#allocation2 + $0xb0] sm:$0x1f] }
  0xbb   : > { %v715_v31 = vsel %vm714_vm13, %v704_v5, 0.0  ;;  %v546_v51 = vsel %vm540_vm4, %v535_v28, 0.0  ;;  %v2774_v3 = vrot.slane %v5119_v15, 5  ;;  %v513_v8 = vmul.f32 %v6608_v21, %v5404_v45 }
  0xbc   : > { %1168 = vrot.lane.b32.xlu0 %v5733_v58, %s6050_s14  ;;  %v716_v27 = vsel %vm714_vm13, %v705_v34, 0.0  ;;  %v723_v17 = vpack.c.bf16 %v715_v31, %v715_v31  ;;  %v554_v57 = vpack.c.bf16 %v546_v51, %v546_v51  ;;  %v2771_v2 = vsel %vm6228_vm5, %v5132_v14, %v2770_v60 }
  0xbd   : > { %v724_v7 = vpack.c.bf16 %v716_v27, %v716_v27  ;;  %v2775_v39 = vsel %vm6228_vm5, %v5133_v16, %v2774_v3  ;;  %v6703_v23 = vmul.f32 %v6608_v21, %v5405_v0  ;;  %v528_v37 = vadd.f32 %v6622_v55, %v513_v8 }
  0xbe   : > { %v732_v32 = vshrl.u32 %v723_v17, 16  ;;  %v735_v50 = vshll.u32 %v723_v17, 16  ;;  %v593_v12 = vshrl.u32 %v554_v57, 16  ;;  %v596_v24 = vshll.u32 %v554_v57, 16 }
  0xbf   : > { %v739_v63 = vshrl.u32 %v724_v7, 16  ;;  %v742_v21 = vshll.u32 %v724_v7, 16  ;;  %v6715_v36 = vcombine.low %v2771_v2, %v2775_v39  ;;  %v5724_v1 = vld [vmem:[#allocation2 + $0x70] ss:$8 sps:$4 sm:$0xff]   ;;  %v4996_v4 = vcombine.low %v6705_v30, %v6705_v30 }
  0xc0   : > { %v734_v40 = vrot.slane %v732_v32, 7  ;;  %v595_v18 = vrot.slane %v593_v12, 7  ;;  %v4997_v20 = vcombine.high %v6705_v30, %v6705_v30  ;;  %v2191_v43 = vld [vmem:[#allocation2 + $0x78] sm:$0x1f]  ;;  %v536_v42 = vmax.f32 %v528_v37, 0.0  ;;  %2518 = vrot.lane.b32.xlu1 %v5724_v1, %s6050_s14  ;;  %v5864_v1 = vld [vmem:[%s7754_s1 + $0xd0] sm:$0xff]  }
  0xc1   : > { %v741_v10 = vrot.slane %v739_v63, 7  ;;  %v2351_v49 = vld [vmem:[#allocation2 + $0x78] sm:$0x1e]  ;;  %v6724_v26 = vcombine.low %v6707_v41, %v6707_v41  ;;  %v5141_v53 = vcombine.high %v6707_v41, %v6707_v41  ;;  %v5052_v44 = vcombine.low %v2191_v43, %v2191_v43  ;;  %v640_v32 = vld [vmem:[#allocation2 + $0x88] sm:$0x1f]  ;;  %5475 = vmatprep.subr.bf16.mxu1 %v5864_v1 }
  0xc2   : > { %v737_v61 = vor.u32 %v735_v50, %v734_v40  ;;  %v598_v22 = vor.u32 %v596_v24, %v595_v18  ;;  %v5053_v58 = vcombine.high %v2191_v43, %v2191_v43  ;;  %v5068_v52 = vcombine.low %v2351_v49, %v2351_v49  ;;  %v1828_v28 = vld [vmem:[#allocation2 + $0x78] sm:$0x1f]  ;;  %v5863_v63 = vld [vmem:[%s7754_s1 + $0x8] sm:$0xff]  }
  0xc3   : > { %v744_v59 = vor.u32 %v742_v21, %v741_v10  ;;  %v5069_v56 = vcombine.high %v2351_v49, %v2351_v49  ;;  %v547_v5 = vsel %vm540_vm4, %v536_v42, 0.0  ;;  %v2292_v34 = vshrl.u32 %v5052_v44, 16  ;;  %v5865_v10 = vld [vmem:[%s7754_s1 + $0x90] sm:$0xff]  }
  0xc4   : > { %v797_v15 = vsel %vm6287_vm9, %v737_v61, %v796_v6  ;;  %v638_v14 = vsel %vm6287_vm9, %v598_v22, %v637_v33  ;;  %v2295_v60 = vshll.u32 %v5052_v44, 16  ;;  %v2301_v45 = vshll.u32 %v5053_v58, 16  ;;  %2137 = vrot.lane.b32.xlu1 %v6666_v38, %s6050_s14  ;;  %v5862_v38 = vld [vmem:[%s7754_s1 + $0x48] sm:$0xff]   ;;  %5476 = vmatpush3.bf16.msra.mxu1 %v5865_v10 }
  0xc5   : > { %798 = vst [vmem:[#allocation2 + $0xa8] sm:$0x1f] %v797_v15  ;;  %v800_v16 = vsel %vm6287_vm9, %v744_v59, %v799_v11  ;;  %639 = vst [vmem:[#allocation2 + $0x80] sm:$0x1f] %v638_v14  ;;  %v6737_v47 = vrot.slane %v5068_v52, 9  ;;  %v6739_v31 = vrot.slane %v5069_v56, 5  ;;  %v555_v0 = vpack.c.bf16 %v547_v5, %v547_v5  ;;  %5433 = vmatprep.subr.bf16.mxu0 %v5862_v38 }
  0xc6   : > { %801 = vst [vmem:[#allocation2 + $0xb0] sm:$0x1f] %v800_v16  ;;  %v2294_v51 = vrot.slane %v2292_v34, 4  ;;  %v2297_v3 = vrot.slane %v2295_v60, 5  ;;  %v4998_v19 = vcombine.low %v1828_v28, %v1828_v28  ;;  %v2303_v27 = vrot.slane %v2301_v45, 5  ;;  %5434 = vmatpush3.bf16.msra.mxu0 %v5863_v63 }
  0xc7   : > { %v2414_v17 = vsel %vm6228_vm5, %v6737_v47, %v6739_v31  ;;  %v4999_v57 = vcombine.high %v1828_v28, %v1828_v28  ;;  %v1928_v2 = vshrl.u32 %v4996_v4, 16  ;;  %v600_v39 = vshrl.u32 %v555_v0, 16 }
  0xc8   : > { %v2298_v7 = vor.u32 %v2297_v3, %v2294_v51  ;;  %v603_v8 = vshll.u32 %v555_v0, 16  ;;  %v1931_v30 = vshll.u32 %v4996_v4, 16  ;;  %v6752_v12 = vshll.u32 %v4997_v20, 16 }
  0xc9   : > { %v1930_v50 = vrot.slane %v1928_v2, 4  ;;  %v1942_v24 = vshrl.u32 %v4998_v19, 16  ;;  %v1945_v29 = vshll.u32 %v4998_v19, 16  ;;  %v602_v6 = vrot.slane %v600_v39, 7 }
  0xca   : > { %v2299_v21 = vrot.slane %v2298_v7, 4  ;;  %v1933_v33 = vrot.slane %v1931_v30, 5  ;;  %v6757_v37 = vshll.u32 %v4999_v57, 16  ;;  %v1939_v40 = vrot.slane %v6752_v12, 5 }
  0xcb   : > { %v6763_v18 = vrot.slane %v1942_v24, 4  ;;  %v6765_v4 = vrot.slane %v1945_v29, 5  ;;  %v2858_v20 = vshrl.u32 %v6724_v26, 16  ;;  %v605_v61 = vor.u32 %v603_v8, %v602_v6 }
  0xcc   : > { %v2192_v43 = vld [vmem:[#allocation2 + $0x80] sm:$0x1f]  ;;  %v6773_v49 = vsel %vm6419_vm12, %v2299_v21, %v2303_v27  ;;  %v1934_v11 = vor.u32 %v1933_v33, %v1930_v50  ;;  %v5012_v22 = vcombine.low %v6747_v48, %v6747_v48  ;;  %v3173_v5 = vld [vmem:[#allocation2 + $0xa8] sm:$0x1f] }
  0xcd   : > { %v2352_v42 = vld [vmem:[#allocation2 + $0x80] sm:$0x1e]  ;;  %v5734_v44 = vld [vmem:[#allocation2 + $0xa8] ss:$8 sps:$4 sm:$0xff]   ;;  %v5054_v58 = vcombine.low %v2192_v43, %v2192_v43  ;;  %v5055_v59 = vcombine.high %v2192_v43, %v2192_v43  ;;  %v5196_v15 = vcombine.low %v3173_v5, %v3173_v5  ;;  %v5197_v14 = vcombine.high %v3173_v5, %v3173_v5 }
  0xce   : > { %v5070_v52 = vcombine.low %v2352_v42, %v2352_v42  ;;  %v5071_v56 = vcombine.high %v2352_v42, %v2352_v42  ;;  %v3174_v28 = vld [vmem:[#allocation2 + $0xb0] sm:$0x1f]  ;;  %v641_v34 = vsel %vm6287_vm9, %v605_v61, %v640_v32  ;;  %v1935_v60 = vrot.slane %v1934_v11, 4  ;;  %3445 = vrot.lane.b32.xlu1 %v5734_v44, %s6051_s16  ;;  %v3333_v21 = vld [vmem:[#allocation2 + $0xa8] sm:$0x1e] }
  0xcf   : > { %v2306_v16 = vshrl.u32 %v5054_v58, 16  ;;  %v2309_v45 = vshll.u32 %v5054_v58, 16  ;;  %v2315_v51 = vshll.u32 %v5055_v59, 16  ;;  %642 = vst [vmem:[#allocation2 + $0x88] sm:$0x1f] %v641_v34  ;;  %v5198_v19 = vcombine.low %v3174_v28, %v3174_v28 }
  0xd0   : > { %v5081_v3 = vrot.slane %v5070_v52, 9  ;;  %v2417_v0 = vrot.slane %v5071_v56, 5  ;;  %v5199_v27 = vcombine.high %v3174_v28, %v3174_v28  ;;  %v3222_v57 = vshrl.u32 %v5196_v15, 16  ;;  %v3334_v47 = vld [vmem:[#allocation2 + $0xb0] sm:$0x1e] }
  0xd1   : > { %v2308_v2 = vrot.slane %v2306_v16, 4  ;;  %v2311_v7 = vrot.slane %v2309_v45, 5  ;;  %v2317_v39 = vrot.slane %v2315_v51, 5  ;;  %v3225_v8 = vshll.u32 %v5196_v15, 16  ;;  %v2810_v5 = vld [vmem:[#allocation2 + $0xa8] sm:$0x1f] }
  0xd2   : > { %v2418_v30 = vsel %vm6228_vm5, %v5081_v3, %v2417_v0  ;;  %v3224_v38 = vrot.slane %v3222_v57, 4  ;;  %v3231_v32 = vshll.u32 %v5197_v14, 16  ;;  %v3236_v50 = vshrl.u32 %v5198_v19, 16  ;;  %v5743_v16 = vld [vmem:[#allocation2 + $0x70] ss:$8 sps:$4 sm:$0xff]  }
  0xd3   : > { %v2312_v12 = vor.u32 %v2311_v7, %v2308_v2  ;;  %v5094_v24 = vcombine.low %v2414_v17, %v2418_v30  ;;  %v3227_v29 = vrot.slane %v3225_v8, 5  ;;  %v3239_v63 = vshll.u32 %v5198_v19, 16  ;;  %v1988_v2 = vld [vmem:[#allocation2 + $0x78] sm:$0x1e] }
  0xd4   : > { %v3233_v6 = vrot.slane %v3231_v32, 5  ;;  %v3238_v33 = vrot.slane %v3236_v50, 4  ;;  %v3245_v1 = vshll.u32 %v5199_v27, 16  ;;  %v6789_v10 = vsel %vm6419_vm12, %v1935_v60, %v1939_v40 }
  0xd5   : > { %v2313_v43 = vrot.slane %v2312_v12, 4  ;;  %2492 = vrot.lane.b32.xlu1 %v5094_v24, %s6052_s17  ;;  %v3228_v42 = vor.u32 %v3227_v29, %v3224_v38  ;;  %v3241_v61 = vrot.slane %v3239_v63, 5  ;;  %v1948_v11 = vor.u32 %v6765_v4, %v6763_v18  ;;  %v5428_v29 = vld [vmem:[%s6637_s8 + $0x8] sm:$0xff]  }
  0xd6   : > { %v3247_v31 = vrot.slane %v3245_v1, 5  ;;  %v1953_v17 = vrot.slane %v6757_v37, 5  ;;  %v5212_v44 = vcombine.low %v3333_v21, %v3333_v21  ;;  %v5213_v58 = vcombine.high %v3333_v21, %v3333_v21  ;;  %v2193_v63 = vld [vmem:[#allocation2 + $0x88] sm:$0x1f] }
  0xd7   : > { %v2318_v59 = vsel %vm6419_vm12, %v2313_v43, %v2317_v39  ;;  %v3229_v52 = vrot.slane %v3228_v42, 4  ;;  %v3242_v40 = vor.u32 %v3241_v61, %v3238_v33  ;;  %v1949_v56 = vrot.slane %v1948_v11, 4  ;;  %v5752_v39 = vld [vmem:[#allocation2 + $0x80] ss:$8 sps:$4 sm:$0xff]  }
  0xd8   : > { %v5090_v28 = vcombine.low %v6773_v49, %v2318_v59  ;;  %v5214_v15 = vcombine.low %v3334_v47, %v3334_v47  ;;  %v5215_v14 = vcombine.high %v3334_v47, %v3334_v47  ;;  %v5228_v34 = vrot.slane %v5212_v44, 9 }
  0xd9   : > { %v3234_v18 = vsel %vm6419_vm12, %v3229_v52, %v3233_v6  ;;  %v3243_v4 = vrot.slane %v3242_v40, 4  ;;  %v1954_v37 = vsel %vm6419_vm12, %v1949_v56, %v1953_v17  ;;  %v3383_v60 = vrot.slane %v5213_v58, 5 }
  0xda   : > { %2472 = vrot.lane.b32.xlu0 %v5090_v28, %s6051_s16  ;;  %v5038_v45 = vcombine.low %v6789_v10, %v1954_v37  ;;  %v5229_v51 = vrot.slane %v5214_v15, 9  ;;  %v3387_v3 = vrot.slane %v5215_v14, 5  ;;  %v5142_v49 = vcombine.low %v2810_v5, %v2810_v5  ;;  %v5871_v15 = vld [vmem:[%s7754_s1 + $0x50] sm:$0xff]  }
  0xdb   : > { %v3248_v0 = vsel %vm6419_vm12, %v3243_v4, %v3247_v31  ;;  %v3384_v19 = vsel %vm6228_vm5, %v5228_v34, %v3383_v60  ;;  %v5143_v27 = vcombine.high %v2810_v5, %v2810_v5  ;;  %v2860_v57 = vrot.slane %v2858_v20, 4  ;;  %v5761_v4 = vld [vmem:[#allocation2 + $0xa0] ss:$8 sps:$4 sm:$0xff]   ;;  %5435 = vmatprep.subr.bf16.mxu0 %v5871_v15 }
  0xdc   : > { %v5244_v7 = vcombine.low %v3234_v18, %v3248_v0  ;;  %v3388_v8 = vsel %vm6228_vm5, %v5229_v51, %v3387_v3  ;;  %v2861_v30 = vshll.u32 %v6724_v26, 16  ;;  %v2867_v38 = vshll.u32 %v5141_v53, 16  ;;  %v2353_v18 = vld [vmem:[#allocation2 + $0x88] sm:$0x1e]  ;;  %v5878_v3 = vld [vmem:[%s7754_s1 + $0x98] sm:$0xff]  }
  0xdd   : > { %v5248_v32 = vcombine.low %v3384_v19, %v3388_v8  ;;  %v2872_v50 = vshrl.u32 %v5142_v49, 16  ;;  %v2875_v12 = vshll.u32 %v5142_v49, 16  ;;  %v2881_v24 = vshll.u32 %v5143_v27, 16  ;;  %v6857_v27 = vpop.permute.xlu1 %2516  ;;  %v5887_v8 = vld [vmem:[%s7754_s1 + $0x58] sm:$0xff]   ;;  %v1830_v15 = vld [vmem:[#allocation2 + $0x88] sm:$0x1f] }
  0xde   : > { %2099 = vrot.lane.b32.xlu0 %v5743_v16, %s6051_s16  ;;  %3465 = vrot.lane.b32.xlu1 %v5244_v7, %s6052_s17  ;;  %v2863_v20 = vrot.slane %v2861_v30, 5  ;;  %v2869_v21 = vrot.slane %v2867_v38, 5  ;;  %v5013_v6 = vcombine.high %v6747_v48, %v6747_v48  ;;  %v5014_v26 = vcombine.low %v1988_v2, %v1988_v2 }
  0xdf   : > { %v2874_v33 = vrot.slane %v2872_v50, 4  ;;  %v2877_v1 = vrot.slane %v2875_v12, 5  ;;  %v2883_v41 = vrot.slane %v2881_v24, 5  ;;  %v5015_v53 = vcombine.high %v1988_v2, %v1988_v2  ;;  %v5888_v12 = vld [vmem:[%s7754_s1 + $0x18] sm:$0xff]  }
  0xe0   : > { %v2864_v10 = vor.u32 %v2863_v20, %v2860_v57  ;;  %v5024_v43 = vrot.slane %v5012_v22, 9  ;;  %v2049_v42 = vrot.slane %v5013_v6, 5  ;;  %v5025_v61 = vrot.slane %v5014_v26, 9  ;;  %v5889_v6 = vld [vmem:[%s7754_s1 + $0xe0] sm:$0xff]  }
  0xe1   : > { %v2878_v11 = vor.u32 %v2877_v1, %v2874_v33  ;;  %v2053_v47 = vrot.slane %v5015_v53, 5  ;;  %v5412_v31 = vunpack.c.l.bf16 %v5428_v29  ;;  %v5413_v17 = vunpack.c.h.bf16 %v5428_v29  ;;  %v643_v33 = vld [vmem:[#allocation2 + $0x90] sm:$0x1f] }
  0xe2   : > { %2993 = vrot.lane.b32.xlu0 %v6715_v36, %s6051_s16  ;;  %2520 = vrot.lane.b32.xlu1 %v5752_v39, %s6050_s14  ;;  %v2865_v44 = vrot.slane %v2864_v10, 4  ;;  %v2050_v58 = vsel %vm6228_vm5, %v5024_v43, %v2049_v42  ;;  %v529_v59 = vadd.f32 %v6622_v55, %v6703_v23  ;;  %v5056_v48 = vcombine.low %v2193_v63, %v2193_v63  ;;  %v2722_v39 = vld [vmem:[#allocation2 + $0x70] sm:$0x1e]  ;;  %v6880_v10 = vpop.permute.xlu0 %2095  ;;  %v5890_v43 = vld [vmem:[%s7754_s1 + $0xa0] sm:$0xff]  }
  0xe3   : > { %v2879_v22 = vrot.slane %v2878_v11, 4  ;;  %v2054_v52 = vsel %vm6228_vm5, %v5025_v61, %v2053_v47  ;;  %v683_v40 = vmul.f32 %v5412_v31, %v6648_v62  ;;  %v684_v56 = vmul.f32 %v5413_v17, %v6648_v62  ;;  %v5872_v62 = vld [vmem:[%s7754_s1 + $0x10] sm:$0xff]   ;;  %v5896_v31 = vld [vmem:[%s7754_s1 + $0x60] sm:$0xff]   ;;  %v802_v17 = vld [vmem:[#allocation2 + $0xb8] sm:$0x1f] }
  0xe4   : > { %v2870_v36 = vsel %vm6419_vm12, %v2865_v44, %v2869_v21  ;;  %v537_v5 = vmax.f32 %v529_v59, 0.0  ;;  %v5057_v28 = vcombine.high %v2193_v63, %v2193_v63  ;;  %v2320_v34 = vshrl.u32 %v5056_v48, 16  ;;  %5436 = vmatpush3.bf16.msra.mxu0 %v5872_v62  ;;  %v2723_v21 = vld [vmem:[#allocation2 + $0x78] sm:$0x1e] }
  0xe5   : > { %v2884_v55 = vsel %vm6419_vm12, %v2879_v22, %v2883_v41  ;;  %v698_v23 = vadd.f32 %v6653_v46, %v683_v40  ;;  %v699_v14 = vadd.f32 %v6653_v46, %v684_v56  ;;  %v5042_v60 = vcombine.low %v2050_v58, %v2054_v52  ;;  %v5877_v46 = vld [vmem:[%s7754_s1 + $0xd8] sm:$0xff]   ;;  %5437 = vmatprep.subr.bf16.mxu0 %v5887_v8  ;;  %v1829_v22 = vld [vmem:[#allocation2 + $0x80] sm:$0x1f]  ;;  %v6889_v52 = vpop.permute.xlu1 %1670 }
  0xe6   : > { %2119 = vrot.lane.b32.xlu0 %v5038_v45, %s6052_s17  ;;  %3485 = vrot.lane.b32.xlu1 %v5248_v32, %s6050_s14  ;;  %v5168_v37 = vcombine.low %v2870_v36, %v2884_v55  ;;  %v548_v16 = vsel %vm540_vm4, %v537_v5, 0.0  ;;  %v2323_v51 = vshll.u32 %v5056_v48, 16  ;;  %v2322_v19 = vrot.slane %v2320_v34, 4  ;;  %v5897_v40 = vld [vmem:[%s7754_s1 + $0x20] sm:$0xff]   ;;  %v5900_v55 = vld [vmem:[%s7754_s1 + $0xe8] sm:$0xff]  }
  0xe7   : > { %v706_v49 = vmax.f32 %v698_v23, 0.0  ;;  %v707_v0 = vmax.f32 %v699_v14, 0.0  ;;  %v556_v45 = vpack.c.bf16 %v548_v16, %v548_v16  ;;  %v6859_v2 = vshll.u32 %v5057_v28, 16  ;;  %5477 = vmatprep.subr.bf16.mxu1 %v5877_v46  ;;  %v805_v23 = vld [vmem:[#allocation2 + $0xc0] sm:$0x1f] }
  0xe8   : > { %v2325_v57 = vrot.slane %v2323_v51, 5  ;;  %v5072_v9 = vcombine.low %v2353_v18, %v2353_v18  ;;  %v5073_v7 = vcombine.high %v2353_v18, %v2353_v18  ;;  %5478 = vmatpush3.bf16.msra.mxu1 %v5878_v3  ;;  %v5120_v41 = vcombine.low %v2722_v39, %v2722_v39  ;;  %5438 = vmatpush3.bf16.msra.mxu0 %v5888_v12 }
  0xe9   : > { %v717_v30 = vsel %vm714_vm13, %v706_v49, 0.0  ;;  %v718_v38 = vsel %vm714_vm13, %v707_v0, 0.0  ;;  %v607_v32 = vshrl.u32 %v556_v45, 16  ;;  %v610_v50 = vshll.u32 %v556_v45, 16  ;;  %5479 = vmatprep.subr.bf16.mxu1 %v5889_v6  ;;  %5439 = vmatprep.subr.bf16.mxu0 %v5896_v31  ;;  %v6909_v45 = vpop.permute.xlu0 %1672  ;;  %v5910_v6 = vld [vmem:[%s7754_s1 + $0x68] sm:$0xff]  }
  0xea   : > { %3021 = vrot.lane.b32.xlu0 %v5761_v4, %s6052_s17  ;;  %3041 = vrot.lane.b32.xlu1 %v5168_v37, %s6050_s14  ;;  %v725_v24 = vpack.c.bf16 %v717_v30, %v717_v30  ;;  %v726_v29 = vpack.c.bf16 %v718_v38, %v718_v38  ;;  %v2326_v63 = vor.u32 %v2325_v57, %v2322_v19  ;;  %v6873_v20 = vrot.slane %v5072_v9, 9  ;;  %v5901_v4 = vld [vmem:[%s7754_s1 + $0xa8] sm:$0xff]  }
  0xeb   : > { %v609_v26 = vrot.slane %v607_v32, 7  ;;  %v6878_v1 = vrot.slane %v5073_v7, 5  ;;  %v5121_v53 = vcombine.high %v2722_v39, %v2722_v39  ;;  %v2331_v59 = vrot.slane %v6859_v2, 5  ;;  %v1734_v7 = vld [vmem:[#allocation2 + $0x10] sm:$0x1e] }
  0xec   : > { %v746_v42 = vshrl.u32 %v725_v24, 16  ;;  %v749_v61 = vshll.u32 %v725_v24, 16  ;;  %v753_v11 = vshrl.u32 %v726_v29, 16  ;;  %v756_v47 = vshll.u32 %v726_v29, 16  ;;  %5480 = vmatpush3.bf16.msra.mxu1 %v5890_v43  ;;  %5440 = vmatpush3.bf16.msra.mxu0 %v5897_v40  ;;  %v6921_v32 = vld [vmem:[#allocation2 + $0x18] sm:$0x1e] }
  0xed   : > { %v612_v44 = vor.u32 %v610_v50, %v609_v26  ;;  %v2327_v58 = vrot.slane %v2326_v63, 4  ;;  %v5122_v48 = vcombine.low %v2723_v21, %v2723_v21  ;;  %v5123_v5 = vcombine.high %v2723_v21, %v2723_v21  ;;  %5481 = vmatprep.subr.bf16.mxu1 %v5900_v55  ;;  %v6923_v50 = vpop.permute.xlu1 %1162  ;;  %v6929_v21 = vld [vmem:[#allocation2 + $0xb0] sm:$0x1f]  ;;  %v6936_v43 = vld [vmem:[#allocation2 + $0x80] sm:$0x1e]  ;;  %5441 = vmatprep.subr.bf16.mxu0 %v5910_v6 }
  0xee   : > { %2139 = vrot.lane.b32.xlu0 %v5042_v60, %s6050_s14  ;;  %v748_v56 = vrot.slane %v746_v42, 7  ;;  %v755_v36 = vrot.slane %v753_v11, 7  ;;  %v5134_v28 = vrot.slane %v5120_v41, 9  ;;  %v2422_v34 = vsel %vm6228_vm5, %v6873_v20, %v6878_v1  ;;  %v5911_v42 = vld [vmem:[%s7754_s1 + $0x28] sm:$0xff]  }
  0xef   : > { %v644_v14 = vsel %vm6287_vm9, %v612_v44, %v643_v33  ;;  %v2778_v18 = vrot.slane %v5121_v53, 5  ;;  %v5135_v62 = vrot.slane %v5122_v48, 9  ;;  %v2782_v16 = vrot.slane %v5123_v5, 5  ;;  %v5913_v44 = vld [vmem:[%s7754_s1 + $0xf0] sm:$0xff]  }
  0xf0   : > { %v751_v37 = vor.u32 %v749_v61, %v748_v56  ;;  %v758_v60 = vor.u32 %v756_v47, %v755_v36  ;;  %645 = vst [vmem:[#allocation2 + $0x90] sm:$0x1f] %v644_v14  ;;  %v5000_v51 = vcombine.low %v1829_v22, %v1829_v22  ;;  %v5001_v3 = vcombine.high %v1829_v22, %v1829_v22  ;;  %v6959_v36 = vpop.permute.xlu0 %1166 }
  0xf1   : > { %v2779_v46 = vsel %vm6228_vm5, %v5134_v28, %v2778_v18  ;;  %v5002_v49 = vcombine.low %v1830_v15, %v1830_v15  ;;  %v5003_v0 = vcombine.high %v1830_v15, %v1830_v15  ;;  %5482 = vmatpush3.bf16.msra.mxu1 %v5901_v4  ;;  %v2783_v2 = vsel %vm6228_vm5, %v5135_v62, %v2782_v16 }
  0xf2   : > { %v803_v19 = vsel %vm6287_vm9, %v751_v37, %v802_v17  ;;  %v806_v57 = vsel %vm6287_vm9, %v758_v60, %v805_v23  ;;  %v1956_v9 = vshrl.u32 %v5000_v51, 16  ;;  %v6919_v39 = vsel %vm6419_vm12, %v2327_v58, %v2331_v59  ;;  %v6946_v17 = vld [vmem:[#allocation2 + $0x88] sm:$0x1e]  ;;  %7768 = vst [vmem:[#allocation4_spill] sm:$0xff] %v6959_v36  ;;  %5442 = vmatpush3.bf16.msra.mxu0 %v5911_v42  ;;  %v5914_v23 = vld [vmem:[%s7754_s1 + $0xb0] sm:$0xff]   ;;  %v6970_v37 = vpop.permute.xlu1 %1164 }
  0xf3   : > { %804 = vst [vmem:[#allocation2 + $0xb8] sm:$0x1f] %v803_v19  ;;  %807 = vst [vmem:[#allocation2 + $0xc0] sm:$0x1f] %v806_v57  ;;  %v1959_v8 = vshll.u32 %v5000_v51, 16  ;;  %v1965_v30 = vshll.u32 %v5001_v3, 16  ;;  %v6925_v12 = vcombine.low %v2779_v46, %v2783_v2  ;;  %v4964_v53 = vcombine.low %v1734_v7, %v1734_v7  ;;  %5483 = vmatprep.subr.bf16.mxu1 %v5913_v44 }
  0xf4   : > { %v1970_v38 = vshrl.u32 %v5002_v49, 16  ;;  %v1958_v24 = vrot.slane %v1956_v9, 4  ;;  %v1973_v29 = vshll.u32 %v5002_v49, 16  ;;  %v6927_v63 = vshll.u32 %v5003_v0, 16  ;;  %7769 = vst [vmem:[#allocation5_spill] sm:$0xff] %v6970_v37  ;;  %v5923_v60 = vld [vmem:[%s7754_s1 + $0x70] sm:$0xff]   ;;  %v6991_v42 = vpop.permute.xlu0 %1642 }
  0xf5   : > { %v1961_v26 = vrot.slane %v1959_v8, 5  ;;  %v1967_v33 = vrot.slane %v1965_v30, 5  ;;  %v4965_v47 = vcombine.high %v1734_v7, %v1734_v7  ;;  %v4966_v31 = vcombine.low %v6921_v32, %v6921_v32  ;;  %5484 = vmatpush3.bf16.msra.mxu1 %v5914_v23  ;;  %5443 = vmatprep.subr.bf16.mxu0 %v5923_v60 }
  0xf6   : > { %v6934_v41 = vrot.slane %v1970_v38, 4  ;;  %v6941_v61 = vrot.slane %v1973_v29, 5  ;;  %v1981_v11 = vrot.slane %v6927_v63, 5  ;;  %v4967_v22 = vcombine.high %v6921_v32, %v6921_v32  ;;  %v5924_v29 = vld [vmem:[%s7754_s1 + $0x30] sm:$0xff]   ;;  %v7003_v23 = vpop.permute.xlu1 %1674  ;;  %v5927_v63 = vld [vmem:[%s7754_s1 + $0xb8] sm:$0xff]  }
  0xf7   : > { %v2194_v58 = vld [vmem:[#allocation2 + $0x90] sm:$0x1f]  ;;  %v1962_v48 = vor.u32 %v1961_v26, %v1958_v24  ;;  %v6955_v40 = vcombine.low %v6929_v21, %v6929_v21  ;;  %v5145_v56 = vcombine.high %v6929_v21, %v6929_v21  ;;  %v6966_v62 = vrot.slane %v4964_v53, 9  ;;  %5444 = vmatpush3.bf16.msra.mxu0 %v5924_v29 }
  0xf8   : > { %v2354_v59 = vld [vmem:[#allocation2 + $0x90] sm:$0x1e]  ;;  %v5058_v5 = vcombine.low %v2194_v58, %v2194_v58  ;;  %v5059_v28 = vcombine.high %v2194_v58, %v2194_v58  ;;  %v1976_v18 = vor.u32 %v6941_v61, %v6934_v41  ;;  %v6968_v4 = vrot.slane %v4965_v47, 5  ;;  %v5926_v61 = vld [vmem:[%s7754_s1 + $0xf8] sm:$0xff]  }
  0xf9   : > { %v5074_v15 = vcombine.low %v2354_v59, %v2354_v59  ;;  %v5075_v55 = vcombine.high %v2354_v59, %v2354_v59  ;;  %v1963_v14 = vrot.slane %v1962_v48, 4  ;;  %v5016_v51 = vcombine.low %v6936_v43, %v6936_v43  ;;  %5485 = vmatprep.subr.bf16.mxu1 %v5926_v61 }
  0xfa   : > { %v5770_v16 = vld [vmem:[#allocation2 + $0xb8] ss:$8 sps:$4 sm:$0xff]   ;;  %v5017_v46 = vcombine.high %v6936_v43, %v6936_v43  ;;  %v5018_v3 = vcombine.low %v6946_v17, %v6946_v17  ;;  %v5019_v49 = vcombine.high %v6946_v17, %v6946_v17  ;;  %v2334_v0 = vshrl.u32 %v5058_v5, 16  ;;  %5486 = vmatpush3.bf16.msra.mxu1 %v5927_v63 }
  0xfb   : > { %v2337_v19 = vshll.u32 %v5058_v5, 16  ;;  %v2343_v57 = vshll.u32 %v5059_v28, 16  ;;  %v5083_v2 = vrot.slane %v5074_v15, 9  ;;  %v3175_v9 = vld [vmem:[#allocation2 + $0xb8] sm:$0x1f]  ;;  %3447 = vrot.lane.b32.xlu1 %v5770_v16, %s6051_s16  ;;  %v2425_v7 = vrot.slane %v5075_v55, 5 }
  0xfc   : > { %v3176_v8 = vld [vmem:[#allocation2 + $0xc0] sm:$0x1f]  ;;  %v5200_v30 = vcombine.low %v3175_v9, %v3175_v9  ;;  %v5201_v38 = vcombine.high %v3175_v9, %v3175_v9  ;;  %v6986_v24 = vsel %vm6419_vm12, %v1963_v14, %v1967_v33  ;;  %v2336_v6 = vrot.slane %v2334_v0, 4  ;;  %v3335_v15 = vld [vmem:[#allocation2 + $0xb8] sm:$0x1e] }
  0xfd   : > { %v2339_v26 = vrot.slane %v2337_v19, 5  ;;  %v2345_v41 = vrot.slane %v2343_v57, 5  ;;  %v5202_v53 = vcombine.low %v3176_v8, %v3176_v8  ;;  %v2426_v47 = vsel %vm6228_vm5, %v5083_v2, %v2425_v7  ;;  %v3336_v55 = vld [vmem:[#allocation2 + $0xc0] sm:$0x1e]  ;;  %v3539_v17 = vld [vmem:[#allocation2 + $0xb8] sm:$0x1f] }
  0xfe   : > { %v5203_v44 = vcombine.high %v3176_v8, %v3176_v8  ;;  %v3250_v33 = vshrl.u32 %v5200_v30, 16  ;;  %v3253_v58 = vshll.u32 %v5200_v30, 16  ;;  %v5095_v48 = vcombine.low %v2422_v34, %v2426_v47 }
  0xff   : > { %v2340_v59 = vor.u32 %v2339_v26, %v2336_v6  ;;  %v3259_v5 = vshll.u32 %v5201_v38, 16  ;;  %v3264_v28 = vshrl.u32 %v5202_v53, 16  ;;  %v3267_v16 = vshll.u32 %v5202_v53, 16  ;;  %v2812_v6 = vld [vmem:[#allocation2 + $0xb8] sm:$0x1f]  ;;  %v7014_v26 = vpop.permute.xlu0 %1644 }
 0x100   : > { %v3252_v14 = vrot.slane %v3250_v33, 4  ;;  %v3255_v60 = vrot.slane %v3253_v58, 5  ;;  %v3273_v0 = vshll.u32 %v5203_v44, 16  ;;  %2494 = vrot.lane.b32.xlu1 %v5095_v48, %s6052_s17  ;;  %v1977_v9 = vrot.slane %v1976_v18, 4  ;;  %v5779_v48 = vld [vmem:[#allocation2 + $0x80] ss:$8 sps:$4 sm:$0xff]  }
 0x101   : > { %v2341_v19 = vrot.slane %v2340_v59, 4  ;;  %v3261_v57 = vrot.slane %v3259_v5, 5  ;;  %v3266_v2 = vrot.slane %v3264_v28, 4  ;;  %v3269_v1 = vrot.slane %v3267_v16, 5  ;;  %v7028_v59 = vpop.permute.xlu1 %2488 }
 0x102   : > { %v3256_v20 = vor.u32 %v3255_v60, %v3252_v14  ;;  %v3275_v34 = vrot.slane %v3273_v0, 5  ;;  %v5216_v7 = vcombine.low %v3335_v15, %v3335_v15  ;;  %v7012_v30 = vsel %vm6419_vm12, %v1977_v9, %v1981_v11  ;;  %v5928_v11 = vld [vmem:[%s7754_s1 + $0x78] sm:$0xff]  }
 0x103   : > { %v2346_v8 = vsel %vm6419_vm12, %v2341_v19, %v2345_v41  ;;  %v5217_v38 = vcombine.high %v3335_v15, %v3335_v15  ;;  %v5218_v29 = vcombine.low %v3336_v55, %v3336_v55  ;;  %v3270_v61 = vor.u32 %v3269_v1, %v3266_v2  ;;  %v5929_v41 = vld [vmem:[%s7754_s1 + $0x38] sm:$0xff]   ;;  %5445 = vmatprep.subr.bf16.mxu0 %v5928_v11 }
 0x104   : > { %v5091_v18 = vcombine.low %v6919_v39, %v2346_v8  ;;  %v3257_v53 = vrot.slane %v3256_v20, 4  ;;  %v5039_v47 = vcombine.low %v6986_v24, %v7012_v30  ;;  %v5219_v44 = vcombine.high %v3336_v55, %v3336_v55  ;;  %5446 = vmatpush3.bf16.msra.mxu0 %v5929_v41  ;;  %v7059_v20 = vpop.permute.xlu0 %1646  ;;  %v2724_v8 = vld [vmem:[#allocation2 + $0x80] sm:$0x1e]  ;;  %v2725_v41 = vld [vmem:[#allocation2 + $0x88] sm:$0x1e] }
 0x105   : > { %v5230_v33 = vrot.slane %v5216_v7, 9  ;;  %v3391_v39 = vrot.slane %v5217_v38, 5  ;;  %v5231_v58 = vrot.slane %v5218_v29, 9  ;;  %v3271_v28 = vrot.slane %v3270_v61, 4  ;;  %v5788_v38 = vld [vmem:[#allocation2 + $0x90] ss:$8 sps:$4 sm:$0xff]   ;;  %v7063_v21 = vpop.permute.xlu1 %2135 }
 0x106   : > { %2474 = vrot.lane.b32.xlu0 %v5091_v18, %s6051_s16  ;;  %v3262_v5 = vsel %vm6419_vm12, %v3257_v53, %v3261_v57  ;;  %v1785_v15 = vsel %vm6228_vm5, %v6966_v62, %v6968_v4  ;;  %v4981_v55 = vrot.slane %v4966_v31, 9  ;;  %v3395_v60 = vrot.slane %v5219_v44, 5  ;;  %v5936_v31 = vld [vmem:[%s7754_s1 + $0x140] sm:$0xff]  }
 0x107   : > { %v3392_v14 = vsel %vm6228_vm5, %v5230_v33, %v3391_v39  ;;  %v1788_v16 = vrot.slane %v4967_v22, 5  ;;  %v5146_v0 = vcombine.low %v2812_v6, %v2812_v6  ;;  %v3276_v19 = vsel %vm6419_vm12, %v3271_v28, %v3275_v34  ;;  %5511 = vmatprep.subr.bf16.mxu0 %v5936_v31  ;;  %v5797_v31 = vld [vmem:[#allocation2 + $0xb0] ss:$8 sps:$4 sm:$0xff]  }
 0x108   : > { %v5147_v57 = vcombine.high %v2812_v6, %v2812_v6  ;;  %v2886_v62 = vshrl.u32 %v6955_v40, 16  ;;  %v2889_v4 = vshll.u32 %v6955_v40, 16  ;;  %v5245_v2 = vcombine.low %v3262_v5, %v3276_v19 }
 0x109   : > { %v3396_v32 = vsel %vm6228_vm5, %v5231_v58, %v3395_v60  ;;  %v1789_v22 = vsel %vm6228_vm5, %v4981_v55, %v1788_v16  ;;  %v2895_v9 = vshll.u32 %v5145_v56, 16  ;;  %v2900_v6 = vshrl.u32 %v5146_v0, 16 }
 0x10a   : > { %2101 = vrot.lane.b32.xlu0 %v5779_v48, %s6051_s16  ;;  %v5249_v40 = vcombine.low %v3392_v14, %v3396_v32  ;;  %v5028_v1 = vcombine.low %v1785_v15, %v1789_v22  ;;  %v2888_v34 = vrot.slane %v2886_v62, 4  ;;  %v2891_v7 = vrot.slane %v2889_v4, 5  ;;  %3467 = vrot.lane.b32.xlu1 %v5245_v2, %s6052_s17  ;;  %v5429_v48 = vld [vmem:[%s6637_s8 + $0x10] sm:$0xff]   ;;  %v7087_v14 = vpop.permute.xlu0 %1138  ;;  %v7093_v4 = vpop.permute.xlu1 %1134  ;;  %v7102_v22 = vld [vmem:[%s7755_s2] ss:$0 sm:$0xff] }
 0x10b   : > { %v2897_v29 = vrot.slane %v2895_v9, 5  ;;  %v2903_v18 = vshll.u32 %v5146_v0, 16  ;;  %v2909_v53 = vshll.u32 %v5147_v57, 16  ;;  %v5026_v63 = vrot.slane %v5016_v51, 9  ;;  %7770 = vst [vmem:[#allocation6_spill] sm:$0xff] %v7087_v14 }
 0x10c   : > { %v7067_v56 = vsel %vm1170_vm14, %v5028_v1, %v6880_v10  ;;  %v2892_v61 = vor.u32 %v2891_v7, %v2888_v34  ;;  %v2057_v11 = vrot.slane %v5017_v46, 5  ;;  %v2902_v44 = vrot.slane %v2900_v6, 4 }
 0x10d   : > { %v2905_v33 = vrot.slane %v2903_v18, 5  ;;  %v2911_v39 = vrot.slane %v2909_v53, 5  ;;  %v5027_v58 = vrot.slane %v5018_v3, 9  ;;  %v2061_v43 = vrot.slane %v5019_v49, 5  ;;  %v3538_v3 = vld [vmem:[#allocation2 + $0xb0] sm:$0x1f] }
 0x10e   : > { %2995 = vrot.lane.b32.xlu0 %v6925_v12, %s6051_s16  ;;  %v2893_v10 = vrot.slane %v2892_v61, 4  ;;  %v2058_v51 = vsel %vm6228_vm5, %v5026_v63, %v2057_v11  ;;  %v5124_v46 = vcombine.low %v2724_v8, %v2724_v8  ;;  %2522 = vrot.lane.b32.xlu1 %v5788_v38, %s6050_s14  ;;  %v5125_v28 = vcombine.high %v2724_v8, %v2724_v8  ;;  %v7119_v63 = vpop.permute.xlu0 %1648 }
 0x10f   : > { %v2906_v5 = vor.u32 %v2905_v33, %v2902_v44  ;;  %v5126_v15 = vcombine.low %v2725_v41, %v2725_v41  ;;  %v5127_v55 = vcombine.high %v2725_v41, %v2725_v41  ;;  %v2062_v60 = vsel %vm6228_vm5, %v5027_v58, %v2061_v43  ;;  %v1209_v43 = vld [vmem:[#allocation2 + $0x8] sm:$0x1f] }
 0x110   : > { %v2898_v12 = vsel %vm6419_vm12, %v2893_v10, %v2897_v29  ;;  %v5136_v16 = vrot.slane %v5124_v46, 9  ;;  %v5416_v0 = vunpack.c.l.bf16 %v5429_v48  ;;  %v5043_v19 = vcombine.low %v2058_v51, %v2062_v60  ;;  %v7116_v29 = vld [vmem:[%s7756_s3] ss:$0 sm:$0xff]  ;;  %v7124_v46 = vpop.permute.xlu1 %1136 }
 0x111   : > { %v2907_v49 = vrot.slane %v2906_v5, 4  ;;  %v2786_v57 = vrot.slane %v5125_v28, 5  ;;  %v5137_v62 = vrot.slane %v5126_v15, 9  ;;  %v2790_v2 = vrot.slane %v5127_v55, 5 }
 0x112   : > { %2121 = vrot.lane.b32.xlu0 %v5039_v47, %s6052_s17  ;;  %v5417_v32 = vunpack.c.h.bf16 %v5429_v48  ;;  %v685_v9 = vmul.f32 %v7102_v22, %v5416_v0  ;;  %v5252_v1 = vcombine.low %v3538_v3, %v3538_v3  ;;  %3487 = vrot.lane.b32.xlu1 %v5249_v40, %s6050_s14  ;;  %v5253_v30 = vcombine.high %v3538_v3, %v3538_v3 }
 0x113   : > { %v2912_v34 = vsel %vm6419_vm12, %v2907_v49, %v2911_v39  ;;  %v2787_v24 = vsel %vm6228_vm5, %v5136_v16, %v2786_v57  ;;  %v5254_v47 = vcombine.low %v3539_v17, %v3539_v17  ;;  %v2791_v8 = vsel %vm6228_vm5, %v5137_v62, %v2790_v2  ;;  %v1210_v39 = vld [vmem:[#allocation2 + $0x10] sm:$0x1f] }
 0x114   : > { %v5169_v7 = vcombine.low %v2898_v12, %v2912_v34  ;;  %v686_v38 = vmul.f32 %v7102_v22, %v5417_v32  ;;  %v700_v40 = vadd.f32 %v7116_v29, %v685_v9  ;;  %v5162_v6 = vcombine.low %v2787_v24, %v2791_v8  ;;  %v7132_v9 = vpop.permute.xlu0 %2115 }
 0x115   : > { %v5255_v18 = vcombine.high %v3539_v17, %v3539_v17  ;;  %v3587_v53 = vshrl.u32 %v5252_v1, 16  ;;  %v3590_v61 = vshll.u32 %v5252_v1, 16  ;;  %v3596_v44 = vshll.u32 %v5253_v30, 16 }
 0x116   : > { %3023 = vrot.lane.b32.xlu0 %v5797_v31, %s6052_s17  ;;  %v701_v11 = vadd.f32 %v7116_v29, %v686_v38  ;;  %v708_v41 = vmax.f32 %v700_v40, 0.0  ;;  %v3601_v33 = vshrl.u32 %v5254_v47, 16  ;;  %3043 = vrot.lane.b32.xlu1 %v5169_v7, %s6050_s14  ;;  %v3604_v10 = vshll.u32 %v5254_v47, 16  ;;  %v1211_v38 = vld [vmem:[#allocation2 + $0x18] sm:$0x1f]  ;;  %v7136_v40 = vpop.permute.xlu1 %2468 }
 0x117   : > { %v3589_v58 = vrot.slane %v3587_v53, 4  ;;  %v3592_v48 = vrot.slane %v3590_v61, 5  ;;  %v3610_v51 = vshll.u32 %v5255_v18, 16  ;;  %v3598_v15 = vrot.slane %v3596_v44, 5 }
 0x118   : > { %v709_v5 = vmax.f32 %v701_v11, 0.0  ;;  %v719_v28 = vsel %vm714_vm13, %v708_v41, 0.0  ;;  %v3603_v55 = vrot.slane %v3601_v33, 4  ;;  %v3606_v60 = vrot.slane %v3604_v10, 5 }
 0x119   : > { %v727_v3 = vpack.c.bf16 %v719_v28, %v719_v28  ;;  %v3593_v12 = vor.u32 %v3592_v48, %v3589_v58  ;;  %v3612_v16 = vrot.slane %v3610_v51, 5  ;;  %v4894_v17 = vcombine.low %v1210_v39, %v1210_v39  ;;  %v811_v58 = vld [vmem:[#allocation2 + $0xd0] sm:$0x1f] }
 0x11a   : > { %2141 = vrot.lane.b32.xlu0 %v5043_v19, %s6050_s14  ;;  %v720_v0 = vsel %vm714_vm13, %v709_v5, 0.0  ;;  %v4895_v49 = vcombine.high %v1210_v39, %v1210_v39  ;;  %v4892_v57 = vcombine.low %v1209_v43, %v1209_v43  ;;  %2997 = vrot.lane.b32.xlu1 %v5162_v6, %s6051_s16  ;;  %v3607_v1 = vor.u32 %v3606_v60, %v3603_v55  ;;  %v808_v6 = vld [vmem:[#allocation2 + $0xc8] sm:$0x1f]  ;;  %v1212_v5 = vld [vmem:[#allocation2 + $0x20] sm:$0x1f]  ;;  %v7142_v60 = vpop.permute.xlu0 %1114 }
 0x11b   : > { %v728_v62 = vpack.c.bf16 %v720_v0, %v720_v0  ;;  %v760_v31 = vshrl.u32 %v727_v3, 16  ;;  %v763_v2 = vshll.u32 %v727_v3, 16  ;;  %v3594_v32 = vrot.slane %v3593_v12, 4 }
 0x11c   : > { %v1272_v34 = vshrl.u32 %v4894_v17, 16  ;;  %v1275_v24 = vshll.u32 %v4894_v17, 16  ;;  %v1281_v30 = vshll.u32 %v4895_v49, 16  ;;  %v3608_v18 = vrot.slane %v3607_v1, 4 }
 0x11d   : > { %v762_v47 = vrot.slane %v760_v31, 7  ;;  %v767_v19 = vshrl.u32 %v728_v62, 16  ;;  %v770_v7 = vshll.u32 %v728_v62, 16  ;;  %v3599_v8 = vsel %vm6419_vm12, %v3594_v32, %v3598_v15  ;;  %v7149_v32 = vpop.permute.xlu1 %2470 }
 0x11e   : > { %v1274_v53 = vrot.slane %v1272_v34, 4  ;;  %v1277_v61 = vrot.slane %v1275_v24, 5  ;;  %v1283_v11 = vrot.slane %v1281_v30, 5  ;;  %v4893_v33 = vcombine.high %v1209_v43, %v1209_v43 }
 0x11f   : > { %v765_v41 = vor.u32 %v763_v2, %v762_v47  ;;  %v769_v44 = vrot.slane %v767_v19, 7  ;;  %v1258_v39 = vshrl.u32 %v4892_v57, 16  ;;  %v3613_v48 = vsel %vm6419_vm12, %v3608_v18, %v3612_v16  ;;  %v7147_v2 = vld [vmem:[#allocation2 + $0xb0] sm:$0x1e] }
 0x120   : > { %v1278_v10 = vor.u32 %v1277_v61, %v1274_v53  ;;  %v1261_v51 = vshll.u32 %v4892_v57, 16  ;;  %v4896_v28 = vcombine.low %v1211_v38, %v1211_v38  ;;  %v5296_v3 = vcombine.low %v3599_v8, %v3613_v48 }
 0x121   : > { %v772_v15 = vor.u32 %v770_v7, %v769_v44  ;;  %v809_v55 = vsel %vm6287_vm9, %v765_v41, %v808_v6  ;;  %v1260_v12 = vrot.slane %v1258_v39, 4  ;;  %v1267_v17 = vshll.u32 %v4893_v33, 16  ;;  %v7163_v41 = vld [vmem:[#allocation2 + $0xc0] sm:$0x1f] }
 0x122   : > { %810 = vst [vmem:[#allocation2 + $0xc8] sm:$0x1f] %v809_v55  ;;  %v1279_v0 = vrot.slane %v1278_v10, 4  ;;  %v1263_v43 = vrot.slane %v1261_v51, 5  ;;  %v4897_v49 = vcombine.high %v1211_v38, %v1211_v38  ;;  %3810 = vrot.lane.b32.xlu1 %v5296_v3, %s6051_s16  ;;  %v4898_v57 = vcombine.low %v1212_v5, %v1212_v5  ;;  %v7157_v38 = vld [vmem:[#allocation2 + $0xb8] sm:$0x1e] }
 0x123   : > { %v812_v16 = vsel %vm6287_vm9, %v772_v15, %v811_v58  ;;  %v4899_v62 = vcombine.high %v1212_v5, %v1212_v5  ;;  %v1286_v31 = vshrl.u32 %v4896_v28, 16  ;;  %v1269_v24 = vrot.slane %v1267_v17, 5  ;;  %v7168_v58 = vpop.permute.xlu0 %1690 }
 0x124   : > { %813 = vst [vmem:[#allocation2 + $0xd0] sm:$0x1f] %v812_v16  ;;  %v1284_v1 = vsel %vm6419_vm12, %v1279_v0, %v1283_v11  ;;  %v1264_v34 = vor.u32 %v1263_v43, %v1260_v12  ;;  %v1289_v30 = vshll.u32 %v4896_v28, 16  ;;  %v7155_v19 = vshll.u32 %v4897_v49, 16  ;;  %v7182_v43 = vpop.permute.xlu1 %1116 }
 0x125   : > { %v7153_v47 = vrot.slane %v1286_v31, 4  ;;  %v1300_v7 = vshrl.u32 %v4898_v57, 16  ;;  %v1303_v8 = vshll.u32 %v4898_v57, 16  ;;  %v7159_v53 = vshll.u32 %v4899_v62, 16 }
 0x126   : > { %v1265_v6 = vrot.slane %v1264_v34, 4  ;;  %v1291_v18 = vrot.slane %v1289_v30, 5  ;;  %v5268_v61 = vcombine.low %v7147_v2, %v7147_v2  ;;  %v5269_v39 = vcombine.high %v7147_v2, %v7147_v2 }
 0x127   : > { %v1302_v44 = vrot.slane %v1300_v7, 4  ;;  %v1305_v33 = vrot.slane %v1303_v8, 5  ;;  %v1311_v51 = vrot.slane %v7159_v53, 5  ;;  %v5270_v5 = vcombine.low %v7157_v38, %v7157_v38 }
 0x128   : > { %v1270_v48 = vsel %vm6419_vm12, %v1265_v6, %v1269_v24  ;;  %v1292_v10 = vor.u32 %v1291_v18, %v7153_v47  ;;  %v5271_v12 = vcombine.high %v7157_v38, %v7157_v38  ;;  %v7180_v0 = vcombine.low %v7163_v41, %v7163_v41 }
 0x129   : > { %v3177_v28 = vld [vmem:[#allocation2 + $0xc8] sm:$0x1f]  ;;  %v4948_v15 = vcombine.low %v1270_v48, %v1284_v1  ;;  %v1306_v3 = vor.u32 %v1305_v33, %v1302_v44  ;;  %v5257_v34 = vcombine.high %v7163_v41, %v7163_v41  ;;  %v7199_v33 = vpop.permute.xlu0 %1692 }
 0x12a   : > { %v3337_v55 = vld [vmem:[#allocation2 + $0xc8] sm:$0x1e]  ;;  %v5204_v17 = vcombine.low %v3177_v28, %v3177_v28  ;;  %v5205_v49 = vcombine.high %v3177_v28, %v3177_v28 }
 0x12b   : > { %v5220_v16 = vcombine.low %v3337_v55, %v3337_v55  ;;  %v5221_v57 = vcombine.high %v3337_v55, %v3337_v55  ;;  %v7184_v62 = vld [vmem:[#allocation2 + $0xc8] sm:$0x1f]  ;;  %v3178_v2 = vld [vmem:[#allocation2 + $0xd0] sm:$0x1f]  ;;  %v7188_v1 = vsel %vm1170_vm14, %v4948_v15, %v6991_v42 }
 0x12c   : > { %v5814_v31 = vld [vmem:[#allocation2 + $0xc8] ss:$8 sps:$4 sm:$0xff]   ;;  %v7194_v24 = vcombine.low %v7184_v62, %v7184_v62  ;;  %v5206_v47 = vcombine.low %v3178_v2, %v3178_v2  ;;  %v5207_v7 = vcombine.high %v3178_v2, %v3178_v2  ;;  %v3278_v8 = vshrl.u32 %v5204_v17, 16  ;;  %v7201_v2 = vpop.permute.xlu1 %1694 }
 0x12d   : > { %v3281_v38 = vshll.u32 %v5204_v17, 16  ;;  %v3338_v6 = vld [vmem:[#allocation2 + $0xd0] sm:$0x1e]  ;;  %3449 = vrot.lane.b32.xlu0 %v5814_v31, %s6051_s16  ;;  %v3287_v18 = vshll.u32 %v5205_v49, 16  ;;  %v5232_v44 = vrot.slane %v5220_v16, 9  ;;  %v3399_v30 = vrot.slane %v5221_v57, 5 }
 0x12e   : > { %v5222_v42 = vcombine.low %v3338_v6, %v3338_v6  ;;  %v5223_v53 = vcombine.high %v3338_v6, %v3338_v6  ;;  %v3280_v41 = vrot.slane %v3278_v8, 4  ;;  %v3292_v28 = vshrl.u32 %v5206_v47, 16  ;;  %v7206_v49 = vld [vmem:[%s7754_s1 + $0x180] sm:$0xff]  }
 0x12f   : > { %v3283_v48 = vrot.slane %v3281_v38, 5  ;;  %v3295_v15 = vshll.u32 %v5206_v47, 16  ;;  %v3289_v55 = vrot.slane %v3287_v18, 5  ;;  %v3301_v11 = vshll.u32 %v5207_v7, 16  ;;  %5561 = vmatprep.subr.bf16.mxu1 %v7206_v49 }
 0x130   : > { %v5233_v36 = vrot.slane %v5222_v42, 9  ;;  %v3294_v14 = vrot.slane %v3292_v28, 4  ;;  %v3403_v31 = vrot.slane %v5223_v53, 5  ;;  %v3400_v8 = vsel %vm6228_vm5, %v5232_v44, %v3399_v30 }
 0x131   : > { %v3284_v17 = vor.u32 %v3283_v48, %v3280_v41  ;;  %v3297_v37 = vrot.slane %v3295_v15, 5  ;;  %v3303_v16 = vrot.slane %v3301_v11, 5  ;;  %v1293_v47 = vrot.slane %v1292_v10, 4  ;;  %v7219_v10 = vpop.permute.xlu0 %1118 }
 0x132   : > { %v1307_v38 = vrot.slane %v1306_v3, 4  ;;  %v3404_v6 = vsel %vm6228_vm5, %v5233_v36, %v3403_v31  ;;  %v5284_v18 = vrot.slane %v5268_v61, 9  ;;  %v7771_v53 = vrot.slane %v7155_v19, 5 }
 0x133   : > { %v3285_v7 = vrot.slane %v3284_v17, 4  ;;  %v3298_v57 = vor.u32 %v3297_v37, %v3294_v14  ;;  %v5250_v42 = vcombine.low %v3400_v8, %v3404_v6  ;;  %v3748_v30 = vrot.slane %v5269_v39, 5 }
 0x134   : > { %v1298_v41 = vsel %vm6419_vm12, %v1293_v47, %v7771_v53  ;;  %v1312_v11 = vsel %vm6419_vm12, %v1307_v38, %v1311_v51  ;;  %v5285_v61 = vrot.slane %v5270_v5, 9  ;;  %v3752_v3 = vrot.slane %v5271_v12, 5  ;;  %v7228_v51 = vpop.permute.xlu1 %1676  ;;  %v3700_v47 = vld [vmem:[#allocation2 + $0xc0] sm:$0x1e] }
 0x135   : > { %v3290_v37 = vsel %vm6419_vm12, %v3285_v7, %v3289_v55  ;;  %v3299_v14 = vrot.slane %v3298_v57, 4  ;;  %v4949_v36 = vcombine.low %v1298_v41, %v1312_v11  ;;  %3489 = vrot.lane.b32.xlu1 %v5250_v42, %s6050_s14  ;;  %v3749_v19 = vsel %vm6228_vm5, %v5284_v18, %v3748_v30  ;;  %v1213_v55 = vld [vmem:[#allocation2 + $0x28] sm:$0x1f]  ;;  %v7244_v41 = vpop.permute.xlu0 %1120 }
 0x136   : > { %v3615_v44 = vshrl.u32 %v7180_v0, 16  ;;  %v3618_v48 = vshll.u32 %v7180_v0, 16  ;;  %v3624_v5 = vshll.u32 %v5257_v34, 16  ;;  %v3629_v15 = vshrl.u32 %v7194_v24, 16  ;;  %v1214_v0 = vld [vmem:[#allocation2 + $0x30] sm:$0x1f] }
 0x137   : > { %v3304_v39 = vsel %vm6419_vm12, %v3299_v14, %v3303_v16  ;;  %v7234_v28 = vsel %vm1170_vm14, %v4949_v36, %v7014_v26  ;;  %v3753_v12 = vsel %vm6228_vm5, %v5285_v61, %v3752_v3  ;;  %v3632_v16 = vshll.u32 %v7194_v24, 16  ;;  %v5831_v26 = vld [vmem:[#allocation2 + $0xc0] ss:$8 sps:$4 sm:$0xff]  }
 0x138   : > { %v5246_v17 = vcombine.low %v3290_v37, %v3304_v39  ;;  %v3617_v31 = vrot.slane %v3615_v44, 4  ;;  %v3620_v8 = vrot.slane %v3618_v48, 5  ;;  %v5300_v38 = vcombine.low %v3749_v19, %v3753_v12  ;;  %v7247_v3 = vpop.permute.xlu1 %2490 }
 0x139   : > { %v3626_v7 = vrot.slane %v3624_v5, 5  ;;  %v3631_v57 = vrot.slane %v3629_v15, 4  ;;  %v7772_v6 = vcombine.high %v7184_v62, %v7184_v62  ;;  %v4900_v42 = vcombine.low %v1213_v55, %v1213_v55  ;;  %v3701_v5 = vld [vmem:[#allocation2 + $0xc8] sm:$0x1e] }
 0x13a   : > { %3469 = vrot.lane.b32.xlu0 %v5246_v17, %s6052_s17  ;;  %v3621_v34 = vor.u32 %v3620_v8, %v3617_v31  ;;  %v4901_v53 = vcombine.high %v1213_v55, %v1213_v55  ;;  %3830 = vrot.lane.b32.xlu1 %v5300_v38, %s6052_s17  ;;  %v3634_v11 = vrot.slane %v3632_v16, 5  ;;  %v4902_v30 = vcombine.low %v1214_v0, %v1214_v0 }
 0x13b   : > { %v3638_v18 = vshll.u32 %v7772_v6, 16  ;;  %v4903_v37 = vcombine.high %v1214_v0, %v1214_v0  ;;  %v5272_v14 = vcombine.low %v3700_v47, %v3700_v47  ;;  %v1314_v61 = vshrl.u32 %v4900_v42, 16 }
 0x13c   : > { %v3622_v36 = vrot.slane %v3621_v34, 4  ;;  %v1317_v19 = vshll.u32 %v4900_v42, 16  ;;  %v3635_v44 = vor.u32 %v3634_v11, %v3631_v57  ;;  %v1323_v48 = vshll.u32 %v4901_v53, 16  ;;  %v7252_v42 = vpop.permute.xlu0 %2097 }
 0x13d   : > { %v3640_v24 = vrot.slane %v3638_v18, 5  ;;  %v1328_v62 = vshrl.u32 %v4902_v30, 16  ;;  %v1331_v39 = vshll.u32 %v4902_v30, 16  ;;  %v1316_v55 = vrot.slane %v1314_v61, 4  ;;  %v2813_v18 = vld [vmem:[#allocation2 + $0xc0] sm:$0x1f] }
 0x13e   : > { %3025 = vrot.lane.b32.xlu0 %v5831_v26, %s6052_s17  ;;  %v3627_v15 = vsel %vm6419_vm12, %v3622_v36, %v3626_v7  ;;  %v1319_v17 = vrot.slane %v1317_v19, 5  ;;  %v1337_v12 = vshll.u32 %v4903_v37, 16  ;;  %v3636_v31 = vrot.slane %v3635_v44, 4  ;;  %7773 = vst [vmem:[#allocation7_spill] sm:$0xff] %v7252_v42  ;;  %v2814_v30 = vld [vmem:[#allocation2 + $0xc8] sm:$0x1f]  ;;  %v7256_v44 = vpop.permute.xlu1 %1696 }
 0x13f   : > { %v1325_v8 = vrot.slane %v1323_v48, 5  ;;  %v1330_v0 = vrot.slane %v1328_v62, 4  ;;  %v1333_v38 = vrot.slane %v1331_v39, 5  ;;  %v5273_v6 = vcombine.high %v3700_v47, %v3700_v47 }
 0x140   : > { %v1320_v16 = vor.u32 %v1319_v17, %v1316_v55  ;;  %v1339_v34 = vrot.slane %v1337_v12, 5  ;;  %v5274_v57 = vcombine.low %v3701_v5, %v3701_v5  ;;  %v3641_v26 = vsel %vm6419_vm12, %v3636_v31, %v3640_v24 }
 0x141   : > { %v1334_v53 = vor.u32 %v1333_v38, %v1330_v0  ;;  %v5275_v11 = vcombine.high %v3701_v5, %v3701_v5  ;;  %v5286_v7 = vrot.slane %v5272_v14, 9  ;;  %v5297_v36 = vcombine.low %v3627_v15, %v3641_v26  ;;  %v2726_v0 = vld [vmem:[#allocation2 + $0x90] sm:$0x1e] }
 0x142   : > { %v1321_v37 = vrot.slane %v1320_v16, 4  ;;  %v3756_v61 = vrot.slane %v5273_v6, 5  ;;  %v5287_v19 = vrot.slane %v5274_v57, 9  ;;  %v5148_v47 = vcombine.low %v2813_v18, %v2813_v18 }
 0x143   : > { %v1335_v48 = vrot.slane %v1334_v53, 4  ;;  %v3760_v62 = vrot.slane %v5275_v11, 5  ;;  %v5149_v39 = vcombine.high %v2813_v18, %v2813_v18  ;;  %3812 = vrot.lane.b32.xlu0 %v5297_v36, %s6051_s16  ;;  %v5150_v5 = vcombine.low %v2814_v30, %v2814_v30  ;;  %v5430_v18 = vld [vmem:[%s6637_s8 + $0x18] sm:$0xff]  }
 0x144   : > { %v1326_v24 = vsel %vm6419_vm12, %v1321_v37, %v1325_v8  ;;  %v3757_v14 = vsel %vm6228_vm5, %v5286_v7, %v3756_v61  ;;  %v5151_v15 = vcombine.high %v2814_v30, %v2814_v30  ;;  %v2914_v12 = vshrl.u32 %v5148_v47, 16  ;;  %v7268_v8 = vpop.permute.xlu0 %1140  ;;  %v2727_v30 = vld [vmem:[#allocation2 + $0x98] sm:$0x1e] }
 0x145   : > { %v1340_v55 = vsel %vm6419_vm12, %v1335_v48, %v1339_v34  ;;  %v3761_v17 = vsel %vm6228_vm5, %v5287_v19, %v3760_v62  ;;  %v2917_v31 = vshll.u32 %v5148_v47, 16  ;;  %v2923_v6 = vshll.u32 %v5149_v39, 16  ;;  %v7275_v19 = vpop.permute.xlu1 %2518 }
 0x146   : > { %v4950_v38 = vcombine.low %v1326_v24, %v1340_v55  ;;  %v5301_v16 = vcombine.low %v3757_v14, %v3761_v17  ;;  %v2928_v57 = vshrl.u32 %v5150_v5, 16  ;;  %v2916_v26 = vrot.slane %v2914_v12, 4  ;;  %7774 = vst [vmem:[#allocation8_spill] sm:$0xff] %v7275_v19  ;;  %v1215_v24 = vld [vmem:[#allocation2 + $0x38] sm:$0x1f] }
 0x147   : > { %v2919_v53 = vrot.slane %v2917_v31, 5  ;;  %v2931_v11 = vshll.u32 %v5150_v5, 16  ;;  %v2937_v7 = vshll.u32 %v5151_v15, 16  ;;  %v2925_v36 = vrot.slane %v2923_v6, 5 }
 0x148   : > { %v7272_v34 = vsel %vm1170_vm14, %v4950_v38, %v7059_v20  ;;  %3832 = vrot.lane.b32.xlu1 %v5301_v16, %s6052_s17  ;;  %v2930_v37 = vrot.slane %v2928_v57, 4  ;;  %v5128_v61 = vcombine.low %v2726_v0, %v2726_v0  ;;  %v5129_v39 = vcombine.high %v2726_v0, %v2726_v0  ;;  %v1216_v38 = vld [vmem:[#allocation2 + $0x40] sm:$0x1f]  ;;  %v7278_v19 = vpop.permute.xlu0 %2117 }
 0x149   : > { %v2920_v48 = vor.u32 %v2919_v53, %v2916_v26  ;;  %v2933_v62 = vrot.slane %v2931_v11, 5  ;;  %v2939_v47 = vrot.slane %v2937_v7, 5  ;;  %v5130_v14 = vcombine.low %v2727_v30, %v2727_v30 }
 0x14a   : > { %v5131_v5 = vcombine.high %v2727_v30, %v2727_v30  ;;  %v5138_v15 = vrot.slane %v5128_v61, 9  ;;  %v5420_v55 = vunpack.c.l.bf16 %v5430_v18  ;;  %v2794_v20 = vrot.slane %v5129_v39, 5  ;;  %v7288_v61 = vpop.permute.xlu1 %2137 }
 0x14b   : > { %v2921_v17 = vrot.slane %v2920_v48, 4  ;;  %v2934_v12 = vor.u32 %v2933_v62, %v2930_v37  ;;  %v5421_v31 = vunpack.c.h.bf16 %v5430_v18  ;;  %v5139_v16 = vrot.slane %v5130_v14, 9 }
 0x14c   : > { %v2798_v6 = vrot.slane %v5131_v5, 5  ;;  %v687_v57 = vmul.f32 %v7102_v22, %v5420_v55  ;;  %v4904_v42 = vcombine.low %v1215_v24, %v1215_v24  ;;  %v2795_v53 = vsel %vm6228_vm5, %v5138_v15, %v2794_v20 }
 0x14d   : > { %v2926_v0 = vsel %vm6419_vm12, %v2921_v17, %v2925_v36  ;;  %v2935_v26 = vrot.slane %v2934_v12, 4  ;;  %v688_v11 = vmul.f32 %v7102_v22, %v5421_v31  ;;  %v4905_v30 = vcombine.high %v1215_v24, %v1215_v24 }
 0x14e   : > { %v2799_v18 = vsel %vm6228_vm5, %v5139_v16, %v2798_v6  ;;  %v702_v7 = vadd.f32 %v7116_v29, %v687_v57  ;;  %v4906_v37 = vcombine.low %v1216_v38, %v1216_v38  ;;  %v4907_v39 = vcombine.high %v1216_v38, %v1216_v38  ;;  %v7297_v38 = vpop.permute.xlu0 %1168 }
 0x14f   : > { %v2940_v48 = vsel %vm6419_vm12, %v2935_v26, %v2939_v47  ;;  %v5163_v62 = vcombine.low %v2795_v53, %v2799_v18  ;;  %v703_v36 = vadd.f32 %v7116_v29, %v688_v11  ;;  %v1342_v15 = vshrl.u32 %v4904_v42, 16  ;;  %v3542_v29 = vld [vmem:[#allocation2 + $0xd0] sm:$0x1f] }
 0x150   : > { %v5170_v14 = vcombine.low %v2926_v0, %v2940_v48  ;;  %v710_v5 = vmax.f32 %v702_v7, 0.0  ;;  %v1345_v22 = vshll.u32 %v4904_v42, 16  ;;  %v1351_v17 = vshll.u32 %v4905_v30, 16  ;;  %v7301_v7 = vpop.permute.xlu1 %3445 }
 0x151   : > { %2999 = vrot.lane.b32.xlu1 %v5163_v62, %s6051_s16  ;;  %v711_v55 = vmax.f32 %v703_v36, 0.0  ;;  %v1356_v12 = vshrl.u32 %v4906_v37, 16  ;;  %v1359_v24 = vshll.u32 %v4906_v37, 16  ;;  %v1344_v47 = vrot.slane %v1342_v15, 4 }
 0x152   : > { %3045 = vrot.lane.b32.xlu0 %v5170_v14, %s6050_s14  ;;  %v721_v20 = vsel %vm714_vm13, %v710_v5, 0.0  ;;  %v1347_v31 = vrot.slane %v1345_v22, 5  ;;  %v1365_v16 = vshll.u32 %v4907_v39, 16  ;;  %v1353_v57 = vrot.slane %v1351_v17, 5  ;;  %v814_v14 = vld [vmem:[#allocation2 + $0xd8] sm:$0x1f] }
 0x153   : > { %v722_v42 = vsel %vm714_vm13, %v711_v55, 0.0  ;;  %v729_v6 = vpack.c.bf16 %v721_v20, %v721_v20  ;;  %v1358_v0 = vrot.slane %v1356_v12, 4  ;;  %v1361_v11 = vrot.slane %v1359_v24, 5  ;;  %v817_v22 = vld [vmem:[#allocation2 + $0xe0] sm:$0x1f] }
 0x154   : > { %v730_v26 = vpack.c.bf16 %v722_v42, %v722_v42  ;;  %v1348_v53 = vor.u32 %v1347_v31, %v1344_v47  ;;  %v1367_v18 = vrot.slane %v1365_v16, 5  ;;  %v5260_v48 = vcombine.low %v3542_v29, %v3542_v29  ;;  %v5898_v20 = vld [vmem:[#allocation2 + $0x58] ss:$8 sps:$4 sm:$0xff]   ;;  %v7305_v42 = vpop.permute.xlu0 %2472 }
 0x155   : > { %v774_v30 = vshrl.u32 %v729_v6, 16  ;;  %v777_v37 = vshll.u32 %v729_v6, 16  ;;  %v5261_v62 = vcombine.high %v3542_v29, %v3542_v29  ;;  %v1362_v15 = vor.u32 %v1361_v11, %v1358_v0  ;;  %v5899_v16 = vld [vmem:[#allocation2] ss:$8 sps:$4 sm:$0xff]   ;;  %v3702_v0 = vld [vmem:[#allocation2 + $0xd0] sm:$0x1e] }
 0x156   : > { %v781_v36 = vshrl.u32 %v730_v26, 16  ;;  %v784_v39 = vshll.u32 %v730_v26, 16  ;;  %v1349_v5 = vrot.slane %v1348_v53, 4  ;;  %v3643_v55 = vshrl.u32 %v5260_v48, 16 }
 0x157   : > { %v776_v35 = vrot.slane %v774_v30, 7  ;;  %v3646_v17 = vshll.u32 %v5260_v48, 16  ;;  %v3652_v12 = vshll.u32 %v5261_v62, 16  ;;  %v1363_v31 = vrot.slane %v1362_v15, 4  ;;  %v5912_v15 = vld [vmem:[#allocation2 + $0x68] ss:$8 sps:$4 sm:$0xff]  }
 0x158   : > { %v783_v47 = vrot.slane %v781_v36, 7  ;;  %v1354_v24 = vsel %vm6419_vm12, %v1349_v5, %v1353_v57  ;;  %v3645_v6 = vrot.slane %v3643_v55, 4  ;;  %v2156_v48 = vsel %vm1183_vm15, %v7067_v56, %v7132_v9  ;;  %v7312_v57 = vpop.permute.xlu1 %2492 }
 0x159   : > { %v779_v29 = vor.u32 %v777_v37, %v776_v35  ;;  %v3648_v26 = vrot.slane %v3646_v17, 5  ;;  %v3654_v53 = vrot.slane %v3652_v12, 5  ;;  %v1368_v30 = vsel %vm6419_vm12, %v1363_v31, %v1367_v18  ;;  %v3545_v35 = vld [vmem:[#allocation2 + $0xe8] sm:$0x1f] }
 0x15a   : > { %v786_v11 = vor.u32 %v784_v39, %v783_v47  ;;  %v4951_v36 = vcombine.low %v1354_v24, %v1368_v30  ;;  %v2164_v5 = vsel %vm1192_vm0, %v2156_v48, %v7063_v21  ;;  %v2526_v39 = vsel %vm1170_vm14, %v5898_v20, %v7136_v40  ;;  %v7338_v20 = vpop.permute.xlu0 %2099  ;;  %v5925_v24 = vld [vmem:[#allocation2 + $0x10] ss:$8 sps:$4 sm:$0xff]  }
 0x15b   : > { %v815_v62 = vsel %vm6287_vm9, %v779_v29, %v814_v14  ;;  %v3649_v37 = vor.u32 %v3648_v26, %v3645_v6  ;;  %v1173_v56 = vsel %vm1170_vm14, %v5899_v16, %v7142_v60  ;;  %v5276_v9 = vcombine.low %v3702_v0, %v3702_v0  ;;  %v5937_v26 = vld [vmem:[%s7754_s1 + $0x100] sm:$0xff]  }
 0x15c   : > { %816 = vst [vmem:[#allocation2 + $0xd8] sm:$0x1f] %v815_v62  ;;  %v818_v18 = vsel %vm6287_vm9, %v786_v11, %v817_v22  ;;  %v7326_v14 = vsel %vm1170_vm14, %v4951_v36, %v7119_v63  ;;  %v2537_v21 = vsel %vm1183_vm15, %v2526_v39, %v7028_v59  ;;  %v1185_v13 = vsel %vm1183_vm15, %v1173_v56, %v7093_v4  ;;  %v3705_v22 = vld [vmem:[#allocation2 + $0xe8] sm:$0x1e] }
 0x15d   : > { %819 = vst [vmem:[#allocation2 + $0xe0] sm:$0x1f] %v818_v18  ;;  %v3650_v55 = vrot.slane %v3649_v37, 4  ;;  %v2545_v40 = vsel %vm1192_vm0, %v2537_v21, %v6857_v27  ;;  %v1194_v60 = vsel %vm1192_vm0, %v1185_v13, %v6923_v50  ;;  %v5277_v17 = vcombine.high %v3702_v0, %v3702_v0  ;;  %v5988_v63 = vld [vmem:[%s7754_s1 + $0x188] sm:$0xff]   ;;  %v7353_v50 = vld [vmem:[#allocation2 + $0xd0] sm:$0x1f] }
 0x15e   : > { %v7336_v12 = vrot.slane %v5276_v9, 9  ;;  %v7347_v4 = vcombine.low %v3545_v35, %v3545_v35  ;;  %v5267_v47 = vcombine.high %v3545_v35, %v3545_v35  ;;  %v7351_v27 = vsel %vm1170_vm14, %v5912_v15, %v7149_v32  ;;  %4435 = vmatprep.mubr.bf16.mxu1 %v2545_v40  ;;  %v7407_v40 = vpop.permute.xlu0 %2993 }
 0x15f   : > { %v7345_v59 = vsel %vm6419_vm12, %v3650_v55, %v3654_v53  ;;  %v7355_v31 = vrot.slane %v5277_v17, 5  ;;  %v1711_v16 = vsel %vm1183_vm15, %v7188_v1, %v6889_v52  ;;  %v5282_v29 = vcombine.low %v3705_v22, %v3705_v22  ;;  %4436 = vmatmul.mubr.bf16.vlgmr.msra.gmra.mrb[0].mxu1 %v2164_v5  ;;  %v7363_v53 = vpop.permute.xlu1 %3465  ;;  %v5943_v52 = vld [vmem:[%s7754_s1 + $0x148] sm:$0xff]  }
 0x160   : > { %v5283_v6 = vcombine.high %v3705_v22, %v3705_v22  ;;  %v7367_v11 = vshll.u32 %v5267_v47, 16  ;;  %v1719_v30 = vsel %vm1192_vm0, %v1711_v16, %v7168_v58  ;;  %5562 = vmatpush3.bf16.msra.mxu1 %v7206_v49  ;;  %v7385_v36 = vcombine.low %v7353_v50, %v7353_v50  ;;  %v5944_v58 = vld [vmem:[%s7754_s1 + $0x108] sm:$0xff]   ;;  %v5989_v49 = vld [vmem:[%s7754_s1 + $0x190] sm:$0xff]  }
 0x161   : > { %v7379_v48 = vrot.slane %v5282_v29, 9  ;;  %4370 = vmatprep.mubr.bf16.mxu0 %v1719_v30  ;;  %5563 = vmatprep.subr.bf16.mxu1 %v5988_v63  ;;  %v1176_v18 = vsel %vm1170_vm14, %v5925_v24, %v7182_v43  ;;  %v7400_v39 = vsel %vm1183_vm15, %v7234_v28, %v6909_v45  ;;  %v7405_v56 = vsel %vm1183_vm15, %v7272_v34, %v7003_v23  ;;  %v5949_v28 = vld [vmem:[%s7754_s1 + $0x150] sm:$0xff]  }
 0x162   : > { %v7381_v62 = vrot.slane %v5283_v6, 5  ;;  %4371 = vmatmul.mubr.bf16.vlgmr.msra.gmra.mrb[0].mxu0 %v1194_v60  ;;  %v7415_v23 = vsel %vm1183_vm15, %v1176_v18, %v7124_v46  ;;  %v5950_v16 = vld [vmem:[%s7754_s1 + $0x110] sm:$0xff]   ;;  %v5991_v46 = vld [vmem:[%s7754_s1 + $0x198] sm:$0xff]   ;;  %v7432_v32 = vpop.permute.xlu0 %2119 }
 0x163   : > { %v3543_v37 = vld [vmem:[#allocation2 + $0xd8] sm:$0x1f]  ;;  %5512 = vmatpush3.bf16.msra.mxu0 %v5937_v26  ;;  %v7424_v29 = vpop.permute.xlu1 %2520 }
 0x164   : > { %v3179_v5 = vld [vmem:[#allocation2 + $0xd8] sm:$0x1f]  ;;  %v5262_v35 = vcombine.low %v3543_v37, %v3543_v37  ;;  %v5263_v55 = vcombine.high %v3543_v37, %v3543_v37  ;;  %v3180_v21 = vld [vmem:[#allocation2 + $0xe0] sm:$0x1f]  ;;  %5513 = vmatprep.subr.bf16.mxu0 %v5943_v52  ;;  %5564 = vmatpush3.bf16.msra.mxu1 %v5988_v63 }
 0x165   : > { %v5870_v9 = vld [vmem:[#allocation2 + $0xd8] ss:$8 sps:$4 sm:$0xff]   ;;  %v5208_v13 = vcombine.low %v3179_v5, %v3179_v5  ;;  %v5209_v22 = vcombine.high %v3179_v5, %v3179_v5  ;;  %v5210_v43 = vcombine.low %v3180_v21, %v3180_v21  ;;  %v5211_v17 = vcombine.high %v3180_v21, %v3180_v21  ;;  %5565 = vmatprep.subr.bf16.mxu1 %v5989_v49 }
 0x166   : > { %3451 = vrot.lane.b32.xlu0 %v5870_v9, %s6051_s16  ;;  %v3657_v34 = vshrl.u32 %v5262_v35, 16  ;;  %v3660_v60 = vshll.u32 %v5262_v35, 16  ;;  %v3666_v47 = vshll.u32 %v5263_v55, 16  ;;  %v3339_v37 = vld [vmem:[#allocation2 + $0xd8] sm:$0x1e] }
 0x167   : > { %v3306_v24 = vshrl.u32 %v5208_v13, 16  ;;  %v3309_v6 = vshll.u32 %v5208_v13, 16  ;;  %v3315_v26 = vshll.u32 %v5209_v22, 16  ;;  %v3320_v30 = vshrl.u32 %v5210_v43, 16  ;;  %v3340_v55 = vld [vmem:[#allocation2 + $0xe0] sm:$0x1e]  ;;  %5514 = vmatpush3.bf16.msra.mxu0 %v5944_v58 }
 0x168   : > { %v3323_v52 = vshll.u32 %v5210_v43, 16  ;;  %v3659_v5 = vrot.slane %v3657_v34, 4  ;;  %v3662_v18 = vrot.slane %v3660_v60, 5  ;;  %v3668_v9 = vrot.slane %v3666_v47, 5  ;;  %5515 = vmatprep.subr.bf16.mxu0 %v5949_v28  ;;  %v5955_v13 = vld [vmem:[%s7754_s1 + $0x158] sm:$0xff]   ;;  %5566 = vmatpush3.bf16.msra.mxu1 %v5989_v49  ;;  %v5992_v58 = vld [vmem:[%s7754_s1 + $0x1a0] sm:$0xff]   ;;  %v7440_v49 = vpop.permute.xlu1 %3485 }
 0x169   : > { %v3308_v35 = vrot.slane %v3306_v24, 4  ;;  %v3311_v21 = vrot.slane %v3309_v6, 5  ;;  %v3317_v15 = vrot.slane %v3315_v26, 5  ;;  %v3322_v45 = vrot.slane %v3320_v30, 4  ;;  %v3703_v28 = vld [vmem:[#allocation2 + $0xd8] sm:$0x1e]  ;;  %5567 = vmatprep.subr.bf16.mxu1 %v5991_v46 }
 0x16a   : > { %v3325_v63 = vrot.slane %v3323_v52, 5  ;;  %v3663_v22 = vor.u32 %v3662_v18, %v3659_v5  ;;  %v3329_v1 = vshll.u32 %v5211_v17, 16  ;;  %v5224_v43 = vcombine.low %v3339_v37, %v3339_v37  ;;  %v5956_v17 = vld [vmem:[%s7754_s1 + $0x118] sm:$0xff]  }
 0x16b   : > { %v5225_v0 = vcombine.high %v3339_v37, %v3339_v37  ;;  %v3312_v34 = vor.u32 %v3311_v21, %v3308_v35  ;;  %v5226_v47 = vcombine.low %v3340_v55, %v3340_v55  ;;  %v5227_v24 = vcombine.high %v3340_v55, %v3340_v55  ;;  %5516 = vmatpush3.bf16.msra.mxu0 %v5950_v16  ;;  %v3544_v21 = vld [vmem:[#allocation2 + $0xe0] sm:$0x1f] }
 0x16c   : > { %v3326_v60 = vor.u32 %v3325_v63, %v3322_v45  ;;  %v3664_v6 = vrot.slane %v3663_v22, 4  ;;  %v3331_v26 = vrot.slane %v3329_v1, 5  ;;  %v5234_v30 = vrot.slane %v5224_v43, 9  ;;  %5517 = vmatprep.subr.bf16.mxu0 %v5955_v13  ;;  %v5957_v45 = vld [vmem:[%s7754_s1 + $0x160] sm:$0xff]   ;;  %5568 = vmatpush3.bf16.msra.mxu1 %v5991_v46 }
 0x16d   : > { %v3407_v52 = vrot.slane %v5225_v0, 5  ;;  %v3313_v37 = vrot.slane %v3312_v34, 4  ;;  %v5235_v18 = vrot.slane %v5226_v47, 9  ;;  %v3411_v35 = vrot.slane %v5227_v24, 5  ;;  %v3704_v34 = vld [vmem:[#allocation2 + $0xe0] sm:$0x1e]  ;;  %5569 = vmatprep.subr.bf16.mxu1 %v5992_v58 }
 0x16e   : > { %v3327_v5 = vrot.slane %v3326_v60, 4  ;;  %v3669_v1 = vsel %vm6419_vm12, %v3664_v6, %v3668_v9  ;;  %v5278_v16 = vcombine.low %v3703_v28, %v3703_v28  ;;  %v5279_v55 = vcombine.high %v3703_v28, %v3703_v28  ;;  %v6001_v9 = vld [vmem:[%s7754_s1 + $0x1a8] sm:$0xff]  }
 0x16f   : > { %v3408_v0 = vsel %vm6228_vm5, %v5234_v30, %v3407_v52  ;;  %v5298_v63 = vcombine.low %v7345_v59, %v3669_v1  ;;  %v3318_v22 = vsel %vm6419_vm12, %v3313_v37, %v3317_v15  ;;  %v3412_v43 = vsel %vm6228_vm5, %v5235_v18, %v3411_v35  ;;  %5518 = vmatpush3.bf16.msra.mxu0 %v5956_v17  ;;  %v5958_v59 = vld [vmem:[%s7754_s1 + $0x120] sm:$0xff]   ;;  %v7462_v15 = vpop.permute.xlu0 %3021  ;;  %v5959_v17 = vld [vmem:[%s7754_s1 + $0x168] sm:$0xff]   ;;  %v5895_v18 = vld [vmem:[#allocation2 + $0xd0] ss:$8 sps:$4 sm:$0xff]  }
 0x170   : > { %v3332_v13 = vsel %vm6419_vm12, %v3327_v5, %v3331_v26  ;;  %v5251_v47 = vcombine.low %v3408_v0, %v3412_v43  ;;  %v5289_v46 = vrot.slane %v5278_v16, 9  ;;  %v3768_v24 = vrot.slane %v5279_v55, 5  ;;  %v2816_v5 = vld [vmem:[#allocation2 + $0xd8] sm:$0x1f]  ;;  %5519 = vmatprep.subr.bf16.mxu0 %v5957_v45  ;;  %v7476_v55 = vpop.permute.xlu1 %3041  ;;  %5570 = vmatpush3.bf16.msra.mxu1 %v5992_v58 }
 0x171   : > { %v5247_v60 = vcombine.low %v3318_v22, %v3332_v13  ;;  %3814 = vrot.lane.b32.xlu1 %v5298_v63, %s6051_s16  ;;  %v5264_v28 = vcombine.low %v3544_v21, %v3544_v21  ;;  %v5265_v6 = vcombine.high %v3544_v21, %v3544_v21  ;;  %v7775_v26 = vshrl.u32 %v7347_v4, 16  ;;  %5571 = vmatprep.subr.bf16.mxu1 %v6001_v9 }
 0x172   : > { %v7776_v52 = vshll.u32 %v7347_v4, 16  ;;  %v3769_v35 = vsel %vm6228_vm5, %v5289_v46, %v3768_v24  ;;  %v3696_v1 = vrot.slane %v7367_v11, 5  ;;  %v5280_v0 = vcombine.low %v3704_v34, %v3704_v34  ;;  %v5960_v11 = vld [vmem:[%s7754_s1 + $0x128] sm:$0xff]  }
 0x173   : > { %v3687_v30 = vrot.slane %v7775_v26, 4  ;;  %3471 = vrot.lane.b32.xlu0 %v5247_v60, %s6052_s17  ;;  %v5281_v16 = vcombine.high %v3704_v34, %v3704_v34  ;;  %v7777_v4 = vsel %vm6228_vm5, %v7336_v12, %v7355_v31  ;;  %v3671_v21 = vshrl.u32 %v5264_v28, 16  ;;  %5520 = vmatpush3.bf16.msra.mxu0 %v5958_v59  ;;  %v5961_v31 = vld [vmem:[%s7754_s1 + $0x170] sm:$0xff]  }
 0x174   : > { %v3690_v37 = vrot.slane %v7776_v52, 5  ;;  %v5302_v45 = vcombine.low %v7777_v4, %v3769_v35  ;;  %v3674_v63 = vshll.u32 %v5264_v28, 16  ;;  %v3680_v22 = vshll.u32 %v5265_v6, 16  ;;  %5521 = vmatprep.subr.bf16.mxu0 %v5959_v17  ;;  %5572 = vmatpush3.bf16.msra.mxu1 %v6001_v9  ;;  %v5930_v35 = vld [vmem:[#allocation2 + $0x20] ss:$8 sps:$4 sm:$0xff]   ;;  %v7507_v9 = vpop.permute.xlu1 %3447 }
 0x175   : > { %v5290_v43 = vrot.slane %v5280_v0, 9  ;;  %v3772_v60 = vrot.slane %v5281_v16, 5  ;;  %v5154_v46 = vcombine.low %v2816_v5, %v2816_v5  ;;  %3491 = vrot.lane.b32.xlu1 %v5251_v47, %s6050_s14  ;;  %v3673_v58 = vrot.slane %v3671_v21, 4  ;;  %v7495_v47 = vpop.permute.xlu0 %2139 }
 0x176   : > { %v3691_v13 = vor.u32 %v3690_v37, %v3687_v30  ;;  %v3676_v34 = vrot.slane %v3674_v63, 5  ;;  %v3682_v24 = vrot.slane %v3680_v22, 5  ;;  %v5155_v12 = vcombine.high %v2816_v5, %v2816_v5  ;;  %v5931_v22 = vld [vmem:[#allocation2 + $0x30] ss:$8 sps:$4 sm:$0xff]  }
 0x177   : > { %3027 = vrot.lane.b32.xlu0 %v5895_v18, %s6052_s17  ;;  %v3773_v59 = vsel %vm6228_vm5, %v5290_v43, %v3772_v60  ;;  %v2942_v6 = vshrl.u32 %v7385_v36, 16  ;;  %v2945_v26 = vshll.u32 %v7385_v36, 16  ;;  %v7778_v52 = vsel %vm6228_vm5, %v7379_v48, %v7381_v62  ;;  %5522 = vmatpush3.bf16.msra.mxu0 %v5960_v11  ;;  %v7780_v43 = vld [vmem:[#allocation5_spill] sm:$0xff] }
 0x178   : > { %v3692_v28 = vrot.slane %v3691_v13, 4  ;;  %v3677_v30 = vor.u32 %v3676_v34, %v3673_v58  ;;  %v5303_v37 = vcombine.low %v3773_v59, %v7778_v52  ;;  %v7779_v5 = vcombine.high %v7353_v50, %v7353_v50  ;;  %5523 = vmatprep.subr.bf16.mxu0 %v5961_v31  ;;  %v1736_v34 = vld [vmem:[#allocation2 + $0x20] sm:$0x1e] }
 0x179   : > { %v2956_v18 = vshrl.u32 %v5154_v46, 16  ;;  %v2944_v36 = vrot.slane %v2942_v6, 4  ;;  %v2947_v16 = vrot.slane %v2945_v26, 5  ;;  %v2959_v4 = vshll.u32 %v5154_v46, 16  ;;  %3834 = vrot.lane.b32.xlu1 %v5302_v45, %s6052_s17  ;;  %v7528_v59 = vpop.permute.xlu0 %2474 }
 0x17a   : > { %v2951_v17 = vshll.u32 %v7779_v5, 16  ;;  %v3697_v0 = vsel %vm6419_vm12, %v3692_v28, %v3696_v1  ;;  %v3678_v21 = vrot.slane %v3677_v30, 4  ;;  %v2965_v63 = vshll.u32 %v5155_v12, 16  ;;  %v1737_v28 = vld [vmem:[#allocation2 + $0x28] sm:$0x1e] }
 0x17b   : > { %v2958_v62 = vrot.slane %v2956_v18, 4  ;;  %v2948_v50 = vor.u32 %v2947_v16, %v2944_v36  ;;  %v2961_v13 = vrot.slane %v2959_v4, 5  ;;  %v1197_v1 = vsel %vm1192_vm0, %v7415_v23, %v7780_v43  ;;  %v5962_v23 = vld [vmem:[%s7754_s1 + $0x130] sm:$0xff]   ;;  %v7547_v18 = vpop.permute.xlu1 %2494 }
 0x17c   : > { %v2953_v48 = vrot.slane %v2951_v17, 5  ;;  %v1722_v60 = vsel %vm1192_vm0, %v7400_v39, %v7199_v33  ;;  %v3683_v46 = vsel %vm6419_vm12, %v3678_v21, %v3682_v24  ;;  %v2967_v45 = vrot.slane %v2965_v63, 5  ;;  %v7781_v39 = vld [vmem:[#allocation6_spill] sm:$0xff]  ;;  %5524 = vmatpush3.bf16.msra.mxu0 %v5962_v23  ;;  %v7783_v21 = vld [vmem:[#allocation8_spill] sm:$0xff] }
 0x17d   : > { %v1725_v11 = vsel %vm1192_vm0, %v7405_v56, %v7201_v2  ;;  %v1179_v58 = vsel %vm1170_vm14, %v5930_v35, %v7219_v10  ;;  %4378 = vmatprep.mubr.bf16.mxu0 %v1722_v60  ;;  %v5299_v12 = vcombine.low %v3683_v46, %v3697_v0  ;;  %v2949_v31 = vrot.slane %v2948_v50, 4  ;;  %v5968_v2 = vld [vmem:[%s7754_s1 + $0x178] sm:$0xff]   ;;  %3836 = vrot.lane.b32.xlu1 %v5303_v37, %s6052_s17  ;;  %v7782_v10 = vld [vmem:[#allocation4_spill] sm:$0xff] }
 0x17e   : > { %v2962_v33 = vor.u32 %v2961_v13, %v2958_v62  ;;  %v1189_v24 = vsel %vm1183_vm15, %v1179_v58, %v7781_v39  ;;  %4379 = vmatmul.mubr.bf16.gmra.mrb[4].mxu0 %v1197_v1  ;;  %v1717_v6 = vsel %vm1183_vm15, %v7326_v14, %v7228_v51  ;;  %v1182_v26 = vsel %vm1170_vm14, %v5931_v22, %v7244_v41  ;;  %v5942_v0 = vld [vmem:[#allocation2 + $0x78] ss:$8 sps:$4 sm:$0xff]   ;;  %v1738_v62 = vld [vmem:[#allocation2 + $0x30] sm:$0x1e] }
 0x17f   : > { %v1200_v56 = vsel %vm1192_vm0, %v1189_v24, %v7782_v10  ;;  %v2539_v30 = vsel %vm1183_vm15, %v7351_v27, %v7247_v3  ;;  %3816 = vrot.lane.b32.xlu0 %v5299_v12, %s6051_s16  ;;  %v2954_v52 = vsel %vm6419_vm12, %v2949_v31, %v2953_v48  ;;  %v4968_v5 = vcombine.low %v1736_v34, %v1736_v34  ;;  %v3085_v3 = vld [vmem:[#allocation2 + $0xa0] sm:$0x1e]  ;;  %v3086_v27 = vld [vmem:[#allocation2 + $0xa8] sm:$0x1e]  ;;  %v5969_v50 = vld [vmem:[%s7754_s1 + $0x138] sm:$0xff]   ;;  %v7571_v39 = vpop.permute.xlu1 %3467 }
 0x180   : > { %v2963_v37 = vrot.slane %v2962_v33, 4  ;;  %v4969_v17 = vcombine.high %v1736_v34, %v1736_v34  ;;  %4386 = vmatprep.mubr.bf16.mxu0 %v1725_v11  ;;  %v4970_v35 = vcombine.low %v1737_v28, %v1737_v28  ;;  %v4971_v51 = vcombine.high %v1737_v28, %v1737_v28  ;;  %5525 = vmatprep.subr.bf16.mxu0 %v5968_v2  ;;  %v1739_v46 = vld [vmem:[#allocation2 + $0x38] sm:$0x1e] }
 0x181   : > { %v1728_v41 = vsel %vm1192_vm0, %v1717_v6, %v7256_v44  ;;  %v1191_v14 = vsel %vm1183_vm15, %v1182_v26, %v7268_v8  ;;  %v4982_v16 = vrot.slane %v4968_v5, 9  ;;  %v2548_v48 = vsel %vm1192_vm0, %v2539_v30, %v7783_v21  ;;  %v2560_v6 = vld [vmem:[#allocation2 + $0x60] sm:$0x1f]  ;;  %5526 = vmatpush3.bf16.msra.mxu0 %v5969_v50  ;;  %v7784_v26 = vld [vmem:[#allocation7_spill] sm:$0xff] }
 0x182   : > { %v2968_v36 = vsel %vm6419_vm12, %v2963_v37, %v2967_v45  ;;  %v1792_v4 = vrot.slane %v4969_v17, 5  ;;  %v4983_v22 = vrot.slane %v4970_v35, 9  ;;  %v1796_v44 = vrot.slane %v4971_v51, 5  ;;  %4443 = vmatprep.mubr.bf16.mxu1 %v2548_v48  ;;  %v7564_v45 = vpop.permute.xlu0 %2101  ;;  %v2561_v37 = vld [vmem:[#allocation2 + $0x68] sm:$0x1f] }
 0x183   : > { %v5171_v63 = vcombine.low %v2954_v52, %v2968_v36  ;;  %v1203_v8 = vsel %vm1192_vm0, %v1191_v14, %v7297_v38  ;;  %v5172_v43 = vcombine.low %v3085_v3, %v3085_v3  ;;  %v5173_v1 = vcombine.high %v3085_v3, %v3085_v3 }
 0x184   : > { %v1793_v13 = vsel %vm6228_vm5, %v4982_v16, %v1792_v4  ;;  %v5174_v60 = vcombine.low %v3086_v27, %v3086_v27  ;;  %v1797_v11 = vsel %vm6228_vm5, %v4983_v22, %v1796_v44  ;;  %v5175_v38 = vcombine.high %v3086_v27, %v3086_v27 }
 0x185   : > { %3047 = vrot.lane.b32.xlu0 %v5171_v63, %s6050_s14  ;;  %v2532_v58 = vsel %vm1170_vm14, %v5942_v0, %v7305_v42  ;;  %v4972_v34 = vcombine.low %v1738_v62, %v1738_v62  ;;  %v5029_v23 = vcombine.low %v1793_v13, %v1797_v11  ;;  %v5188_v12 = vrot.slane %v5172_v43, 9 }
 0x186   : > { %4387 = vmatmul.mubr.bf16.gmra.mrb[8].mxu0 %v1200_v56  ;;  %v3135_v31 = vrot.slane %v5173_v1, 5  ;;  %v5189_v33 = vrot.slane %v5174_v60, 9  ;;  %v3139_v24 = vrot.slane %v5175_v38, 5  ;;  %v2541_v28 = vsel %vm1183_vm15, %v2532_v58, %v7312_v57  ;;  %v7585_v27 = vpop.permute.xlu0 %2995 }
 0x187   : > { %4394 = vmatprep.mubr.bf16.mxu0 %v1728_v41  ;;  %v4973_v2 = vcombine.high %v1738_v62, %v1738_v62  ;;  %v4974_v10 = vcombine.low %v1739_v46, %v1739_v46  ;;  %v2148_v42 = vsel %vm1170_vm14, %v5029_v23, %v7784_v26  ;;  %v4975_v30 = vcombine.high %v1739_v46, %v1739_v46  ;;  %v7593_v62 = vpop.permute.xlu1 %2522  ;;  %v3087_v46 = vld [vmem:[#allocation2 + $0xb0] sm:$0x1e] }
 0x188   : > { %v3136_v56 = vsel %vm6228_vm5, %v5188_v12, %v3135_v31  ;;  %v4984_v52 = vrot.slane %v4972_v34, 9  ;;  %v2158_v5 = vsel %vm1183_vm15, %v2148_v42, %v7278_v19  ;;  %v3140_v17 = vsel %vm6228_vm5, %v5189_v33, %v3139_v24  ;;  %v3088_v34 = vld [vmem:[#allocation2 + $0xb8] sm:$0x1e]  ;;  %v1740_v31 = vld [vmem:[#allocation2 + $0x40] sm:$0x1e] }
 0x189   : > { %v1800_v57 = vrot.slane %v4973_v2, 5  ;;  %v4985_v35 = vrot.slane %v4974_v10, 9  ;;  %v2167_v51 = vsel %vm1192_vm0, %v2158_v5, %v7288_v61  ;;  %v5236_v41 = vcombine.low %v3136_v56, %v3140_v17  ;;  %v1741_v42 = vld [vmem:[#allocation2 + $0x48] sm:$0x1e] }
 0x18a   : > { %v1804_v14 = vrot.slane %v4975_v30, 5  ;;  %v5100_v3 = vcombine.low %v2560_v6, %v2560_v6  ;;  %4444 = vmatmul.mubr.bf16.gmra.mrb[4].mxu1 %v2167_v51  ;;  %v5101_v36 = vcombine.high %v2560_v6, %v2560_v6  ;;  %v5102_v16 = vcombine.low %v2561_v37, %v2561_v37  ;;  %v7603_v33 = vpop.permute.xlu0 %2121 }
 0x18b   : > { %v1801_v0 = vsel %vm6228_vm5, %v4984_v52, %v1800_v57  ;;  %v5103_v19 = vcombine.high %v2561_v37, %v2561_v37  ;;  %v3495_v4 = vsel %vm1170_vm14, %v5236_v41, %v7301_v7  ;;  %v2551_v58 = vsel %vm1192_vm0, %v2541_v28, %v7424_v29  ;;  %v3488_v56 = vpop.permute.xlu1 %3487  ;;  %v5967_v52 = vld [vmem:[#allocation2 + $0x88] ss:$8 sps:$4 sm:$0xff]  }
 0x18c   : > { %v1805_v21 = vsel %vm6228_vm5, %v4985_v35, %v1804_v14  ;;  %v2609_v48 = vshrl.u32 %v5100_v3, 16  ;;  %v2612_v61 = vshll.u32 %v5100_v3, 16  ;;  %v3506_v22 = vsel %vm1183_vm15, %v3495_v4, %v7363_v53  ;;  %4451 = vmatprep.mubr.bf16.mxu1 %v2551_v58  ;;  %v2562_v41 = vld [vmem:[#allocation2 + $0x70] sm:$0x1f]  ;;  %v2563_v14 = vld [vmem:[#allocation2 + $0x78] sm:$0x1f] }
 0x18d   : > { %v5030_v63 = vcombine.low %v1801_v0, %v1805_v21  ;;  %v2618_v44 = vshll.u32 %v5101_v36, 16  ;;  %v2623_v50 = vshrl.u32 %v5102_v16, 16  ;;  %v2626_v1 = vshll.u32 %v5102_v16, 16 }
 0x18e   : > { %4395 = vmatmul.mubr.bf16.gmra.mrb[12].mxu0 %v1203_v8  ;;  %v2611_v13 = vrot.slane %v2609_v48, 4  ;;  %v2614_v43 = vrot.slane %v2612_v61, 5  ;;  %v2632_v60 = vshll.u32 %v5103_v19, 16  ;;  %v3514_v24 = vsel %vm1192_vm0, %v3506_v22, %v7440_v49  ;;  %v7617_v19 = vpop.permute.xlu0 %3023 }
 0x18f   : > { %v2151_v7 = vsel %vm1170_vm14, %v5030_v63, %v7338_v20  ;;  %v2620_v11 = vrot.slane %v2618_v44, 5  ;;  %v2625_v38 = vrot.slane %v2623_v50, 4  ;;  %v2628_v12 = vrot.slane %v2626_v1, 5  ;;  %4500 = vmatprep.mubr.bf16.mxu0 %v3514_v24 }
 0x190   : > { %v2615_v23 = vor.u32 %v2614_v43, %v2611_v13  ;;  %v2634_v53 = vrot.slane %v2632_v60, 5  ;;  %v2160_v8 = vsel %vm1183_vm15, %v2151_v7, %v7432_v32  ;;  %v5176_v2 = vcombine.low %v3087_v46, %v3087_v46  ;;  %v3044_v13 = vpop.permute.xlu1 %3043 }
 0x191   : > { %v2170_v20 = vsel %vm1192_vm0, %v2160_v8, %v7495_v47  ;;  %v5177_v10 = vcombine.high %v3087_v46, %v3087_v46  ;;  %v2629_v28 = vor.u32 %v2628_v12, %v2625_v38  ;;  %v5178_v6 = vcombine.low %v3088_v34, %v3088_v34 }
 0x192   : > { %v2616_v29 = vrot.slane %v2615_v23, 4  ;;  %v5179_v26 = vcombine.high %v3088_v34, %v3088_v34  ;;  %v5190_v32 = vrot.slane %v5176_v2, 9  ;;  %v4976_v37 = vcombine.low %v1740_v31, %v1740_v31  ;;  %4452 = vmatmul.mubr.bf16.gmra.mrb[8].mxu1 %v2170_v20  ;;  %v2142_v24 = vpop.permute.xlu0 %2141 }
 0x193   : > { %v3143_v30 = vrot.slane %v5177_v10, 5  ;;  %v2630_v5 = vrot.slane %v2629_v28, 4  ;;  %v5191_v17 = vrot.slane %v5178_v6, 9  ;;  %v4977_v35 = vcombine.high %v1740_v31, %v1740_v31 }
 0x194   : > { %v2621_v49 = vsel %vm6419_vm12, %v2616_v29, %v2620_v11  ;;  %v3147_v47 = vrot.slane %v5179_v26, 5  ;;  %v4978_v51 = vcombine.low %v1741_v42, %v1741_v42  ;;  %v4979_v36 = vcombine.high %v1741_v42, %v1741_v42  ;;  %v7643_v6 = vpop.permute.xlu1 %2997 }
 0x195   : > { %v3144_v57 = vsel %vm6228_vm5, %v5190_v32, %v3143_v30  ;;  %v2635_v3 = vsel %vm6419_vm12, %v2630_v5, %v2634_v53  ;;  %v4986_v16 = vrot.slane %v4976_v37, 9  ;;  %v2535_v21 = vsel %vm1170_vm14, %v5967_v52, %v7528_v59  ;;  %v3089_v32 = vld [vmem:[#allocation2 + $0xc0] sm:$0x1e] }
 0x196   : > { %v3148_v0 = vsel %vm6228_vm5, %v5191_v17, %v3147_v47  ;;  %v5156_v4 = vcombine.low %v2621_v49, %v2635_v3  ;;  %v1808_v48 = vrot.slane %v4977_v35, 5  ;;  %v4987_v61 = vrot.slane %v4978_v51, 9  ;;  %v3090_v49 = vld [vmem:[#allocation2 + $0xc8] sm:$0x1e] }
 0x197   : > { %v1812_v63 = vrot.slane %v4979_v36, 5  ;;  %v5104_v22 = vcombine.low %v2562_v41, %v2562_v41  ;;  %v5105_v44 = vcombine.high %v2562_v41, %v2562_v41  ;;  %v5106_v50 = vcombine.low %v2563_v14, %v2563_v14  ;;  %v2565_v3 = vld [vmem:[#allocation2 + $0x88] sm:$0x1f] }
 0x198   : > { %v3051_v43 = vsel %vm1170_vm14, %v5156_v4, %v7407_v40  ;;  %v5237_v1 = vcombine.low %v3144_v57, %v3148_v0  ;;  %v1809_v60 = vsel %vm6228_vm5, %v4986_v16, %v1808_v48  ;;  %v5107_v46 = vcombine.high %v2563_v14, %v2563_v14  ;;  %v3811_v17 = vpop.permute.xlu1 %3810  ;;  %v2564_v14 = vld [vmem:[#allocation2 + $0x80] sm:$0x1f] }
 0x199   : > { %v3062_v7 = vsel %vm1183_vm15, %v3051_v43, %v7462_v15  ;;  %v2543_v59 = vsel %vm1183_vm15, %v2535_v21, %v7547_v18  ;;  %v1813_v11 = vsel %vm6228_vm5, %v4987_v61, %v1812_v63  ;;  %v2637_v38 = vshrl.u32 %v5104_v22, 16  ;;  %v5987_v43 = vld [vmem:[#allocation2 + $0xb0] ss:$8 sps:$4 sm:$0xff]  }
 0x19a   : > { %v3070_v58 = vsel %vm1192_vm0, %v3062_v7, %v7476_v55  ;;  %v5031_v34 = vcombine.low %v1809_v60, %v1813_v11  ;;  %v2640_v40 = vshll.u32 %v5104_v22, 16  ;;  %v2646_v23 = vshll.u32 %v5105_v44, 16 }
 0x19b   : > { %4501 = vmatmul.mubr.bf16.vlgmr.msra.gmra.mrb[16].mxu0 %v3070_v58  ;;  %v2639_v12 = vrot.slane %v2637_v38, 4  ;;  %v2651_v53 = vshrl.u32 %v5106_v50, 16  ;;  %v2654_v8 = vshll.u32 %v5106_v50, 16  ;;  %v2660_v31 = vshll.u32 %v5107_v46, 16 }
 0x19c   : > { %v3498_v15 = vsel %vm1170_vm14, %v5237_v1, %v7507_v9  ;;  %v2154_v18 = vsel %vm1170_vm14, %v5031_v34, %v7564_v45  ;;  %v2642_v20 = vrot.slane %v2640_v40, 5  ;;  %v2554_v2 = vsel %vm1192_vm0, %v2543_v59, %v7593_v62 }
 0x19d   : > { %v3508_v55 = vsel %vm1183_vm15, %v3498_v15, %v7571_v39  ;;  %v2653_v10 = vrot.slane %v2651_v53, 4  ;;  %v2656_v29 = vrot.slane %v2654_v8, 5  ;;  %v2162_v28 = vsel %vm1183_vm15, %v2154_v18, %v7603_v33  ;;  %4459 = vmatprep.mubr.bf16.mxu1 %v2554_v2 }
 0x19e   : > { %v2643_v26 = vor.u32 %v2642_v20, %v2639_v12  ;;  %v2648_v9 = vrot.slane %v2646_v23, 5  ;;  %v3517_v42 = vsel %vm1192_vm0, %v3508_v55, %v3488_v56  ;;  %v2173_v45 = vsel %vm1192_vm0, %v2162_v28, %v2142_v24  ;;  %v5990_v55 = vld [vmem:[#allocation2 + $0xc0] ss:$8 sps:$4 sm:$0xff]  }
 0x19f   : > { %v2657_v30 = vor.u32 %v2656_v29, %v2653_v10  ;;  %v2662_v62 = vrot.slane %v2660_v31, 5  ;;  %4508 = vmatprep.mubr.bf16.mxu0 %v3517_v42  ;;  %4460 = vmatmul.mubr.bf16.gmra.mrb[12].mxu1 %v2173_v45  ;;  %v5180_v37 = vcombine.low %v3089_v32, %v3089_v32  ;;  %v5181_v56 = vcombine.high %v3089_v32, %v3089_v32  ;;  %v3450_v21 = vpop.permute.xlu0 %3449 }
 0x1a0   : > { %v2644_v52 = vrot.slane %v2643_v26, 4  ;;  %v5182_v57 = vcombine.low %v3090_v49, %v3090_v49  ;;  %v5183_v35 = vcombine.high %v3090_v49, %v3090_v49  ;;  %v5108_v63 = vcombine.low %v2564_v14, %v2564_v14 }
 0x1a1   : > { %v2658_v39 = vrot.slane %v2657_v30, 4  ;;  %v5192_v51 = vrot.slane %v5180_v37, 9  ;;  %v3151_v0 = vrot.slane %v5181_v56, 5  ;;  %v5110_v22 = vcombine.low %v2565_v3, %v2565_v3  ;;  %v3092_v56 = vld [vmem:[#allocation2 + $0xd8] sm:$0x1e] }
 0x1a2   : > { %v2649_v33 = vsel %vm6419_vm12, %v2644_v52, %v2648_v9  ;;  %v5193_v16 = vrot.slane %v5182_v57, 9  ;;  %v3155_v4 = vrot.slane %v5183_v35, 5  ;;  %v2668_v60 = vshll.u32 %v5108_v63, 16  ;;  %v2566_v57 = vld [vmem:[#allocation2 + $0x90] sm:$0x1f] }
 0x1a3   : > { %v2663_v5 = vsel %vm6419_vm12, %v2658_v39, %v2662_v62  ;;  %v3152_v61 = vsel %vm6228_vm5, %v5192_v51, %v3151_v0  ;;  %v2679_v46 = vshrl.u32 %v5110_v22, 16  ;;  %v2682_v7 = vshll.u32 %v5110_v22, 16  ;;  %v2567_v35 = vld [vmem:[#allocation2 + $0x98] sm:$0x1f] }
 0x1a4   : > { %v5157_v47 = vcombine.low %v2649_v33, %v2663_v5  ;;  %v3156_v44 = vsel %vm6228_vm5, %v5193_v16, %v3155_v4  ;;  %v5109_v40 = vcombine.high %v2564_v14, %v2564_v14  ;;  %v5111_v23 = vcombine.high %v2565_v3, %v2565_v3 }
 0x1a5   : > { %v5238_v50 = vcombine.low %v3152_v61, %v3156_v44  ;;  %v2670_v53 = vrot.slane %v2668_v60, 5  ;;  %v2681_v8 = vrot.slane %v2679_v46, 4  ;;  %v2684_v31 = vrot.slane %v2682_v7, 5 }
 0x1a6   : > { %v3054_v41 = vsel %vm1170_vm14, %v5157_v47, %v7585_v27  ;;  %v2674_v15 = vshll.u32 %v5109_v40, 16  ;;  %v2688_v2 = vshll.u32 %v5111_v23, 16  ;;  %v3091_v47 = vld [vmem:[#allocation2 + $0xd0] sm:$0x1e]  ;;  %v5186_v14 = vcombine.low %v3092_v56, %v3092_v56 }
 0x1a7   : > { %v3064_v36 = vsel %vm1183_vm15, %v3054_v41, %v7617_v19  ;;  %v3490_v27 = vpop.permute.xlu1 %3489  ;;  %v3501_v1 = vsel %vm1170_vm14, %v5238_v50, %v3450_v21  ;;  %v2665_v19 = vshrl.u32 %v5108_v63, 16  ;;  %v2685_v20 = vor.u32 %v2684_v31, %v2681_v8 }
 0x1a8   : > { %v3073_v48 = vsel %vm1192_vm0, %v3064_v36, %v3044_v13  ;;  %v3840_v13 = vsel %vm1170_vm14, %v5987_v43, %v3811_v17  ;;  %v2676_v29 = vrot.slane %v2674_v15, 5  ;;  %v2690_v42 = vrot.slane %v2688_v2, 5 }
 0x1a9   : > { %4509 = vmatmul.mubr.bf16.gmra.mrb[20].mxu0 %v3073_v48  ;;  %v2667_v12 = vrot.slane %v2665_v19, 4  ;;  %v2686_v9 = vrot.slane %v2685_v20, 4  ;;  %v5184_v51 = vcombine.low %v3091_v47, %v3091_v47  ;;  %v5185_v41 = vcombine.high %v3091_v47, %v3091_v47 }
 0x1aa   : > { %v5187_v3 = vcombine.high %v3092_v56, %v3092_v56  ;;  %v5112_v0 = vcombine.low %v2566_v57, %v2566_v57  ;;  %v5114_v36 = vcombine.low %v2567_v35, %v2567_v35  ;;  %v5195_v4 = vrot.slane %v5186_v14, 9 }
 0x1ab   : > { %v2671_v18 = vor.u32 %v2670_v53, %v2667_v12  ;;  %v2691_v52 = vsel %vm6419_vm12, %v2686_v9, %v2690_v42  ;;  %v3159_v16 = vrot.slane %v5185_v41, 5  ;;  %v5115_v19 = vcombine.high %v2567_v35, %v2567_v35  ;;  %v6002_v53 = vld [vmem:[#allocation2 + $0xd0] ss:$8 sps:$4 sm:$0xff]   ;;  %v6003_v9 = vld [vmem:[#allocation2 + $0xe0] ss:$8 sps:$4 sm:$0xff]  }
 0x1ac   : > { %v3470_v59 = vpop.permute.xlu0 %3469  ;;  %v3831_v38 = vpop.permute.xlu1 %3830  ;;  %v3163_v21 = vrot.slane %v5187_v3, 5  ;;  %v2693_v48 = vshrl.u32 %v5112_v0, 16  ;;  %v2696_v61 = vshll.u32 %v5112_v0, 16  ;;  %v2707_v63 = vshrl.u32 %v5114_v36, 16 }
 0x1ad   : > { %v3510_v11 = vsel %vm1183_vm15, %v3501_v1, %v3470_v59  ;;  %v3851_v34 = vsel %vm1183_vm15, %v3840_v13, %v3831_v38  ;;  %v2672_v26 = vrot.slane %v2671_v18, 4  ;;  %v2710_v22 = vshll.u32 %v5114_v36, 16 }
 0x1ae   : > { %v3520_v58 = vsel %vm1192_vm0, %v3510_v11, %v3490_v27  ;;  %3862 = vst.msk [vmem:[#allocation3 + $0x30] sm:$0xff] %vm1192_vm0, %v3851_v34  ;;  %v3164_v50 = vsel %vm6228_vm5, %v5195_v4, %v3163_v21  ;;  %v5113_v1 = vcombine.high %v2566_v57, %v2566_v57  ;;  %v2695_v46 = vrot.slane %v2693_v48, 4 }
 0x1af   : > { %4516 = vmatprep.mubr.bf16.mxu0 %v3520_v58  ;;  %v2677_v62 = vsel %vm6419_vm12, %v2672_v26, %v2676_v29  ;;  %v2698_v7 = vrot.slane %v2696_v61, 5  ;;  %v2709_v59 = vrot.slane %v2707_v63, 4  ;;  %v2712_v13 = vrot.slane %v2710_v22, 5 }
 0x1b0   : > { %v3026_v24 = vpop.permute.xlu0 %3025  ;;  %v5158_v39 = vcombine.low %v2677_v62, %v2691_v52  ;;  %v2702_v40 = vshll.u32 %v5113_v1, 16  ;;  %v2716_v12 = vshll.u32 %v5115_v19, 16 }
 0x1b1   : > { %v2699_v34 = vor.u32 %v2698_v7, %v2695_v46  ;;  %v2713_v23 = vor.u32 %v2712_v13, %v2709_v59 }
 0x1b2   : > { %v3057_v37 = vsel %vm1170_vm14, %v5158_v39, %v7643_v6  ;;  %v5194_v6 = vrot.slane %v5184_v51, 9  ;;  %v2704_v15 = vrot.slane %v2702_v40, 5  ;;  %v2718_v20 = vrot.slane %v2716_v12, 5 }
 0x1b3   : > { %v3066_v49 = vsel %vm1183_vm15, %v3057_v37, %v3026_v24  ;;  %v2700_v24 = vrot.slane %v2699_v34, 4  ;;  %v2714_v18 = vrot.slane %v2713_v23, 4 }
 0x1b4   : > { %v3160_v27 = vsel %vm6228_vm5, %v5194_v6, %v3159_v16 }
 0x1b5   : > { %v3872_v10 = vld [vmem:[#allocation3 + $0x30] sm:$0xff]  ;;  %v3813_v28 = vpop.permute.xlu0 %3812  ;;  %v5239_v60 = vcombine.low %v3160_v27, %v3164_v50  ;;  %v2719_v26 = vsel %vm6419_vm12, %v2714_v18, %v2718_v20 }
 0x1b6   : > { %5573 = vmatprep.mubr.msk.bf16.mxu1 %vm1192_vm0, %v3872_v10  ;;  %v3843_v45 = vsel %vm1170_vm14, %v5990_v55, %v3813_v28  ;;  %v2705_v28 = vsel %vm6419_vm12, %v2700_v24, %v2704_v15 }
 0x1ba   : > { %v3833_v32 = vpop.permute.xlu1 %3832 }
 0x1bb   : > { %v3854_v30 = vsel %vm1183_vm15, %v3843_v45, %v3833_v32  ;;  %v5159_v45 = vcombine.low %v2705_v28, %v2719_v26 }
 0x1bc   : > { %3863 = vst.msk [vmem:[#allocation3 + $0x68] sm:$0xff] %vm1192_vm0, %v3854_v30 }
 0x1c3   : > { %v3879_v33 = vld [vmem:[#allocation3 + $0x68] sm:$0xff]  ;;  %v3000_v44 = vpop.permute.xlu1 %2999 }
 0x1c4   : > { %v3046_v5 = vpop.permute.xlu0 %3045  ;;  %5574 = vmatmul.mubr.msk.bf16.vlgmr.msra.gmra.mrb[16].mxu1 %vm1192_vm0, %v3879_v33  ;;  %v3060_v52 = vsel %vm1170_vm14, %v5159_v45, %v3000_v44 }
 0x1c5   : > { %v3076_v17 = vsel %vm1192_vm0, %v3066_v49, %v3046_v5 }
 0x1c6   : > { %4517 = vmatmul.mubr.bf16.gmra.mrb[24].mxu0 %v3076_v17 }
 0x1d8   : > { %v3452_v43 = vpop.permute.xlu0 %3451 }
 0x1d9   : > { %v3504_v38 = vsel %vm1170_vm14, %v5239_v60, %v3452_v43 }
 0x1e3   : > { %v3815_v11 = vpop.permute.xlu1 %3814 }
 0x1e4   : > { %v3846_v55 = vsel %vm1170_vm14, %v6002_v53, %v3815_v11 }
 0x1e5   : > { %v3472_v58 = vpop.permute.xlu0 %3471 }
 0x1e6   : > { %v3512_v25 = vsel %vm1183_vm15, %v3504_v38, %v3472_v58 }
 0x1e7   : > { %v3492_v8 = vpop.permute.xlu1 %3491 }
 0x1e8   : > { %v3523_v31 = vsel %vm1192_vm0, %v3512_v25, %v3492_v8 }
 0x1e9   : > { %4524 = vmatprep.mubr.bf16.mxu0 %v3523_v31  ;;  %v3028_v2 = vpop.permute.xlu0 %3027 }
 0x1ea   : > { %v3068_v37 = vsel %vm1183_vm15, %v3060_v52, %v3028_v2 }
 0x1eb   : > { %v3835_v10 = vpop.permute.xlu1 %3834 }
 0x1ec   : > { %v3857_v29 = vsel %vm1183_vm15, %v3846_v55, %v3835_v10 }
 0x1ed   : > { %3864 = vst.msk [vmem:[#allocation3 + $0xa0] sm:$0xff] %vm1192_vm0, %v3857_v29 }
 0x1ef   : > { %v3837_v42 = vpop.permute.xlu1 %3836 }
 0x1f1   : > { %v3817_v32 = vpop.permute.xlu0 %3816 }
 0x1f2   : > { %v3849_v30 = vsel %vm1170_vm14, %v6003_v9, %v3817_v32 }
 0x1f3   : > { %v3860_v62 = vsel %vm1183_vm15, %v3849_v30, %v3837_v42 }
 0x1f4   : > { %3865 = vst.msk [vmem:[#allocation3 + $0xd8] sm:$0xff] %vm1192_vm0, %v3860_v62  ;;  %v3886_v39 = vld [vmem:[#allocation3 + $0xa0] sm:$0xff] }
 0x1f5   : > { %5577 = vmatprep.mubr.msk.bf16.mxu1 %vm1192_vm0, %v3886_v39 }
 0x1f7   : > { %v3048_v33 = vpop.permute.xlu0 %3047 }
 0x1f8   : > { %v3079_v54 = vsel %vm1192_vm0, %v3068_v37, %v3048_v33 }
 0x1f9   : > { %4525 = vmatmul.mubr.bf16.gmra.mrb[28].mxu0 %v3079_v54 }
 0x1fb   : > { %v3893_v49 = vld [vmem:[#allocation3 + $0xd8] sm:$0xff] }
 0x1fc   : > { %5578 = vmatmul.mubr.msk.bf16.gmra.mrb[20].mxu1 %vm1192_vm0, %v3893_v49 }
 0x232   : > { %v5487_v5 = vpop.f32.mrb[0].mxu1 }
 0x233   : > { %v5488_v17 = vpop.f32.mrb[1].mxu1 }
 0x234   : > { %v5489_v47 = vadd.f32 %v5488_v17, %v5487_v5  ;;  %v5490_v56 = vpop.f32.mrb[2].mxu1 }
 0x235   : > { %v5447_v57 = vpop.f32.mrb[0].mxu0  ;;  %v5491_v35 = vpop.f32.mrb[3].mxu1 }
 0x236   : > { %v5448_v51 = vpop.f32.mrb[1].mxu0  ;;  %v5492_v41 = vadd.f32 %v5491_v35, %v5490_v56 }
 0x237   : > { %v5449_v14 = vadd.f32 %v5448_v51, %v5447_v57  ;;  %v5450_v3 = vpop.f32.mrb[2].mxu0 }
 0x238   : > { %v5451_v0 = vpop.f32.mrb[3].mxu0 }
 0x239   : > { %v4438_v36 = vadd.f32 %v5489_v47, %v5449_v14  ;;  %v5452_v6 = vadd.f32 %v5451_v0, %v5450_v3 }
 0x23b   : > { %v4441_v16 = vadd.f32 %v5492_v41, %v5452_v6 }
 0x251   : > { %v5453_v4 = vpop.f32.mrb[4].mxu0 }
 0x252   : > { %v5454_v21 = vpop.f32.mrb[5].mxu0 }
 0x253   : > { %v5455_v48 = vadd.f32 %v5454_v21, %v5453_v4  ;;  %v5456_v61 = vpop.f32.mrb[6].mxu0 }
 0x254   : > { %v5457_v63 = vpop.f32.mrb[7].mxu0 }
 0x255   : > { %v5458_v22 = vadd.f32 %v5457_v63, %v5456_v61 }
 0x259   : > { %v5459_v44 = vpop.f32.mrb[8].mxu0 }
 0x25a   : > { %v5460_v27 = vpop.f32.mrb[9].mxu0 }
 0x25b   : > { %v5461_v50 = vadd.f32 %v5460_v27, %v5459_v44  ;;  %v5462_v43 = vpop.f32.mrb[10].mxu0 }
 0x25c   : > { %v5463_v1 = vpop.f32.mrb[11].mxu0 }
 0x25d   : > { %v5464_v19 = vadd.f32 %v5463_v1, %v5462_v43  ;;  %v5493_v60 = vpop.f32.mrb[4].mxu1 }
 0x25e   : > { %v5494_v46 = vpop.f32.mrb[5].mxu1 }
 0x25f   : > { %v5495_v7 = vadd.f32 %v5494_v46, %v5493_v60  ;;  %v5496_v59 = vpop.f32.mrb[6].mxu1 }
 0x260   : > { %v5497_v11 = vpop.f32.mrb[7].mxu1 }
 0x261   : > { %v5465_v13 = vpop.f32.mrb[12].mxu0  ;;  %v4446_v58 = vadd.f32 %v5495_v7, %v5455_v48  ;;  %v5498_v34 = vadd.f32 %v5497_v11, %v5496_v59 }
 0x262   : > { %v5466_v38 = vpop.f32.mrb[13].mxu0 }
 0x263   : > { %v5467_v40 = vadd.f32 %v5466_v38, %v5465_v13  ;;  %v5468_v23 = vpop.f32.mrb[14].mxu0  ;;  %v4449_v53 = vadd.f32 %v5498_v34, %v5458_v22 }
 0x264   : > { %v5469_v12 = vpop.f32.mrb[15].mxu0 }
 0x265   : > { %v5470_v25 = vadd.f32 %v5469_v12, %v5468_v23  ;;  %v5499_v8 = vpop.f32.mrb[8].mxu1 }
 0x266   : > { %v5500_v31 = vpop.f32.mrb[9].mxu1 }
 0x267   : > { %v5501_v24 = vadd.f32 %v5500_v31, %v5499_v8  ;;  %v5502_v15 = vpop.f32.mrb[10].mxu1 }
 0x268   : > { %v5503_v18 = vpop.f32.mrb[11].mxu1 }
 0x269   : > { %v4454_v20 = vadd.f32 %v5501_v24, %v5461_v50  ;;  %v5504_v2 = vadd.f32 %v5503_v18, %v5502_v15 }
 0x26b   : > { %v4457_v55 = vadd.f32 %v5504_v2, %v5464_v19 }
 0x26e   : > { %v5527_v10 = vpop.f32.mrb[16].mxu0 }
 0x26f   : > { %v5528_v29 = vpop.f32.mrb[17].mxu0 }
 0x270   : > { %v5529_v28 = vadd.f32 %v5528_v29, %v5527_v10  ;;  %v5530_v26 = vpop.f32.mrb[18].mxu0 }
 0x271   : > { %v5531_v9 = vpop.f32.mrb[19].mxu0 }
 0x272   : > { %v5532_v42 = vadd.f32 %v5531_v9, %v5530_v26  ;;  %v4503_v45 = vadd.f32 %v5529_v28, %v4438_v36  ;;  %v5505_v32 = vpop.f32.mrb[12].mxu1 }
 0x273   : > { %v5506_v30 = vpop.f32.mrb[13].mxu1 }
 0x274   : > { %v4506_v62 = vadd.f32 %v5532_v42, %v4441_v16  ;;  %v5507_v52 = vadd.f32 %v5506_v30, %v5505_v32  ;;  %v5508_v39 = vpop.f32.mrb[14].mxu1 }
 0x275   : > { %v5509_v37 = vpop.f32.mrb[15].mxu1 }
 0x276   : > { %v4462_v33 = vadd.f32 %v5507_v52, %v5467_v40  ;;  %v5510_v54 = vadd.f32 %v5509_v37, %v5508_v39 }
 0x278   : > { %v7701_v49 = vadd.f32 %v5510_v54, %v5470_v25 }
 0x27c   : > { %v5533_v5 = vpop.f32.mrb[20].mxu0 }
 0x27d   : > { %v5534_v17 = vpop.f32.mrb[21].mxu0 }
 0x27e   : > { %v5535_v47 = vadd.f32 %v5534_v17, %v5533_v5  ;;  %v5536_v56 = vpop.f32.mrb[22].mxu0 }
 0x27f   : > { %v5537_v57 = vpop.f32.mrb[23].mxu0 }
 0x280   : > { %v5538_v35 = vadd.f32 %v5537_v57, %v5536_v56  ;;  %v4511_v51 = vadd.f32 %v5535_v47, %v4446_v58 }
 0x282   : > { %v4514_v41 = vadd.f32 %v5538_v35, %v4449_v53 }
 0x297   : > { %v5575_v14 = vpop.f32.mrb[16].mxu1 }
 0x298   : > { %v4576_v3 = vadd.f32 %v5575_v14, %v4511_v51  ;;  %v4567_v0 = vpop.f32.mrb[17].mxu1 }
 0x299   : > { %v5539_v36 = vpop.f32.mrb[24].mxu0  ;;  %v4568_v6 = vadd.f32 %v4567_v0, %v4503_v45  ;;  %v5576_v16 = vpop.f32.mrb[18].mxu1 }
 0x29a   : > { %v4600_v4 = vpack.c.bf16 %v4576_v3, %v4576_v3  ;;  %v5540_v21 = vpop.f32.mrb[25].mxu0  ;;  %v4579_v48 = vadd.f32 %v5576_v16, %v4514_v41  ;;  %v4570_v61 = vpop.f32.mrb[19].mxu1  ;;  %v4638_v46 = vmul.f32 %v4576_v3, %v4576_v3  ;;  %v4618_v34 = vsel %vm1170_vm14, %v4576_v3, 0.0 }
 0x29b   : > { %v5541_v63 = vadd.f32 %v5540_v21, %v5539_v36  ;;  %v4598_v22 = vpack.c.bf16 %v4568_v6, %v4568_v6  ;;  %v5542_v44 = vpop.f32.mrb[26].mxu0  ;;  %v4636_v43 = vmul.f32 %v4568_v6, %v4568_v6  ;;  %v4571_v19 = vadd.f32 %v4570_v61, %v4506_v62 }
 0x29c   : > { %4609 = vst.msk [vmem:[%s6132_s15 + $0x8] sm:$0xf] %vm4606_vm1, %v4600_v4  ;;  %v4601_v27 = vpack.c.bf16 %v4579_v48, %v4579_v48  ;;  %v5543_v50 = vpop.f32.mrb[27].mxu0  ;;  %v4615_v7 = vsel %vm1170_vm14, %v4568_v6, 0.0  ;;  %v4639_v23 = vmul.f32 %v4579_v48, %v4579_v48  ;;  %v4647_v8 = vsel %vm1170_vm14, %v4638_v46, 0.0 }
 0x29d   : > { %4607 = vst.msk [vmem:[%s6132_s15] sm:$0xf] %vm4606_vm1, %v4598_v22  ;;  %v5544_v1 = vadd.f32 %v5543_v50, %v5542_v44  ;;  %v4519_v60 = vadd.f32 %v5541_v63, %v4454_v20  ;;  %v4599_v59 = vpack.c.bf16 %v4571_v19, %v4571_v19  ;;  %v4616_v13 = vsel %vm1170_vm14, %v4571_v19, 0.0 }
 0x29e   : > { %4610 = vst.msk [vmem:[%s6132_s15 + $0xc] sm:$0xf] %vm4606_vm1, %v4601_v27  ;;  %v4637_v11 = vmul.f32 %v4571_v19, %v4571_v19  ;;  %v4617_v58 = vadd.f32 %v4616_v13, %v4615_v7  ;;  %v4644_v40 = vsel %vm1170_vm14, %v4636_v43, 0.0  ;;  %v4620_v31 = vsel %vm1170_vm14, %v4579_v48, 0.0 }
 0x29f   : > { %v4522_v38 = vadd.f32 %v5544_v1, %v4457_v55  ;;  %4608 = vst.msk [vmem:[%s6132_s15 + $0x4] sm:$0xf] %vm4606_vm1, %v4599_v59  ;;  %v4649_v18 = vsel %vm1170_vm14, %v4639_v23, 0.0 }
 0x2a0   : > { %v4645_v12 = vsel %vm1170_vm14, %v4637_v11, 0.0  ;;  %v4619_v53 = vadd.f32 %v4618_v34, %v4617_v58  ;;  %v4667_v34 = vld [vmem:[%s6127_s12] sm:$0x3] }
 0x2a1   : > { %v4646_v25 = vadd.f32 %v4645_v12, %v4644_v40 }
 0x2a2   : > { %v4621_v15 = vadd.f32 %v4620_v31, %v4619_v53 }
 0x2a3   : > { %v4648_v24 = vadd.f32 %v4647_v8, %v4646_v25 }
 0x2a5   : > { %v4650_v20 = vadd.f32 %v4649_v18, %v4648_v24 }
 0x2cc   : > { %v5545_v2 = vpop.f32.mrb[28].mxu0 }
 0x2cd   : > { %v5546_v55 = vpop.f32.mrb[29].mxu0 }
 0x2ce   : > { %v5547_v10 = vadd.f32 %v5546_v55, %v5545_v2  ;;  %v5548_v29 = vpop.f32.mrb[30].mxu0 }
 0x2cf   : > { %v5549_v28 = vpop.f32.mrb[31].mxu0  ;;  %v5579_v26 = vpop.f32.mrb[20].mxu1 }
 0x2d0   : > { %v4527_v9 = vadd.f32 %v5547_v10, %v4462_v33  ;;  %v5550_v42 = vadd.f32 %v5549_v28, %v5548_v29  ;;  %v4583_v45 = vpop.f32.mrb[21].mxu1 }
 0x2d1   : > { %v4584_v30 = vadd.f32 %v4583_v45, %v4519_v60  ;;  %v5580_v62 = vpop.f32.mrb[22].mxu1 }
 0x2d2   : > { %v4592_v32 = vadd.f32 %v5579_v26, %v4527_v9  ;;  %v4530_v52 = vadd.f32 %v5550_v42, %v7701_v49  ;;  %v4586_v39 = vpop.f32.mrb[23].mxu1 }
 0x2d3   : > { %v4602_v54 = vpack.c.bf16 %v4584_v30, %v4584_v30  ;;  %v4622_v5 = vsel %vm1170_vm14, %v4584_v30, 0.0  ;;  %v4640_v47 = vmul.f32 %v4584_v30, %v4584_v30  ;;  %v4587_v57 = vadd.f32 %v4586_v39, %v4522_v38 }
 0x2d4   : > { %v4604_v37 = vpack.c.bf16 %v4592_v32, %v4592_v32  ;;  %v4623_v17 = vadd.f32 %v4622_v5, %v4621_v15  ;;  %v4595_v56 = vadd.f32 %v5580_v62, %v4530_v52  ;;  %v4642_v33 = vmul.f32 %v4592_v32, %v4592_v32 }
 0x2d5   : > { %4611 = vst.msk [vmem:[%s6132_s15 + $0x10] sm:$0xf] %vm4606_vm1, %v4602_v54  ;;  %v4651_v35 = vsel %vm1170_vm14, %v4640_v47, 0.0  ;;  %v4603_v41 = vpack.c.bf16 %v4587_v57, %v4587_v57  ;;  %v4624_v14 = vsel %vm1170_vm14, %v4587_v57, 0.0  ;;  %v4641_v3 = vmul.f32 %v4587_v57, %v4587_v57 }
 0x2d6   : > { %4613 = vst.msk [vmem:[%s6132_s15 + $0x18] sm:$0xf] %vm4606_vm1, %v4604_v37  ;;  %v4605_v51 = vpack.c.bf16 %v4595_v56, %v4595_v56  ;;  %v4652_v49 = vadd.f32 %v4651_v35, %v4650_v20  ;;  %v4625_v0 = vadd.f32 %v4624_v14, %v4623_v17  ;;  %v4643_v36 = vmul.f32 %v4595_v56, %v4595_v56 }
 0x2d7   : > { %4612 = vst.msk [vmem:[%s6132_s15 + $0x14] sm:$0xf] %vm4606_vm1, %v4603_v41  ;;  %v4626_v6 = vsel %vm1170_vm14, %v4592_v32, 0.0  ;;  %v4653_v16 = vsel %vm1170_vm14, %v4641_v3, 0.0  ;;  %v4628_v48 = vsel %vm1170_vm14, %v4595_v56, 0.0  ;;  %v4655_v61 = vsel %vm1170_vm14, %v4642_v33, 0.0 }
 0x2d8   : > { %4614 = vst.msk [vmem:[%s6132_s15 + $0x1c] sm:$0xf] %vm4606_vm1, %v4605_v51  ;;  %v4627_v4 = vadd.f32 %v4626_v6, %v4625_v0  ;;  %v4654_v21 = vadd.f32 %v4653_v16, %v4652_v49  ;;  %v4657_v44 = vsel %vm1170_vm14, %v4643_v36, 0.0 }
 0x2da   : > { %v4629_v63 = vadd.f32 %v4628_v48, %v4627_v4  ;;  %v4656_v22 = vadd.f32 %v4655_v61, %v4654_v21 }
 0x2dc   : > { %v4630_v27 = vrot.slane %v4629_v63, 4  ;;  %v4658_v50 = vadd.f32 %v4657_v44, %v4656_v22 }
 0x2de   : > { %v4631_v43 = vadd.f32 %v4630_v27, %v4629_v63  ;;  %v4659_v1 = vrot.slane %v4658_v50, 4 }
 0x2e0   : > { %v4632_v19 = vrot.slane %v4631_v43, 2  ;;  %v4660_v60 = vadd.f32 %v4659_v1, %v4658_v50 }
 0x2e2   : > { %v4633_v46 = vadd.f32 %v4632_v19, %v4631_v43  ;;  %v4661_v7 = vrot.slane %v4660_v60, 2 }
 0x2e4   : > { %v4634_v59 = vrot.slane %v4633_v46, 1  ;;  %v4662_v13 = vadd.f32 %v4661_v7, %v4660_v60 }
 0x2e6   : > { %v4663_v11 = vrot.slane %v4662_v13, 1  ;;  %v4635_v38 = vadd.f32 %v4634_v59, %v4633_v46 }
 0x2e8   : > { %v4664_v58 = vadd.f32 %v4663_v11, %v4662_v13 }
 0x2ea   : > { %v4666_v40 = vsel %vm4665_vm2, %v4635_v38, %v4664_v58 }
 0x2eb   : > { %v4668_v23 = vadd.f32 %v4667_v34, %v4666_v40 }
 0x2ed   : > { %4670 = vst.msk [vmem:[%s6127_s12] sm:$0x3] %vm4669_vm3, %v4668_v23 }
 0x2ee PF: > { %s16_s22 = sadd.s32 1, %s6046_s22   ;;  %s7785_s18 = smov %s6038_s20 }
 0x2ef   : > { %p13_p8 = scmp.ge.s32.totalorder %s16_s22, 10   ;;  %s7786_s19 = smov %s6042_s21 }
 0x2f0   : > { %s7787_s20 = smov %s7790_s23  ;;  %s7788_s21 = smov %s7794_s24 }
 0x2f1   :  { %15 = sbr.rel (!%p13_p8) target bundleno = 3 (0x3), region = 93 }

</bundles_post_ra>
